<compile_context>
chip_gen: v5e
topology: v5e:2x2
jax: 0.10.0
libtpu: 0.0.40
codegen_flags: <defaults>
</compile_context>

<pallas_src>
import jax
import jax.numpy as jnp
from jax import lax
from jax.experimental import pallas as pl
from jax.experimental.pallas import tpu as pltpu

LANE = 128
SUBLANE = 8


def _round_up(x, m):
    return ((x + m - 1) // m) * m


def _vmem_spec():
    return pl.BlockSpec(memory_space=pltpu.MemorySpace.VMEM)


def _any_spec():
    return pl.BlockSpec(memory_space=pl.ANY)


# ---------------------------------------------------------------------------
# Fused decoder kernel (built per static shape configuration)
# ---------------------------------------------------------------------------

def _make_decoder_kernel(T, Bp, layers):
    """layers: ((H, Gs, GW),)*3 — true hidden, gate lane stride, gate block width."""
    (H1, Gs1, GW1), (H2, Gs2, GW2), (H3, Gs3, GW3) = layers

    def layer_norm(x, gamma, beta, H):
        # x: (T*Bp, S) f32 with lanes >= H exactly zero → plain sums are exact.
        mean = jnp.sum(x, axis=-1, keepdims=True) * (1.0 / H)
        if H == x.shape[-1]:
            cent = x - mean
        else:
            mask = lax.broadcasted_iota(jnp.int32, x.shape, 1) < H
            cent = jnp.where(mask, x - mean, 0.0)
        var = jnp.sum(cent * cent, axis=-1, keepdims=True) * (1.0 / H)
        # gamma/beta are zero in padded lanes, so padding stays exactly zero.
        return cent * lax.rsqrt(var + 1e-5) * gamma + beta

    def lstm_scan(get_xpt, w_hh_ref, seq_ref, Gs):
        """Run T LSTM steps. Gate slot s lives in lanes [s*Gs, s*Gs + H);
        gate order (i, f, o, g). Zero h0/c0. Padded gate lanes hold 0 so
        i/f/o = 0.5, g = 0 there → padded lanes of h/c stay exactly zero."""
        h = jnp.zeros((Bp, Gs), jnp.float32)
        c = jnp.zeros((Bp, Gs), jnp.float32)
        for t in range(T):  # fully unrolled — T is small and static
            gates = get_xpt(t) + jnp.dot(h.astype(jnp.bfloat16), w_hh_ref[...],
                                         preferred_element_type=jnp.float32)
            sig = jax.nn.sigmoid(gates)            # one EUP op over whole block
            g_g = jnp.tanh(gates[:, 3 * Gs:4 * Gs])
            i_g = sig[:, 0 * Gs:1 * Gs]
            f_g = sig[:, 1 * Gs:2 * Gs]
            o_g = sig[:, 2 * Gs:3 * Gs]
            c = f_g * c + i_g * g_g
            h = o_g * jnp.tanh(c)
            seq_ref[t * Bp:(t + 1) * Bp, :] = h    # sublane-aligned scratch store

    def kernel(lat_ref,
               w_ih1, w_hh1, b1, g1, be1,
               w_ih2, w_hh2, b2, g2, be2,
               w_ih3_hbm, w_hh3_hbm, b3, g3, be3,
               w_out, b_out,
               out_ref,
               xp2_ref, xp3_ref, seq1_ref, seq2_ref, seq3_ref,
               w_ih3_vmem, w_hh3_vmem, dma_sem):
        # Prefetch layer-3 weights HBM->VMEM; overlaps with layers 1-2 compute.
        cp_ih3 = pltpu.make_async_copy(w_ih3_hbm, w_ih3_vmem, dma_sem.at[0])
        cp_hh3 = pltpu.make_async_copy(w_hh3_hbm, w_hh3_vmem, dma_sem.at[1])
        cp_ih3.start()
        cp_hh3.start()

        # ---- rnn1: decoder input is one latent repeated T times -------------
        # → compute the input projection a single time (no tiled input at all).
        xp1 = (jnp.dot(lat_ref[...].astype(jnp.bfloat16), w_ih1[...],
                       preferred_element_type=jnp.float32) + b1[...])
        lstm_scan(lambda t: xp1, w_hh1, seq1_ref, Gs1)
        x1 = layer_norm(seq1_ref[...], g1[...], be1[...], H1)
        # TODO(synk): nn.Dropout(0.4) is identity here (eval-mode semantics).

        # ---- rnn2: hoisted input projection lives in VMEM scratch ------------
        xp2_ref[...] = (jnp.dot(x1.astype(jnp.bfloat16), w_ih2[...],
                                preferred_element_type=jnp.float32) + b2[...])
        lstm_scan(lambda t: xp2_ref[t * Bp:(t + 1) * Bp, :], w_hh2, seq2_ref, Gs2)
        x2 = layer_norm(seq2_ref[...], g2[...], be2[...], H2)

        # ---- rnn3 (weights arrive via the async copies started above) -------
        cp_ih3.wait()
        xp3_ref[...] = (jnp.dot(x2.astype(jnp.bfloat16), w_ih3_vmem[...],
                                preferred_element_type=jnp.float32) + b3[...])
        cp_hh3.wait()
        lstm_scan(lambda t: xp3_ref[t * Bp:(t + 1) * Bp, :], w_hh3_vmem, seq3_ref, Gs3)
        x3 = layer_norm(seq3_ref[...], g3[...], be3[...], H3)

        # ---- output layer (lane-padded output, sliced in the wrapper) -------
        out_ref[...] = (jnp.dot(x3.astype(jnp.bfloat16), w_out[...],
                                preferred_element_type=jnp.float32) + b_out[...])

    return kernel


# ---------------------------------------------------------------------------
# Parameter construction (mirrors PyTorch default init; packed for the kernel)
# ---------------------------------------------------------------------------

def _uniform(key, shape, k):
    return jax.random.uniform(key, shape, jnp.float32, minval=-k, maxval=k)


# Kernel gate order (i, f, o, g)  <-  PyTorch storage order (i, f, g, o).
_GATE_SRC = (0, 1, 3, 2)


def _init_lstm_raw(key, in_dim, hidden):
    k = 1.0 / (hidden ** 0.5)
    k1, k2, k3, k4 = jax.random.split(key, 4)
    # Stored pre-transposed: (in, 4H) / (H, 4H); gate blocks in PyTorch order.
    w_ih = _uniform(k1, (in_dim, 4 * hidden), k)
    w_hh = _uniform(k2, (hidden, 4 * hidden), k)
    b = _uniform(k3, (1, 4 * hidden), k) + _uniform(k4, (1, 4 * hidden), k)   # b_ih + b_hh
    return w_ih, w_hh, b


def _pack_lstm(w_ih, w_hh, b, in_pad, h, gs, gw):
    """Re-block weights so gate slot s occupies lanes [s*gs, s*gs + h); rest zero.
    Weights are stored bf16 (MXU-native); bias stays f32 (added post-matmul)."""
    in_dim = w_ih.shape[0]
    w_ih_p = jnp.zeros((in_pad, gw), jnp.float32)
    w_hh_p = jnp.zeros((gs, gw), jnp.float32)
    b_p = jnp.zeros((1, gw), jnp.float32)
    for slot, src in enumerate(_GATE_SRC):
        w_ih_p = w_ih_p.at[:in_dim, slot * gs:slot * gs + h].set(w_ih[:, src * h:(src + 1) * h])
        w_hh_p = w_hh_p.at[:h, slot * gs:slot * gs + h].set(w_hh[:, src * h:(src + 1) * h])
        b_p = b_p.at[:, slot * gs:slot * gs + h].set(b[:, src * h:(src + 1) * h])
    return w_ih_p.astype(jnp.bfloat16), w_hh_p.astype(jnp.bfloat16), b_p


def init_decoder_params(key, seq_len, input_dim, n_features):
    hidden1 = 8 * input_dim
    hidden2 = 32 * input_dim
    H = [input_dim, hidden1, hidden2]
    GW = [_round_up(4 * h, LANE) for h in H]   # gate block total width (lane-padded)
    GS = [gw // 4 for gw in GW]                # gate lane stride == state width
    Dp0 = _round_up(input_dim, LANE)
    in_pad = [Dp0, GS[0], GS[1]]               # padded input width each layer consumes
    Np = _round_up(n_features, LANE)

    keys = jax.random.split(key, 5)
    in_dims = [input_dim, input_dim, hidden1]
    rnn = []
    for i in range(3):
        raw = _init_lstm_raw(keys[i], in_dims[i], H[i])
        rnn.append(_pack_lstm(*raw, in_pad=in_pad[i], h=H[i], gs=GS[i], gw=GW[i]))

    def ln_pad(h, s):
        gamma = jnp.zeros((1, s), jnp.float32).at[:, :h].set(1.0)
        beta = jnp.zeros((1, s), jnp.float32)
        return gamma, beta

    ln = [ln_pad(h, s) for h, s in zip(H, GS)]

    k_lin = 1.0 / (hidden2 ** 0.5)
    w_out = _uniform(keys[3], (hidden2, n_features), k_lin)
    b_out = _uniform(keys[4], (1, n_features), k_lin)
    w_out_p = (jnp.zeros((GS[2], Np), jnp.float32)
               .at[:hidden2, :n_features].set(w_out)).astype(jnp.bfloat16)
    b_out_p = jnp.zeros((1, Np), jnp.float32).at[:, :n_features].set(b_out)

    return {
        "seq_len": seq_len, "input_dim": input_dim, "n_features": n_features,
        "H": H, "GS": GS, "GW": GW, "Dp0": Dp0, "Np": Np,
        "rnn": rnn, "ln": ln, "out_w": w_out_p, "out_b": b_out_p,
    }


# ---------------------------------------------------------------------------
# Decoder forward (single fused pallas_call)
# ---------------------------------------------------------------------------

def decoder_forward(x, params):
    """x: (B, 1, input_dim) — latent from the encoder (batch_first, like PyTorch)."""
    T = params["seq_len"]
    D = params["input_dim"]
    Nf = params["n_features"]
    H, GS, GW = params["H"], params["GS"], params["GW"]
    Dp0, Np = params["Dp0"], params["Np"]

    B = x.shape[0]
    Bp = _round_up(B, SUBLANE)                        # sublane-pad the batch

    lat = x[:, 0, :]                                  # (B, D) — no jnp.tile needed
    lat_p = jnp.zeros((Bp, Dp0), jnp.float32).at[:B, :D].set(lat)

    kernel = _make_decoder_kernel(
        T, Bp, tuple((H[i], GS[i], GW[i]) for i in range(3)))

    (w_ih1, w_hh1, b1), (w_ih2, w_hh2, b2), (w_ih3, w_hh3, b3) = params["rnn"]
    (g1, be1), (g2, be2), (g3, be3) = params["ln"]

    args = [lat_p,
            w_ih1, w_hh1, b1, g1, be1,
            w_ih2, w_hh2, b2, g2, be2,
            w_ih3, w_hh3, b3, g3, be3,
            params["out_w"], params["out_b"]]

    in_specs = [_vmem_spec()] * len(args)
    in_specs[11] = _any_spec()    # w_ih3 stays in HBM; DMA'd inside the kernel
    in_specs[12] = _any_spec()    # w_hh3 stays in HBM; DMA'd inside the kernel

    y = pl.pallas_call(
        kernel,
        out_shape=jax.ShapeDtypeStruct((T * Bp, Np), jnp.float32),
        in_specs=in_specs,
        out_specs=_vmem_spec(),
        scratch_shapes=[
            pltpu.VMEM((T * Bp, GW[1]), jnp.float32),   # xp2 (hoisted projection)
            pltpu.VMEM((T * Bp, GW[2]), jnp.float32),   # xp3 (hoisted projection)
            pltpu.VMEM((T * Bp, GS[0]), jnp.float32),   # seq1
            pltpu.VMEM((T * Bp, GS[1]), jnp.float32),   # seq2
            pltpu.VMEM((T * Bp, GS[2]), jnp.float32),   # seq3
            pltpu.VMEM((GS[1], GW[2]), jnp.bfloat16),   # w_ih3 VMEM landing buffer
            pltpu.VMEM((GS[2], GW[2]), jnp.bfloat16),   # w_hh3 VMEM landing buffer
            pltpu.SemaphoreType.DMA((2,)),
        ],
    )(*args)

    # Strip sublane/lane padding and restore batch_first (B, T, n_features).
    y = y.reshape(T, Bp, Np)[:, :B, :Nf]
    return jnp.transpose(y, (1, 0, 2))


# ---------------------------------------------------------------------------

if __name__ == "__main__":
    SEQ_LEN = 8
    INPUT_DIM = 4      # -> hidden1 = 32, hidden2 = 128
    N_FEATURES = 3
    BATCH = 2

    key = jax.random.PRNGKey(0)
    k_params, k_x = jax.random.split(key)
    params = init_decoder_params(k_params, SEQ_LEN, INPUT_DIM, N_FEATURES)
    x = jax.random.normal(k_x, (BATCH, 1, INPUT_DIM), jnp.float32)

    out = decoder_forward(x, params)
    out = jax.block_until_ready(out)
    assert out.shape == (BATCH, SEQ_LEN, N_FEATURES), out.shape
    print("KERNEL_OK")
</pallas_src>

<mosaic_0001>
module attributes {stable_mosaic.version = 11 : i64} {
  func.func @kernel(%arg0: memref<8x128xf32, #tpu.memory_space<vmem>>, %arg1: memref<128x128xbf16, #tpu.memory_space<vmem>>, %arg2: memref<32x128xbf16, #tpu.memory_space<vmem>>, %arg3: memref<1x128xf32, #tpu.memory_space<vmem>>, %arg4: memref<1x32xf32, #tpu.memory_space<vmem>>, %arg5: memref<1x32xf32, #tpu.memory_space<vmem>>, %arg6: memref<32x128xbf16, #tpu.memory_space<vmem>>, %arg7: memref<32x128xbf16, #tpu.memory_space<vmem>>, %arg8: memref<1x128xf32, #tpu.memory_space<vmem>>, %arg9: memref<1x32xf32, #tpu.memory_space<vmem>>, %arg10: memref<1x32xf32, #tpu.memory_space<vmem>>, %arg11: memref<32x512xbf16, #tpu.memory_space<any>>, %arg12: memref<128x512xbf16, #tpu.memory_space<any>>, %arg13: memref<1x512xf32, #tpu.memory_space<vmem>>, %arg14: memref<1x128xf32, #tpu.memory_space<vmem>>, %arg15: memref<1x128xf32, #tpu.memory_space<vmem>>, %arg16: memref<128x128xbf16, #tpu.memory_space<vmem>>, %arg17: memref<1x128xf32, #tpu.memory_space<vmem>>, %arg18: memref<64x128xf32, #tpu.memory_space<vmem>>, %arg19: memref<64x128xf32, #tpu.memory_space<vmem>>, %arg20: memref<64x512xf32, #tpu.memory_space<vmem>>, %arg21: memref<64x32xf32, #tpu.memory_space<vmem>>, %arg22: memref<64x32xf32, #tpu.memory_space<vmem>>, %arg23: memref<64x128xf32, #tpu.memory_space<vmem>>, %arg24: memref<32x512xbf16, #tpu.memory_space<vmem>>, %arg25: memref<128x512xbf16, #tpu.memory_space<vmem>>, %arg26: memref<2x!tpu.dma_semaphore, #tpu.memory_space<semaphore_mem>>) attributes {dimension_semantics = [], scalar_prefetch = 0 : i64, scratch_operands = 8 : i64, tpu.core_type = #tpu.core_type<tc>} {
    %c0_i32 = arith.constant 0 : i32
    %0 = tpu.memref_slice %arg26[%c0_i32] : memref<2x!tpu.dma_semaphore, #tpu.memory_space<semaphore_mem>> -> memref<1x!tpu.dma_semaphore, #tpu.memory_space<semaphore_mem>>
    %1 = tpu.memref_squeeze %0 : memref<1x!tpu.dma_semaphore, #tpu.memory_space<semaphore_mem>> -> memref<!tpu.dma_semaphore, #tpu.memory_space<semaphore_mem>>
    tpu.enqueue_dma source(%arg11 : memref<32x512xbf16, #tpu.memory_space<any>>) target(%arg24 : memref<32x512xbf16, #tpu.memory_space<vmem>>) target_semaphore(%1 : memref<!tpu.dma_semaphore, #tpu.memory_space<semaphore_mem>>)
    %c1_i32 = arith.constant 1 : i32
    %2 = tpu.memref_slice %arg26[%c1_i32] : memref<2x!tpu.dma_semaphore, #tpu.memory_space<semaphore_mem>> -> memref<1x!tpu.dma_semaphore, #tpu.memory_space<semaphore_mem>>
    %3 = tpu.memref_squeeze %2 : memref<1x!tpu.dma_semaphore, #tpu.memory_space<semaphore_mem>> -> memref<!tpu.dma_semaphore, #tpu.memory_space<semaphore_mem>>
    tpu.enqueue_dma source(%arg12 : memref<128x512xbf16, #tpu.memory_space<any>>) target(%arg25 : memref<128x512xbf16, #tpu.memory_space<vmem>>) target_semaphore(%3 : memref<!tpu.dma_semaphore, #tpu.memory_space<semaphore_mem>>)
    %c0 = arith.constant 0 : index
    %c0_0 = arith.constant 0 : index
    %4 = vector.load %arg0[%c0, %c0_0] : memref<8x128xf32, #tpu.memory_space<vmem>>, vector<8x128xf32>
    %5 = arith.truncf %4 : vector<8x128xf32> to vector<8x128xbf16>
    %c0_1 = arith.constant 0 : index
    %c0_2 = arith.constant 0 : index
    %6 = vector.load %arg1[%c0_1, %c0_2] : memref<128x128xbf16, #tpu.memory_space<vmem>>, vector<128x128xbf16>
    %cst = arith.constant dense<0.000000e+00> : vector<8x128xf32>
    %7 = tpu.matmul %5, %6, %cst {dimension_numbers = #tpu.dot_dimension_numbers<[1], [0], [0], [1], [0, 0, 1, 1], [], []>} : vector<8x128xbf16>, vector<128x128xbf16>, vector<8x128xf32> -> vector<8x128xf32>
    %c0_3 = arith.constant 0 : index
    %c0_4 = arith.constant 0 : index
    %8 = vector.load %arg3[%c0_3, %c0_4] : memref<1x128xf32, #tpu.memory_space<vmem>>, vector<1x128xf32>
    %9 = vector.broadcast %8 : vector<1x128xf32> to vector<8x128xf32>
    %10 = arith.addf %7, %9 : vector<8x128xf32>
    %cst_5 = arith.constant 0.000000e+00 : f32
    %11 = vector.broadcast %cst_5 : f32 to vector<8x32xf32>
    %cst_6 = arith.constant 0.000000e+00 : f32
    %12 = vector.broadcast %cst_6 : f32 to vector<8x32xf32>
    %13 = arith.truncf %11 : vector<8x32xf32> to vector<8x32xbf16>
    %c0_7 = arith.constant 0 : index
    %c0_8 = arith.constant 0 : index
    %14 = vector.load %arg2[%c0_7, %c0_8] : memref<32x128xbf16, #tpu.memory_space<vmem>>, vector<32x128xbf16>
    %cst_9 = arith.constant dense<0.000000e+00> : vector<8x128xf32>
    %15 = tpu.matmul %13, %14, %cst_9 {dimension_numbers = #tpu.dot_dimension_numbers<[1], [0], [0], [1], [0, 0, 1, 1], [], []>} : vector<8x32xbf16>, vector<32x128xbf16>, vector<8x128xf32> -> vector<8x128xf32>
    %16 = arith.addf %10, %15 : vector<8x128xf32>
    %17 = arith.negf %16 : vector<8x128xf32>
    %18 = math.exp %17 : vector<8x128xf32>
    %cst_10 = arith.constant 1.000000e+00 : f32
    %19 = vector.broadcast %cst_10 : f32 to vector<8x128xf32>
    %20 = arith.addf %19, %18 : vector<8x128xf32>
    %21 = arith.divf %19, %20 : vector<8x128xf32>
    %22 = vector.extract_strided_slice %16 {offsets = [0, 96], sizes = [8, 32], strides = [1, 1]} : vector<8x128xf32> to vector<8x32xf32>
    %23 = math.tanh %22 : vector<8x32xf32>
    %24 = vector.extract_strided_slice %21 {offsets = [0, 0], sizes = [8, 32], strides = [1, 1]} : vector<8x128xf32> to vector<8x32xf32>
    %25 = vector.extract_strided_slice %21 {offsets = [0, 32], sizes = [8, 32], strides = [1, 1]} : vector<8x128xf32> to vector<8x32xf32>
    %26 = vector.extract_strided_slice %21 {offsets = [0, 64], sizes = [8, 32], strides = [1, 1]} : vector<8x128xf32> to vector<8x32xf32>
    %27 = arith.mulf %25, %12 : vector<8x32xf32>
    %28 = arith.mulf %24, %23 : vector<8x32xf32>
    %29 = arith.addf %27, %28 : vector<8x32xf32>
    %30 = math.tanh %29 : vector<8x32xf32>
    %31 = arith.mulf %26, %30 : vector<8x32xf32>
    %c0_11 = arith.constant 0 : index
    %c0_12 = arith.constant 0 : index
    %32 = vector.load %arg21[%c0_11, %c0_12] : memref<64x32xf32, #tpu.memory_space<vmem>>, vector<8x32xf32>
    tpu.vector_store %arg21[%c0_11, %c0_12], %31 {strides = array<i32>} : memref<64x32xf32, #tpu.memory_space<vmem>>, vector<8x32xf32>,
    %33 = arith.truncf %31 : vector<8x32xf32> to vector<8x32xbf16>
    %c0_13 = arith.constant 0 : index
    %c0_14 = arith.constant 0 : index
    %34 = vector.load %arg2[%c0_13, %c0_14] : memref<32x128xbf16, #tpu.memory_space<vmem>>, vector<32x128xbf16>
    %cst_15 = arith.constant dense<0.000000e+00> : vector<8x128xf32>
    %35 = tpu.matmul %33, %34, %cst_15 {dimension_numbers = #tpu.dot_dimension_numbers<[1], [0], [0], [1], [0, 0, 1, 1], [], []>} : vector<8x32xbf16>, vector<32x128xbf16>, vector<8x128xf32> -> vector<8x128xf32>
    %36 = arith.addf %10, %35 : vector<8x128xf32>
    %37 = arith.negf %36 : vector<8x128xf32>
    %38 = math.exp %37 : vector<8x128xf32>
    %cst_16 = arith.constant 1.000000e+00 : f32
    %39 = vector.broadcast %cst_16 : f32 to vector<8x128xf32>
    %40 = arith.addf %39, %38 : vector<8x128xf32>
    %41 = arith.divf %39, %40 : vector<8x128xf32>
    %42 = vector.extract_strided_slice %36 {offsets = [0, 96], sizes = [8, 32], strides = [1, 1]} : vector<8x128xf32> to vector<8x32xf32>
    %43 = math.tanh %42 : vector<8x32xf32>
    %44 = vector.extract_strided_slice %41 {offsets = [0, 0], sizes = [8, 32], strides = [1, 1]} : vector<8x128xf32> to vector<8x32xf32>
    %45 = vector.extract_strided_slice %41 {offsets = [0, 32], sizes = [8, 32], strides = [1, 1]} : vector<8x128xf32> to vector<8x32xf32>
    %46 = vector.extract_strided_slice %41 {offsets = [0, 64], sizes = [8, 32], strides = [1, 1]} : vector<8x128xf32> to vector<8x32xf32>
    %47 = arith.mulf %45, %29 : vector<8x32xf32>
    %48 = arith.mulf %44, %43 : vector<8x32xf32>
    %49 = arith.addf %47, %48 : vector<8x32xf32>
    %50 = math.tanh %49 : vector<8x32xf32>
    %51 = arith.mulf %46, %50 : vector<8x32xf32>
    %c8 = arith.constant 8 : index
    %c0_17 = arith.constant 0 : index
    %52 = vector.load %arg21[%c8, %c0_17] : memref<64x32xf32, #tpu.memory_space<vmem>>, vector<8x32xf32>
    tpu.vector_store %arg21[%c8, %c0_17], %51 {strides = array<i32>} : memref<64x32xf32, #tpu.memory_space<vmem>>, vector<8x32xf32>,
    %53 = arith.truncf %51 : vector<8x32xf32> to vector<8x32xbf16>
    %c0_18 = arith.constant 0 : index
    %c0_19 = arith.constant 0 : index
    %54 = vector.load %arg2[%c0_18, %c0_19] : memref<32x128xbf16, #tpu.memory_space<vmem>>, vector<32x128xbf16>
    %cst_20 = arith.constant dense<0.000000e+00> : vector<8x128xf32>
    %55 = tpu.matmul %53, %54, %cst_20 {dimension_numbers = #tpu.dot_dimension_numbers<[1], [0], [0], [1], [0, 0, 1, 1], [], []>} : vector<8x32xbf16>, vector<32x128xbf16>, vector<8x128xf32> -> vector<8x128xf32>
    %56 = arith.addf %10, %55 : vector<8x128xf32>
    %57 = arith.negf %56 : vector<8x128xf32>
    %58 = math.exp %57 : vector<8x128xf32>
    %cst_21 = arith.constant 1.000000e+00 : f32
    %59 = vector.broadcast %cst_21 : f32 to vector<8x128xf32>
    %60 = arith.addf %59, %58 : vector<8x128xf32>
    %61 = arith.divf %59, %60 : vector<8x128xf32>
    %62 = vector.extract_strided_slice %56 {offsets = [0, 96], sizes = [8, 32], strides = [1, 1]} : vector<8x128xf32> to vector<8x32xf32>
    %63 = math.tanh %62 : vector<8x32xf32>
    %64 = vector.extract_strided_slice %61 {offsets = [0, 0], sizes = [8, 32], strides = [1, 1]} : vector<8x128xf32> to vector<8x32xf32>
    %65 = vector.extract_strided_slice %61 {offsets = [0, 32], sizes = [8, 32], strides = [1, 1]} : vector<8x128xf32> to vector<8x32xf32>
    %66 = vector.extract_strided_slice %61 {offsets = [0, 64], sizes = [8, 32], strides = [1, 1]} : vector<8x128xf32> to vector<8x32xf32>
    %67 = arith.mulf %65, %49 : vector<8x32xf32>
    %68 = arith.mulf %64, %63 : vector<8x32xf32>
    %69 = arith.addf %67, %68 : vector<8x32xf32>
    %70 = math.tanh %69 : vector<8x32xf32>
    %71 = arith.mulf %66, %70 : vector<8x32xf32>
    %c16 = arith.constant 16 : index
    %c0_22 = arith.constant 0 : index
    %72 = vector.load %arg21[%c16, %c0_22] : memref<64x32xf32, #tpu.memory_space<vmem>>, vector<8x32xf32>
    tpu.vector_store %arg21[%c16, %c0_22], %71 {strides = array<i32>} : memref<64x32xf32, #tpu.memory_space<vmem>>, vector<8x32xf32>,
    %73 = arith.truncf %71 : vector<8x32xf32> to vector<8x32xbf16>
    %c0_23 = arith.constant 0 : index
    %c0_24 = arith.constant 0 : index
    %74 = vector.load %arg2[%c0_23, %c0_24] : memref<32x128xbf16, #tpu.memory_space<vmem>>, vector<32x128xbf16>
    %cst_25 = arith.constant dense<0.000000e+00> : vector<8x128xf32>
    %75 = tpu.matmul %73, %74, %cst_25 {dimension_numbers = #tpu.dot_dimension_numbers<[1], [0], [0], [1], [0, 0, 1, 1], [], []>} : vector<8x32xbf16>, vector<32x128xbf16>, vector<8x128xf32> -> vector<8x128xf32>
    %76 = arith.addf %10, %75 : vector<8x128xf32>
    %77 = arith.negf %76 : vector<8x128xf32>
    %78 = math.exp %77 : vector<8x128xf32>
    %cst_26 = arith.constant 1.000000e+00 : f32
    %79 = vector.broadcast %cst_26 : f32 to vector<8x128xf32>
    %80 = arith.addf %79, %78 : vector<8x128xf32>
    %81 = arith.divf %79, %80 : vector<8x128xf32>
    %82 = vector.extract_strided_slice %76 {offsets = [0, 96], sizes = [8, 32], strides = [1, 1]} : vector<8x128xf32> to vector<8x32xf32>
    %83 = math.tanh %82 : vector<8x32xf32>
    %84 = vector.extract_strided_slice %81 {offsets = [0, 0], sizes = [8, 32], strides = [1, 1]} : vector<8x128xf32> to vector<8x32xf32>
    %85 = vector.extract_strided_slice %81 {offsets = [0, 32], sizes = [8, 32], strides = [1, 1]} : vector<8x128xf32> to vector<8x32xf32>
    %86 = vector.extract_strided_slice %81 {offsets = [0, 64], sizes = [8, 32], strides = [1, 1]} : vector<8x128xf32> to vector<8x32xf32>
    %87 = arith.mulf %85, %69 : vector<8x32xf32>
    %88 = arith.mulf %84, %83 : vector<8x32xf32>
    %89 = arith.addf %87, %88 : vector<8x32xf32>
    %90 = math.tanh %89 : vector<8x32xf32>
    %91 = arith.mulf %86, %90 : vector<8x32xf32>
    %c24 = arith.constant 24 : index
    %c0_27 = arith.constant 0 : index
    %92 = vector.load %arg21[%c24, %c0_27] : memref<64x32xf32, #tpu.memory_space<vmem>>, vector<8x32xf32>
    tpu.vector_store %arg21[%c24, %c0_27], %91 {strides = array<i32>} : memref<64x32xf32, #tpu.memory_space<vmem>>, vector<8x32xf32>,
    %93 = arith.truncf %91 : vector<8x32xf32> to vector<8x32xbf16>
    %c0_28 = arith.constant 0 : index
    %c0_29 = arith.constant 0 : index
    %94 = vector.load %arg2[%c0_28, %c0_29] : memref<32x128xbf16, #tpu.memory_space<vmem>>, vector<32x128xbf16>
    %cst_30 = arith.constant dense<0.000000e+00> : vector<8x128xf32>
    %95 = tpu.matmul %93, %94, %cst_30 {dimension_numbers = #tpu.dot_dimension_numbers<[1], [0], [0], [1], [0, 0, 1, 1], [], []>} : vector<8x32xbf16>, vector<32x128xbf16>, vector<8x128xf32> -> vector<8x128xf32>
    %96 = arith.addf %10, %95 : vector<8x128xf32>
    %97 = arith.negf %96 : vector<8x128xf32>
    %98 = math.exp %97 : vector<8x128xf32>
    %cst_31 = arith.constant 1.000000e+00 : f32
    %99 = vector.broadcast %cst_31 : f32 to vector<8x128xf32>
    %100 = arith.addf %99, %98 : vector<8x128xf32>
    %101 = arith.divf %99, %100 : vector<8x128xf32>
    %102 = vector.extract_strided_slice %96 {offsets = [0, 96], sizes = [8, 32], strides = [1, 1]} : vector<8x128xf32> to vector<8x32xf32>
    %103 = math.tanh %102 : vector<8x32xf32>
    %104 = vector.extract_strided_slice %101 {offsets = [0, 0], sizes = [8, 32], strides = [1, 1]} : vector<8x128xf32> to vector<8x32xf32>
    %105 = vector.extract_strided_slice %101 {offsets = [0, 32], sizes = [8, 32], strides = [1, 1]} : vector<8x128xf32> to vector<8x32xf32>
    %106 = vector.extract_strided_slice %101 {offsets = [0, 64], sizes = [8, 32], strides = [1, 1]} : vector<8x128xf32> to vector<8x32xf32>
    %107 = arith.mulf %105, %89 : vector<8x32xf32>
    %108 = arith.mulf %104, %103 : vector<8x32xf32>
    %109 = arith.addf %107, %108 : vector<8x32xf32>
    %110 = math.tanh %109 : vector<8x32xf32>
    %111 = arith.mulf %106, %110 : vector<8x32xf32>
    %c32 = arith.constant 32 : index
    %c0_32 = arith.constant 0 : index
    %112 = vector.load %arg21[%c32, %c0_32] : memref<64x32xf32, #tpu.memory_space<vmem>>, vector<8x32xf32>
    tpu.vector_store %arg21[%c32, %c0_32], %111 {strides = array<i32>} : memref<64x32xf32, #tpu.memory_space<vmem>>, vector<8x32xf32>,
    %113 = arith.truncf %111 : vector<8x32xf32> to vector<8x32xbf16>
    %c0_33 = arith.constant 0 : index
    %c0_34 = arith.constant 0 : index
    %114 = vector.load %arg2[%c0_33, %c0_34] : memref<32x128xbf16, #tpu.memory_space<vmem>>, vector<32x128xbf16>
    %cst_35 = arith.constant dense<0.000000e+00> : vector<8x128xf32>
    %115 = tpu.matmul %113, %114, %cst_35 {dimension_numbers = #tpu.dot_dimension_numbers<[1], [0], [0], [1], [0, 0, 1, 1], [], []>} : vector<8x32xbf16>, vector<32x128xbf16>, vector<8x128xf32> -> vector<8x128xf32>
    %116 = arith.addf %10, %115 : vector<8x128xf32>
    %117 = arith.negf %116 : vector<8x128xf32>
    %118 = math.exp %117 : vector<8x128xf32>
    %cst_36 = arith.constant 1.000000e+00 : f32
    %119 = vector.broadcast %cst_36 : f32 to vector<8x128xf32>
    %120 = arith.addf %119, %118 : vector<8x128xf32>
    %121 = arith.divf %119, %120 : vector<8x128xf32>
    %122 = vector.extract_strided_slice %116 {offsets = [0, 96], sizes = [8, 32], strides = [1, 1]} : vector<8x128xf32> to vector<8x32xf32>
    %123 = math.tanh %122 : vector<8x32xf32>
    %124 = vector.extract_strided_slice %121 {offsets = [0, 0], sizes = [8, 32], strides = [1, 1]} : vector<8x128xf32> to vector<8x32xf32>
    %125 = vector.extract_strided_slice %121 {offsets = [0, 32], sizes = [8, 32], strides = [1, 1]} : vector<8x128xf32> to vector<8x32xf32>
    %126 = vector.extract_strided_slice %121 {offsets = [0, 64], sizes = [8, 32], strides = [1, 1]} : vector<8x128xf32> to vector<8x32xf32>
    %127 = arith.mulf %125, %109 : vector<8x32xf32>
    %128 = arith.mulf %124, %123 : vector<8x32xf32>
    %129 = arith.addf %127, %128 : vector<8x32xf32>
    %130 = math.tanh %129 : vector<8x32xf32>
    %131 = arith.mulf %126, %130 : vector<8x32xf32>
    %c40 = arith.constant 40 : index
    %c0_37 = arith.constant 0 : index
    %132 = vector.load %arg21[%c40, %c0_37] : memref<64x32xf32, #tpu.memory_space<vmem>>, vector<8x32xf32>
    tpu.vector_store %arg21[%c40, %c0_37], %131 {strides = array<i32>} : memref<64x32xf32, #tpu.memory_space<vmem>>, vector<8x32xf32>,
    %133 = arith.truncf %131 : vector<8x32xf32> to vector<8x32xbf16>
    %c0_38 = arith.constant 0 : index
    %c0_39 = arith.constant 0 : index
    %134 = vector.load %arg2[%c0_38, %c0_39] : memref<32x128xbf16, #tpu.memory_space<vmem>>, vector<32x128xbf16>
    %cst_40 = arith.constant dense<0.000000e+00> : vector<8x128xf32>
    %135 = tpu.matmul %133, %134, %cst_40 {dimension_numbers = #tpu.dot_dimension_numbers<[1], [0], [0], [1], [0, 0, 1, 1], [], []>} : vector<8x32xbf16>, vector<32x128xbf16>, vector<8x128xf32> -> vector<8x128xf32>
    %136 = arith.addf %10, %135 : vector<8x128xf32>
    %137 = arith.negf %136 : vector<8x128xf32>
    %138 = math.exp %137 : vector<8x128xf32>
    %cst_41 = arith.constant 1.000000e+00 : f32
    %139 = vector.broadcast %cst_41 : f32 to vector<8x128xf32>
    %140 = arith.addf %139, %138 : vector<8x128xf32>
    %141 = arith.divf %139, %140 : vector<8x128xf32>
    %142 = vector.extract_strided_slice %136 {offsets = [0, 96], sizes = [8, 32], strides = [1, 1]} : vector<8x128xf32> to vector<8x32xf32>
    %143 = math.tanh %142 : vector<8x32xf32>
    %144 = vector.extract_strided_slice %141 {offsets = [0, 0], sizes = [8, 32], strides = [1, 1]} : vector<8x128xf32> to vector<8x32xf32>
    %145 = vector.extract_strided_slice %141 {offsets = [0, 32], sizes = [8, 32], strides = [1, 1]} : vector<8x128xf32> to vector<8x32xf32>
    %146 = vector.extract_strided_slice %141 {offsets = [0, 64], sizes = [8, 32], strides = [1, 1]} : vector<8x128xf32> to vector<8x32xf32>
    %147 = arith.mulf %145, %129 : vector<8x32xf32>
    %148 = arith.mulf %144, %143 : vector<8x32xf32>
    %149 = arith.addf %147, %148 : vector<8x32xf32>
    %150 = math.tanh %149 : vector<8x32xf32>
    %151 = arith.mulf %146, %150 : vector<8x32xf32>
    %c48 = arith.constant 48 : index
    %c0_42 = arith.constant 0 : index
    %152 = vector.load %arg21[%c48, %c0_42] : memref<64x32xf32, #tpu.memory_space<vmem>>, vector<8x32xf32>
    tpu.vector_store %arg21[%c48, %c0_42], %151 {strides = array<i32>} : memref<64x32xf32, #tpu.memory_space<vmem>>, vector<8x32xf32>,
    %153 = arith.truncf %151 : vector<8x32xf32> to vector<8x32xbf16>
    %c0_43 = arith.constant 0 : index
    %c0_44 = arith.constant 0 : index
    %154 = vector.load %arg2[%c0_43, %c0_44] : memref<32x128xbf16, #tpu.memory_space<vmem>>, vector<32x128xbf16>
    %cst_45 = arith.constant dense<0.000000e+00> : vector<8x128xf32>
    %155 = tpu.matmul %153, %154, %cst_45 {dimension_numbers = #tpu.dot_dimension_numbers<[1], [0], [0], [1], [0, 0, 1, 1], [], []>} : vector<8x32xbf16>, vector<32x128xbf16>, vector<8x128xf32> -> vector<8x128xf32>
    %156 = arith.addf %10, %155 : vector<8x128xf32>
    %157 = arith.negf %156 : vector<8x128xf32>
    %158 = math.exp %157 : vector<8x128xf32>
    %cst_46 = arith.constant 1.000000e+00 : f32
    %159 = vector.broadcast %cst_46 : f32 to vector<8x128xf32>
    %160 = arith.addf %159, %158 : vector<8x128xf32>
    %161 = arith.divf %159, %160 : vector<8x128xf32>
    %162 = vector.extract_strided_slice %156 {offsets = [0, 96], sizes = [8, 32], strides = [1, 1]} : vector<8x128xf32> to vector<8x32xf32>
    %163 = math.tanh %162 : vector<8x32xf32>
    %164 = vector.extract_strided_slice %161 {offsets = [0, 0], sizes = [8, 32], strides = [1, 1]} : vector<8x128xf32> to vector<8x32xf32>
    %165 = vector.extract_strided_slice %161 {offsets = [0, 32], sizes = [8, 32], strides = [1, 1]} : vector<8x128xf32> to vector<8x32xf32>
    %166 = vector.extract_strided_slice %161 {offsets = [0, 64], sizes = [8, 32], strides = [1, 1]} : vector<8x128xf32> to vector<8x32xf32>
    %167 = arith.mulf %165, %149 : vector<8x32xf32>
    %168 = arith.mulf %164, %163 : vector<8x32xf32>
    %169 = arith.addf %167, %168 : vector<8x32xf32>
    %170 = math.tanh %169 : vector<8x32xf32>
    %171 = arith.mulf %166, %170 : vector<8x32xf32>
    %c56 = arith.constant 56 : index
    %c0_47 = arith.constant 0 : index
    %172 = vector.load %arg21[%c56, %c0_47] : memref<64x32xf32, #tpu.memory_space<vmem>>, vector<8x32xf32>
    tpu.vector_store %arg21[%c56, %c0_47], %171 {strides = array<i32>} : memref<64x32xf32, #tpu.memory_space<vmem>>, vector<8x32xf32>,
    %c0_48 = arith.constant 0 : index
    %c0_49 = arith.constant 0 : index
    %173 = vector.load %arg21[%c0_48, %c0_49] : memref<64x32xf32, #tpu.memory_space<vmem>>, vector<64x32xf32>
    %c0_50 = arith.constant 0 : index
    %c0_51 = arith.constant 0 : index
    %174 = vector.load %arg4[%c0_50, %c0_51] : memref<1x32xf32, #tpu.memory_space<vmem>>, vector<1x32xf32>
    %c0_52 = arith.constant 0 : index
    %c0_53 = arith.constant 0 : index
    %175 = vector.load %arg5[%c0_52, %c0_53] : memref<1x32xf32, #tpu.memory_space<vmem>>, vector<1x32xf32>
    %cst_54 = arith.constant dense<0.000000e+00> : vector<64xf32>
    %176 = vector.multi_reduction <add>, %173, %cst_54 [1] : vector<64x32xf32> to vector<64xf32>
    %177 = vector.shape_cast %176 : vector<64xf32> to vector<64x1xf32>
    %cst_55 = arith.constant 2.500000e-01 : f32
    %178 = vector.broadcast %cst_55 : f32 to vector<64x1xf32>
    %179 = arith.mulf %177, %178 : vector<64x1xf32>
    %180 = tpu.iota {dimensions = array<i32: 1>} : vector<64x32xi32>
    %c4_i32 = arith.constant 4 : i32
    %181 = vector.broadcast %c4_i32 : i32 to vector<64x32xi32>
    %182 = arith.cmpi slt, %180, %181 : vector<64x32xi32>
    %183 = vector.broadcast %179 : vector<64x1xf32> to vector<64x32xf32>
    %184 = arith.subf %173, %183 : vector<64x32xf32>
    %cst_56 = arith.constant 0.000000e+00 : f32
    %185 = vector.broadcast %cst_56 : f32 to vector<64x32xf32>
    %186 = arith.select %182, %184, %185 : vector<64x32xi1>, vector<64x32xf32>
    %187 = arith.mulf %186, %186 : vector<64x32xf32>
    %cst_57 = arith.constant dense<0.000000e+00> : vector<64xf32>
    %188 = vector.multi_reduction <add>, %187, %cst_57 [1] : vector<64x32xf32> to vector<64xf32>
    %189 = vector.shape_cast %188 : vector<64xf32> to vector<64x1xf32>
    %cst_58 = arith.constant 2.500000e-01 : f32
    %190 = vector.broadcast %cst_58 : f32 to vector<64x1xf32>
    %191 = arith.mulf %189, %190 : vector<64x1xf32>
    %cst_59 = arith.constant 9.99999974E-6 : f32
    %192 = vector.broadcast %cst_59 : f32 to vector<64x1xf32>
    %193 = arith.addf %191, %192 : vector<64x1xf32>
    %194 = math.rsqrt %193 : vector<64x1xf32>
    %195 = vector.broadcast %194 : vector<64x1xf32> to vector<64x32xf32>
    %196 = arith.mulf %186, %195 : vector<64x32xf32>
    %197 = vector.broadcast %174 : vector<1x32xf32> to vector<64x32xf32>
    %198 = arith.mulf %196, %197 : vector<64x32xf32>
    %199 = vector.broadcast %175 : vector<1x32xf32> to vector<64x32xf32>
    %200 = arith.addf %198, %199 : vector<64x32xf32>
    %201 = arith.truncf %200 : vector<64x32xf32> to vector<64x32xbf16>
    %c0_60 = arith.constant 0 : index
    %c0_61 = arith.constant 0 : index
    %202 = vector.load %arg6[%c0_60, %c0_61] : memref<32x128xbf16, #tpu.memory_space<vmem>>, vector<32x128xbf16>
    %cst_62 = arith.constant dense<0.000000e+00> : vector<64x128xf32>
    %203 = tpu.matmul %201, %202, %cst_62 {dimension_numbers = #tpu.dot_dimension_numbers<[1], [0], [0], [1], [0, 0, 1, 1], [], []>} : vector<64x32xbf16>, vector<32x128xbf16>, vector<64x128xf32> -> vector<64x128xf32>
    %c0_63 = arith.constant 0 : index
    %c0_64 = arith.constant 0 : index
    %204 = vector.load %arg8[%c0_63, %c0_64] : memref<1x128xf32, #tpu.memory_space<vmem>>, vector<1x128xf32>
    %205 = vector.broadcast %204 : vector<1x128xf32> to vector<64x128xf32>
    %206 = arith.addf %203, %205 : vector<64x128xf32>
    %c0_65 = arith.constant 0 : index
    %c0_66 = arith.constant 0 : index
    %207 = vector.load %arg19[%c0_65, %c0_66] : memref<64x128xf32, #tpu.memory_space<vmem>>, vector<64x128xf32>
    tpu.vector_store %arg19[%c0_65, %c0_66], %206 {strides = array<i32>} : memref<64x128xf32, #tpu.memory_space<vmem>>, vector<64x128xf32>,
    %cst_67 = arith.constant 0.000000e+00 : f32
    %208 = vector.broadcast %cst_67 : f32 to vector<8x32xf32>
    %cst_68 = arith.constant 0.000000e+00 : f32
    %209 = vector.broadcast %cst_68 : f32 to vector<8x32xf32>
    %c0_69 = arith.constant 0 : index
    %c0_70 = arith.constant 0 : index
    %210 = vector.load %arg19[%c0_69, %c0_70] : memref<64x128xf32, #tpu.memory_space<vmem>>, vector<8x128xf32>
    %211 = arith.truncf %208 : vector<8x32xf32> to vector<8x32xbf16>
    %c0_71 = arith.constant 0 : index
    %c0_72 = arith.constant 0 : index
    %212 = vector.load %arg7[%c0_71, %c0_72] : memref<32x128xbf16, #tpu.memory_space<vmem>>, vector<32x128xbf16>
    %cst_73 = arith.constant dense<0.000000e+00> : vector<8x128xf32>
    %213 = tpu.matmul %211, %212, %cst_73 {dimension_numbers = #tpu.dot_dimension_numbers<[1], [0], [0], [1], [0, 0, 1, 1], [], []>} : vector<8x32xbf16>, vector<32x128xbf16>, vector<8x128xf32> -> vector<8x128xf32>
    %214 = arith.addf %210, %213 : vector<8x128xf32>
    %215 = arith.negf %214 : vector<8x128xf32>
    %216 = math.exp %215 : vector<8x128xf32>
    %cst_74 = arith.constant 1.000000e+00 : f32
    %217 = vector.broadcast %cst_74 : f32 to vector<8x128xf32>
    %218 = arith.addf %217, %216 : vector<8x128xf32>
    %219 = arith.divf %217, %218 : vector<8x128xf32>
    %220 = vector.extract_strided_slice %214 {offsets = [0, 96], sizes = [8, 32], strides = [1, 1]} : vector<8x128xf32> to vector<8x32xf32>
    %221 = math.tanh %220 : vector<8x32xf32>
    %222 = vector.extract_strided_slice %219 {offsets = [0, 0], sizes = [8, 32], strides = [1, 1]} : vector<8x128xf32> to vector<8x32xf32>
    %223 = vector.extract_strided_slice %219 {offsets = [0, 32], sizes = [8, 32], strides = [1, 1]} : vector<8x128xf32> to vector<8x32xf32>
    %224 = vector.extract_strided_slice %219 {offsets = [0, 64], sizes = [8, 32], strides = [1, 1]} : vector<8x128xf32> to vector<8x32xf32>
    %225 = arith.mulf %223, %209 : vector<8x32xf32>
    %226 = arith.mulf %222, %221 : vector<8x32xf32>
    %227 = arith.addf %225, %226 : vector<8x32xf32>
    %228 = math.tanh %227 : vector<8x32xf32>
    %229 = arith.mulf %224, %228 : vector<8x32xf32>
    %c0_75 = arith.constant 0 : index
    %c0_76 = arith.constant 0 : index
    %230 = vector.load %arg22[%c0_75, %c0_76] : memref<64x32xf32, #tpu.memory_space<vmem>>, vector<8x32xf32>
    tpu.vector_store %arg22[%c0_75, %c0_76], %229 {strides = array<i32>} : memref<64x32xf32, #tpu.memory_space<vmem>>, vector<8x32xf32>,
    %c8_77 = arith.constant 8 : index
    %c0_78 = arith.constant 0 : index
    %231 = vector.load %arg19[%c8_77, %c0_78] : memref<64x128xf32, #tpu.memory_space<vmem>>, vector<8x128xf32>
    %232 = arith.truncf %229 : vector<8x32xf32> to vector<8x32xbf16>
    %c0_79 = arith.constant 0 : index
    %c0_80 = arith.constant 0 : index
    %233 = vector.load %arg7[%c0_79, %c0_80] : memref<32x128xbf16, #tpu.memory_space<vmem>>, vector<32x128xbf16>
    %cst_81 = arith.constant dense<0.000000e+00> : vector<8x128xf32>
    %234 = tpu.matmul %232, %233, %cst_81 {dimension_numbers = #tpu.dot_dimension_numbers<[1], [0], [0], [1], [0, 0, 1, 1], [], []>} : vector<8x32xbf16>, vector<32x128xbf16>, vector<8x128xf32> -> vector<8x128xf32>
    %235 = arith.addf %231, %234 : vector<8x128xf32>
    %236 = arith.negf %235 : vector<8x128xf32>
    %237 = math.exp %236 : vector<8x128xf32>
    %cst_82 = arith.constant 1.000000e+00 : f32
    %238 = vector.broadcast %cst_82 : f32 to vector<8x128xf32>
    %239 = arith.addf %238, %237 : vector<8x128xf32>
    %240 = arith.divf %238, %239 : vector<8x128xf32>
    %241 = vector.extract_strided_slice %235 {offsets = [0, 96], sizes = [8, 32], strides = [1, 1]} : vector<8x128xf32> to vector<8x32xf32>
    %242 = math.tanh %241 : vector<8x32xf32>
    %243 = vector.extract_strided_slice %240 {offsets = [0, 0], sizes = [8, 32], strides = [1, 1]} : vector<8x128xf32> to vector<8x32xf32>
    %244 = vector.extract_strided_slice %240 {offsets = [0, 32], sizes = [8, 32], strides = [1, 1]} : vector<8x128xf32> to vector<8x32xf32>
    %245 = vector.extract_strided_slice %240 {offsets = [0, 64], sizes = [8, 32], strides = [1, 1]} : vector<8x128xf32> to vector<8x32xf32>
    %246 = arith.mulf %244, %227 : vector<8x32xf32>
    %247 = arith.mulf %243, %242 : vector<8x32xf32>
    %248 = arith.addf %246, %247 : vector<8x32xf32>
    %249 = math.tanh %248 : vector<8x32xf32>
    %250 = arith.mulf %245, %249 : vector<8x32xf32>
    %c8_83 = arith.constant 8 : index
    %c0_84 = arith.constant 0 : index
    %251 = vector.load %arg22[%c8_83, %c0_84] : memref<64x32xf32, #tpu.memory_space<vmem>>, vector<8x32xf32>
    tpu.vector_store %arg22[%c8_83, %c0_84], %250 {strides = array<i32>} : memref<64x32xf32, #tpu.memory_space<vmem>>, vector<8x32xf32>,
    %c16_85 = arith.constant 16 : index
    %c0_86 = arith.constant 0 : index
    %252 = vector.load %arg19[%c16_85, %c0_86] : memref<64x128xf32, #tpu.memory_space<vmem>>, vector<8x128xf32>
    %253 = arith.truncf %250 : vector<8x32xf32> to vector<8x32xbf16>
    %c0_87 = arith.constant 0 : index
    %c0_88 = arith.constant 0 : index
    %254 = vector.load %arg7[%c0_87, %c0_88] : memref<32x128xbf16, #tpu.memory_space<vmem>>, vector<32x128xbf16>
    %cst_89 = arith.constant dense<0.000000e+00> : vector<8x128xf32>
    %255 = tpu.matmul %253, %254, %cst_89 {dimension_numbers = #tpu.dot_dimension_numbers<[1], [0], [0], [1], [0, 0, 1, 1], [], []>} : vector<8x32xbf16>, vector<32x128xbf16>, vector<8x128xf32> -> vector<8x128xf32>
    %256 = arith.addf %252, %255 : vector<8x128xf32>
    %257 = arith.negf %256 : vector<8x128xf32>
    %258 = math.exp %257 : vector<8x128xf32>
    %cst_90 = arith.constant 1.000000e+00 : f32
    %259 = vector.broadcast %cst_90 : f32 to vector<8x128xf32>
    %260 = arith.addf %259, %258 : vector<8x128xf32>
    %261 = arith.divf %259, %260 : vector<8x128xf32>
    %262 = vector.extract_strided_slice %256 {offsets = [0, 96], sizes = [8, 32], strides = [1, 1]} : vector<8x128xf32> to vector<8x32xf32>
    %263 = math.tanh %262 : vector<8x32xf32>
    %264 = vector.extract_strided_slice %261 {offsets = [0, 0], sizes = [8, 32], strides = [1, 1]} : vector<8x128xf32> to vector<8x32xf32>
    %265 = vector.extract_strided_slice %261 {offsets = [0, 32], sizes = [8, 32], strides = [1, 1]} : vector<8x128xf32> to vector<8x32xf32>
    %266 = vector.extract_strided_slice %261 {offsets = [0, 64], sizes = [8, 32], strides = [1, 1]} : vector<8x128xf32> to vector<8x32xf32>
    %267 = arith.mulf %265, %248 : vector<8x32xf32>
    %268 = arith.mulf %264, %263 : vector<8x32xf32>
    %269 = arith.addf %267, %268 : vector<8x32xf32>
    %270 = math.tanh %269 : vector<8x32xf32>
    %271 = arith.mulf %266, %270 : vector<8x32xf32>
    %c16_91 = arith.constant 16 : index
    %c0_92 = arith.constant 0 : index
    %272 = vector.load %arg22[%c16_91, %c0_92] : memref<64x32xf32, #tpu.memory_space<vmem>>, vector<8x32xf32>
    tpu.vector_store %arg22[%c16_91, %c0_92], %271 {strides = array<i32>} : memref<64x32xf32, #tpu.memory_space<vmem>>, vector<8x32xf32>,
    %c24_93 = arith.constant 24 : index
    %c0_94 = arith.constant 0 : index
    %273 = vector.load %arg19[%c24_93, %c0_94] : memref<64x128xf32, #tpu.memory_space<vmem>>, vector<8x128xf32>
    %274 = arith.truncf %271 : vector<8x32xf32> to vector<8x32xbf16>
    %c0_95 = arith.constant 0 : index
    %c0_96 = arith.constant 0 : index
    %275 = vector.load %arg7[%c0_95, %c0_96] : memref<32x128xbf16, #tpu.memory_space<vmem>>, vector<32x128xbf16>
    %cst_97 = arith.constant dense<0.000000e+00> : vector<8x128xf32>
    %276 = tpu.matmul %274, %275, %cst_97 {dimension_numbers = #tpu.dot_dimension_numbers<[1], [0], [0], [1], [0, 0, 1, 1], [], []>} : vector<8x32xbf16>, vector<32x128xbf16>, vector<8x128xf32> -> vector<8x128xf32>
    %277 = arith.addf %273, %276 : vector<8x128xf32>
    %278 = arith.negf %277 : vector<8x128xf32>
    %279 = math.exp %278 : vector<8x128xf32>
    %cst_98 = arith.constant 1.000000e+00 : f32
    %280 = vector.broadcast %cst_98 : f32 to vector<8x128xf32>
    %281 = arith.addf %280, %279 : vector<8x128xf32>
    %282 = arith.divf %280, %281 : vector<8x128xf32>
    %283 = vector.extract_strided_slice %277 {offsets = [0, 96], sizes = [8, 32], strides = [1, 1]} : vector<8x128xf32> to vector<8x32xf32>
    %284 = math.tanh %283 : vector<8x32xf32>
    %285 = vector.extract_strided_slice %282 {offsets = [0, 0], sizes = [8, 32], strides = [1, 1]} : vector<8x128xf32> to vector<8x32xf32>
    %286 = vector.extract_strided_slice %282 {offsets = [0, 32], sizes = [8, 32], strides = [1, 1]} : vector<8x128xf32> to vector<8x32xf32>
    %287 = vector.extract_strided_slice %282 {offsets = [0, 64], sizes = [8, 32], strides = [1, 1]} : vector<8x128xf32> to vector<8x32xf32>
    %288 = arith.mulf %286, %269 : vector<8x32xf32>
    %289 = arith.mulf %285, %284 : vector<8x32xf32>
    %290 = arith.addf %288, %289 : vector<8x32xf32>
    %291 = math.tanh %290 : vector<8x32xf32>
    %292 = arith.mulf %287, %291 : vector<8x32xf32>
    %c24_99 = arith.constant 24 : index
    %c0_100 = arith.constant 0 : index
    %293 = vector.load %arg22[%c24_99, %c0_100] : memref<64x32xf32, #tpu.memory_space<vmem>>, vector<8x32xf32>
    tpu.vector_store %arg22[%c24_99, %c0_100], %292 {strides = array<i32>} : memref<64x32xf32, #tpu.memory_space<vmem>>, vector<8x32xf32>,
    %c32_101 = arith.constant 32 : index
    %c0_102 = arith.constant 0 : index
    %294 = vector.load %arg19[%c32_101, %c0_102] : memref<64x128xf32, #tpu.memory_space<vmem>>, vector<8x128xf32>
    %295 = arith.truncf %292 : vector<8x32xf32> to vector<8x32xbf16>
    %c0_103 = arith.constant 0 : index
    %c0_104 = arith.constant 0 : index
    %296 = vector.load %arg7[%c0_103, %c0_104] : memref<32x128xbf16, #tpu.memory_space<vmem>>, vector<32x128xbf16>
    %cst_105 = arith.constant dense<0.000000e+00> : vector<8x128xf32>
    %297 = tpu.matmul %295, %296, %cst_105 {dimension_numbers = #tpu.dot_dimension_numbers<[1], [0], [0], [1], [0, 0, 1, 1], [], []>} : vector<8x32xbf16>, vector<32x128xbf16>, vector<8x128xf32> -> vector<8x128xf32>
    %298 = arith.addf %294, %297 : vector<8x128xf32>
    %299 = arith.negf %298 : vector<8x128xf32>
    %300 = math.exp %299 : vector<8x128xf32>
    %cst_106 = arith.constant 1.000000e+00 : f32
    %301 = vector.broadcast %cst_106 : f32 to vector<8x128xf32>
    %302 = arith.addf %301, %300 : vector<8x128xf32>
    %303 = arith.divf %301, %302 : vector<8x128xf32>
    %304 = vector.extract_strided_slice %298 {offsets = [0, 96], sizes = [8, 32], strides = [1, 1]} : vector<8x128xf32> to vector<8x32xf32>
    %305 = math.tanh %304 : vector<8x32xf32>
    %306 = vector.extract_strided_slice %303 {offsets = [0, 0], sizes = [8, 32], strides = [1, 1]} : vector<8x128xf32> to vector<8x32xf32>
    %307 = vector.extract_strided_slice %303 {offsets = [0, 32], sizes = [8, 32], strides = [1, 1]} : vector<8x128xf32> to vector<8x32xf32>
    %308 = vector.extract_strided_slice %303 {offsets = [0, 64], sizes = [8, 32], strides = [1, 1]} : vector<8x128xf32> to vector<8x32xf32>
    %309 = arith.mulf %307, %290 : vector<8x32xf32>
    %310 = arith.mulf %306, %305 : vector<8x32xf32>
    %311 = arith.addf %309, %310 : vector<8x32xf32>
    %312 = math.tanh %311 : vector<8x32xf32>
    %313 = arith.mulf %308, %312 : vector<8x32xf32>
    %c32_107 = arith.constant 32 : index
    %c0_108 = arith.constant 0 : index
    %314 = vector.load %arg22[%c32_107, %c0_108] : memref<64x32xf32, #tpu.memory_space<vmem>>, vector<8x32xf32>
    tpu.vector_store %arg22[%c32_107, %c0_108], %313 {strides = array<i32>} : memref<64x32xf32, #tpu.memory_space<vmem>>, vector<8x32xf32>,
    %c40_109 = arith.constant 40 : index
    %c0_110 = arith.constant 0 : index
    %315 = vector.load %arg19[%c40_109, %c0_110] : memref<64x128xf32, #tpu.memory_space<vmem>>, vector<8x128xf32>
    %316 = arith.truncf %313 : vector<8x32xf32> to vector<8x32xbf16>
    %c0_111 = arith.constant 0 : index
    %c0_112 = arith.constant 0 : index
    %317 = vector.load %arg7[%c0_111, %c0_112] : memref<32x128xbf16, #tpu.memory_space<vmem>>, vector<32x128xbf16>
    %cst_113 = arith.constant dense<0.000000e+00> : vector<8x128xf32>
    %318 = tpu.matmul %316, %317, %cst_113 {dimension_numbers = #tpu.dot_dimension_numbers<[1], [0], [0], [1], [0, 0, 1, 1], [], []>} : vector<8x32xbf16>, vector<32x128xbf16>, vector<8x128xf32> -> vector<8x128xf32>
    %319 = arith.addf %315, %318 : vector<8x128xf32>
    %320 = arith.negf %319 : vector<8x128xf32>
    %321 = math.exp %320 : vector<8x128xf32>
    %cst_114 = arith.constant 1.000000e+00 : f32
    %322 = vector.broadcast %cst_114 : f32 to vector<8x128xf32>
    %323 = arith.addf %322, %321 : vector<8x128xf32>
    %324 = arith.divf %322, %323 : vector<8x128xf32>
    %325 = vector.extract_strided_slice %319 {offsets = [0, 96], sizes = [8, 32], strides = [1, 1]} : vector<8x128xf32> to vector<8x32xf32>
    %326 = math.tanh %325 : vector<8x32xf32>
    %327 = vector.extract_strided_slice %324 {offsets = [0, 0], sizes = [8, 32], strides = [1, 1]} : vector<8x128xf32> to vector<8x32xf32>
    %328 = vector.extract_strided_slice %324 {offsets = [0, 32], sizes = [8, 32], strides = [1, 1]} : vector<8x128xf32> to vector<8x32xf32>
    %329 = vector.extract_strided_slice %324 {offsets = [0, 64], sizes = [8, 32], strides = [1, 1]} : vector<8x128xf32> to vector<8x32xf32>
    %330 = arith.mulf %328, %311 : vector<8x32xf32>
    %331 = arith.mulf %327, %326 : vector<8x32xf32>
    %332 = arith.addf %330, %331 : vector<8x32xf32>
    %333 = math.tanh %332 : vector<8x32xf32>
    %334 = arith.mulf %329, %333 : vector<8x32xf32>
    %c40_115 = arith.constant 40 : index
    %c0_116 = arith.constant 0 : index
    %335 = vector.load %arg22[%c40_115, %c0_116] : memref<64x32xf32, #tpu.memory_space<vmem>>, vector<8x32xf32>
    tpu.vector_store %arg22[%c40_115, %c0_116], %334 {strides = array<i32>} : memref<64x32xf32, #tpu.memory_space<vmem>>, vector<8x32xf32>,
    %c48_117 = arith.constant 48 : index
    %c0_118 = arith.constant 0 : index
    %336 = vector.load %arg19[%c48_117, %c0_118] : memref<64x128xf32, #tpu.memory_space<vmem>>, vector<8x128xf32>
    %337 = arith.truncf %334 : vector<8x32xf32> to vector<8x32xbf16>
    %c0_119 = arith.constant 0 : index
    %c0_120 = arith.constant 0 : index
    %338 = vector.load %arg7[%c0_119, %c0_120] : memref<32x128xbf16, #tpu.memory_space<vmem>>, vector<32x128xbf16>
    %cst_121 = arith.constant dense<0.000000e+00> : vector<8x128xf32>
    %339 = tpu.matmul %337, %338, %cst_121 {dimension_numbers = #tpu.dot_dimension_numbers<[1], [0], [0], [1], [0, 0, 1, 1], [], []>} : vector<8x32xbf16>, vector<32x128xbf16>, vector<8x128xf32> -> vector<8x128xf32>
    %340 = arith.addf %336, %339 : vector<8x128xf32>
    %341 = arith.negf %340 : vector<8x128xf32>
    %342 = math.exp %341 : vector<8x128xf32>
    %cst_122 = arith.constant 1.000000e+00 : f32
    %343 = vector.broadcast %cst_122 : f32 to vector<8x128xf32>
    %344 = arith.addf %343, %342 : vector<8x128xf32>
    %345 = arith.divf %343, %344 : vector<8x128xf32>
    %346 = vector.extract_strided_slice %340 {offsets = [0, 96], sizes = [8, 32], strides = [1, 1]} : vector<8x128xf32> to vector<8x32xf32>
    %347 = math.tanh %346 : vector<8x32xf32>
    %348 = vector.extract_strided_slice %345 {offsets = [0, 0], sizes = [8, 32], strides = [1, 1]} : vector<8x128xf32> to vector<8x32xf32>
    %349 = vector.extract_strided_slice %345 {offsets = [0, 32], sizes = [8, 32], strides = [1, 1]} : vector<8x128xf32> to vector<8x32xf32>
    %350 = vector.extract_strided_slice %345 {offsets = [0, 64], sizes = [8, 32], strides = [1, 1]} : vector<8x128xf32> to vector<8x32xf32>
    %351 = arith.mulf %349, %332 : vector<8x32xf32>
    %352 = arith.mulf %348, %347 : vector<8x32xf32>
    %353 = arith.addf %351, %352 : vector<8x32xf32>
    %354 = math.tanh %353 : vector<8x32xf32>
    %355 = arith.mulf %350, %354 : vector<8x32xf32>
    %c48_123 = arith.constant 48 : index
    %c0_124 = arith.constant 0 : index
    %356 = vector.load %arg22[%c48_123, %c0_124] : memref<64x32xf32, #tpu.memory_space<vmem>>, vector<8x32xf32>
    tpu.vector_store %arg22[%c48_123, %c0_124], %355 {strides = array<i32>} : memref<64x32xf32, #tpu.memory_space<vmem>>, vector<8x32xf32>,
    %c56_125 = arith.constant 56 : index
    %c0_126 = arith.constant 0 : index
    %357 = vector.load %arg19[%c56_125, %c0_126] : memref<64x128xf32, #tpu.memory_space<vmem>>, vector<8x128xf32>
    %358 = arith.truncf %355 : vector<8x32xf32> to vector<8x32xbf16>
    %c0_127 = arith.constant 0 : index
    %c0_128 = arith.constant 0 : index
    %359 = vector.load %arg7[%c0_127, %c0_128] : memref<32x128xbf16, #tpu.memory_space<vmem>>, vector<32x128xbf16>
    %cst_129 = arith.constant dense<0.000000e+00> : vector<8x128xf32>
    %360 = tpu.matmul %358, %359, %cst_129 {dimension_numbers = #tpu.dot_dimension_numbers<[1], [0], [0], [1], [0, 0, 1, 1], [], []>} : vector<8x32xbf16>, vector<32x128xbf16>, vector<8x128xf32> -> vector<8x128xf32>
    %361 = arith.addf %357, %360 : vector<8x128xf32>
    %362 = arith.negf %361 : vector<8x128xf32>
    %363 = math.exp %362 : vector<8x128xf32>
    %cst_130 = arith.constant 1.000000e+00 : f32
    %364 = vector.broadcast %cst_130 : f32 to vector<8x128xf32>
    %365 = arith.addf %364, %363 : vector<8x128xf32>
    %366 = arith.divf %364, %365 : vector<8x128xf32>
    %367 = vector.extract_strided_slice %361 {offsets = [0, 96], sizes = [8, 32], strides = [1, 1]} : vector<8x128xf32> to vector<8x32xf32>
    %368 = math.tanh %367 : vector<8x32xf32>
    %369 = vector.extract_strided_slice %366 {offsets = [0, 0], sizes = [8, 32], strides = [1, 1]} : vector<8x128xf32> to vector<8x32xf32>
    %370 = vector.extract_strided_slice %366 {offsets = [0, 32], sizes = [8, 32], strides = [1, 1]} : vector<8x128xf32> to vector<8x32xf32>
    %371 = vector.extract_strided_slice %366 {offsets = [0, 64], sizes = [8, 32], strides = [1, 1]} : vector<8x128xf32> to vector<8x32xf32>
    %372 = arith.mulf %370, %353 : vector<8x32xf32>
    %373 = arith.mulf %369, %368 : vector<8x32xf32>
    %374 = arith.addf %372, %373 : vector<8x32xf32>
    %375 = math.tanh %374 : vector<8x32xf32>
    %376 = arith.mulf %371, %375 : vector<8x32xf32>
    %c56_131 = arith.constant 56 : index
    %c0_132 = arith.constant 0 : index
    %377 = vector.load %arg22[%c56_131, %c0_132] : memref<64x32xf32, #tpu.memory_space<vmem>>, vector<8x32xf32>
    tpu.vector_store %arg22[%c56_131, %c0_132], %376 {strides = array<i32>} : memref<64x32xf32, #tpu.memory_space<vmem>>, vector<8x32xf32>,
    %c0_133 = arith.constant 0 : index
    %c0_134 = arith.constant 0 : index
    %378 = vector.load %arg22[%c0_133, %c0_134] : memref<64x32xf32, #tpu.memory_space<vmem>>, vector<64x32xf32>
    %c0_135 = arith.constant 0 : index
    %c0_136 = arith.constant 0 : index
    %379 = vector.load %arg9[%c0_135, %c0_136] : memref<1x32xf32, #tpu.memory_space<vmem>>, vector<1x32xf32>
    %c0_137 = arith.constant 0 : index
    %c0_138 = arith.constant 0 : index
    %380 = vector.load %arg10[%c0_137, %c0_138] : memref<1x32xf32, #tpu.memory_space<vmem>>, vector<1x32xf32>
    %cst_139 = arith.constant dense<0.000000e+00> : vector<64xf32>
    %381 = vector.multi_reduction <add>, %378, %cst_139 [1] : vector<64x32xf32> to vector<64xf32>
    %382 = vector.shape_cast %381 : vector<64xf32> to vector<64x1xf32>
    %cst_140 = arith.constant 3.125000e-02 : f32
    %383 = vector.broadcast %cst_140 : f32 to vector<64x1xf32>
    %384 = arith.mulf %382, %383 : vector<64x1xf32>
    %385 = vector.broadcast %384 : vector<64x1xf32> to vector<64x32xf32>
    %386 = arith.subf %378, %385 : vector<64x32xf32>
    %387 = arith.mulf %386, %386 : vector<64x32xf32>
    %cst_141 = arith.constant dense<0.000000e+00> : vector<64xf32>
    %388 = vector.multi_reduction <add>, %387, %cst_141 [1] : vector<64x32xf32> to vector<64xf32>
    %389 = vector.shape_cast %388 : vector<64xf32> to vector<64x1xf32>
    %cst_142 = arith.constant 3.125000e-02 : f32
    %390 = vector.broadcast %cst_142 : f32 to vector<64x1xf32>
    %391 = arith.mulf %389, %390 : vector<64x1xf32>
    %cst_143 = arith.constant 9.99999974E-6 : f32
    %392 = vector.broadcast %cst_143 : f32 to vector<64x1xf32>
    %393 = arith.addf %391, %392 : vector<64x1xf32>
    %394 = math.rsqrt %393 : vector<64x1xf32>
    %395 = vector.broadcast %394 : vector<64x1xf32> to vector<64x32xf32>
    %396 = arith.mulf %386, %395 : vector<64x32xf32>
    %397 = vector.broadcast %379 : vector<1x32xf32> to vector<64x32xf32>
    %398 = arith.mulf %396, %397 : vector<64x32xf32>
    %399 = vector.broadcast %380 : vector<1x32xf32> to vector<64x32xf32>
    %400 = arith.addf %398, %399 : vector<64x32xf32>
    %c0_i32_144 = arith.constant 0 : i32
    %401 = tpu.memref_slice %arg26[%c0_i32_144] : memref<2x!tpu.dma_semaphore, #tpu.memory_space<semaphore_mem>> -> memref<1x!tpu.dma_semaphore, #tpu.memory_space<semaphore_mem>>
    %402 = tpu.memref_squeeze %401 : memref<1x!tpu.dma_semaphore, #tpu.memory_space<semaphore_mem>> -> memref<!tpu.dma_semaphore, #tpu.memory_space<semaphore_mem>>
    tpu.wait_dma2 semaphore(%402 : memref<!tpu.dma_semaphore, #tpu.memory_space<semaphore_mem>>) src(%arg11 : memref<32x512xbf16, #tpu.memory_space<any>>) dst(%arg24 : memref<32x512xbf16, #tpu.memory_space<vmem>>)
    %403 = arith.truncf %400 : vector<64x32xf32> to vector<64x32xbf16>
    %c0_145 = arith.constant 0 : index
    %c0_146 = arith.constant 0 : index
    %404 = vector.load %arg24[%c0_145, %c0_146] : memref<32x512xbf16, #tpu.memory_space<vmem>>, vector<32x512xbf16>
    %cst_147 = arith.constant dense<0.000000e+00> : vector<64x512xf32>
    %405 = tpu.matmul %403, %404, %cst_147 {dimension_numbers = #tpu.dot_dimension_numbers<[1], [0], [0], [1], [0, 0, 1, 1], [], []>} : vector<64x32xbf16>, vector<32x512xbf16>, vector<64x512xf32> -> vector<64x512xf32>
    %c0_148 = arith.constant 0 : index
    %c0_149 = arith.constant 0 : index
    %406 = vector.load %arg13[%c0_148, %c0_149] : memref<1x512xf32, #tpu.memory_space<vmem>>, vector<1x512xf32>
    %407 = vector.broadcast %406 : vector<1x512xf32> to vector<64x512xf32>
    %408 = arith.addf %405, %407 : vector<64x512xf32>
    %c0_150 = arith.constant 0 : index
    %c0_151 = arith.constant 0 : index
    %409 = vector.load %arg20[%c0_150, %c0_151] : memref<64x512xf32, #tpu.memory_space<vmem>>, vector<64x512xf32>
    tpu.vector_store %arg20[%c0_150, %c0_151], %408 {strides = array<i32>} : memref<64x512xf32, #tpu.memory_space<vmem>>, vector<64x512xf32>,
    %c1_i32_152 = arith.constant 1 : i32
    %410 = tpu.memref_slice %arg26[%c1_i32_152] : memref<2x!tpu.dma_semaphore, #tpu.memory_space<semaphore_mem>> -> memref<1x!tpu.dma_semaphore, #tpu.memory_space<semaphore_mem>>
    %411 = tpu.memref_squeeze %410 : memref<1x!tpu.dma_semaphore, #tpu.memory_space<semaphore_mem>> -> memref<!tpu.dma_semaphore, #tpu.memory_space<semaphore_mem>>
    tpu.wait_dma2 semaphore(%411 : memref<!tpu.dma_semaphore, #tpu.memory_space<semaphore_mem>>) src(%arg12 : memref<128x512xbf16, #tpu.memory_space<any>>) dst(%arg25 : memref<128x512xbf16, #tpu.memory_space<vmem>>)
    %cst_153 = arith.constant 0.000000e+00 : f32
    %412 = vector.broadcast %cst_153 : f32 to vector<8x128xf32>
    %cst_154 = arith.constant 0.000000e+00 : f32
    %413 = vector.broadcast %cst_154 : f32 to vector<8x128xf32>
    %c0_155 = arith.constant 0 : index
    %c0_156 = arith.constant 0 : index
    %414 = vector.load %arg20[%c0_155, %c0_156] : memref<64x512xf32, #tpu.memory_space<vmem>>, vector<8x512xf32>
    %415 = arith.truncf %412 : vector<8x128xf32> to vector<8x128xbf16>
    %c0_157 = arith.constant 0 : index
    %c0_158 = arith.constant 0 : index
    %416 = vector.load %arg25[%c0_157, %c0_158] : memref<128x512xbf16, #tpu.memory_space<vmem>>, vector<128x512xbf16>
    %cst_159 = arith.constant dense<0.000000e+00> : vector<8x512xf32>
    %417 = tpu.matmul %415, %416, %cst_159 {dimension_numbers = #tpu.dot_dimension_numbers<[1], [0], [0], [1], [0, 0, 1, 1], [], []>} : vector<8x128xbf16>, vector<128x512xbf16>, vector<8x512xf32> -> vector<8x512xf32>
    %418 = arith.addf %414, %417 : vector<8x512xf32>
    %419 = arith.negf %418 : vector<8x512xf32>
    %420 = math.exp %419 : vector<8x512xf32>
    %cst_160 = arith.constant 1.000000e+00 : f32
    %421 = vector.broadcast %cst_160 : f32 to vector<8x512xf32>
    %422 = arith.addf %421, %420 : vector<8x512xf32>
    %423 = arith.divf %421, %422 : vector<8x512xf32>
    %424 = vector.extract_strided_slice %418 {offsets = [0, 384], sizes = [8, 128], strides = [1, 1]} : vector<8x512xf32> to vector<8x128xf32>
    %425 = math.tanh %424 : vector<8x128xf32>
    %426 = vector.extract_strided_slice %423 {offsets = [0, 0], sizes = [8, 128], strides = [1, 1]} : vector<8x512xf32> to vector<8x128xf32>
    %427 = vector.extract_strided_slice %423 {offsets = [0, 128], sizes = [8, 128], strides = [1, 1]} : vector<8x512xf32> to vector<8x128xf32>
    %428 = vector.extract_strided_slice %423 {offsets = [0, 256], sizes = [8, 128], strides = [1, 1]} : vector<8x512xf32> to vector<8x128xf32>
    %429 = arith.mulf %427, %413 : vector<8x128xf32>
    %430 = arith.mulf %426, %425 : vector<8x128xf32>
    %431 = arith.addf %429, %430 : vector<8x128xf32>
    %432 = math.tanh %431 : vector<8x128xf32>
    %433 = arith.mulf %428, %432 : vector<8x128xf32>
    %c0_161 = arith.constant 0 : index
    %c0_162 = arith.constant 0 : index
    %434 = vector.load %arg23[%c0_161, %c0_162] : memref<64x128xf32, #tpu.memory_space<vmem>>, vector<8x128xf32>
    tpu.vector_store %arg23[%c0_161, %c0_162], %433 {strides = array<i32>} : memref<64x128xf32, #tpu.memory_space<vmem>>, vector<8x128xf32>,
    %c8_163 = arith.constant 8 : index
    %c0_164 = arith.constant 0 : index
    %435 = vector.load %arg20[%c8_163, %c0_164] : memref<64x512xf32, #tpu.memory_space<vmem>>, vector<8x512xf32>
    %436 = arith.truncf %433 : vector<8x128xf32> to vector<8x128xbf16>
    %c0_165 = arith.constant 0 : index
    %c0_166 = arith.constant 0 : index
    %437 = vector.load %arg25[%c0_165, %c0_166] : memref<128x512xbf16, #tpu.memory_space<vmem>>, vector<128x512xbf16>
    %cst_167 = arith.constant dense<0.000000e+00> : vector<8x512xf32>
    %438 = tpu.matmul %436, %437, %cst_167 {dimension_numbers = #tpu.dot_dimension_numbers<[1], [0], [0], [1], [0, 0, 1, 1], [], []>} : vector<8x128xbf16>, vector<128x512xbf16>, vector<8x512xf32> -> vector<8x512xf32>
    %439 = arith.addf %435, %438 : vector<8x512xf32>
    %440 = arith.negf %439 : vector<8x512xf32>
    %441 = math.exp %440 : vector<8x512xf32>
    %cst_168 = arith.constant 1.000000e+00 : f32
    %442 = vector.broadcast %cst_168 : f32 to vector<8x512xf32>
    %443 = arith.addf %442, %441 : vector<8x512xf32>
    %444 = arith.divf %442, %443 : vector<8x512xf32>
    %445 = vector.extract_strided_slice %439 {offsets = [0, 384], sizes = [8, 128], strides = [1, 1]} : vector<8x512xf32> to vector<8x128xf32>
    %446 = math.tanh %445 : vector<8x128xf32>
    %447 = vector.extract_strided_slice %444 {offsets = [0, 0], sizes = [8, 128], strides = [1, 1]} : vector<8x512xf32> to vector<8x128xf32>
    %448 = vector.extract_strided_slice %444 {offsets = [0, 128], sizes = [8, 128], strides = [1, 1]} : vector<8x512xf32> to vector<8x128xf32>
    %449 = vector.extract_strided_slice %444 {offsets = [0, 256], sizes = [8, 128], strides = [1, 1]} : vector<8x512xf32> to vector<8x128xf32>
    %450 = arith.mulf %448, %431 : vector<8x128xf32>
    %451 = arith.mulf %447, %446 : vector<8x128xf32>
    %452 = arith.addf %450, %451 : vector<8x128xf32>
    %453 = math.tanh %452 : vector<8x128xf32>
    %454 = arith.mulf %449, %453 : vector<8x128xf32>
    %c8_169 = arith.constant 8 : index
    %c0_170 = arith.constant 0 : index
    %455 = vector.load %arg23[%c8_169, %c0_170] : memref<64x128xf32, #tpu.memory_space<vmem>>, vector<8x128xf32>
    tpu.vector_store %arg23[%c8_169, %c0_170], %454 {strides = array<i32>} : memref<64x128xf32, #tpu.memory_space<vmem>>, vector<8x128xf32>,
    %c16_171 = arith.constant 16 : index
    %c0_172 = arith.constant 0 : index
    %456 = vector.load %arg20[%c16_171, %c0_172] : memref<64x512xf32, #tpu.memory_space<vmem>>, vector<8x512xf32>
    %457 = arith.truncf %454 : vector<8x128xf32> to vector<8x128xbf16>
    %c0_173 = arith.constant 0 : index
    %c0_174 = arith.constant 0 : index
    %458 = vector.load %arg25[%c0_173, %c0_174] : memref<128x512xbf16, #tpu.memory_space<vmem>>, vector<128x512xbf16>
    %cst_175 = arith.constant dense<0.000000e+00> : vector<8x512xf32>
    %459 = tpu.matmul %457, %458, %cst_175 {dimension_numbers = #tpu.dot_dimension_numbers<[1], [0], [0], [1], [0, 0, 1, 1], [], []>} : vector<8x128xbf16>, vector<128x512xbf16>, vector<8x512xf32> -> vector<8x512xf32>
    %460 = arith.addf %456, %459 : vector<8x512xf32>
    %461 = arith.negf %460 : vector<8x512xf32>
    %462 = math.exp %461 : vector<8x512xf32>
    %cst_176 = arith.constant 1.000000e+00 : f32
    %463 = vector.broadcast %cst_176 : f32 to vector<8x512xf32>
    %464 = arith.addf %463, %462 : vector<8x512xf32>
    %465 = arith.divf %463, %464 : vector<8x512xf32>
    %466 = vector.extract_strided_slice %460 {offsets = [0, 384], sizes = [8, 128], strides = [1, 1]} : vector<8x512xf32> to vector<8x128xf32>
    %467 = math.tanh %466 : vector<8x128xf32>
    %468 = vector.extract_strided_slice %465 {offsets = [0, 0], sizes = [8, 128], strides = [1, 1]} : vector<8x512xf32> to vector<8x128xf32>
    %469 = vector.extract_strided_slice %465 {offsets = [0, 128], sizes = [8, 128], strides = [1, 1]} : vector<8x512xf32> to vector<8x128xf32>
    %470 = vector.extract_strided_slice %465 {offsets = [0, 256], sizes = [8, 128], strides = [1, 1]} : vector<8x512xf32> to vector<8x128xf32>
    %471 = arith.mulf %469, %452 : vector<8x128xf32>
    %472 = arith.mulf %468, %467 : vector<8x128xf32>
    %473 = arith.addf %471, %472 : vector<8x128xf32>
    %474 = math.tanh %473 : vector<8x128xf32>
    %475 = arith.mulf %470, %474 : vector<8x128xf32>
    %c16_177 = arith.constant 16 : index
    %c0_178 = arith.constant 0 : index
    %476 = vector.load %arg23[%c16_177, %c0_178] : memref<64x128xf32, #tpu.memory_space<vmem>>, vector<8x128xf32>
    tpu.vector_store %arg23[%c16_177, %c0_178], %475 {strides = array<i32>} : memref<64x128xf32, #tpu.memory_space<vmem>>, vector<8x128xf32>,
    %c24_179 = arith.constant 24 : index
    %c0_180 = arith.constant 0 : index
    %477 = vector.load %arg20[%c24_179, %c0_180] : memref<64x512xf32, #tpu.memory_space<vmem>>, vector<8x512xf32>
    %478 = arith.truncf %475 : vector<8x128xf32> to vector<8x128xbf16>
    %c0_181 = arith.constant 0 : index
    %c0_182 = arith.constant 0 : index
    %479 = vector.load %arg25[%c0_181, %c0_182] : memref<128x512xbf16, #tpu.memory_space<vmem>>, vector<128x512xbf16>
    %cst_183 = arith.constant dense<0.000000e+00> : vector<8x512xf32>
    %480 = tpu.matmul %478, %479, %cst_183 {dimension_numbers = #tpu.dot_dimension_numbers<[1], [0], [0], [1], [0, 0, 1, 1], [], []>} : vector<8x128xbf16>, vector<128x512xbf16>, vector<8x512xf32> -> vector<8x512xf32>
    %481 = arith.addf %477, %480 : vector<8x512xf32>
    %482 = arith.negf %481 : vector<8x512xf32>
    %483 = math.exp %482 : vector<8x512xf32>
    %cst_184 = arith.constant 1.000000e+00 : f32
    %484 = vector.broadcast %cst_184 : f32 to vector<8x512xf32>
    %485 = arith.addf %484, %483 : vector<8x512xf32>
    %486 = arith.divf %484, %485 : vector<8x512xf32>
    %487 = vector.extract_strided_slice %481 {offsets = [0, 384], sizes = [8, 128], strides = [1, 1]} : vector<8x512xf32> to vector<8x128xf32>
    %488 = math.tanh %487 : vector<8x128xf32>
    %489 = vector.extract_strided_slice %486 {offsets = [0, 0], sizes = [8, 128], strides = [1, 1]} : vector<8x512xf32> to vector<8x128xf32>
    %490 = vector.extract_strided_slice %486 {offsets = [0, 128], sizes = [8, 128], strides = [1, 1]} : vector<8x512xf32> to vector<8x128xf32>
    %491 = vector.extract_strided_slice %486 {offsets = [0, 256], sizes = [8, 128], strides = [1, 1]} : vector<8x512xf32> to vector<8x128xf32>
    %492 = arith.mulf %490, %473 : vector<8x128xf32>
    %493 = arith.mulf %489, %488 : vector<8x128xf32>
    %494 = arith.addf %492, %493 : vector<8x128xf32>
    %495 = math.tanh %494 : vector<8x128xf32>
    %496 = arith.mulf %491, %495 : vector<8x128xf32>
    %c24_185 = arith.constant 24 : index
    %c0_186 = arith.constant 0 : index
    %497 = vector.load %arg23[%c24_185, %c0_186] : memref<64x128xf32, #tpu.memory_space<vmem>>, vector<8x128xf32>
    tpu.vector_store %arg23[%c24_185, %c0_186], %496 {strides = array<i32>} : memref<64x128xf32, #tpu.memory_space<vmem>>, vector<8x128xf32>,
    %c32_187 = arith.constant 32 : index
    %c0_188 = arith.constant 0 : index
    %498 = vector.load %arg20[%c32_187, %c0_188] : memref<64x512xf32, #tpu.memory_space<vmem>>, vector<8x512xf32>
    %499 = arith.truncf %496 : vector<8x128xf32> to vector<8x128xbf16>
    %c0_189 = arith.constant 0 : index
    %c0_190 = arith.constant 0 : index
    %500 = vector.load %arg25[%c0_189, %c0_190] : memref<128x512xbf16, #tpu.memory_space<vmem>>, vector<128x512xbf16>
    %cst_191 = arith.constant dense<0.000000e+00> : vector<8x512xf32>
    %501 = tpu.matmul %499, %500, %cst_191 {dimension_numbers = #tpu.dot_dimension_numbers<[1], [0], [0], [1], [0, 0, 1, 1], [], []>} : vector<8x128xbf16>, vector<128x512xbf16>, vector<8x512xf32> -> vector<8x512xf32>
    %502 = arith.addf %498, %501 : vector<8x512xf32>
    %503 = arith.negf %502 : vector<8x512xf32>
    %504 = math.exp %503 : vector<8x512xf32>
    %cst_192 = arith.constant 1.000000e+00 : f32
    %505 = vector.broadcast %cst_192 : f32 to vector<8x512xf32>
    %506 = arith.addf %505, %504 : vector<8x512xf32>
    %507 = arith.divf %505, %506 : vector<8x512xf32>
    %508 = vector.extract_strided_slice %502 {offsets = [0, 384], sizes = [8, 128], strides = [1, 1]} : vector<8x512xf32> to vector<8x128xf32>
    %509 = math.tanh %508 : vector<8x128xf32>
    %510 = vector.extract_strided_slice %507 {offsets = [0, 0], sizes = [8, 128], strides = [1, 1]} : vector<8x512xf32> to vector<8x128xf32>
    %511 = vector.extract_strided_slice %507 {offsets = [0, 128], sizes = [8, 128], strides = [1, 1]} : vector<8x512xf32> to vector<8x128xf32>
    %512 = vector.extract_strided_slice %507 {offsets = [0, 256], sizes = [8, 128], strides = [1, 1]} : vector<8x512xf32> to vector<8x128xf32>
    %513 = arith.mulf %511, %494 : vector<8x128xf32>
    %514 = arith.mulf %510, %509 : vector<8x128xf32>
    %515 = arith.addf %513, %514 : vector<8x128xf32>
    %516 = math.tanh %515 : vector<8x128xf32>
    %517 = arith.mulf %512, %516 : vector<8x128xf32>
    %c32_193 = arith.constant 32 : index
    %c0_194 = arith.constant 0 : index
    %518 = vector.load %arg23[%c32_193, %c0_194] : memref<64x128xf32, #tpu.memory_space<vmem>>, vector<8x128xf32>
    tpu.vector_store %arg23[%c32_193, %c0_194], %517 {strides = array<i32>} : memref<64x128xf32, #tpu.memory_space<vmem>>, vector<8x128xf32>,
    %c40_195 = arith.constant 40 : index
    %c0_196 = arith.constant 0 : index
    %519 = vector.load %arg20[%c40_195, %c0_196] : memref<64x512xf32, #tpu.memory_space<vmem>>, vector<8x512xf32>
    %520 = arith.truncf %517 : vector<8x128xf32> to vector<8x128xbf16>
    %c0_197 = arith.constant 0 : index
    %c0_198 = arith.constant 0 : index
    %521 = vector.load %arg25[%c0_197, %c0_198] : memref<128x512xbf16, #tpu.memory_space<vmem>>, vector<128x512xbf16>
    %cst_199 = arith.constant dense<0.000000e+00> : vector<8x512xf32>
    %522 = tpu.matmul %520, %521, %cst_199 {dimension_numbers = #tpu.dot_dimension_numbers<[1], [0], [0], [1], [0, 0, 1, 1], [], []>} : vector<8x128xbf16>, vector<128x512xbf16>, vector<8x512xf32> -> vector<8x512xf32>
    %523 = arith.addf %519, %522 : vector<8x512xf32>
    %524 = arith.negf %523 : vector<8x512xf32>
    %525 = math.exp %524 : vector<8x512xf32>
    %cst_200 = arith.constant 1.000000e+00 : f32
    %526 = vector.broadcast %cst_200 : f32 to vector<8x512xf32>
    %527 = arith.addf %526, %525 : vector<8x512xf32>
    %528 = arith.divf %526, %527 : vector<8x512xf32>
    %529 = vector.extract_strided_slice %523 {offsets = [0, 384], sizes = [8, 128], strides = [1, 1]} : vector<8x512xf32> to vector<8x128xf32>
    %530 = math.tanh %529 : vector<8x128xf32>
    %531 = vector.extract_strided_slice %528 {offsets = [0, 0], sizes = [8, 128], strides = [1, 1]} : vector<8x512xf32> to vector<8x128xf32>
    %532 = vector.extract_strided_slice %528 {offsets = [0, 128], sizes = [8, 128], strides = [1, 1]} : vector<8x512xf32> to vector<8x128xf32>
    %533 = vector.extract_strided_slice %528 {offsets = [0, 256], sizes = [8, 128], strides = [1, 1]} : vector<8x512xf32> to vector<8x128xf32>
    %534 = arith.mulf %532, %515 : vector<8x128xf32>
    %535 = arith.mulf %531, %530 : vector<8x128xf32>
    %536 = arith.addf %534, %535 : vector<8x128xf32>
    %537 = math.tanh %536 : vector<8x128xf32>
    %538 = arith.mulf %533, %537 : vector<8x128xf32>
    %c40_201 = arith.constant 40 : index
    %c0_202 = arith.constant 0 : index
    %539 = vector.load %arg23[%c40_201, %c0_202] : memref<64x128xf32, #tpu.memory_space<vmem>>, vector<8x128xf32>
    tpu.vector_store %arg23[%c40_201, %c0_202], %538 {strides = array<i32>} : memref<64x128xf32, #tpu.memory_space<vmem>>, vector<8x128xf32>,
    %c48_203 = arith.constant 48 : index
    %c0_204 = arith.constant 0 : index
    %540 = vector.load %arg20[%c48_203, %c0_204] : memref<64x512xf32, #tpu.memory_space<vmem>>, vector<8x512xf32>
    %541 = arith.truncf %538 : vector<8x128xf32> to vector<8x128xbf16>
    %c0_205 = arith.constant 0 : index
    %c0_206 = arith.constant 0 : index
    %542 = vector.load %arg25[%c0_205, %c0_206] : memref<128x512xbf16, #tpu.memory_space<vmem>>, vector<128x512xbf16>
    %cst_207 = arith.constant dense<0.000000e+00> : vector<8x512xf32>
    %543 = tpu.matmul %541, %542, %cst_207 {dimension_numbers = #tpu.dot_dimension_numbers<[1], [0], [0], [1], [0, 0, 1, 1], [], []>} : vector<8x128xbf16>, vector<128x512xbf16>, vector<8x512xf32> -> vector<8x512xf32>
    %544 = arith.addf %540, %543 : vector<8x512xf32>
    %545 = arith.negf %544 : vector<8x512xf32>
    %546 = math.exp %545 : vector<8x512xf32>
    %cst_208 = arith.constant 1.000000e+00 : f32
    %547 = vector.broadcast %cst_208 : f32 to vector<8x512xf32>
    %548 = arith.addf %547, %546 : vector<8x512xf32>
    %549 = arith.divf %547, %548 : vector<8x512xf32>
    %550 = vector.extract_strided_slice %544 {offsets = [0, 384], sizes = [8, 128], strides = [1, 1]} : vector<8x512xf32> to vector<8x128xf32>
    %551 = math.tanh %550 : vector<8x128xf32>
    %552 = vector.extract_strided_slice %549 {offsets = [0, 0], sizes = [8, 128], strides = [1, 1]} : vector<8x512xf32> to vector<8x128xf32>
    %553 = vector.extract_strided_slice %549 {offsets = [0, 128], sizes = [8, 128], strides = [1, 1]} : vector<8x512xf32> to vector<8x128xf32>
    %554 = vector.extract_strided_slice %549 {offsets = [0, 256], sizes = [8, 128], strides = [1, 1]} : vector<8x512xf32> to vector<8x128xf32>
    %555 = arith.mulf %553, %536 : vector<8x128xf32>
    %556 = arith.mulf %552, %551 : vector<8x128xf32>
    %557 = arith.addf %555, %556 : vector<8x128xf32>
    %558 = math.tanh %557 : vector<8x128xf32>
    %559 = arith.mulf %554, %558 : vector<8x128xf32>
    %c48_209 = arith.constant 48 : index
    %c0_210 = arith.constant 0 : index
    %560 = vector.load %arg23[%c48_209, %c0_210] : memref<64x128xf32, #tpu.memory_space<vmem>>, vector<8x128xf32>
    tpu.vector_store %arg23[%c48_209, %c0_210], %559 {strides = array<i32>} : memref<64x128xf32, #tpu.memory_space<vmem>>, vector<8x128xf32>,
    %c56_211 = arith.constant 56 : index
    %c0_212 = arith.constant 0 : index
    %561 = vector.load %arg20[%c56_211, %c0_212] : memref<64x512xf32, #tpu.memory_space<vmem>>, vector<8x512xf32>
    %562 = arith.truncf %559 : vector<8x128xf32> to vector<8x128xbf16>
    %c0_213 = arith.constant 0 : index
    %c0_214 = arith.constant 0 : index
    %563 = vector.load %arg25[%c0_213, %c0_214] : memref<128x512xbf16, #tpu.memory_space<vmem>>, vector<128x512xbf16>
    %cst_215 = arith.constant dense<0.000000e+00> : vector<8x512xf32>
    %564 = tpu.matmul %562, %563, %cst_215 {dimension_numbers = #tpu.dot_dimension_numbers<[1], [0], [0], [1], [0, 0, 1, 1], [], []>} : vector<8x128xbf16>, vector<128x512xbf16>, vector<8x512xf32> -> vector<8x512xf32>
    %565 = arith.addf %561, %564 : vector<8x512xf32>
    %566 = arith.negf %565 : vector<8x512xf32>
    %567 = math.exp %566 : vector<8x512xf32>
    %cst_216 = arith.constant 1.000000e+00 : f32
    %568 = vector.broadcast %cst_216 : f32 to vector<8x512xf32>
    %569 = arith.addf %568, %567 : vector<8x512xf32>
    %570 = arith.divf %568, %569 : vector<8x512xf32>
    %571 = vector.extract_strided_slice %565 {offsets = [0, 384], sizes = [8, 128], strides = [1, 1]} : vector<8x512xf32> to vector<8x128xf32>
    %572 = math.tanh %571 : vector<8x128xf32>
    %573 = vector.extract_strided_slice %570 {offsets = [0, 0], sizes = [8, 128], strides = [1, 1]} : vector<8x512xf32> to vector<8x128xf32>
    %574 = vector.extract_strided_slice %570 {offsets = [0, 128], sizes = [8, 128], strides = [1, 1]} : vector<8x512xf32> to vector<8x128xf32>
    %575 = vector.extract_strided_slice %570 {offsets = [0, 256], sizes = [8, 128], strides = [1, 1]} : vector<8x512xf32> to vector<8x128xf32>
    %576 = arith.mulf %574, %557 : vector<8x128xf32>
    %577 = arith.mulf %573, %572 : vector<8x128xf32>
    %578 = arith.addf %576, %577 : vector<8x128xf32>
    %579 = math.tanh %578 : vector<8x128xf32>
    %580 = arith.mulf %575, %579 : vector<8x128xf32>
    %c56_217 = arith.constant 56 : index
    %c0_218 = arith.constant 0 : index
    %581 = vector.load %arg23[%c56_217, %c0_218] : memref<64x128xf32, #tpu.memory_space<vmem>>, vector<8x128xf32>
    tpu.vector_store %arg23[%c56_217, %c0_218], %580 {strides = array<i32>} : memref<64x128xf32, #tpu.memory_space<vmem>>, vector<8x128xf32>,
    %c0_219 = arith.constant 0 : index
    %c0_220 = arith.constant 0 : index
    %582 = vector.load %arg23[%c0_219, %c0_220] : memref<64x128xf32, #tpu.memory_space<vmem>>, vector<64x128xf32>
    %c0_221 = arith.constant 0 : index
    %c0_222 = arith.constant 0 : index
    %583 = vector.load %arg14[%c0_221, %c0_222] : memref<1x128xf32, #tpu.memory_space<vmem>>, vector<1x128xf32>
    %c0_223 = arith.constant 0 : index
    %c0_224 = arith.constant 0 : index
    %584 = vector.load %arg15[%c0_223, %c0_224] : memref<1x128xf32, #tpu.memory_space<vmem>>, vector<1x128xf32>
    %cst_225 = arith.constant dense<0.000000e+00> : vector<64xf32>
    %585 = vector.multi_reduction <add>, %582, %cst_225 [1] : vector<64x128xf32> to vector<64xf32>
    %586 = vector.shape_cast %585 : vector<64xf32> to vector<64x1xf32>
    %cst_226 = arith.constant 7.812500e-03 : f32
    %587 = vector.broadcast %cst_226 : f32 to vector<64x1xf32>
    %588 = arith.mulf %586, %587 : vector<64x1xf32>
    %589 = vector.broadcast %588 : vector<64x1xf32> to vector<64x128xf32>
    %590 = arith.subf %582, %589 : vector<64x128xf32>
    %591 = arith.mulf %590, %590 : vector<64x128xf32>
    %cst_227 = arith.constant dense<0.000000e+00> : vector<64xf32>
    %592 = vector.multi_reduction <add>, %591, %cst_227 [1] : vector<64x128xf32> to vector<64xf32>
    %593 = vector.shape_cast %592 : vector<64xf32> to vector<64x1xf32>
    %cst_228 = arith.constant 7.812500e-03 : f32
    %594 = vector.broadcast %cst_228 : f32 to vector<64x1xf32>
    %595 = arith.mulf %593, %594 : vector<64x1xf32>
    %cst_229 = arith.constant 9.99999974E-6 : f32
    %596 = vector.broadcast %cst_229 : f32 to vector<64x1xf32>
    %597 = arith.addf %595, %596 : vector<64x1xf32>
    %598 = math.rsqrt %597 : vector<64x1xf32>
    %599 = vector.broadcast %598 : vector<64x1xf32> to vector<64x128xf32>
    %600 = arith.mulf %590, %599 : vector<64x128xf32>
    %601 = vector.broadcast %583 : vector<1x128xf32> to vector<64x128xf32>
    %602 = arith.mulf %600, %601 : vector<64x128xf32>
    %603 = vector.broadcast %584 : vector<1x128xf32> to vector<64x128xf32>
    %604 = arith.addf %602, %603 : vector<64x128xf32>
    %605 = arith.truncf %604 : vector<64x128xf32> to vector<64x128xbf16>
    %c0_230 = arith.constant 0 : index
    %c0_231 = arith.constant 0 : index
    %606 = vector.load %arg16[%c0_230, %c0_231] : memref<128x128xbf16, #tpu.memory_space<vmem>>, vector<128x128xbf16>
    %cst_232 = arith.constant dense<0.000000e+00> : vector<64x128xf32>
    %607 = tpu.matmul %605, %606, %cst_232 {dimension_numbers = #tpu.dot_dimension_numbers<[1], [0], [0], [1], [0, 0, 1, 1], [], []>} : vector<64x128xbf16>, vector<128x128xbf16>, vector<64x128xf32> -> vector<64x128xf32>
    %c0_233 = arith.constant 0 : index
    %c0_234 = arith.constant 0 : index
    %608 = vector.load %arg17[%c0_233, %c0_234] : memref<1x128xf32, #tpu.memory_space<vmem>>, vector<1x128xf32>
    %609 = vector.broadcast %608 : vector<1x128xf32> to vector<64x128xf32>
    %610 = arith.addf %607, %609 : vector<64x128xf32>
    %c0_235 = arith.constant 0 : index
    %c0_236 = arith.constant 0 : index
    %611 = vector.load %arg18[%c0_235, %c0_236] : memref<64x128xf32, #tpu.memory_space<vmem>>, vector<64x128xf32>
    tpu.vector_store %arg18[%c0_235, %c0_236], %610 {strides = array<i32>} : memref<64x128xf32, #tpu.memory_space<vmem>>, vector<64x128xf32>,
    return
  }
}

</mosaic_0001>

<bundles_post_ra>
// kernel: tpu_custom_call.1
= control target key start
LH: loop header
LB: loop body
LE: loop exit
PB: predicated region body
PF: predicated region fallthrough
CT: control target
= control target key end

     0   :  { %s8395_s0 = inlined_call_operand.hbm [shape: f32[8,128], index: 0, kind: input, shape index: {}]   ;;  %s8396_s1 = inlined_call_operand.hbm [shape: bf16[128,128], index: 1, kind: input, shape index: {}]   ;;  %s8397_s2 = inlined_call_operand.hbm [shape: bf16[32,128], index: 2, kind: input, shape index: {}]   ;;  %s8398_s3 = inlined_call_operand.vmem [shape: f32[1,128], index: 3, kind: input, shape index: {}]   ;;  %s8399_s4 = inlined_call_operand.vmem [shape: f32[1,32], index: 4, kind: input, shape index: {}]   ;;  %s8400_s5 = inlined_call_operand.vmem [shape: f32[1,32], index: 5, kind: input, shape index: {}]   ;;  %s8401_s6 = inlined_call_operand.hbm [shape: bf16[32,128], index: 6, kind: input, shape index: {}]   ;;  %s8402_s7 = inlined_call_operand.hbm [shape: bf16[32,128], index: 7, kind: input, shape index: {}]   ;;  %s8403_s8 = inlined_call_operand.hbm [shape: f32[1,128], index: 8, kind: input, shape index: {}]   ;;  %s8404_s9 = inlined_call_operand.vmem [shape: f32[1,32], index: 9, kind: input, shape index: {}]   ;;  %s8405_s10 = inlined_call_operand.vmem [shape: f32[1,32], index: 10, kind: input, shape index: {}]   ;;  %s8406_s11 = inlined_call_operand.hbm [shape: bf16[32,512], index: 11, kind: input, shape index: {}]   ;;  %s8407_s12 = inlined_call_operand.hbm [shape: bf16[128,512], index: 12, kind: input, shape index: {}]   ;;  %s8408_s13 = inlined_call_operand.vmem [shape: f32[1,512], index: 13, kind: input, shape index: {}]   ;;  %s8409_s14 = inlined_call_operand.vmem [shape: f32[1,128], index: 14, kind: input, shape index: {}]   ;;  %s8410_s15 = inlined_call_operand.vmem [shape: f32[1,128], index: 15, kind: input, shape index: {}]   ;;  %s8411_s16 = inlined_call_operand.hbm [shape: bf16[128,128], index: 16, kind: input, shape index: {}]   ;;  %s8412_s17 = inlined_call_operand.vmem [shape: f32[1,128], index: 17, kind: input, shape index: {}]   ;;  %s8413_s18 = inlined_call_operand.hbm [shape: f32[64,128], index: 18, kind: output, shape index: {}]  }
   0x1   :  { %8414 = sst [smem:[#allocation36_spill]] %s8395_s0 }
   0x2   :  { %8415 = sst [smem:[#allocation37_spill]] %s8396_s1 }
   0x3   :  { %8416 = sst [smem:[#allocation38_spill]] %s8397_s2 }
   0x4   :  { %8417 = sst [smem:[#allocation39_spill]] %s8413_s18 }
   0x5   :  { %23 = vsyncpa [#allocation11], 0 }
   0x6   :  { %24 = vsyncpa [#allocation14], 0 }
   0x7   :  { %25 = vsyncpa [#allocation17], 0 }
   0x8   :  { %26 = vsyncpa [#allocation20], 0  ;;  %s8418_s29 = sld [smem:[#allocation37_spill]] }
   0xe   :  { %s43_s30 = sshll.u32 %s8418_s29, 4  ;;  %s44_s30 = int_to_ptr.hbm [resolvable:$true] %s43_s30 }
   0xf   :  { %27 = vsyncpa [#allocation12], 0  ;;  %s7366_s0 = smov [#allocation13]   ;;  %s75_s21 = sshll.u32 %s8401_s6, 4  ;;  %s76_s21 = int_to_ptr.hbm [resolvable:$true] %s75_s21 }
  0x10   :  { %s45_s19 = sshll.u32 %s7366_s0, 4  ;;  %s7367_s22 = smov 64   ;;  %s46_s19 = int_to_ptr.vmem [resolvable:$true] %s45_s19 }
  0x11   :  { %s7368_s2 = smov 4   ;;  %s7369_s23 = smov [#allocation16]  }
  0x12   :  { %51 = dma.hbm_to_vmem [thread:$0]  %s44_s30, 1024, %s46_s19, [#allocation14], %s7367_s22, %s7367_s22, %s7368_s2  }
  0x13   :  { %s77_s24 = sshll.u32 %s7369_s23, 4  ;;  %s102_s27 = sshll.u32 %s8403_s8, 4  ;;  %s78_s24 = int_to_ptr.vmem [resolvable:$true] %s77_s24  ;;  %s103_s27 = int_to_ptr.hbm [resolvable:$true] %s102_s27 }
  0x14   :  { %83 = dma.hbm_to_vmem [thread:$0]  %s76_s21, 256, %s78_s24, [#allocation17], %s7367_s22, %s7367_s22, %s7368_s2  }
  0x15   :  { %s8419_s29 = sld [smem:[#allocation36_spill]]  ;;  %s7370_s1 = smov [#allocation19]  }
  0x16   :  { %s104_s20 = sshll.u32 %s7370_s1, 4  ;;  %s7371_s30 = smov [#allocation10]   ;;  %s105_s20 = int_to_ptr.vmem [resolvable:$true] %s104_s20 }
  0x17   :  { %107 = dma.hbm_to_vmem [thread:$0]  %s103_s27, 16, %s105_s20, [#allocation20]  }
  0x18   :  { %s35_s19 = sshll.u32 %s7371_s30, 4  ;;  %s8420_s8 = sld [smem:[#allocation38_spill]]  ;;  %s36_s19 = int_to_ptr.vmem [resolvable:$true] %s35_s19 }
  0x19   :  { %s88_s24 = sshll.u32 %s8402_s7, 4  ;;  %s7372_s6 = smov [#allocation15]   ;;  %s89_s24 = int_to_ptr.hbm [resolvable:$true] %s88_s24 }
  0x1a   :  { %s58_s28 = sshll.u32 %s7372_s6, 4  ;;  %s7373_s27 = smov [#allocation18]   ;;  %s59_s28 = int_to_ptr.vmem [resolvable:$true] %s58_s28 }
  0x1b   :  { %s33_s0 = sshll.u32 %s8419_s29, 4  ;;  %s90_s29 = sshll.u32 %s7373_s27, 4  ;;  %s34_s0 = int_to_ptr.hbm [resolvable:$true] %s33_s0  ;;  %s91_s29 = int_to_ptr.vmem [resolvable:$true] %s90_s29 }
  0x1c   :  { %38 = dma.hbm_to_vmem [thread:$0]  %s34_s0, 128, %s36_s19, [#allocation11]  }
  0x1d   :  { %s122_s30 = sshll.u32 %s8411_s16, 4  ;;  %s7374_s7 = smov [#allocation21]   ;;  %s123_s30 = int_to_ptr.hbm [resolvable:$true] %s122_s30 }
  0x1e   :  { %s56_s26 = sshll.u32 %s8420_s8, 4  ;;  %s124_s18 = sshll.u32 %s7374_s7, 4  ;;  %s57_s26 = int_to_ptr.hbm [resolvable:$true] %s56_s26  ;;  %s125_s18 = int_to_ptr.vmem [resolvable:$true] %s124_s18 }
  0x1f   :  { %64 = dma.hbm_to_vmem [thread:$0]  %s57_s26, 256, %s59_s28, [#allocation14], %s7367_s22, %s7367_s22, %s7368_s2  }
  0x20   :  { %96 = dma.hbm_to_vmem [thread:$0]  %s89_s24, 256, %s91_s29, [#allocation17], %s7367_s22, %s7367_s22, %s7368_s2  }
  0x21   :  { %130 = dma.hbm_to_vmem [thread:$0]  %s123_s30, 1024, %s125_s18, [#allocation20], %s7367_s22, %s7367_s22, %s7368_s2  }
  0x22   :  { %7352 = dma.done.wait [#allocation11], 128  }
  0x23   :  { %7353 = vsyncadd [#allocation11], 4294967168 }
  0x24   :  { %7354 = dma.done.wait [#allocation14], 1280  }
  0x25   :  { %7355 = vsyncadd [#allocation14], 4294966016 }
  0x26   :  { %7356 = dma.done.wait [#allocation17], 512  }
  0x27   :  { %7357 = vsyncadd [#allocation17], 4294966784 }
  0x28   :  { %7358 = dma.done.wait [#allocation20], 1040  }
  0x29   :  { %7359 = vsyncadd [#allocation20], 4294966256  ;;  %v6474_v0 = vld [vmem:[#allocation13 + $0x38] sm:$0xff]  ;;  %v6476_v1 = vld [vmem:[#allocation15 + $0x8] sm:$0xff]  ;;  %v7375_v6 = vmov 0   ;;  %s7376_s0 = smov 32  }
  0x2a   :  { %259 = vmatpush.bf16.msra.mxu0 %v6474_v0  ;;  %v6473_v2 = vld [vmem:[#allocation13 + $0x30] sm:$0xff]  ;;  %298 = vmatpush.bf16.msra.mxu1 %v6476_v1  ;;  %v6475_v3 = vld [vmem:[#allocation15] sm:$0xff]  ;;  %v6472_v4 = vld [vmem:[#allocation13 + $0x28] sm:$0xff]  ;;  %vm288_vm4 = vcmask 261120   ;;  %s169_s26 = sshll.u32 %s8406_s11, 4  ;;  %s7377_s21 = smov [#allocation7]   ;;  %s170_s26 = int_to_ptr.hbm [resolvable:$true] %s169_s26 }
  0x2b   :  { %v6471_v5 = vld [vmem:[#allocation13 + $0x20] sm:$0xff]  ;;  %v6470_v7 = vld [vmem:[#allocation13 + $0x18] sm:$0xff]  ;;  %v6469_v8 = vld [vmem:[#allocation13 + $0x10] sm:$0xff]  ;;  %s171_s24 = sshll.u32 %s7377_s21, 4  ;;  %s183_s27 = sshll.u32 %s8407_s12, 4  ;;  %s172_s24 = int_to_ptr.vmem [resolvable:$true] %s171_s24  ;;  %s184_s27 = int_to_ptr.hbm [resolvable:$true] %s183_s27 }
  0x2c   :  { %v6468_v9 = vld [vmem:[#allocation13 + $0x8] sm:$0xff]  ;;  %v6467_v10 = vld [vmem:[#allocation13] sm:$0xff]  ;;  %v189_v11 = vld [vmem:[#allocation10] sm:$0xff]  ;;  %174 = dma.hbm_to_vmem [thread:$0]  %s170_s26, 1024, %s172_s24, [#allocation9] }
  0x2d   :  { %v190_v12 = vpack.c.bf16 %v189_v11, %v189_v11  ;;  %v6799_v15 = vld [vmem:[%s8398_s3] ss:$0 sm:$0xff]  ;;  %v6478_v40 = vld [vmem:[#allocation15 + $0x8] sm:$0xff]  ;;  %v6477_v41 = vld [vmem:[#allocation15] sm:$0xff]  ;;  %s7378_s29 = smov [#allocation8]  }
  0x2e   :  { %260 = vmatpush.bf16.msra.mxu0 %v6473_v2  ;;  %299 = vmatpush.bf16.msra.mxu1 %v6475_v3  ;;  %s185_s1 = sshll.u32 %s7378_s29, 4  ;;  %s186_s1 = int_to_ptr.vmem [resolvable:$true] %s185_s1 }
  0x2f   :  { %188 = dma.hbm_to_vmem [thread:$0]  %s184_s27, 4096, %s186_s1, [#allocation9 + $0x1] }
  0x31   :  { %300 = vmatmul.bf16.vlgmr.msra.gmra.mxu1 %v7375_v6 }
  0x32   :  { %261 = vmatpush.bf16.msra.mxu0 %v6472_v4  ;;  %377 = vmatpush.bf16.msrb.mxu1 %v6478_v40 }
  0x36   :  { %262 = vmatpush.bf16.msra.mxu0 %v6471_v5  ;;  %378 = vmatpush.bf16.msrb.mxu1 %v6477_v41  ;;  %v6480_v5 = vld [vmem:[#allocation15 + $0x8] sm:$0xff] }
  0x37   :  { %456 = vmatpush.bf16.msra.mxu3 %v6480_v5 }
  0x3a   :  { %263 = vmatpush.bf16.msra.mxu0 %v6470_v7  ;;  %v6479_v7 = vld [vmem:[#allocation15] sm:$0xff] }
  0x3b   :  { %457 = vmatpush.bf16.msra.mxu3 %v6479_v7 }
  0x3e   :  { %264 = vmatpush.bf16.msra.mxu0 %v6469_v8 }
  0x42   :  { %265 = vmatpush.bf16.msra.mxu0 %v6468_v9 }
  0x46   :  { %266 = vmatpush.bf16.msra.mxu0 %v6467_v10 }
  0x49   :  { %267 = vmatmul.bf16.vlgmr.msra.gmra.mxu0 %v190_v12 }
  0xae   :  { %v301_v13 = vpop.f32.mrf.mxu1 }
  0xb6   :  { %v303_v14 = vpop.f32.mrf.mxu1 }
  0xc6   :  { %v268_v16 = vpop.f32.mrf.mxu0 }
  0xc7   :  { %v7517_v17 = vadd.f32 %v6799_v15, %v268_v16 }
  0xc9   :  { %v305_v18 = vadd.f32 %v301_v13, %v7517_v17 }
  0xcb   :  { %6805 = vtanh.f32 %v305_v18  ;;  %v5175_v21 = vmul.f32 -1.442695, %v305_v18 }
  0xcd   :  { %6807 = vpow2.f32 %v5175_v21 }
  0xce   :  { %v270_v19 = vpop.f32.mrf.mxu0 }
  0xd1   :  { %v6806_v20 = vpop.eup %6805 }
  0xd2   :  { %328 = vrot.lane.b32.xlu0 %v6806_v20, %s7376_s0 }
  0xd3   :  { %v6808_v22 = vpop.eup %6807 }
  0xd4   :  { %v309_v23 = vadd.f32 1.0, %v6808_v22 }
  0xd6   :  { %6809 = vrcp.f32 %v309_v23  ;;  %v321_v29 = vand.u32 2147483648, %v309_v23  ;;  %vm315_vm1 = vweird.f32 %v309_v23  ;;  %v319_v30 = vand.u32 2147483647, %v309_v23 }
  0xd8   :  { %v322_v32 = vor.u32 1.1754944e-38, %v321_v29  ;;  %vm320_vm3 = vcmp.eq.f32.partialorder %v319_v30, 8.507059e+37 }
  0xdc   :  { %v6810_v24 = vpop.eup %6809 }
  0xdd   :  { %v311_v25 = vmul.f32 %v6810_v24, %v309_v23  ;;  %vm316_vm0 = vweird.f32 %v6810_v24 }
  0xde   :  { %vm317_vm2 = vmor %vm315_vm1, %vm316_vm0 }
  0xdf   :  { %v312_v26 = vsub.f32 1.0, %v311_v25 }
  0xe1   :  { %v313_v27 = vmul.f32 %v6810_v24, %v312_v26 }
  0xe3   :  { %v314_v28 = vadd.f32 %v6810_v24, %v313_v27 }
  0xe5   :  { %v318_v31 = vsel %vm317_vm2, %v6810_v24, %v314_v28 }
  0xe6   :  { %v323_v34 = vsel %vm320_vm3, %v322_v32, %v318_v31 }
  0xe7   :  { %v326_v36 = vmul.f32 0.0, %v323_v34 }
 0x144   :  { %v329_v33 = vpop.permute.xlu0 %328 }
 0x145   :  { %v331_v35 = vmul.f32 %v329_v33, %v323_v34 }
 0x147   :  { %333 = vrot.lane.b32.xlu0 %v331_v35, %s7376_s0 }
 0x1b9   :  { %v334_v37 = vpop.permute.xlu0 %333 }
 0x1ba   :  { %v336_v38 = vadd.f32 %v334_v37, %v326_v36  ;;  %v6482_v36 = vld [vmem:[#allocation15 + $0x8] sm:$0xff]  ;;  %v6481_v37 = vld [vmem:[#allocation15] sm:$0xff] }
 0x1bb   :  { %535 = vmatpush.bf16.msra.mxu1 %v6482_v36 }
 0x1bc   :  { %6811 = vtanh.f32 %v336_v38 }
 0x1bf   :  { %536 = vmatpush.bf16.msra.mxu1 %v6481_v37 }
 0x1c2   :  { %v6812_v39 = vpop.eup %6811 }
 0x1c3   :  { %339 = vrot.lane.b32.xlu1 %v6812_v39, %s7376_s0 }
 0x235   :  { %v340_v42 = vpop.permute.xlu1 %339 }
 0x236   :  { %v7523_v43 = vmul.f32 %v340_v42, %v323_v34 }
 0x238   :  { %v348_v44 = vpack.c.bf16 %v7523_v43, %v7523_v43 }
 0x23a   :  { %354 = vrot.lane.b32.xlu1 %v348_v44, %s7367_s22 }
 0x2ac   :  { %v355_v45 = vpop.permute.xlu1 %354 }
 0x2ad   :  { %5184 = vmatmul.msk.bf16.vlgmr.msrb.gmra.mxu1 %vm288_vm4, %v355_v45 }
 0x32a   :  { %v380_v46 = vpop.f32.mrf.mxu1 }
 0x32b   :  { %v384_v47 = vadd.f32 %v380_v46, %v7517_v17 }
 0x32d   :  { %6813 = vtanh.f32 %v384_v47  ;;  %v5185_v50 = vmul.f32 -1.442695, %v384_v47 }
 0x32f   :  { %6815 = vpow2.f32 %v5185_v50 }
 0x332   :  { %v382_v48 = vpop.f32.mrf.mxu1 }
 0x333   :  { %v6814_v49 = vpop.eup %6813 }
 0x334   :  { %407 = vrot.lane.b32.xlu2 %v6814_v49, %s7376_s0 }
 0x335   :  { %v6816_v51 = vpop.eup %6815 }
 0x336   :  { %v388_v52 = vadd.f32 1.0, %v6816_v51 }
 0x338   :  { %6817 = vrcp.f32 %v388_v52  ;;  %v400_v58 = vand.u32 2147483648, %v388_v52  ;;  %vm394_vm6 = vweird.f32 %v388_v52  ;;  %v398_v59 = vand.u32 2147483647, %v388_v52 }
 0x33a   :  { %v401_v61 = vor.u32 1.1754944e-38, %v400_v58  ;;  %vm399_vm8 = vcmp.eq.f32.partialorder %v398_v59, 8.507059e+37 }
 0x33e   :  { %v6818_v53 = vpop.eup %6817 }
 0x33f   :  { %v390_v54 = vmul.f32 %v6818_v53, %v388_v52  ;;  %vm395_vm5 = vweird.f32 %v6818_v53 }
 0x340   :  { %vm396_vm7 = vmor %vm394_vm6, %vm395_vm5 }
 0x341   :  { %v391_v55 = vsub.f32 1.0, %v390_v54 }
 0x343   :  { %v392_v56 = vmul.f32 %v6818_v53, %v391_v55 }
 0x345   :  { %v393_v57 = vadd.f32 %v6818_v53, %v392_v56 }
 0x347   :  { %v397_v60 = vsel %vm396_vm7, %v6818_v53, %v393_v57 }
 0x348   :  { %v402_v63 = vsel %vm399_vm8, %v401_v61, %v397_v60 }
 0x349   :  { %v405_v1 = vmul.f32 %v402_v63, %v336_v38 }
 0x38e   :  { %v408_v62 = vpop.permute.xlu2 %407 }
 0x38f   :  { %v410_v0 = vmul.f32 %v408_v62, %v402_v63 }
 0x391   :  { %412 = vrot.lane.b32.xlu2 %v410_v0, %s7376_s0 }
 0x3eb   :  { %v413_v2 = vpop.permute.xlu2 %412 }
 0x3ec   :  { %v415_v3 = vadd.f32 %v413_v2, %v405_v1  ;;  %v6484_v2 = vld [vmem:[#allocation15 + $0x8] sm:$0xff] }
 0x3ed   :  { %614 = vmatpush.bf16.msra.mxu2 %v6484_v2  ;;  %v6487_v2 = vld [vmem:[#allocation15] sm:$0xff] }
 0x3ee   :  { %6819 = vtanh.f32 %v415_v3 }
 0x3f4   :  { %v6820_v4 = vpop.eup %6819 }
 0x3f5   :  { %418 = vrot.lane.b32.xlu0 %v6820_v4, %s7376_s0 }
 0x467   :  { %v419_v8 = vpop.permute.xlu0 %418 }
 0x468   :  { %v7533_v9 = vmul.f32 %v419_v8, %v402_v63 }
 0x46a   :  { %v427_v10 = vpack.c.bf16 %v7533_v9, %v7533_v9 }
 0x46c   :  { %433 = vrot.lane.b32.xlu1 %v427_v10, %s7367_s22 }
 0x4de   :  { %v434_v11 = vpop.permute.xlu1 %433 }
 0x4df   :  { %5194 = vmatmul.msk.bf16.vlgmr.msra.gmra.mxu3 %vm288_vm4, %v434_v11 }
 0x562   :  { %v459_v12 = vpop.f32.mrf.mxu3 }
 0x563   :  { %v463_v13 = vadd.f32 %v459_v12, %v7517_v17 }
 0x565   :  { %6821 = vtanh.f32 %v463_v13  ;;  %v5195_v16 = vmul.f32 -1.442695, %v463_v13 }
 0x567   :  { %6823 = vpow2.f32 %v5195_v16 }
 0x56a   :  { %v461_v14 = vpop.f32.mrf.mxu3 }
 0x56b   :  { %v6822_v15 = vpop.eup %6821 }
 0x56c   :  { %486 = vrot.lane.b32.xlu2 %v6822_v15, %s7376_s0 }
 0x56d   :  { %v6824_v18 = vpop.eup %6823 }
 0x56e   :  { %v467_v19 = vadd.f32 1.0, %v6824_v18 }
 0x570   :  { %6825 = vrcp.f32 %v467_v19  ;;  %v479_v25 = vand.u32 2147483648, %v467_v19  ;;  %vm473_vm10 = vweird.f32 %v467_v19  ;;  %v477_v26 = vand.u32 2147483647, %v467_v19 }
 0x572   :  { %v480_v28 = vor.u32 1.1754944e-38, %v479_v25  ;;  %vm478_vm12 = vcmp.eq.f32.partialorder %v477_v26, 8.507059e+37 }
 0x576   :  { %v6826_v20 = vpop.eup %6825 }
 0x577   :  { %v469_v21 = vmul.f32 %v6826_v20, %v467_v19  ;;  %vm474_vm9 = vweird.f32 %v6826_v20 }
 0x578   :  { %vm475_vm11 = vmor %vm473_vm10, %vm474_vm9 }
 0x579   :  { %v470_v22 = vsub.f32 1.0, %v469_v21 }
 0x57b   :  { %v471_v23 = vmul.f32 %v6826_v20, %v470_v22 }
 0x57d   :  { %v472_v24 = vadd.f32 %v6826_v20, %v471_v23 }
 0x57f   :  { %v476_v27 = vsel %vm475_vm11, %v6826_v20, %v472_v24 }
 0x580   :  { %v481_v30 = vsel %vm478_vm12, %v480_v28, %v476_v27 }
 0x581   :  { %v484_v32 = vmul.f32 %v481_v30, %v415_v3  ;;  %v6483_v3 = vld [vmem:[#allocation15] sm:$0xff] }
 0x582   :  { %615 = vmatpush.bf16.msra.mxu2 %v6483_v3 }
 0x5c6   :  { %v487_v29 = vpop.permute.xlu2 %486 }
 0x5c7   :  { %v489_v31 = vmul.f32 %v487_v29, %v481_v30 }
 0x5c9   :  { %491 = vrot.lane.b32.xlu0 %v489_v31, %s7376_s0 }
 0x63b   :  { %v492_v33 = vpop.permute.xlu0 %491 }
 0x63c   :  { %v494_v34 = vadd.f32 %v492_v33, %v484_v32 }
 0x63e   :  { %6827 = vtanh.f32 %v494_v34 }
 0x644   :  { %v6828_v35 = vpop.eup %6827 }
 0x645   :  { %497 = vrot.lane.b32.xlu1 %v6828_v35, %s7376_s0  ;;  %v6485_v35 = vld [vmem:[#allocation15] sm:$0xff] }
 0x6b7   :  { %v498_v38 = vpop.permute.xlu1 %497 }
 0x6b8   :  { %v7543_v39 = vmul.f32 %v498_v38, %v481_v30 }
 0x6ba   :  { %v506_v40 = vpack.c.bf16 %v7543_v39, %v7543_v39 }
 0x6bc   :  { %512 = vrot.lane.b32.xlu2 %v506_v40, %s7367_s22 }
 0x716   :  { %v513_v41 = vpop.permute.xlu2 %512 }
 0x717   :  { %5204 = vmatmul.msk.bf16.vlgmr.msra.gmra.mxu1 %vm288_vm4, %v513_v41 }
 0x794   :  { %v538_v42 = vpop.f32.mrf.mxu1 }
 0x795   :  { %v542_v44 = vadd.f32 %v538_v42, %v7517_v17 }
 0x797   :  { %6829 = vtanh.f32 %v542_v44  ;;  %v5205_v47 = vmul.f32 -1.442695, %v542_v44 }
 0x799   :  { %6831 = vpow2.f32 %v5205_v47 }
 0x79c   :  { %v540_v45 = vpop.f32.mrf.mxu1 }
 0x79d   :  { %v6830_v46 = vpop.eup %6829 }
 0x79e   :  { %565 = vrot.lane.b32.xlu0 %v6830_v46, %s7376_s0 }
 0x79f   :  { %v6832_v48 = vpop.eup %6831 }
 0x7a0   :  { %v546_v49 = vadd.f32 1.0, %v6832_v48 }
 0x7a2   :  { %6833 = vrcp.f32 %v546_v49  ;;  %v558_v55 = vand.u32 2147483648, %v546_v49  ;;  %vm552_vm14 = vweird.f32 %v546_v49  ;;  %v556_v56 = vand.u32 2147483647, %v546_v49 }
 0x7a4   :  { %v559_v58 = vor.u32 1.1754944e-38, %v558_v55  ;;  %vm557_vm0 = vcmp.eq.f32.partialorder %v556_v56, 8.507059e+37 }
 0x7a8   :  { %v6834_v50 = vpop.eup %6833 }
 0x7a9   :  { %v548_v51 = vmul.f32 %v6834_v50, %v546_v49  ;;  %vm553_vm13 = vweird.f32 %v6834_v50 }
 0x7aa   :  { %vm554_vm15 = vmor %vm552_vm14, %vm553_vm13 }
 0x7ab   :  { %v549_v52 = vsub.f32 1.0, %v548_v51 }
 0x7ad   :  { %v550_v53 = vmul.f32 %v6834_v50, %v549_v52 }
 0x7af   :  { %v551_v54 = vadd.f32 %v6834_v50, %v550_v53 }
 0x7b1   :  { %v555_v57 = vsel %vm554_vm15, %v6834_v50, %v551_v54 }
 0x7b2   :  { %v560_v60 = vsel %vm557_vm0, %v559_v58, %v555_v57 }
 0x7b3   :  { %v563_v62 = vmul.f32 %v560_v60, %v494_v34  ;;  %v6486_v34 = vld [vmem:[#allocation15 + $0x8] sm:$0xff] }
 0x7b4   :  { %693 = vmatpush.bf16.msrb.mxu3 %v6486_v34  ;;  %v6490_v34 = vld [vmem:[#allocation15 + $0x8] sm:$0xff] }
 0x7b5   :  { %851 = vmatpush.bf16.msrb.mxu2 %v6490_v34 }
 0x7b8   :  { %694 = vmatpush.bf16.msrb.mxu3 %v6485_v35  ;;  %v6489_v35 = vld [vmem:[#allocation15] sm:$0xff] }
 0x7b9   :  { %852 = vmatpush.bf16.msrb.mxu2 %v6489_v35 }
 0x810   :  { %v566_v59 = vpop.permute.xlu0 %565 }
 0x811   :  { %v568_v61 = vmul.f32 %v566_v59, %v560_v60 }
 0x813   :  { %570 = vrot.lane.b32.xlu1 %v568_v61, %s7376_s0 }
 0x885   :  { %v571_v63 = vpop.permute.xlu1 %570 }
 0x886   :  { %v573_v0 = vadd.f32 %v571_v63, %v563_v62 }
 0x888   :  { %6835 = vtanh.f32 %v573_v0 }
 0x88e   :  { %v6836_v1 = vpop.eup %6835 }
 0x88f   :  { %576 = vrot.lane.b32.xlu2 %v6836_v1, %s7376_s0  ;;  %v6488_v1 = vld [vmem:[#allocation15 + $0x8] sm:$0xff] }
 0x890   :  { %772 = vmatpush.bf16.msrb.mxu1 %v6488_v1 }
 0x894   :  { %773 = vmatpush.bf16.msrb.mxu1 %v6487_v2 }
 0x8e9   :  { %v577_v4 = vpop.permute.xlu2 %576 }
 0x8ea   :  { %v7553_v5 = vmul.f32 %v577_v4, %v560_v60 }
 0x8ec   :  { %v585_v7 = vpack.c.bf16 %v7553_v5, %v7553_v5 }
 0x8ee   :  { %591 = vrot.lane.b32.xlu0 %v585_v7, %s7367_s22 }
 0x960   :  { %v592_v8 = vpop.permute.xlu0 %591 }
 0x961   :  { %5214 = vmatmul.msk.bf16.vlgmr.msra.gmra.mxu2 %vm288_vm4, %v592_v8 }
 0x9e4   :  { %v617_v10 = vpop.f32.mrf.mxu2 }
 0x9e5   :  { %v621_v11 = vadd.f32 %v617_v10, %v7517_v17 }
 0x9e7   :  { %6837 = vtanh.f32 %v621_v11  ;;  %v5215_v14 = vmul.f32 -1.442695, %v621_v11 }
 0x9e9   :  { %6839 = vpow2.f32 %v5215_v14 }
 0x9ec   :  { %v619_v12 = vpop.f32.mrf.mxu2 }
 0x9ed   :  { %v6838_v13 = vpop.eup %6837 }
 0x9ee   :  { %644 = vrot.lane.b32.xlu1 %v6838_v13, %s7376_s0 }
 0x9ef   :  { %v6840_v15 = vpop.eup %6839 }
 0x9f0   :  { %v625_v16 = vadd.f32 1.0, %v6840_v15 }
 0x9f2   :  { %6841 = vrcp.f32 %v625_v16  ;;  %v637_v23 = vand.u32 2147483648, %v625_v16  ;;  %vm631_vm2 = vweird.f32 %v625_v16  ;;  %v635_v24 = vand.u32 2147483647, %v625_v16 }
 0x9f4   :  { %v638_v26 = vor.u32 1.1754944e-38, %v637_v23  ;;  %vm636_vm5 = vcmp.eq.f32.partialorder %v635_v24, 8.507059e+37 }
 0x9f8   :  { %v6842_v18 = vpop.eup %6841 }
 0x9f9   :  { %v627_v19 = vmul.f32 %v6842_v18, %v625_v16  ;;  %vm632_vm1 = vweird.f32 %v6842_v18 }
 0x9fa   :  { %vm633_vm3 = vmor %vm631_vm2, %vm632_vm1 }
 0x9fb   :  { %v628_v20 = vsub.f32 1.0, %v627_v19 }
 0x9fd   :  { %v629_v21 = vmul.f32 %v6842_v18, %v628_v20 }
 0x9ff   :  { %v630_v22 = vadd.f32 %v6842_v18, %v629_v21 }
 0xa01   :  { %v634_v25 = vsel %vm633_vm3, %v6842_v18, %v630_v22 }
 0xa02   :  { %v639_v28 = vsel %vm636_vm5, %v638_v26, %v634_v25 }
 0xa03   :  { %v642_v30 = vmul.f32 %v639_v28, %v573_v0 }
 0xa60   :  { %v645_v27 = vpop.permute.xlu1 %644 }
 0xa61   :  { %v647_v29 = vmul.f32 %v645_v27, %v639_v28 }
 0xa63   :  { %649 = vrot.lane.b32.xlu2 %v647_v29, %s7376_s0 }
 0xabd   :  { %v650_v31 = vpop.permute.xlu2 %649 }
 0xabe   :  { %v652_v32 = vadd.f32 %v650_v31, %v642_v30 }
 0xac0   :  { %6843 = vtanh.f32 %v652_v32 }
 0xac6   :  { %v6844_v33 = vpop.eup %6843 }
 0xac7   :  { %655 = vrot.lane.b32.xlu0 %v6844_v33, %s7376_s0 }
 0xb39   :  { %v656_v36 = vpop.permute.xlu0 %655 }
 0xb3a   :  { %v7563_v37 = vmul.f32 %v656_v36, %v639_v28 }
 0xb3c   :  { %v664_v38 = vpack.c.bf16 %v7563_v37, %v7563_v37 }
 0xb3e   :  { %670 = vrot.lane.b32.xlu1 %v664_v38, %s7367_s22 }
 0xbb0   :  { %v671_v40 = vpop.permute.xlu1 %670 }
 0xbb1   :  { %5224 = vmatmul.msk.bf16.vlgmr.msrb.gmra.mxu3 %vm288_vm4, %v671_v40 }
 0xc34   :  { %v696_v41 = vpop.f32.mrf.mxu3 }
 0xc35   :  { %v700_v42 = vadd.f32 %v696_v41, %v7517_v17 }
 0xc37   :  { %6845 = vtanh.f32 %v700_v42  ;;  %v5225_v46 = vmul.f32 -1.442695, %v700_v42 }
 0xc39   :  { %6847 = vpow2.f32 %v5225_v46 }
 0xc3c   :  { %v698_v44 = vpop.f32.mrf.mxu3 }
 0xc3d   :  { %v6846_v45 = vpop.eup %6845 }
 0xc3e   :  { %723 = vrot.lane.b32.xlu2 %v6846_v45, %s7376_s0 }
 0xc3f   :  { %v6848_v47 = vpop.eup %6847 }
 0xc40   :  { %v704_v48 = vadd.f32 1.0, %v6848_v47 }
 0xc42   :  { %6849 = vrcp.f32 %v704_v48  ;;  %v716_v54 = vand.u32 2147483648, %v704_v48  ;;  %vm710_vm7 = vweird.f32 %v704_v48  ;;  %v714_v55 = vand.u32 2147483647, %v704_v48 }
 0xc44   :  { %v717_v57 = vor.u32 1.1754944e-38, %v716_v54  ;;  %vm715_vm9 = vcmp.eq.f32.partialorder %v714_v55, 8.507059e+37 }
 0xc48   :  { %v6850_v49 = vpop.eup %6849 }
 0xc49   :  { %v706_v50 = vmul.f32 %v6850_v49, %v704_v48  ;;  %vm711_vm6 = vweird.f32 %v6850_v49 }
 0xc4a   :  { %vm712_vm8 = vmor %vm710_vm7, %vm711_vm6 }
 0xc4b   :  { %v707_v51 = vsub.f32 1.0, %v706_v50 }
 0xc4d   :  { %v708_v52 = vmul.f32 %v6850_v49, %v707_v51 }
 0xc4f   :  { %v709_v53 = vadd.f32 %v6850_v49, %v708_v52 }
 0xc51   :  { %v713_v56 = vsel %vm712_vm8, %v6850_v49, %v709_v53 }
 0xc52   :  { %v718_v59 = vsel %vm715_vm9, %v717_v57, %v713_v56 }
 0xc53   :  { %v721_v61 = vmul.f32 %v718_v59, %v652_v32 }
 0xc98   :  { %v724_v58 = vpop.permute.xlu2 %723 }
 0xc99   :  { %v726_v60 = vmul.f32 %v724_v58, %v718_v59 }
 0xc9b   :  { %728 = vrot.lane.b32.xlu0 %v726_v60, %s7376_s0 }
 0xd0d   :  { %v729_v62 = vpop.permute.xlu0 %728 }
 0xd0e   :  { %v731_v63 = vadd.f32 %v729_v62, %v721_v61 }
 0xd10   :  { %6851 = vtanh.f32 %v731_v63 }
 0xd16   :  { %v6852_v0 = vpop.eup %6851 }
 0xd17   :  { %734 = vrot.lane.b32.xlu1 %v6852_v0, %s7376_s0  ;;  %v943_v0 = vlaneseq }
 0xd89   :  { %v735_v3 = vpop.permute.xlu1 %734 }
 0xd8a   :  { %v737_v4 = vmul.f32 %v735_v3, %v718_v59 }
 0xd8c   :  { %v743_v7 = vpack.c.bf16 %v737_v4, %v737_v4 }
 0xd8e   :  { %749 = vrot.lane.b32.xlu2 %v743_v7, %s7367_s22  ;;  %v7606_v7 = vand.u32 127, %v943_v0  ;;  %v6492_v0 = vld [vmem:[#allocation16 + $0x8] sm:$0xff] }
 0xd8f   :  { %1162 = vmatpush.bf16.msra.mxu3 %v6492_v0 }
 0xd90   :  { %vm945_vm2 = vcmp.lt.s32.totalorder %v7606_v7, 4 }
 0xde8   :  { %v750_v8 = vpop.permute.xlu2 %749 }
 0xde9   :  { %5234 = vmatmul.msk.bf16.vlgmr.msrb.gmra.mxu1 %vm288_vm4, %v750_v8 }
 0xe66   :  { %v775_v10 = vpop.f32.mrf.mxu1 }
 0xe67   :  { %v779_v11 = vadd.f32 %v775_v10, %v7517_v17 }
 0xe69   :  { %6853 = vtanh.f32 %v779_v11  ;;  %v5235_v14 = vmul.f32 -1.442695, %v779_v11 }
 0xe6b   :  { %6855 = vpow2.f32 %v5235_v14 }
 0xe6e   :  { %v777_v12 = vpop.f32.mrf.mxu1 }
 0xe6f   :  { %v6854_v13 = vpop.eup %6853 }
 0xe70   :  { %802 = vrot.lane.b32.xlu0 %v6854_v13, %s7376_s0 }
 0xe71   :  { %v6856_v15 = vpop.eup %6855 }
 0xe72   :  { %v783_v16 = vadd.f32 1.0, %v6856_v15 }
 0xe74   :  { %6857 = vrcp.f32 %v783_v16  ;;  %v795_v23 = vand.u32 2147483648, %v783_v16  ;;  %vm789_vm11 = vweird.f32 %v783_v16  ;;  %v793_v24 = vand.u32 2147483647, %v783_v16 }
 0xe76   :  { %v796_v26 = vor.u32 1.1754944e-38, %v795_v23  ;;  %vm794_vm13 = vcmp.eq.f32.partialorder %v793_v24, 8.507059e+37 }
 0xe7a   :  { %v6858_v18 = vpop.eup %6857 }
 0xe7b   :  { %v785_v19 = vmul.f32 %v6858_v18, %v783_v16  ;;  %vm790_vm10 = vweird.f32 %v6858_v18 }
 0xe7c   :  { %vm791_vm12 = vmor %vm789_vm11, %vm790_vm10 }
 0xe7d   :  { %v786_v20 = vsub.f32 1.0, %v785_v19 }
 0xe7f   :  { %v787_v21 = vmul.f32 %v6858_v18, %v786_v20 }
 0xe81   :  { %v788_v22 = vadd.f32 %v6858_v18, %v787_v21 }
 0xe83   :  { %v792_v25 = vsel %vm791_vm12, %v6858_v18, %v788_v22 }
 0xe84   :  { %v797_v28 = vsel %vm794_vm13, %v796_v26, %v792_v25 }
 0xe85   :  { %v800_v30 = vmul.f32 %v797_v28, %v731_v63 }
 0xee2   :  { %v803_v27 = vpop.permute.xlu0 %802 }
 0xee3   :  { %v805_v29 = vmul.f32 %v803_v27, %v797_v28 }
 0xee5   :  { %807 = vrot.lane.b32.xlu1 %v805_v29, %s7376_s0 }
 0xf57   :  { %v808_v31 = vpop.permute.xlu1 %807 }
 0xf58   :  { %v7578_v32 = vadd.f32 %v808_v31, %v800_v30 }
 0xf5a   :  { %6859 = vtanh.f32 %v7578_v32 }
 0xf60   :  { %v6860_v33 = vpop.eup %6859 }
 0xf61   :  { %813 = vrot.lane.b32.xlu2 %v6860_v33, %s7376_s0 }
 0xfbb   :  { %v814_v36 = vpop.permute.xlu2 %813 }
 0xfbc   :  { %v816_v38 = vmul.f32 %v814_v36, %v797_v28 }
 0xfbe   :  { %v822_v40 = vpack.c.bf16 %v816_v38, %v816_v38 }
 0xfc0   :  { %828 = vrot.lane.b32.xlu0 %v822_v40, %s7367_s22 }
 0xfc8   :  { %344 = vrot.lane.b32.xlu0 %v7523_v43, %s7367_s22 }
 0xfd0   :  { %502 = vrot.lane.b32.xlu0 %v7543_v39, %s7367_s22 }
 0xfd8   :  { %739 = vrot.lane.b32.xlu0 %v737_v4, %s7367_s22 }
0x1032   :  { %v829_v41 = vpop.permute.xlu0 %828 }
0x1033   :  { %5244 = vmatmul.msk.bf16.vlgmr.msrb.gmra.mxu2 %vm288_vm4, %v829_v41 }
0x103a   :  { %v345_v42 = vpop.permute.xlu0 %344 }
0x103b   :  { %347 = vst.msk [vmem:[#allocation4] sm:$0xff] %vm288_vm4, %v345_v42 }
0x1042   :  { %v503_v44 = vpop.permute.xlu0 %502  ;;  %v901_v45 = vld [vmem:[#allocation4] sm:$0xff] }
0x1043   :  { %505 = vst.msk [vmem:[#allocation4 + $0x10] sm:$0xff] %vm288_vm4, %v503_v44  ;;  %v911_v46 = vsel %vm288_vm4, %v901_v45, 0.0 }
0x1044   :  { %912 = vadd.xlane.f32.xlu0 %v911_v46 }
0x104a   :  { %v740_v47 = vpop.permute.xlu0 %739  ;;  %v903_v23 = vld [vmem:[#allocation4 + $0x10] sm:$0xff] }
0x104b   :  { %742 = vst.msk [vmem:[#allocation4 + $0x28] sm:$0xff] %vm288_vm4, %v740_v47  ;;  %v917_v24 = vsel %vm288_vm4, %v903_v23, 0.0 }
0x1052   :  { %v7608_v10 = vld [vmem:[#allocation4 + $0x28] sm:$0xff] }
0x10b6   :  { %v854_v43 = vpop.f32.mrf.mxu2 }
0x10b7   :  { %v858_v39 = vadd.f32 %v854_v43, %v7517_v17  ;;  %v913_v63 = vpop.xlane.xlu0 %912 }
0x10b8   :  { %v935_v4 = vmul.f32 0.25, %v913_v63 }
0x10b9   :  { %6861 = vtanh.f32 %v858_v39  ;;  %v5245_v50 = vmul.f32 -1.442695, %v858_v39 }
0x10ba   :  { %v946_v8 = vsub.f32 %v901_v45, %v935_v4 }
0x10bb   :  { %6863 = vpow2.f32 %v5245_v50 }
0x10bc   :  { %v7616_v12 = vsel %vm945_vm2, %v946_v8, 0.0  ;;  %v6491_v8 = vld [vmem:[#allocation16] sm:$0xff] }
0x10bd   :  { %v962_v13 = vmul.f32 %v7616_v12, %v7616_v12  ;;  %1163 = vmatpush.bf16.msra.mxu3 %v6491_v8 }
0x10be   :  { %v856_v48 = vpop.f32.mrf.mxu2 }
0x10bf   :  { %v6862_v49 = vpop.eup %6861  ;;  %v970_v14 = vsel %vm288_vm4, %v962_v13, 0.0 }
0x10c0   :  { %881 = vrot.lane.b32.xlu1 %v6862_v49, %s7376_s0 }
0x10c1   :  { %v6864_v51 = vpop.eup %6863 }
0x10c2   :  { %v862_v52 = vadd.f32 1.0, %v6864_v51 }
0x10c4   :  { %6865 = vrcp.f32 %v862_v52  ;;  %v874_v57 = vand.u32 2147483648, %v862_v52  ;;  %vm868_vm15 = vweird.f32 %v862_v52  ;;  %v872_v58 = vand.u32 2147483647, %v862_v52 }
0x10c6   :  { %v875_v59 = vor.u32 1.1754944e-38, %v874_v57  ;;  %vm873_vm1 = vcmp.eq.f32.partialorder %v872_v58, 8.507059e+37 }
0x10c8   :  { %423 = vrot.lane.b32.xlu1 %v7533_v9, %s7367_s22 }
0x10ca   :  { %v6866_v53 = vpop.eup %6865 }
0x10cb   :  { %v864_v17 = vmul.f32 %v6866_v53, %v862_v52  ;;  %vm869_vm14 = vweird.f32 %v6866_v53 }
0x10cc   :  { %vm870_vm0 = vmor %vm868_vm15, %vm869_vm14 }
0x10cd   :  { %v865_v54 = vsub.f32 1.0, %v864_v17 }
0x10cf   :  { %v866_v55 = vmul.f32 %v6866_v53, %v865_v54 }
0x10d0   :  { %581 = vrot.lane.b32.xlu1 %v7553_v5, %s7367_s22 }
0x10d1   :  { %v867_v56 = vadd.f32 %v6866_v53, %v866_v55 }
0x10d3   :  { %v871_v9 = vsel %vm870_vm0, %v6866_v53, %v867_v56 }
0x10d4   :  { %v876_v60 = vsel %vm873_vm1, %v875_v59, %v871_v9 }
0x10d5   :  { %v879_v15 = vmul.f32 %v876_v60, %v7578_v32 }
0x10d8   :  { %818 = vrot.lane.b32.xlu1 %v816_v38, %s7367_s22 }
0x1132   :  { %v882_v5 = vpop.permute.xlu1 %881 }
0x1133   :  { %v884_v61 = vmul.f32 %v882_v5, %v876_v60 }
0x1135   :  { %886 = vrot.lane.b32.xlu2 %v884_v61, %s7376_s0 }
0x113a   :  { %v424_v62 = vpop.permute.xlu1 %423 }
0x113b   :  { %426 = vst.msk [vmem:[#allocation4 + $0x8] sm:$0xff] %vm288_vm4, %v424_v62 }
0x113d   :  { %660 = vrot.lane.b32.xlu2 %v7563_v37, %s7367_s22  ;;  %v926_v37 = vsel %vm288_vm4, %v7608_v10, 0.0 }
0x1142   :  { %v582_v1 = vpop.permute.xlu1 %581  ;;  %v902_v2 = vld [vmem:[#allocation4 + $0x8] sm:$0xff] }
0x1143   :  { %584 = vst.msk [vmem:[#allocation4 + $0x18] sm:$0xff] %vm288_vm4, %v582_v1  ;;  %v914_v3 = vsel %vm288_vm4, %v902_v2, 0.0 }
0x1144   :  { %915 = vadd.xlane.f32.xlu1 %v914_v3 }
0x114a   :  { %v819_v11 = vpop.permute.xlu1 %818  ;;  %v904_v27 = vld [vmem:[#allocation4 + $0x18] sm:$0xff] }
0x114b   :  { %821 = vst.msk [vmem:[#allocation4 + $0x30] sm:$0xff] %vm288_vm4, %v819_v11  ;;  %v920_v29 = vsel %vm288_vm4, %v904_v27, 0.0 }
0x114c   :  { %927 = vadd.xlane.f32.xlu1 %v926_v37 }
0x1152   :  { %v907_v32 = vld [vmem:[#allocation4 + $0x30] sm:$0xff] }
0x1153   :  { %v929_v34 = vsel %vm288_vm4, %v907_v32, 0.0 }
0x1154   :  { %971 = vadd.xlane.f32.xlu1 %v970_v14 }
0x118f   :  { %v887_v16 = vpop.permute.xlu2 %886 }
0x1190   :  { %v889_v18 = vadd.f32 %v887_v16, %v879_v15 }
0x1192   :  { %6867 = vtanh.f32 %v889_v18 }
0x1197   :  { %v661_v19 = vpop.permute.xlu2 %660 }
0x1198   :  { %v6868_v20 = vpop.eup %6867  ;;  %663 = vst.msk [vmem:[#allocation4 + $0x20] sm:$0xff] %vm288_vm4, %v661_v19 }
0x1199   :  { %892 = vrot.lane.b32.xlu2 %v6868_v20, %s7376_s0 }
0x119f   :  { %v905_v21 = vld [vmem:[#allocation4 + $0x20] sm:$0xff] }
0x11a0   :  { %v923_v22 = vsel %vm288_vm4, %v905_v21, 0.0 }
0x11a1   :  { %924 = vadd.xlane.f32.xlu0 %v923_v22 }
0x11b7   :  { %v916_v28 = vpop.xlane.xlu1 %915 }
0x11b8   :  { %v936_v30 = vmul.f32 0.25, %v916_v28 }
0x11ba   :  { %v947_v31 = vsub.f32 %v902_v2, %v936_v30 }
0x11bc   :  { %v7631_v36 = vsel %vm945_vm2, %v947_v31, 0.0 }
0x11bd   :  { %v963_v38 = vmul.f32 %v7631_v36, %v7631_v36 }
0x11bf   :  { %v973_v41 = vsel %vm288_vm4, %v963_v38, 0.0  ;;  %v928_v48 = vpop.xlane.xlu1 %927 }
0x11c0   :  { %v940_v51 = vmul.f32 0.25, %v928_v48 }
0x11c2   :  { %918 = vadd.xlane.f32.xlu2 %v917_v24  ;;  %v951_v17 = vsub.f32 %v7608_v10, %v940_v51 }
0x11c4   :  { %v7658_v55 = vsel %vm945_vm2, %v951_v17, 0.0 }
0x11c5   :  { %v967_v56 = vmul.f32 %v7658_v55, %v7658_v55 }
0x11c7   :  { %v985_v57 = vsel %vm288_vm4, %v967_v56, 0.0  ;;  %v972_v58 = vpop.xlane.xlu1 %971 }
0x11c8   :  { %v994_v9 = vmul.f32 0.25, %v972_v58  ;;  %v6494_v58 = vld [vmem:[#allocation18 + $0x8] sm:$0xff] }
0x11c9   :  { %1216 = vmatpush.bf16.msrb.mxu3 %v6494_v58 }
0x11ca   :  { %v1002_v59 = vadd.f32 1e-05, %v994_v9 }
0x11cc   :  { %6869 = vrsqrt.f32 %v1002_v59  ;;  %vm1016_vm5 = vweird.f32 %v1002_v59 }
0x11d2   :  { %v6870_v3 = vpop.eup %6869 }
0x11d3   :  { %v1011_v11 = vmul.f32 %v6870_v3, %v1002_v59  ;;  %vm1017_vm3 = vweird.f32 %v6870_v3 }
0x11d4   :  { %vm1018_vm6 = vmor %vm1016_vm5, %vm1017_vm3 }
0x11d5   :  { %v1012_v14 = vmul.f32 %v6870_v3, %v1011_v11 }
0x11d7   :  { %v1013_v20 = vmul.f32 0.5, %v1012_v14 }
0x11f3   :  { %v893_v25 = vpop.permute.xlu2 %892 }
0x11f4   :  { %v895_v26 = vmul.f32 %v893_v25, %v876_v60 }
0x11f6   :  { %897 = vrot.lane.b32.xlu2 %v895_v26, %s7367_s22 }
0x1214   :  { %v925_v33 = vpop.xlane.xlu0 %924 }
0x1215   :  { %v939_v35 = vmul.f32 0.25, %v925_v33  ;;  %v7686_v33 = vld [vmem:[%s8400_s5] ss:$0 sm:$0xff] }
0x1217   :  { %v950_v40 = vsub.f32 %v905_v21, %v939_v35  ;;  %v1014_v21 = vsub.f32 1.5, %v1013_v20 }
0x1219   :  { %v7638_v42 = vsel %vm945_vm2, %v950_v40, 0.0 }
0x121a   :  { %v966_v44 = vmul.f32 %v7638_v42, %v7638_v42 }
0x121c   :  { %v982_v45 = vsel %vm288_vm4, %v966_v44, 0.0 }
0x121f   :  { %921 = vadd.xlane.f32.xlu2 %v920_v29  ;;  %v7680_v29 = vld [vmem:[%s8399_s4] ss:$0 sm:$0xff] }
0x1227   :  { %930 = vadd.xlane.f32.xlu2 %v929_v34 }
0x122f   :  { %974 = vadd.xlane.f32.xlu2 %v973_v41 }
0x1235   :  { %v919_v46 = vpop.xlane.xlu2 %918 }
0x1236   :  { %v937_v43 = vmul.f32 0.25, %v919_v46 }
0x1237   :  { %983 = vadd.xlane.f32.xlu2 %v982_v45 }
0x1238   :  { %v948_v39 = vsub.f32 %v903_v23, %v937_v43  ;;  %v1015_v23 = vmul.f32 %v6870_v3, %v1014_v21 }
0x123a   :  { %v7650_v52 = vsel %vm945_vm2, %v948_v39, 0.0  ;;  %v1019_v26 = vsel %vm1018_vm6, %v6870_v3, %v1015_v23 }
0x123b   :  { %v964_v53 = vmul.f32 %v7650_v52, %v7650_v52  ;;  %v1090_v30 = vmul.f32 %v1019_v26, %v7616_v12 }
0x123d   :  { %v976_v54 = vsel %vm288_vm4, %v964_v53, 0.0  ;;  %v1101_v34 = vmul.f32 %v7680_v29, %v1090_v30 }
0x123f   :  { %v1112_v40 = vadd.f32 %v7686_v33, %v1101_v34 }
0x1250   :  { %v898_v47 = vpop.permute.xlu2 %897 }
0x1251   :  { %900 = vst.msk [vmem:[#allocation4 + $0x38] sm:$0xff] %vm288_vm4, %v898_v47 }
0x1258   :  { %v7644_v49 = vld [vmem:[#allocation4 + $0x38] sm:$0xff] }
0x1259   :  { %v932_v50 = vsel %vm288_vm4, %v7644_v49, 0.0 }
0x125a   :  { %933 = vadd.xlane.f32.xlu0 %v932_v50 }
0x1262   :  { %977 = vadd.xlane.f32.xlu0 %v976_v54 }
0x126a   :  { %986 = vadd.xlane.f32.xlu0 %v985_v57 }
0x1292   :  { %v922_v5 = vpop.xlane.xlu2 %921 }
0x1293   :  { %v938_v60 = vmul.f32 0.25, %v922_v5 }
0x1295   :  { %v949_v61 = vsub.f32 %v904_v27, %v938_v60 }
0x1297   :  { %v7665_v62 = vsel %vm945_vm2, %v949_v61, 0.0 }
0x1298   :  { %v965_v63 = vmul.f32 %v7665_v62, %v7665_v62 }
0x129a   :  { %v931_v1 = vpop.xlane.xlu2 %930  ;;  %v979_v2 = vsel %vm288_vm4, %v965_v63, 0.0 }
0x129b   :  { %v941_v4 = vmul.f32 0.25, %v931_v1  ;;  %980 = vadd.xlane.f32.xlu1 %v979_v2 }
0x129d   :  { %v952_v10 = vsub.f32 %v907_v32, %v941_v4 }
0x129f   :  { %v7672_v37 = vsel %vm945_vm2, %v952_v10, 0.0 }
0x12a0   :  { %v968_v13 = vmul.f32 %v7672_v37, %v7672_v37 }
0x12a2   :  { %v975_v15 = vpop.xlane.xlu2 %974  ;;  %v988_v16 = vsel %vm288_vm4, %v968_v13, 0.0 }
0x12a3   :  { %v995_v18 = vmul.f32 0.25, %v975_v15  ;;  %989 = vadd.xlane.f32.xlu1 %v988_v16 }
0x12a5   :  { %v1003_v19 = vadd.f32 1e-05, %v995_v18 }
0x12a7   :  { %6871 = vrsqrt.f32 %v1003_v19  ;;  %vm1026_vm8 = vweird.f32 %v1003_v19 }
0x12aa   :  { %v984_v53 = vpop.xlane.xlu2 %983 }
0x12ab   :  { %v998_v56 = vmul.f32 0.25, %v984_v53 }
0x12ad   :  { %v6872_v22 = vpop.eup %6871  ;;  %v1006_v7 = vadd.f32 1e-05, %v998_v56 }
0x12ae   :  { %v1021_v24 = vmul.f32 %v6872_v22, %v1003_v19  ;;  %vm1027_vm7 = vweird.f32 %v6872_v22 }
0x12af   :  { %vm1028_vm9 = vmor %vm1026_vm8, %vm1027_vm7  ;;  %vm1056_vm5 = vweird.f32 %v1006_v7 }
0x12b0   :  { %v1022_v25 = vmul.f32 %v6872_v22, %v1021_v24 }
0x12b2   :  { %v1023_v27 = vmul.f32 0.5, %v1022_v25 }
0x12b4   :  { %v1024_v28 = vsub.f32 1.5, %v1023_v27 }
0x12b6   :  { %v1025_v31 = vmul.f32 %v6872_v22, %v1024_v28 }
0x12b8   :  { %v1029_v32 = vsel %vm1028_vm9, %v6872_v22, %v1025_v31 }
0x12b9   :  { %v1091_v35 = vmul.f32 %v1029_v32, %v7631_v36 }
0x12bb   :  { %v1102_v38 = vmul.f32 %v7680_v29, %v1091_v35 }
0x12bd   :  { %v1113_v41 = vadd.f32 %v7686_v33, %v1102_v38 }
0x12bf   :  { %v1120_v12 = vpack.c.bf16 %v1113_v41, %v1112_v40 }
0x12c1   :  { %5254 = vmatmul.msk.bf16.vlgmr.msra.gmra.mxu3 %vm288_vm4, %v1120_v12 }
0x12cd   :  { %v934_v44 = vpop.xlane.xlu0 %933 }
0x12ce   :  { %v942_v45 = vmul.f32 0.25, %v934_v44 }
0x12d0   :  { %v953_v46 = vsub.f32 %v7644_v49, %v942_v45 }
0x12d2   :  { %v7697_v47 = vsel %vm945_vm2, %v953_v46, 0.0 }
0x12d3   :  { %v969_v36 = vmul.f32 %v7697_v47, %v7697_v47 }
0x12d5   :  { %v991_v43 = vsel %vm288_vm4, %v969_v36, 0.0  ;;  %v978_v39 = vpop.xlane.xlu0 %977 }
0x12d6   :  { %992 = vadd.xlane.f32.xlu2 %v991_v43  ;;  %v996_v48 = vmul.f32 0.25, %v978_v39 }
0x12d8   :  { %v1004_v50 = vadd.f32 1e-05, %v996_v48  ;;  %v6493_v48 = vld [vmem:[#allocation18] sm:$0xff] }
0x12d9   :  { %1217 = vmatpush.bf16.msrb.mxu3 %v6493_v48 }
0x12da   :  { %6873 = vrsqrt.f32 %v1004_v50  ;;  %vm1036_vm11 = vweird.f32 %v1004_v50 }
0x12dd   :  { %v987_v51 = vpop.xlane.xlu0 %986 }
0x12de   :  { %v999_v54 = vmul.f32 0.25, %v987_v51 }
0x12e0   :  { %v6874_v17 = vpop.eup %6873  ;;  %v1007_v57 = vadd.f32 1e-05, %v999_v54 }
0x12e1   :  { %v1031_v49 = vmul.f32 %v6874_v17, %v1004_v50  ;;  %vm1037_vm10 = vweird.f32 %v6874_v17 }
0x12e2   :  { %6875 = vrsqrt.f32 %v1007_v57  ;;  %vm1038_vm12 = vmor %vm1036_vm11, %vm1037_vm10  ;;  %vm1066_vm2 = vweird.f32 %v1007_v57 }
0x12e3   :  { %v1032_v9 = vmul.f32 %v6874_v17, %v1031_v49  ;;  %6877 = vrsqrt.f32 %v1006_v7 }
0x12e5   :  { %v1033_v61 = vmul.f32 0.5, %v1032_v9 }
0x12e7   :  { %v1034_v0 = vsub.f32 1.5, %v1033_v61 }
0x12e8   :  { %v6876_v63 = vpop.eup %6875 }
0x12e9   :  { %v6878_v1 = vpop.eup %6877  ;;  %v1061_v2 = vmul.f32 %v6876_v63, %v1007_v57  ;;  %v1035_v8 = vmul.f32 %v6874_v17, %v1034_v0  ;;  %vm1067_vm0 = vweird.f32 %v6876_v63 }
0x12ea   :  { %v1051_v4 = vmul.f32 %v6878_v1, %v1006_v7  ;;  %vm1057_vm1 = vweird.f32 %v6878_v1  ;;  %vm1068_vm3 = vmor %vm1066_vm2, %vm1067_vm0 }
0x12eb   :  { %v1062_v11 = vmul.f32 %v6876_v63, %v1061_v2  ;;  %v1039_v15 = vsel %vm1038_vm12, %v6874_v17, %v1035_v8  ;;  %vm1058_vm6 = vmor %vm1056_vm5, %vm1057_vm1 }
0x12ec   :  { %v1052_v14 = vmul.f32 %v6878_v1, %v1051_v4  ;;  %v1092_v20 = vmul.f32 %v1039_v15, %v7650_v52 }
0x12ed   :  { %v1063_v18 = vmul.f32 0.5, %v1062_v11 }
0x12ee   :  { %v1053_v21 = vmul.f32 0.5, %v1052_v14  ;;  %v1103_v26 = vmul.f32 %v7680_v29, %v1092_v20 }
0x12ef   :  { %v1064_v23 = vsub.f32 1.5, %v1063_v18 }
0x12f0   :  { %v1054_v27 = vsub.f32 1.5, %v1053_v21  ;;  %v1114_v31 = vadd.f32 %v7686_v33, %v1103_v26 }
0x12f1   :  { %v1065_v30 = vmul.f32 %v6876_v63, %v1064_v23 }
0x12f2   :  { %v1055_v52 = vmul.f32 %v6878_v1, %v1054_v27 }
0x12f3   :  { %v1069_v35 = vsel %vm1068_vm3, %v6876_v63, %v1065_v30 }
0x12f4   :  { %v1095_v38 = vmul.f32 %v1069_v35, %v7658_v55 }
0x12f6   :  { %v1106_v12 = vmul.f32 %v7680_v29, %v1095_v38 }
0x12f8   :  { %v1117_v46 = vadd.f32 %v7686_v33, %v1106_v12 }
0x130e   :  { %v981_v59 = vpop.xlane.xlu1 %980 }
0x130f   :  { %v997_v5 = vmul.f32 0.25, %v981_v59 }
0x1311   :  { %v1005_v60 = vadd.f32 1e-05, %v997_v5 }
0x1313   :  { %6879 = vrsqrt.f32 %v1005_v60  ;;  %vm1046_vm14 = vweird.f32 %v1005_v60 }
0x1316   :  { %v990_v41 = vpop.xlane.xlu1 %989 }
0x1317   :  { %v1000_v44 = vmul.f32 0.25, %v990_v41 }
0x1319   :  { %v6880_v3 = vpop.eup %6879  ;;  %v1008_v36 = vadd.f32 1e-05, %v1000_v44 }
0x131a   :  { %v1041_v10 = vmul.f32 %v6880_v3, %v1005_v60  ;;  %vm1047_vm13 = vweird.f32 %v6880_v3 }
0x131b   :  { %vm1048_vm15 = vmor %vm1046_vm14, %vm1047_vm13  ;;  %6881 = vrsqrt.f32 %v1008_v36  ;;  %vm1076_vm8 = vweird.f32 %v1008_v36 }
0x131c   :  { %v1042_v13 = vmul.f32 %v6880_v3, %v1041_v10 }
0x131e   :  { %v1043_v16 = vmul.f32 0.5, %v1042_v13 }
0x1320   :  { %v1044_v19 = vsub.f32 1.5, %v1043_v16 }
0x1321   :  { %v6882_v50 = vpop.eup %6881 }
0x1322   :  { %v1045_v22 = vmul.f32 %v6880_v3, %v1044_v19  ;;  %v1071_v55 = vmul.f32 %v6882_v50, %v1008_v36  ;;  %vm1077_vm7 = vweird.f32 %v6882_v50 }
0x1323   :  { %vm1078_vm9 = vmor %vm1076_vm8, %vm1077_vm7 }
0x1324   :  { %v1049_v24 = vsel %vm1048_vm15, %v6880_v3, %v1045_v22 }
0x1325   :  { %v1093_v25 = vmul.f32 %v1049_v24, %v7665_v62  ;;  %v1059_v62 = vsel %vm1058_vm6, %v6878_v1, %v1055_v52 }
0x1326   :  { %v1094_v40 = vmul.f32 %v1059_v62, %v7638_v42  ;;  %v1072_v42 = vmul.f32 %v6882_v50, %v1071_v55 }
0x1327   :  { %v1104_v28 = vmul.f32 %v7680_v29, %v1093_v25 }
0x1328   :  { %v1105_v45 = vmul.f32 %v7680_v29, %v1094_v40  ;;  %v1073_v54 = vmul.f32 0.5, %v1072_v42 }
0x1329   :  { %v1115_v32 = vadd.f32 %v7686_v33, %v1104_v28 }
0x132a   :  { %v1116_v43 = vadd.f32 %v7686_v33, %v1105_v45  ;;  %v1074_v56 = vsub.f32 1.5, %v1073_v54  ;;  %v6496_v45 = vld [vmem:[#allocation18 + $0x8] sm:$0xff] }
0x132b   :  { %v1121_v34 = vpack.c.bf16 %v1115_v32, %v1114_v31  ;;  %1296 = vmatpush.bf16.msra.mxu1 %v6496_v45 }
0x132c   :  { %v1122_v39 = vpack.c.bf16 %v1117_v46, %v1116_v43  ;;  %v1075_v57 = vmul.f32 %v6882_v50, %v1074_v56  ;;  %v6495_v46 = vld [vmem:[#allocation18] sm:$0xff] }
0x132d   :  { %5255 = vmatmul.msk.bf16.gmra.mxu3 %vm288_vm4, %v1121_v34 }
0x132e   :  { %v1079_v9 = vsel %vm1078_vm9, %v6882_v50, %v1075_v57 }
0x132f   :  { %v1096_v60 = vmul.f32 %v1079_v9, %v7672_v37  ;;  %1297 = vmatpush.bf16.msra.mxu1 %v6495_v46 }
0x1331   :  { %v1107_v1 = vmul.f32 %v7680_v29, %v1096_v60 }
0x1333   :  { %v1118_v3 = vadd.f32 %v7686_v33, %v1107_v1 }
0x133d   :  { %5256 = vmatmul.msk.bf16.gmra.mxu3 %vm288_vm4, %v1122_v39 }
0x1344   :  { %v1165_v37 = vpop.f32.mrf.mxu3 }
0x1349   :  { %v993_v51 = vpop.xlane.xlu2 %992 }
0x134a   :  { %v1001_v53 = vmul.f32 0.25, %v993_v51 }
0x134c   :  { %v1009_v17 = vadd.f32 1e-05, %v1001_v53  ;;  %v1167_v10 = vpop.f32.mrf.mxu3 }
0x134e   :  { %6883 = vrsqrt.f32 %v1009_v17  ;;  %vm1086_vm11 = vweird.f32 %v1009_v17 }
0x1354   :  { %v6884_v49 = vpop.eup %6883 }
0x1355   :  { %v1081_v7 = vmul.f32 %v6884_v49, %v1009_v17  ;;  %vm1087_vm10 = vweird.f32 %v6884_v49 }
0x1356   :  { %vm1088_vm12 = vmor %vm1086_vm11, %vm1087_vm10 }
0x1357   :  { %v1082_v58 = vmul.f32 %v6884_v49, %v1081_v7 }
0x1359   :  { %v1083_v59 = vmul.f32 0.5, %v1082_v58 }
0x135b   :  { %v1084_v5 = vsub.f32 1.5, %v1083_v59 }
0x135d   :  { %v1085_v61 = vmul.f32 %v6884_v49, %v1084_v5 }
0x135f   :  { %v1089_v63 = vsel %vm1088_vm12, %v6884_v49, %v1085_v61 }
0x1360   :  { %v1097_v0 = vmul.f32 %v1089_v63, %v7697_v47 }
0x1362   :  { %v1108_v2 = vmul.f32 %v7680_v29, %v1097_v0 }
0x1364   :  { %v1119_v4 = vadd.f32 %v7686_v33, %v1108_v2  ;;  %v7736_v33 = vld [vmem:[#allocation19] ss:$0 sm:$0xff] }
0x1365   :  { %v1166_v16 = vadd.f32 %v7736_v33, %v1165_v37  ;;  %v1168_v50 = vadd.f32 %v7736_v33, %v1167_v10  ;;  %v6498_v37 = vld [vmem:[#allocation18 + $0x8] sm:$0xff]  ;;  %v6497_v10 = vld [vmem:[#allocation18] sm:$0xff] }
0x1366   :  { %v1123_v8 = vpack.c.bf16 %v1119_v4, %v1118_v3  ;;  %1376 = vmatpush.bf16.msra.mxu2 %v6498_v37 }
0x1368   :  { %5257 = vmatmul.msk.bf16.gmra.mxu3 %vm288_vm4, %v1123_v8 }
0x136a   :  { %1377 = vmatpush.bf16.msra.mxu2 %v6497_v10 }
0x1378   :  { %1218 = vmatmul.bf16.vlgmr.msrb.gmra.mxu3 %v7375_v6 }
0x13b0   :  { %v7724_v11 = vpop.f32.mrf.mxu3 }
0x13b8   :  { %v7726_v13 = vpop.f32.mrf.mxu3 }
0x13c0   :  { %v7728_v47 = vpop.f32.mrf.mxu3 }
0x13c8   :  { %v7730_v14 = vpop.f32.mrf.mxu3 }
0x13eb   :  { %v7732_v29 = vpop.f32.mrf.mxu3 }
0x13f3   :  { %v7734_v15 = vpop.f32.mrf.mxu3 }
0x13fb   :  { %v1219_v18 = vpop.f32.mrf.mxu3 }
0x13fc   :  { %v1223_v19 = vadd.f32 %v1219_v18, %v1166_v16 }
0x13fe   :  { %6885 = vtanh.f32 %v1223_v19  ;;  %v5266_v22 = vmul.f32 -1.442695, %v1223_v19 }
0x1400   :  { %6887 = vpow2.f32 %v5266_v22 }
0x1403   :  { %v1221_v20 = vpop.f32.mrf.mxu3 }
0x1404   :  { %v6886_v21 = vpop.eup %6885 }
0x1405   :  { %1246 = vrot.lane.b32.xlu0 %v6886_v21, %s7376_s0  ;;  %v1171_v21 = vadd.f32 %v7736_v33, %v7724_v11 }
0x1406   :  { %v6888_v23 = vpop.eup %6887 }
0x1407   :  { %v1227_v24 = vadd.f32 1.0, %v6888_v23 }
0x1409   :  { %6889 = vrcp.f32 %v1227_v24  ;;  %v1239_v31 = vand.u32 2147483648, %v1227_v24  ;;  %vm1233_vm14 = vweird.f32 %v1227_v24  ;;  %v1237_v32 = vand.u32 2147483647, %v1227_v24 }
0x140b   :  { %v1240_v34 = vor.u32 1.1754944e-38, %v1239_v31  ;;  %vm1238_vm0 = vcmp.eq.f32.partialorder %v1237_v32, 8.507059e+37 }
0x140f   :  { %v6890_v25 = vpop.eup %6889 }
0x1410   :  { %v1229_v26 = vmul.f32 %v6890_v25, %v1227_v24  ;;  %vm1234_vm13 = vweird.f32 %v6890_v25 }
0x1411   :  { %vm1235_vm15 = vmor %vm1233_vm14, %vm1234_vm13 }
0x1412   :  { %v1230_v27 = vsub.f32 1.0, %v1229_v26 }
0x1414   :  { %v1231_v28 = vmul.f32 %v6890_v25, %v1230_v27 }
0x1416   :  { %v1232_v30 = vadd.f32 %v6890_v25, %v1231_v28 }
0x1418   :  { %v1236_v52 = vsel %vm1235_vm15, %v6890_v25, %v1232_v30 }
0x1419   :  { %v1241_v62 = vsel %vm1238_vm0, %v1240_v34, %v1236_v52 }
0x141a   :  { %v1244_v40 = vmul.f32 0.0, %v1241_v62 }
0x1477   :  { %v1247_v35 = vpop.permute.xlu0 %1246 }
0x1478   :  { %v1249_v38 = vmul.f32 %v1247_v35, %v1241_v62 }
0x147a   :  { %1251 = vrot.lane.b32.xlu1 %v1249_v38, %s7376_s0 }
0x14ec   :  { %v1252_v41 = vpop.permute.xlu1 %1251 }
0x14ed   :  { %v1254_v12 = vadd.f32 %v1252_v41, %v1244_v40 }
0x14ef   :  { %6891 = vtanh.f32 %v1254_v12 }
0x14f5   :  { %v6892_v44 = vpop.eup %6891 }
0x14f6   :  { %1257 = vrot.lane.b32.xlu2 %v6892_v44, %s7376_s0 }
0x1550   :  { %v1258_v36 = vpop.permute.xlu2 %1257 }
0x1551   :  { %v7742_v43 = vmul.f32 %v1258_v36, %v1241_v62 }
0x1553   :  { %v1267_v39 = vpack.c.bf16 %v7742_v43, %v7742_v43 }
0x1555   :  { %1273 = vrot.lane.b32.xlu0 %v1267_v39, %s7367_s22  ;;  %v6500_v39 = vld [vmem:[#allocation18 + $0x8] sm:$0xff] }
0x1556   :  { %1456 = vmatpush.bf16.msrb.mxu0 %v6500_v39 }
0x15c7   :  { %v1274_v48 = vpop.permute.xlu0 %1273 }
0x15c8   :  { %5275 = vmatmul.msk.bf16.vlgmr.msra.gmra.mxu1 %vm288_vm4, %v1274_v48  ;;  %v6499_v48 = vld [vmem:[#allocation18] sm:$0xff] }
0x15c9   :  { %1457 = vmatpush.bf16.msrb.mxu0 %v6499_v48 }
0x1645   :  { %v1299_v55 = vpop.f32.mrf.mxu1 }
0x1646   :  { %v1303_v42 = vadd.f32 %v1299_v55, %v1168_v50 }
0x1648   :  { %6893 = vtanh.f32 %v1303_v42  ;;  %v5276_v17 = vmul.f32 -1.442695, %v1303_v42 }
0x164a   :  { %6895 = vpow2.f32 %v5276_v17 }
0x164d   :  { %v1301_v51 = vpop.f32.mrf.mxu1 }
0x164e   :  { %v6894_v53 = vpop.eup %6893 }
0x164f   :  { %1326 = vrot.lane.b32.xlu1 %v6894_v53, %s7376_s0  ;;  %v1173_v53 = vadd.f32 %v7736_v33, %v7726_v13 }
0x1650   :  { %v6896_v54 = vpop.eup %6895 }
0x1651   :  { %v1307_v56 = vadd.f32 1.0, %v6896_v54 }
0x1653   :  { %6897 = vrcp.f32 %v1307_v56  ;;  %v1319_v59 = vand.u32 2147483648, %v1307_v56  ;;  %vm1313_vm2 = vweird.f32 %v1307_v56  ;;  %v1317_v5 = vand.u32 2147483647, %v1307_v56 }
0x1655   :  { %v1320_v61 = vor.u32 1.1754944e-38, %v1319_v59  ;;  %vm1318_vm5 = vcmp.eq.f32.partialorder %v1317_v5, 8.507059e+37 }
0x1659   :  { %v6898_v49 = vpop.eup %6897 }
0x165a   :  { %v1309_v57 = vmul.f32 %v6898_v49, %v1307_v56  ;;  %vm1314_vm1 = vweird.f32 %v6898_v49 }
0x165b   :  { %vm1315_vm3 = vmor %vm1313_vm2, %vm1314_vm1 }
0x165c   :  { %v1310_v7 = vsub.f32 1.0, %v1309_v57 }
0x165e   :  { %v1311_v58 = vmul.f32 %v6898_v49, %v1310_v7 }
0x1660   :  { %v1312_v9 = vadd.f32 %v6898_v49, %v1311_v58 }
0x1662   :  { %v1316_v60 = vsel %vm1315_vm3, %v6898_v49, %v1312_v9 }
0x1663   :  { %v1321_v0 = vsel %vm1318_vm5, %v1320_v61, %v1316_v60 }
0x1664   :  { %v1324_v2 = vmul.f32 %v1321_v0, %v1254_v12 }
0x16c1   :  { %v1327_v63 = vpop.permute.xlu1 %1326 }
0x16c2   :  { %v1329_v1 = vmul.f32 %v1327_v63, %v1321_v0 }
0x16c4   :  { %1331 = vrot.lane.b32.xlu0 %v1329_v1, %s7376_s0 }
0x1736   :  { %v1332_v3 = vpop.permute.xlu0 %1331 }
0x1737   :  { %v1334_v4 = vadd.f32 %v1332_v3, %v1324_v2 }
0x1739   :  { %6899 = vtanh.f32 %v1334_v4 }
0x173f   :  { %v6900_v8 = vpop.eup %6899 }
0x1740   :  { %1337 = vrot.lane.b32.xlu2 %v6900_v8, %s7376_s0 }
0x179a   :  { %v1338_v16 = vpop.permute.xlu2 %1337 }
0x179b   :  { %v7752_v18 = vmul.f32 %v1338_v16, %v1321_v0 }
0x179d   :  { %v1347_v19 = vpack.c.bf16 %v7752_v18, %v7752_v18 }
0x179f   :  { %1353 = vrot.lane.b32.xlu1 %v1347_v19, %s7367_s22  ;;  %v6502_v19 = vld [vmem:[#allocation18 + $0x8] sm:$0xff] }
0x17a0   :  { %1536 = vmatpush.bf16.msrb.mxu1 %v6502_v19 }
0x1811   :  { %v1354_v20 = vpop.permute.xlu1 %1353 }
0x1812   :  { %5285 = vmatmul.msk.bf16.vlgmr.msra.gmra.mxu2 %vm288_vm4, %v1354_v20  ;;  %v6501_v20 = vld [vmem:[#allocation18] sm:$0xff] }
0x1813   :  { %1537 = vmatpush.bf16.msrb.mxu1 %v6501_v20 }
0x1895   :  { %v1379_v22 = vpop.f32.mrf.mxu2 }
0x1896   :  { %v1383_v23 = vadd.f32 %v1379_v22, %v1171_v21 }
0x1898   :  { %6901 = vtanh.f32 %v1383_v23  ;;  %v5286_v26 = vmul.f32 -1.442695, %v1383_v23 }
0x189a   :  { %6903 = vpow2.f32 %v5286_v26 }
0x189d   :  { %v1381_v24 = vpop.f32.mrf.mxu2 }
0x189e   :  { %v6902_v25 = vpop.eup %6901 }
0x189f   :  { %1406 = vrot.lane.b32.xlu0 %v6902_v25, %s7376_s0  ;;  %v1176_v25 = vadd.f32 %v7736_v33, %v7728_v47 }
0x18a0   :  { %v6904_v27 = vpop.eup %6903 }
0x18a1   :  { %v1387_v28 = vadd.f32 1.0, %v6904_v27 }
0x18a3   :  { %6905 = vrcp.f32 %v1387_v28  ;;  %v1399_v35 = vand.u32 2147483648, %v1387_v28  ;;  %vm1393_vm7 = vweird.f32 %v1387_v28  ;;  %v1397_v11 = vand.u32 2147483647, %v1387_v28 }
0x18a5   :  { %v1400_v38 = vor.u32 1.1754944e-38, %v1399_v35  ;;  %vm1398_vm9 = vcmp.eq.f32.partialorder %v1397_v11, 8.507059e+37 }
0x18a9   :  { %v6906_v30 = vpop.eup %6905 }
0x18aa   :  { %v1389_v31 = vmul.f32 %v6906_v30, %v1387_v28  ;;  %vm1394_vm6 = vweird.f32 %v6906_v30 }
0x18ab   :  { %vm1395_vm8 = vmor %vm1393_vm7, %vm1394_vm6 }
0x18ac   :  { %v1390_v32 = vsub.f32 1.0, %v1389_v31 }
0x18ae   :  { %v1391_v52 = vmul.f32 %v6906_v30, %v1390_v32 }
0x18b0   :  { %v1392_v34 = vadd.f32 %v6906_v30, %v1391_v52 }
0x18b2   :  { %v1396_v62 = vsel %vm1395_vm8, %v6906_v30, %v1392_v34 }
0x18b3   :  { %v1401_v41 = vsel %vm1398_vm9, %v1400_v38, %v1396_v62 }
0x18b4   :  { %v1404_v44 = vmul.f32 %v1401_v41, %v1334_v4 }
0x1911   :  { %v1407_v40 = vpop.permute.xlu0 %1406 }
0x1912   :  { %v1409_v12 = vmul.f32 %v1407_v40, %v1401_v41 }
0x1914   :  { %1411 = vrot.lane.b32.xlu2 %v1409_v12, %s7376_s0 }
0x196e   :  { %v1412_v45 = vpop.permute.xlu2 %1411 }
0x196f   :  { %v1414_v46 = vadd.f32 %v1412_v45, %v1404_v44 }
0x1971   :  { %6907 = vtanh.f32 %v1414_v46 }
0x1977   :  { %v6908_v36 = vpop.eup %6907 }
0x1978   :  { %1417 = vrot.lane.b32.xlu1 %v6908_v36, %s7376_s0 }
0x19ea   :  { %v1418_v50 = vpop.permute.xlu1 %1417 }
0x19eb   :  { %v7763_v55 = vmul.f32 %v1418_v50, %v1401_v41 }
0x19ed   :  { %v1427_v42 = vpack.c.bf16 %v7763_v55, %v7763_v55 }
0x19ef   :  { %1433 = vrot.lane.b32.xlu0 %v1427_v42, %s7367_s22  ;;  %v6504_v42 = vld [vmem:[#allocation18 + $0x8] sm:$0xff] }
0x19f0   :  { %1616 = vmatpush.bf16.msrb.mxu2 %v6504_v42 }
0x1a61   :  { %v1434_v51 = vpop.permute.xlu0 %1433 }
0x1a62   :  { %5295 = vmatmul.msk.bf16.vlgmr.msrb.gmra.mxu0 %vm288_vm4, %v1434_v51  ;;  %v6503_v51 = vld [vmem:[#allocation18] sm:$0xff] }
0x1a63   :  { %1617 = vmatpush.bf16.msrb.mxu2 %v6503_v51 }
0x1adf   :  { %v1459_v17 = vpop.f32.mrf.mxu0 }
0x1ae0   :  { %v1463_v54 = vadd.f32 %v1459_v17, %v1173_v53 }
0x1ae2   :  { %6909 = vtanh.f32 %v1463_v54  ;;  %v5296_v57 = vmul.f32 -1.442695, %v1463_v54 }
0x1ae4   :  { %6911 = vpow2.f32 %v5296_v57 }
0x1ae7   :  { %v1461_v56 = vpop.f32.mrf.mxu0 }
0x1ae8   :  { %v6910_v49 = vpop.eup %6909 }
0x1ae9   :  { %1486 = vrot.lane.b32.xlu2 %v6910_v49, %s7376_s0  ;;  %v1178_v49 = vadd.f32 %v7736_v33, %v7730_v14 }
0x1aea   :  { %v6912_v7 = vpop.eup %6911 }
0x1aeb   :  { %v1467_v58 = vadd.f32 1.0, %v6912_v7 }
0x1aed   :  { %6913 = vrcp.f32 %v1467_v58  ;;  %v1479_v63 = vand.u32 2147483648, %v1467_v58  ;;  %vm1473_vm11 = vweird.f32 %v1467_v58  ;;  %v1477_v13 = vand.u32 2147483647, %v1467_v58 }
0x1aef   :  { %v1480_v1 = vor.u32 1.1754944e-38, %v1479_v63  ;;  %vm1478_vm13 = vcmp.eq.f32.partialorder %v1477_v13, 8.507059e+37 }
0x1af3   :  { %v6914_v9 = vpop.eup %6913 }
0x1af4   :  { %v1469_v59 = vmul.f32 %v6914_v9, %v1467_v58  ;;  %vm1474_vm10 = vweird.f32 %v6914_v9 }
0x1af5   :  { %vm1475_vm12 = vmor %vm1473_vm11, %vm1474_vm10 }
0x1af6   :  { %v1470_v5 = vsub.f32 1.0, %v1469_v59 }
0x1af8   :  { %v1471_v60 = vmul.f32 %v6914_v9, %v1470_v5 }
0x1afa   :  { %v1472_v61 = vadd.f32 %v6914_v9, %v1471_v60 }
0x1afc   :  { %v1476_v0 = vsel %vm1475_vm12, %v6914_v9, %v1472_v61 }
0x1afd   :  { %v1481_v3 = vsel %vm1478_vm13, %v1480_v1, %v1476_v0 }
0x1afe   :  { %v1484_v8 = vmul.f32 %v1481_v3, %v1414_v46 }
0x1b43   :  { %v1487_v2 = vpop.permute.xlu2 %1486 }
0x1b44   :  { %v1489_v4 = vmul.f32 %v1487_v2, %v1481_v3 }
0x1b46   :  { %1491 = vrot.lane.b32.xlu1 %v1489_v4, %s7376_s0 }
0x1bb8   :  { %v1492_v37 = vpop.permute.xlu1 %1491 }
0x1bb9   :  { %v1494_v10 = vadd.f32 %v1492_v37, %v1484_v8 }
0x1bbb   :  { %6915 = vtanh.f32 %v1494_v10 }
0x1bc1   :  { %v6916_v16 = vpop.eup %6915 }
0x1bc2   :  { %1497 = vrot.lane.b32.xlu0 %v6916_v16, %s7376_s0 }
0x1c34   :  { %v1498_v21 = vpop.permute.xlu0 %1497 }
0x1c35   :  { %v7774_v22 = vmul.f32 %v1498_v21, %v1481_v3 }
0x1c37   :  { %v1507_v23 = vpack.c.bf16 %v7774_v22, %v7774_v22 }
0x1c39   :  { %1513 = vrot.lane.b32.xlu2 %v1507_v23, %s7367_s22  ;;  %v6506_v23 = vld [vmem:[#allocation18 + $0x8] sm:$0xff] }
0x1c3a   :  { %1696 = vmatpush.bf16.msra.mxu0 %v6506_v23 }
0x1c93   :  { %v1514_v24 = vpop.permute.xlu2 %1513 }
0x1c94   :  { %5305 = vmatmul.msk.bf16.vlgmr.msrb.gmra.mxu1 %vm288_vm4, %v1514_v24  ;;  %v6505_v24 = vld [vmem:[#allocation18] sm:$0xff] }
0x1c95   :  { %1697 = vmatpush.bf16.msra.mxu0 %v6505_v24 }
0x1d11   :  { %v1539_v26 = vpop.f32.mrf.mxu1 }
0x1d12   :  { %v1543_v27 = vadd.f32 %v1539_v26, %v1176_v25 }
0x1d14   :  { %6917 = vtanh.f32 %v1543_v27  ;;  %v5306_v31 = vmul.f32 -1.442695, %v1543_v27 }
0x1d16   :  { %6919 = vpow2.f32 %v5306_v31 }
0x1d19   :  { %v1541_v28 = vpop.f32.mrf.mxu1 }
0x1d1a   :  { %v6918_v30 = vpop.eup %6917 }
0x1d1b   :  { %1566 = vrot.lane.b32.xlu1 %v6918_v30, %s7376_s0  ;;  %v1181_v30 = vadd.f32 %v7736_v33, %v7732_v29 }
0x1d1c   :  { %v6920_v32 = vpop.eup %6919 }
0x1d1d   :  { %v1547_v52 = vadd.f32 1.0, %v6920_v32 }
0x1d1f   :  { %6921 = vrcp.f32 %v1547_v52  ;;  %v1559_v40 = vand.u32 2147483648, %v1547_v52  ;;  %vm1553_vm15 = vweird.f32 %v1547_v52  ;;  %v1557_v47 = vand.u32 2147483647, %v1547_v52 }
0x1d21   :  { %v1560_v12 = vor.u32 1.1754944e-38, %v1559_v40  ;;  %vm1558_vm1 = vcmp.eq.f32.partialorder %v1557_v47, 8.507059e+37 }
0x1d25   :  { %v6922_v34 = vpop.eup %6921 }
0x1d26   :  { %v1549_v35 = vmul.f32 %v6922_v34, %v1547_v52  ;;  %vm1554_vm14 = vweird.f32 %v6922_v34 }
0x1d27   :  { %vm1555_vm0 = vmor %vm1553_vm15, %vm1554_vm14 }
0x1d28   :  { %v1550_v11 = vsub.f32 1.0, %v1549_v35 }
0x1d2a   :  { %v1551_v62 = vmul.f32 %v6922_v34, %v1550_v11 }
0x1d2c   :  { %v1552_v38 = vadd.f32 %v6922_v34, %v1551_v62 }
0x1d2e   :  { %v1556_v41 = vsel %vm1555_vm0, %v6922_v34, %v1552_v38 }
0x1d2f   :  { %v1561_v45 = vsel %vm1558_vm1, %v1560_v12, %v1556_v41 }
0x1d30   :  { %v1564_v36 = vmul.f32 %v1561_v45, %v1494_v10 }
0x1d8d   :  { %v1567_v44 = vpop.permute.xlu1 %1566 }
0x1d8e   :  { %v1569_v46 = vmul.f32 %v1567_v44, %v1561_v45 }
0x1d90   :  { %1571 = vrot.lane.b32.xlu0 %v1569_v46, %s7376_s0 }
0x1e02   :  { %v1572_v39 = vpop.permute.xlu0 %1571 }
0x1e03   :  { %v1574_v48 = vadd.f32 %v1572_v39, %v1564_v36 }
0x1e05   :  { %6923 = vtanh.f32 %v1574_v48 }
0x1e0b   :  { %v6924_v50 = vpop.eup %6923 }
0x1e0c   :  { %1577 = vrot.lane.b32.xlu2 %v6924_v50, %s7376_s0 }
0x1e66   :  { %v1578_v53 = vpop.permute.xlu2 %1577 }
0x1e67   :  { %v7785_v17 = vmul.f32 %v1578_v53, %v1561_v45 }
0x1e69   :  { %v1587_v54 = vpack.c.bf16 %v7785_v17, %v7785_v17 }
0x1e6b   :  { %1593 = vrot.lane.b32.xlu1 %v1587_v54, %s7367_s22  ;;  %v6508_v54 = vld [vmem:[#allocation18 + $0x8] sm:$0xff] }
0x1e6c   :  { %1776 = vmatpush.bf16.msra.mxu1 %v6508_v54 }
0x1edd   :  { %v1594_v56 = vpop.permute.xlu1 %1593 }
0x1ede   :  { %5315 = vmatmul.msk.bf16.vlgmr.msrb.gmra.mxu2 %vm288_vm4, %v1594_v56  ;;  %v6507_v56 = vld [vmem:[#allocation18] sm:$0xff] }
0x1edf   :  { %1777 = vmatpush.bf16.msra.mxu1 %v6507_v56 }
0x1f61   :  { %v1619_v57 = vpop.f32.mrf.mxu2 }
0x1f62   :  { %v1623_v7 = vadd.f32 %v1619_v57, %v1178_v49 }
0x1f64   :  { %6925 = vtanh.f32 %v1623_v7  ;;  %v5316_v59 = vmul.f32 -1.442695, %v1623_v7 }
0x1f66   :  { %6927 = vpow2.f32 %v5316_v59 }
0x1f69   :  { %v1621_v58 = vpop.f32.mrf.mxu2 }
0x1f6a   :  { %v6926_v9 = vpop.eup %6925 }
0x1f6b   :  { %1646 = vrot.lane.b32.xlu0 %v6926_v9, %s7376_s0  ;;  %v1183_v9 = vadd.f32 %v7736_v33, %v7734_v15 }
0x1f6c   :  { %v6928_v5 = vpop.eup %6927 }
0x1f6d   :  { %v1627_v60 = vadd.f32 1.0, %v6928_v5 }
0x1f6f   :  { %6929 = vrcp.f32 %v1627_v60  ;;  %v1639_v2 = vand.u32 2147483648, %v1627_v60  ;;  %vm1633_vm3 = vweird.f32 %v1627_v60  ;;  %v1637_v14 = vand.u32 2147483647, %v1627_v60 }
0x1f71   :  { %v1640_v4 = vor.u32 1.1754944e-38, %v1639_v2  ;;  %vm1638_vm6 = vcmp.eq.f32.partialorder %v1637_v14, 8.507059e+37 }
0x1f75   :  { %v6930_v61 = vpop.eup %6929 }
0x1f76   :  { %v1629_v63 = vmul.f32 %v6930_v61, %v1627_v60  ;;  %vm1634_vm2 = vweird.f32 %v6930_v61 }
0x1f77   :  { %vm1635_vm5 = vmor %vm1633_vm3, %vm1634_vm2 }
0x1f78   :  { %v1630_v13 = vsub.f32 1.0, %v1629_v63 }
0x1f7a   :  { %v1631_v0 = vmul.f32 %v6930_v61, %v1630_v13 }
0x1f7c   :  { %v1632_v1 = vadd.f32 %v6930_v61, %v1631_v0 }
0x1f7e   :  { %v1636_v3 = vsel %vm1635_vm5, %v6930_v61, %v1632_v1 }
0x1f7f   :  { %v1641_v37 = vsel %vm1638_vm6, %v1640_v4, %v1636_v3 }
0x1f80   :  { %v1644_v16 = vmul.f32 %v1641_v37, %v1574_v48 }
0x1fdd   :  { %v1647_v8 = vpop.permute.xlu0 %1646 }
0x1fde   :  { %v1649_v10 = vmul.f32 %v1647_v8, %v1641_v37 }
0x1fe0   :  { %1651 = vrot.lane.b32.xlu2 %v1649_v10, %s7376_s0 }
0x203a   :  { %v1652_v19 = vpop.permute.xlu2 %1651 }
0x203b   :  { %v1654_v20 = vadd.f32 %v1652_v19, %v1644_v16 }
0x203d   :  { %6931 = vtanh.f32 %v1654_v20 }
0x2043   :  { %v6932_v21 = vpop.eup %6931 }
0x2044   :  { %1657 = vrot.lane.b32.xlu1 %v6932_v21, %s7376_s0 }
0x20b6   :  { %v1658_v25 = vpop.permute.xlu1 %1657 }
0x20b7   :  { %v7796_v26 = vmul.f32 %v1658_v25, %v1641_v37 }
0x20b9   :  { %v1667_v27 = vpack.c.bf16 %v7796_v26, %v7796_v26 }
0x20bb   :  { %1673 = vrot.lane.b32.xlu0 %v1667_v27, %s7367_s22 }
0x212d   :  { %v1674_v28 = vpop.permute.xlu0 %1673 }
0x212e   :  { %5325 = vmatmul.msk.bf16.vlgmr.msra.gmra.mxu0 %vm288_vm4, %v1674_v28 }
0x21ab   :  { %v1699_v31 = vpop.f32.mrf.mxu0 }
0x21ac   :  { %v1703_v32 = vadd.f32 %v1699_v31, %v1181_v30 }
0x21ae   :  { %6933 = vtanh.f32 %v1703_v32  ;;  %v5326_v35 = vmul.f32 -1.442695, %v1703_v32 }
0x21b0   :  { %6935 = vpow2.f32 %v5326_v35 }
0x21b3   :  { %v1701_v52 = vpop.f32.mrf.mxu0 }
0x21b4   :  { %v6934_v34 = vpop.eup %6933 }
0x21b5   :  { %1726 = vrot.lane.b32.xlu2 %v6934_v34, %s7376_s0 }
0x21b6   :  { %v6936_v11 = vpop.eup %6935 }
0x21b7   :  { %v1707_v62 = vadd.f32 1.0, %v6936_v11 }
0x21b9   :  { %6937 = vrcp.f32 %v1707_v62  ;;  %v1719_v44 = vand.u32 2147483648, %v1707_v62  ;;  %vm1713_vm8 = vweird.f32 %v1707_v62  ;;  %v1717_v29 = vand.u32 2147483647, %v1707_v62 }
0x21bb   :  { %v1720_v46 = vor.u32 1.1754944e-38, %v1719_v44  ;;  %vm1718_vm10 = vcmp.eq.f32.partialorder %v1717_v29, 8.507059e+37 }
0x21bf   :  { %v6938_v38 = vpop.eup %6937 }
0x21c0   :  { %v1709_v40 = vmul.f32 %v6938_v38, %v1707_v62  ;;  %vm1714_vm7 = vweird.f32 %v6938_v38 }
0x21c1   :  { %vm1715_vm9 = vmor %vm1713_vm8, %vm1714_vm7 }
0x21c2   :  { %v1710_v47 = vsub.f32 1.0, %v1709_v40 }
0x21c4   :  { %v1711_v41 = vmul.f32 %v6938_v38, %v1710_v47 }
0x21c6   :  { %v1712_v12 = vadd.f32 %v6938_v38, %v1711_v41 }
0x21c8   :  { %v1716_v45 = vsel %vm1715_vm9, %v6938_v38, %v1712_v12 }
0x21c9   :  { %v1721_v39 = vsel %vm1718_vm10, %v1720_v46, %v1716_v45 }
0x21ca   :  { %v1724_v50 = vmul.f32 %v1721_v39, %v1654_v20 }
0x220f   :  { %v1727_v36 = vpop.permute.xlu2 %1726 }
0x2210   :  { %v1729_v48 = vmul.f32 %v1727_v36, %v1721_v39 }
0x2212   :  { %1731 = vrot.lane.b32.xlu1 %v1729_v48, %s7376_s0 }
0x2284   :  { %v1732_v42 = vpop.permute.xlu1 %1731 }
0x2285   :  { %v1734_v51 = vadd.f32 %v1732_v42, %v1724_v50 }
0x2287   :  { %6939 = vtanh.f32 %v1734_v51 }
0x228d   :  { %v6940_v53 = vpop.eup %6939 }
0x228e   :  { %1737 = vrot.lane.b32.xlu0 %v6940_v53, %s7376_s0 }
0x2300   :  { %v1738_v49 = vpop.permute.xlu0 %1737 }
0x2301   :  { %v1740_v57 = vmul.f32 %v1738_v49, %v1721_v39 }
0x2303   :  { %v1747_v7 = vpack.c.bf16 %v1740_v57, %v1740_v57 }
0x2305   :  { %1753 = vrot.lane.b32.xlu2 %v1747_v7, %s7367_s22 }
0x235f   :  { %v1754_v58 = vpop.permute.xlu2 %1753 }
0x2360   :  { %5335 = vmatmul.msk.bf16.vlgmr.msra.gmra.mxu1 %vm288_vm4, %v1754_v58 }
0x23dd   :  { %v1779_v59 = vpop.f32.mrf.mxu1 }
0x23de   :  { %v1783_v5 = vadd.f32 %v1779_v59, %v1183_v9 }
0x23e0   :  { %6941 = vtanh.f32 %v1783_v5  ;;  %v5336_v63 = vmul.f32 -1.442695, %v1783_v5 }
0x23e2   :  { %6943 = vpow2.f32 %v5336_v63 }
0x23e5   :  { %v1781_v60 = vpop.f32.mrf.mxu1 }
0x23e6   :  { %v6942_v61 = vpop.eup %6941 }
0x23e7   :  { %1806 = vrot.lane.b32.xlu1 %v6942_v61, %s7376_s0 }
0x23e8   :  { %v6944_v13 = vpop.eup %6943 }
0x23e9   :  { %v1787_v0 = vadd.f32 1.0, %v6944_v13 }
0x23eb   :  { %6945 = vrcp.f32 %v1787_v0  ;;  %v1799_v3 = vand.u32 2147483648, %v1787_v0  ;;  %vm1793_vm12 = vweird.f32 %v1787_v0  ;;  %v1797_v4 = vand.u32 2147483647, %v1787_v0 }
0x23ed   :  { %v1800_v8 = vor.u32 1.1754944e-38, %v1799_v3  ;;  %vm1798_vm14 = vcmp.eq.f32.partialorder %v1797_v4, 8.507059e+37 }
0x23ef   :  { %1262 = vrot.lane.b32.xlu1 %v7742_v43, %s7367_s22 }
0x23f1   :  { %v6946_v15 = vpop.eup %6945 }
0x23f2   :  { %v1789_v33 = vmul.f32 %v6946_v15, %v1787_v0  ;;  %vm1794_vm11 = vweird.f32 %v6946_v15 }
0x23f3   :  { %vm1795_vm13 = vmor %vm1793_vm12, %vm1794_vm11 }
0x23f4   :  { %v1790_v1 = vsub.f32 1.0, %v1789_v33 }
0x23f6   :  { %v1791_v2 = vmul.f32 %v6946_v15, %v1790_v1 }
0x23f7   :  { %1502 = vrot.lane.b32.xlu1 %v7774_v22, %s7367_s22 }
0x23f8   :  { %v1792_v14 = vadd.f32 %v6946_v15, %v1791_v2 }
0x23fa   :  { %v1796_v43 = vsel %vm1795_vm13, %v6946_v15, %v1792_v14 }
0x23fb   :  { %v1801_v37 = vsel %vm1798_vm14, %v1800_v8, %v1796_v43 }
0x23fc   :  { %v1804_v21 = vmul.f32 %v1801_v37, %v1734_v51 }
0x23ff   :  { %1742 = vrot.lane.b32.xlu1 %v1740_v57, %s7367_s22 }
0x2459   :  { %v1807_v22 = vpop.permute.xlu1 %1806 }
0x245a   :  { %v1809_v10 = vmul.f32 %v1807_v22, %v1801_v37 }
0x245c   :  { %1811 = vrot.lane.b32.xlu0 %v1809_v10, %s7376_s0 }
0x2461   :  { %v1263_v16 = vpop.permute.xlu1 %1262 }
0x2462   :  { %1265 = vst.msk [vmem:[#allocation5] sm:$0xff] %vm288_vm4, %v1263_v16 }
0x2464   :  { %1342 = vrot.lane.b32.xlu0 %v7752_v18, %s7367_s22 }
0x2469   :  { %v1503_v19 = vpop.permute.xlu1 %1502  ;;  %v1826_v32 = vld [vmem:[#allocation5] sm:$0xff] }
0x246a   :  { %1505 = vst.msk [vmem:[#allocation5 + $0x18] sm:$0xff] %vm288_vm4, %v1503_v19  ;;  %v1836_v52 = vsel %vm288_vm4, %v1826_v32, 0.0 }
0x246c   :  { %1582 = vrot.lane.b32.xlu0 %v7785_v17, %s7367_s22 }
0x2471   :  { %v1743_v20 = vpop.permute.xlu1 %1742  ;;  %v1829_v34 = vld [vmem:[#allocation5 + $0x18] sm:$0xff] }
0x2472   :  { %1745 = vst.msk [vmem:[#allocation5 + $0x30] sm:$0xff] %vm288_vm4, %v1743_v20  ;;  %v1845_v35 = vsel %vm288_vm4, %v1829_v34, 0.0 }
0x2479   :  { %v1832_v11 = vld [vmem:[#allocation5 + $0x30] sm:$0xff] }
0x247a   :  { %v1854_v62 = vsel %vm288_vm4, %v1832_v11, 0.0 }
0x24ce   :  { %v1812_v23 = vpop.permute.xlu0 %1811 }
0x24cf   :  { %v1814_v24 = vadd.f32 %v1812_v23, %v1804_v21 }
0x24d1   :  { %6947 = vtanh.f32 %v1814_v24 }
0x24d6   :  { %v1343_v25 = vpop.permute.xlu0 %1342 }
0x24d7   :  { %v6948_v27 = vpop.eup %6947  ;;  %1345 = vst.msk [vmem:[#allocation5 + $0x8] sm:$0xff] %vm288_vm4, %v1343_v25 }
0x24d8   :  { %1817 = vrot.lane.b32.xlu2 %v6948_v27, %s7376_s0 }
0x24de   :  { %v1583_v18 = vpop.permute.xlu0 %1582  ;;  %v1827_v28 = vld [vmem:[#allocation5 + $0x8] sm:$0xff] }
0x24df   :  { %1585 = vst.msk [vmem:[#allocation5 + $0x20] sm:$0xff] %vm288_vm4, %v1583_v18  ;;  %v1839_v30 = vsel %vm288_vm4, %v1827_v28, 0.0 }
0x24e0   :  { %1840 = vadd.xlane.f32.xlu1 %v1839_v30  ;;  %1422 = vrot.lane.b32.xlu2 %v7763_v55, %s7367_s22 }
0x24e6   :  { %v1830_v17 = vld [vmem:[#allocation5 + $0x20] sm:$0xff] }
0x24e7   :  { %v1848_v31 = vsel %vm288_vm4, %v1830_v17, 0.0 }
0x24e8   :  { %1849 = vadd.xlane.f32.xlu1 %v1848_v31  ;;  %1662 = vrot.lane.b32.xlu2 %v7796_v26, %s7367_s22 }
0x2511   :  { %1837 = vadd.xlane.f32.xlu2 %v1836_v52 }
0x2519   :  { %1846 = vadd.xlane.f32.xlu2 %v1845_v35  ;;  %v7885_v35 = vld [vmem:[%s8404_s9] ss:$0 sm:$0xff] }
0x2521   :  { %1855 = vadd.xlane.f32.xlu2 %v1854_v62 }
0x2532   :  { %v1818_v55 = vpop.permute.xlu2 %1817 }
0x2533   :  { %v1820_v38 = vmul.f32 %v1818_v55, %v1801_v37  ;;  %v7890_v55 = vld [vmem:[%s8405_s10] ss:$0 sm:$0xff] }
0x2535   :  { %1822 = vrot.lane.b32.xlu0 %v1820_v38, %s7367_s22 }
0x253a   :  { %v1423_v40 = vpop.permute.xlu2 %1422 }
0x253b   :  { %1425 = vst.msk [vmem:[#allocation5 + $0x10] sm:$0xff] %vm288_vm4, %v1423_v40 }
0x2542   :  { %v1663_v26 = vpop.permute.xlu2 %1662  ;;  %v1828_v46 = vld [vmem:[#allocation5 + $0x10] sm:$0xff] }
0x2543   :  { %1665 = vst.msk [vmem:[#allocation5 + $0x28] sm:$0xff] %vm288_vm4, %v1663_v26  ;;  %v1842_v48 = vsel %vm288_vm4, %v1828_v46, 0.0 }
0x254a   :  { %v1831_v51 = vld [vmem:[#allocation5 + $0x28] sm:$0xff] }
0x254b   :  { %v1851_v53 = vsel %vm288_vm4, %v1831_v51, 0.0 }
0x2553   :  { %v1841_v47 = vpop.xlane.xlu1 %1840 }
0x2554   :  { %v1861_v41 = vmul.f32 0.03125, %v1841_v47 }
0x2556   :  { %v7840_v12 = vsub.f32 %v1827_v28, %v1861_v41 }
0x2558   :  { %v1877_v44 = vmul.f32 %v7840_v12, %v7840_v12 }
0x255a   :  { %v1887_v29 = vsel %vm288_vm4, %v1877_v44, 0.0 }
0x255b   :  { %v1850_v45 = vpop.xlane.xlu1 %1849  ;;  %1888 = vadd.xlane.f32.xlu2 %v1887_v29 }
0x255c   :  { %v1864_v36 = vmul.f32 0.03125, %v1850_v45 }
0x255e   :  { %v7845_v39 = vsub.f32 %v1830_v17, %v1864_v36 }
0x255f   :  { %1843 = vadd.xlane.f32.xlu0 %v1842_v48 }
0x2560   :  { %v1880_v50 = vmul.f32 %v7845_v39, %v7845_v39 }
0x2562   :  { %v1896_v42 = vsel %vm288_vm4, %v1880_v50, 0.0 }
0x2563   :  { %1897 = vadd.xlane.f32.xlu2 %v1896_v42 }
0x2567   :  { %1852 = vadd.xlane.f32.xlu0 %v1851_v53 }
0x2584   :  { %v1838_v54 = vpop.xlane.xlu2 %1837 }
0x2585   :  { %v1860_v56 = vmul.f32 0.03125, %v1838_v54 }
0x2587   :  { %v7852_v49 = vsub.f32 %v1826_v32, %v1860_v56 }
0x2589   :  { %v1876_v57 = vmul.f32 %v7852_v49, %v7852_v49 }
0x258b   :  { %v1884_v7 = vsel %vm288_vm4, %v1876_v57, 0.0 }
0x258c   :  { %1885 = vadd.xlane.f32.xlu0 %v1884_v7  ;;  %v1847_v58 = vpop.xlane.xlu2 %1846 }
0x258d   :  { %v1863_v9 = vmul.f32 0.03125, %v1847_v58 }
0x258f   :  { %v7857_v59 = vsub.f32 %v1829_v34, %v1863_v9 }
0x2591   :  { %v1879_v5 = vmul.f32 %v7857_v59, %v7857_v59 }
0x2593   :  { %v1893_v60 = vsel %vm288_vm4, %v1879_v5, 0.0 }
0x2594   :  { %1894 = vadd.xlane.f32.xlu0 %v1893_v60  ;;  %v1856_v61 = vpop.xlane.xlu2 %1855 }
0x2595   :  { %v1866_v63 = vmul.f32 0.03125, %v1856_v61 }
0x2597   :  { %v7862_v13 = vsub.f32 %v1832_v11, %v1866_v63 }
0x2599   :  { %v1882_v0 = vmul.f32 %v7862_v13, %v7862_v13 }
0x259b   :  { %v1902_v15 = vsel %vm288_vm4, %v1882_v0, 0.0 }
0x259c   :  { %1903 = vadd.xlane.f32.xlu0 %v1902_v15 }
0x25a7   :  { %v1823_v33 = vpop.permute.xlu0 %1822 }
0x25a8   :  { %1825 = vst.msk [vmem:[#allocation5 + $0x38] sm:$0xff] %vm288_vm4, %v1823_v33 }
0x25af   :  { %v7868_v1 = vld [vmem:[#allocation5 + $0x38] sm:$0xff] }
0x25b0   :  { %v1857_v2 = vsel %vm288_vm4, %v7868_v1, 0.0 }
0x25b1   :  { %1858 = vadd.xlane.f32.xlu1 %v1857_v2 }
0x25ce   :  { %v1889_v14 = vpop.xlane.xlu2 %1888 }
0x25cf   :  { %v1909_v3 = vmul.f32 0.03125, %v1889_v14 }
0x25d1   :  { %v1917_v4 = vadd.f32 1e-05, %v1909_v3 }
0x25d2   :  { %v1844_v43 = vpop.xlane.xlu0 %1843 }
0x25d3   :  { %6949 = vrsqrt.f32 %v1917_v4  ;;  %v1862_v8 = vmul.f32 0.03125, %v1844_v43  ;;  %vm1940_vm0 = vweird.f32 %v1917_v4 }
0x25d5   :  { %v7872_v22 = vsub.f32 %v1828_v46, %v1862_v8 }
0x25d6   :  { %v1898_v37 = vpop.xlane.xlu2 %1897 }
0x25d7   :  { %v1912_v10 = vmul.f32 0.03125, %v1898_v37  ;;  %v1878_v16 = vmul.f32 %v7872_v22, %v7872_v22 }
0x25d9   :  { %v6950_v19 = vpop.eup %6949  ;;  %v1920_v20 = vadd.f32 1e-05, %v1912_v10  ;;  %v1890_v21 = vsel %vm288_vm4, %v1878_v16, 0.0 }
0x25da   :  { %v1935_v23 = vmul.f32 %v6950_v19, %v1917_v4  ;;  %1891 = vadd.xlane.f32.xlu1 %v1890_v21  ;;  %v1853_v24 = vpop.xlane.xlu0 %1852  ;;  %vm1941_vm15 = vweird.f32 %v6950_v19 }
0x25db   :  { %6951 = vrsqrt.f32 %v1920_v20  ;;  %v1865_v25 = vmul.f32 0.03125, %v1853_v24  ;;  %vm1942_vm1 = vmor %vm1940_vm0, %vm1941_vm15  ;;  %vm1970_vm3 = vweird.f32 %v1920_v20 }
0x25dc   :  { %v1936_v27 = vmul.f32 %v6950_v19, %v1935_v23 }
0x25dd   :  { %v7877_v18 = vsub.f32 %v1831_v51, %v1865_v25 }
0x25de   :  { %v1937_v28 = vmul.f32 0.5, %v1936_v27 }
0x25df   :  { %v1881_v30 = vmul.f32 %v7877_v18, %v7877_v18 }
0x25e0   :  { %v1938_v17 = vsub.f32 1.5, %v1937_v28 }
0x25e1   :  { %v6952_v31 = vpop.eup %6951  ;;  %v1899_v32 = vsel %vm288_vm4, %v1881_v30, 0.0 }
0x25e2   :  { %v1939_v52 = vmul.f32 %v6950_v19, %v1938_v17  ;;  %v1965_v34 = vmul.f32 %v6952_v31, %v1920_v20  ;;  %1900 = vadd.xlane.f32.xlu1 %v1899_v32  ;;  %vm1971_vm2 = vweird.f32 %v6952_v31 }
0x25e3   :  { %vm1972_vm5 = vmor %vm1970_vm3, %vm1971_vm2 }
0x25e4   :  { %v1943_v11 = vsel %vm1942_vm1, %v6950_v19, %v1939_v52  ;;  %v1966_v62 = vmul.f32 %v6952_v31, %v1965_v34 }
0x25e5   :  { %v2005_v38 = vmul.f32 %v1943_v11, %v7840_v12 }
0x25e6   :  { %v1967_v40 = vmul.f32 0.5, %v1966_v62 }
0x25e7   :  { %v2016_v26 = vmul.f32 %v7885_v35, %v2005_v38 }
0x25e8   :  { %v1968_v47 = vsub.f32 1.5, %v1967_v40 }
0x25e9   :  { %v7895_v41 = vadd.f32 %v7890_v55, %v2016_v26 }
0x25ea   :  { %v1969_v44 = vmul.f32 %v6952_v31, %v1968_v47 }
0x25ec   :  { %v1973_v29 = vsel %vm1972_vm5, %v6952_v31, %v1969_v44 }
0x25ed   :  { %v2008_v45 = vmul.f32 %v1973_v29, %v7845_v39 }
0x25ef   :  { %v2019_v46 = vmul.f32 %v7885_v35, %v2008_v45 }
0x25f1   :  { %v7900_v36 = vadd.f32 %v7890_v55, %v2019_v46 }
0x25ff   :  { %v1886_v12 = vpop.xlane.xlu0 %1885 }
0x2600   :  { %v1908_v48 = vmul.f32 0.03125, %v1886_v12 }
0x2602   :  { %v1916_v50 = vadd.f32 1e-05, %v1908_v48 }
0x2604   :  { %6953 = vrsqrt.f32 %v1916_v50  ;;  %vm1930_vm7 = vweird.f32 %v1916_v50 }
0x2607   :  { %v1895_v42 = vpop.xlane.xlu0 %1894 }
0x2608   :  { %v1911_v51 = vmul.f32 0.03125, %v1895_v42 }
0x260a   :  { %v6954_v53 = vpop.eup %6953  ;;  %v1919_v54 = vadd.f32 1e-05, %v1911_v51 }
0x260b   :  { %v1925_v56 = vmul.f32 %v6954_v53, %v1916_v50  ;;  %vm1931_vm6 = vweird.f32 %v6954_v53 }
0x260c   :  { %6955 = vrsqrt.f32 %v1919_v54  ;;  %vm1932_vm8 = vmor %vm1930_vm7, %vm1931_vm6  ;;  %vm1960_vm10 = vweird.f32 %v1919_v54 }
0x260d   :  { %v1926_v57 = vmul.f32 %v6954_v53, %v1925_v56 }
0x260f   :  { %v1927_v7 = vmul.f32 0.5, %v1926_v57  ;;  %v1904_v58 = vpop.xlane.xlu0 %1903 }
0x2610   :  { %v1914_v9 = vmul.f32 0.03125, %v1904_v58 }
0x2611   :  { %v1928_v39 = vsub.f32 1.5, %v1927_v7 }
0x2612   :  { %v6956_v5 = vpop.eup %6955  ;;  %v1922_v60 = vadd.f32 1e-05, %v1914_v9 }
0x2613   :  { %v1929_v61 = vmul.f32 %v6954_v53, %v1928_v39  ;;  %v1955_v63 = vmul.f32 %v6956_v5, %v1919_v54  ;;  %vm1961_vm9 = vweird.f32 %v6956_v5 }
0x2614   :  { %6957 = vrsqrt.f32 %v1922_v60  ;;  %vm1962_vm11 = vmor %vm1960_vm10, %vm1961_vm9  ;;  %vm1990_vm13 = vweird.f32 %v1922_v60 }
0x2615   :  { %v1933_v0 = vsel %vm1932_vm8, %v6954_v53, %v1929_v61  ;;  %v1956_v15 = vmul.f32 %v6956_v5, %v1955_v63 }
0x2616   :  { %v2004_v33 = vmul.f32 %v1933_v0, %v7852_v49 }
0x2617   :  { %v1957_v2 = vmul.f32 0.5, %v1956_v15 }
0x2618   :  { %v2015_v14 = vmul.f32 %v7885_v35, %v2004_v33 }
0x2619   :  { %v1958_v3 = vsub.f32 1.5, %v1957_v2 }
0x261a   :  { %v6958_v4 = vpop.eup %6957  ;;  %v7905_v43 = vadd.f32 %v7890_v55, %v2015_v14 }
0x261b   :  { %v1959_v8 = vmul.f32 %v6956_v5, %v1958_v3  ;;  %v1985_v37 = vmul.f32 %v6958_v4, %v1922_v60  ;;  %vm1991_vm12 = vweird.f32 %v6958_v4 }
0x261c   :  { %vm1992_vm14 = vmor %vm1990_vm13, %vm1991_vm12 }
0x261d   :  { %v1963_v10 = vsel %vm1962_vm11, %v6956_v5, %v1959_v8  ;;  %v1986_v16 = vmul.f32 %v6958_v4, %v1985_v37 }
0x261e   :  { %v2007_v19 = vmul.f32 %v1963_v10, %v7857_v59 }
0x261f   :  { %v1987_v20 = vmul.f32 0.5, %v1986_v16 }
0x2620   :  { %v2018_v49 = vmul.f32 %v7885_v35, %v2007_v19 }
0x2621   :  { %v1988_v21 = vsub.f32 1.5, %v1987_v20 }
0x2622   :  { %v7910_v23 = vadd.f32 %v7890_v55, %v2018_v49 }
0x2623   :  { %v1989_v24 = vmul.f32 %v6958_v4, %v1988_v21 }
0x2624   :  { %v1859_v25 = vpop.xlane.xlu1 %1858 }
0x2625   :  { %v1993_v27 = vsel %vm1992_vm14, %v6958_v4, %v1989_v24  ;;  %v1867_v28 = vmul.f32 0.03125, %v1859_v25 }
0x2626   :  { %v2010_v30 = vmul.f32 %v1993_v27, %v7862_v13 }
0x2627   :  { %v7914_v17 = vsub.f32 %v7868_v1, %v1867_v28 }
0x2628   :  { %v2021_v59 = vmul.f32 %v7885_v35, %v2010_v30 }
0x2629   :  { %v1883_v31 = vmul.f32 %v7914_v17, %v7914_v17 }
0x262a   :  { %v7920_v32 = vadd.f32 %v7890_v55, %v2021_v59 }
0x262b   :  { %v1905_v52 = vsel %vm288_vm4, %v1883_v31, 0.0 }
0x262c   :  { %1906 = vadd.xlane.f32.xlu2 %v1905_v52 }
0x264d   :  { %v1892_v13 = vpop.xlane.xlu1 %1891 }
0x264e   :  { %v1910_v1 = vmul.f32 0.03125, %v1892_v13 }
0x2650   :  { %v1918_v34 = vadd.f32 1e-05, %v1910_v1 }
0x2652   :  { %6959 = vrsqrt.f32 %v1918_v34  ;;  %vm1950_vm0 = vweird.f32 %v1918_v34 }
0x2655   :  { %v1901_v11 = vpop.xlane.xlu1 %1900 }
0x2656   :  { %v1913_v62 = vmul.f32 0.03125, %v1901_v11 }
0x2658   :  { %v6960_v38 = vpop.eup %6959  ;;  %v1921_v40 = vadd.f32 1e-05, %v1913_v62 }
0x2659   :  { %v1945_v26 = vmul.f32 %v6960_v38, %v1918_v34  ;;  %vm1951_vm15 = vweird.f32 %v6960_v38 }
0x265a   :  { %6961 = vrsqrt.f32 %v1921_v40  ;;  %vm1952_vm1 = vmor %vm1950_vm0, %vm1951_vm15  ;;  %vm1980_vm3 = vweird.f32 %v1921_v40 }
0x265b   :  { %v1946_v47 = vmul.f32 %v6960_v38, %v1945_v26 }
0x265d   :  { %v1947_v44 = vmul.f32 0.5, %v1946_v47 }
0x265f   :  { %v1948_v29 = vsub.f32 1.5, %v1947_v44 }
0x2660   :  { %v6962_v45 = vpop.eup %6961 }
0x2661   :  { %v1949_v46 = vmul.f32 %v6960_v38, %v1948_v29  ;;  %v1975_v12 = vmul.f32 %v6962_v45, %v1921_v40  ;;  %vm1981_vm2 = vweird.f32 %v6962_v45 }
0x2662   :  { %vm1982_vm5 = vmor %vm1980_vm3, %vm1981_vm2 }
0x2663   :  { %v1953_v48 = vsel %vm1952_vm1, %v6960_v38, %v1949_v46  ;;  %v1976_v50 = vmul.f32 %v6962_v45, %v1975_v12 }
0x2664   :  { %v2006_v42 = vmul.f32 %v1953_v48, %v7872_v22 }
0x2665   :  { %v1977_v51 = vmul.f32 0.5, %v1976_v50 }
0x2666   :  { %v2017_v53 = vmul.f32 %v7885_v35, %v2006_v42 }
0x2667   :  { %v1978_v54 = vsub.f32 1.5, %v1977_v51 }
0x2668   :  { %v7932_v56 = vadd.f32 %v7890_v55, %v2017_v53 }
0x2669   :  { %v1979_v57 = vmul.f32 %v6962_v45, %v1978_v54 }
0x266b   :  { %v1983_v7 = vsel %vm1982_vm5, %v6962_v45, %v1979_v57 }
0x266c   :  { %v2009_v58 = vmul.f32 %v1983_v7, %v7877_v18 }
0x266e   :  { %v2020_v9 = vmul.f32 %v7885_v35, %v2009_v58 }
0x2670   :  { %v2031_v39 = vadd.f32 %v7890_v55, %v2020_v9 }
0x269f   :  { %v1907_v5 = vpop.xlane.xlu2 %1906 }
0x26a0   :  { %v1915_v22 = vmul.f32 0.03125, %v1907_v5 }
0x26a2   :  { %v1923_v60 = vadd.f32 1e-05, %v1915_v22 }
0x26a4   :  { %6963 = vrsqrt.f32 %v1923_v60  ;;  %vm2000_vm7 = vweird.f32 %v1923_v60 }
0x26aa   :  { %v6964_v61 = vpop.eup %6963 }
0x26ab   :  { %v1995_v63 = vmul.f32 %v6964_v61, %v1923_v60  ;;  %vm2001_vm6 = vweird.f32 %v6964_v61 }
0x26ac   :  { %vm2002_vm8 = vmor %vm2000_vm7, %vm2001_vm6 }
0x26ad   :  { %v1996_v0 = vmul.f32 %v6964_v61, %v1995_v63 }
0x26af   :  { %v1997_v15 = vmul.f32 0.5, %v1996_v0 }
0x26b1   :  { %v1998_v33 = vsub.f32 1.5, %v1997_v15 }
0x26b3   :  { %v1999_v2 = vmul.f32 %v6964_v61, %v1998_v33 }
0x26b5   :  { %v2003_v14 = vsel %vm2002_vm8, %v6964_v61, %v1999_v2 }
0x26b6   :  { %v2011_v18 = vmul.f32 %v2003_v14, %v7914_v17 }
0x26b8   :  { %v2022_v3 = vmul.f32 %v7885_v35, %v2011_v18 }
0x26ba   :  { %v2033_v4 = vadd.f32 %v7890_v55, %v2022_v3 }
0x26bb   :  { %7360 = dma.done.wait [#allocation9], 1024 }
0x26bc   :  { %7361 = vsyncadd [#allocation9], 4294966272  ;;  %v5355_v8 = vld [vmem:[#allocation7 + $0x20] sm:$0xf]  ;;  %v6515_v37 = vld [vmem:[#allocation7 + $0x2c] sm:$0xf0]  ;;  %v2038_v11 = vpack.c.bf16 %v7895_v41, %v7905_v43  ;;  %v2039_v40 = vpack.c.bf16 %v7910_v23, %v7932_v56  ;;  %v2040_v41 = vpack.c.bf16 %v2031_v39, %v7900_v36  ;;  %v2041_v43 = vpack.c.bf16 %v2033_v4, %v7920_v32 }
0x26bd   :  { %v5339_v10 = vld [vmem:[#allocation7] sm:$0xf]  ;;  %v5356_v16 = vor.u32 %v6515_v37, %v5355_v8  ;;  %v6511_v19 = vld [vmem:[#allocation7 + $0xc] sm:$0xf0]  ;;  %v6513_v20 = vld [vmem:[#allocation7 + $0x24] sm:$0xf] }
0x26be   :  { %v5357_v49 = vld [vmem:[#allocation7 + $0x30] sm:$0xf0]  ;;  %v6514_v21 = vld [vmem:[#allocation7 + $0x2c] sm:$0xf]  ;;  %v5365_v24 = vld [vmem:[#allocation7 + $0x38] sm:$0xf0]  ;;  %v5340_v27 = vor.u32 %v6511_v19, %v5339_v10 }
0x26bf   :  { %v6510_v25 = vld [vmem:[#allocation7 + $0xc] sm:$0xf]  ;;  %2118 = vmatpush.bf16.msrb.mxu0 %v5356_v16  ;;  %v5368_v28 = vor.u32 %v6514_v21, %v5365_v24  ;;  %v5349_v30 = vld [vmem:[#allocation7 + $0x18] sm:$0xf0]  ;;  %6781 = vmatpush.bf16.msra.mxu2 %v5356_v16  ;;  %v5360_v35 = vor.u32 %v6513_v20, %v5357_v49  ;;  %v5363_v17 = vld [vmem:[#allocation7 + $0x28] sm:$0xf] }
0x26c0   :  { %v6516_v55 = vld [vmem:[#allocation7 + $0x34] sm:$0xf0]  ;;  %v5347_v59 = vld [vmem:[#allocation7 + $0x8] sm:$0xf]  ;;  %v5352_v31 = vor.u32 %v6510_v25, %v5349_v30  ;;  %v6509_v52 = vld [vmem:[#allocation7 + $0x4] sm:$0xf] }
0x26c1   :  { %2205 = vmatpush.bf16.msra.mxu3 %v5368_v28  ;;  %v5341_v13 = vld [vmem:[#allocation7 + $0x10] sm:$0xf0]  ;;  %v5364_v1 = vor.u32 %v6516_v55, %v5363_v17  ;;  %v6512_v34 = vld [vmem:[#allocation7 + $0x14] sm:$0xf0]  ;;  %v2050_v36 = vld [vmem:[%s8408_s13] sm:$0xf] }
0x26c2   :  { %v5348_v62 = vor.u32 %v6512_v34, %v5347_v59  ;;  %v5344_v38 = vor.u32 %v6509_v52, %v5341_v13  ;;  %v2052_v23 = vperm.slane %v2050_v36, 0  ;;  %v2054_v47 = vperm.slane %v2050_v36, 2 }
0x26c3   :  { %2119 = vmatpush.bf16.msrb.mxu0 %v5340_v27  ;;  %2176 = vmatpush.bf16.msrb.mxu1 %v5364_v1  ;;  %v2055_v45 = vperm.slane %v2050_v36, 3  ;;  %v2053_v0 = vperm.slane %v2050_v36, 1 }
0x26c4   :  { %6782 = vmatpush.bf16.msra.mxu2 %v5340_v27 }
0x26c5   :  { %2206 = vmatpush.bf16.msra.mxu3 %v5352_v31 }
0x26c6   :  { %5369 = vmatmul.msk.bf16.vlgmr.msrb.gmra.mxu0 %vm288_vm4, %v2038_v11 }
0x26c7   :  { %2147 = vmatpush.bf16.msra.mxu0 %v5360_v35  ;;  %2177 = vmatpush.bf16.msrb.mxu1 %v5348_v62 }
0x26c8   :  { %5381 = vmatmul.msk.bf16.vlgmr.msra.gmra.mxu3 %vm288_vm4, %v2038_v11  ;;  %5371 = vmatmul.msk.bf16.vlgmr.msra.gmra.mxu2 %vm288_vm4, %v2040_v41 }
0x26ca   :  { %5377 = vmatmul.msk.bf16.vlgmr.msrb.gmra.mxu1 %vm288_vm4, %v2038_v11 }
0x26cb   :  { %2148 = vmatpush.bf16.msra.mxu0 %v5344_v38 }
0x26d6   :  { %5370 = vmatmul.msk.bf16.gmra.mxu0 %vm288_vm4, %v2039_v40 }
0x26d8   :  { %5382 = vmatmul.msk.bf16.gmra.mxu3 %vm288_vm4, %v2039_v40  ;;  %5372 = vmatmul.msk.bf16.gmra.mxu2 %vm288_vm4, %v2041_v43 }
0x26da   :  { %5378 = vmatmul.msk.bf16.gmra.mxu1 %vm288_vm4, %v2039_v40 }
0x26e6   :  { %5373 = vmatmul.msk.bf16.vlgmr.msra.gmra.mxu0 %vm288_vm4, %v2038_v11 }
0x26e8   :  { %5383 = vmatmul.msk.bf16.gmra.mxu3 %vm288_vm4, %v2040_v41 }
0x26ea   :  { %5379 = vmatmul.msk.bf16.gmra.mxu1 %vm288_vm4, %v2040_v41 }
0x26f6   :  { %5374 = vmatmul.msk.bf16.gmra.mxu0 %vm288_vm4, %v2039_v40 }
0x26f8   :  { %5384 = vmatmul.msk.bf16.gmra.mxu3 %vm288_vm4, %v2041_v43 }
0x26fa   :  { %5380 = vmatmul.msk.bf16.gmra.mxu1 %vm288_vm4, %v2041_v43 }
0x2706   :  { %5375 = vmatmul.msk.bf16.gmra.mxu0 %vm288_vm4, %v2040_v41 }
0x2716   :  { %5376 = vmatmul.msk.bf16.gmra.mxu0 %vm288_vm4, %v2041_v43 }
0x2743   :  { %v2121_v32 = vpop.f32.mrf.mxu0 }
0x2744   :  { %v7965_v26 = vadd.f32 %v2121_v32, %v2052_v23 }
0x2747   :  { %v2179_v44 = vpop.f32.mrf.mxu1 }
0x2748   :  { %v7967_v29 = vadd.f32 %v2179_v44, %v2054_v47 }
0x274b   :  { %v2123_v46 = vpop.f32.mrf.mxu0  ;;  %v2208_v12 = vpop.f32.mrf.mxu3 }
0x274c   :  { %v7969_v48 = vadd.f32 %v2123_v46, %v2052_v23  ;;  %v7971_v50 = vadd.f32 %v2208_v12, %v2055_v45  ;;  %v2131_v60 = vpop.f32.mrf.mxu2 }
0x274d   :  { %v7985_v61 = vadd.f32 %v2131_v60, %v2052_v23 }
0x274f   :  { %v2181_v42 = vpop.f32.mrf.mxu1 }
0x2750   :  { %v7973_v51 = vadd.f32 %v2181_v42, %v2054_v47 }
0x2753   :  { %v2126_v53 = vpop.f32.mrf.mxu0  ;;  %v2210_v54 = vpop.f32.mrf.mxu3 }
0x2754   :  { %v7975_v56 = vadd.f32 %v2126_v53, %v2052_v23  ;;  %v7977_v57 = vadd.f32 %v2210_v54, %v2055_v45  ;;  %v2133_v3 = vpop.f32.mrf.mxu2 }
0x2755   :  { %v7993_v4 = vadd.f32 %v2133_v3, %v2052_v23 }
0x2757   :  { %v2184_v7 = vpop.f32.mrf.mxu1 }
0x2758   :  { %v7979_v58 = vadd.f32 %v2184_v7, %v2054_v47 }
0x275b   :  { %v2128_v9 = vpop.f32.mrf.mxu0  ;;  %v2213_v39 = vpop.f32.mrf.mxu3 }
0x275c   :  { %v7981_v5 = vadd.f32 %v2128_v9, %v2052_v23  ;;  %v7983_v22 = vadd.f32 %v2213_v39, %v2055_v45  ;;  %v2136_v49 = vpop.f32.mrf.mxu2 }
0x275d   :  { %v8001_v21 = vadd.f32 %v2136_v49, %v2052_v23 }
0x275f   :  { %v2186_v63 = vpop.f32.mrf.mxu1 }
0x2760   :  { %v7987_v15 = vadd.f32 %v2186_v63, %v2054_v47 }
0x2763   :  { %v2150_v33 = vpop.f32.mrf.mxu0  ;;  %v2215_v2 = vpop.f32.mrf.mxu3 }
0x2764   :  { %v7989_v14 = vadd.f32 %v2150_v33, %v2053_v0  ;;  %v7991_v18 = vadd.f32 %v2215_v2, %v2055_v45  ;;  %v2138_v17 = vpop.f32.mrf.mxu2 }
0x2765   :  { %v8009_v55 = vadd.f32 %v2138_v17, %v2052_v23 }
0x2767   :  { %v2189_v8 = vpop.f32.mrf.mxu1 }
0x2768   :  { %v7995_v37 = vadd.f32 %v2189_v8, %v2054_v47 }
0x276b   :  { %v2152_v10 = vpop.f32.mrf.mxu0  ;;  %v2218_v16 = vpop.f32.mrf.mxu3 }
0x276c   :  { %v7997_v19 = vadd.f32 %v2152_v10, %v2053_v0  ;;  %v7999_v20 = vadd.f32 %v2218_v16, %v2055_v45 }
0x276f   :  { %v2191_v24 = vpop.f32.mrf.mxu1 }
0x2770   :  { %v8003_v25 = vadd.f32 %v2191_v24, %v2054_v47 }
0x2773   :  { %v2155_v27 = vpop.f32.mrf.mxu0  ;;  %v2220_v28 = vpop.f32.mrf.mxu3 }
0x2774   :  { %v8005_v30 = vadd.f32 %v2155_v27, %v2053_v0  ;;  %v8007_v35 = vadd.f32 %v2220_v28, %v2055_v45 }
0x2777   :  { %v2194_v59 = vpop.f32.mrf.mxu1 }
0x2778   :  { %v8011_v31 = vadd.f32 %v2194_v59, %v2054_v47 }
0x277b   :  { %v2157_v52 = vpop.f32.mrf.mxu0  ;;  %v2223_v13 = vpop.f32.mrf.mxu3 }
0x277c   :  { %v8013_v1 = vadd.f32 %v2157_v52, %v2053_v0  ;;  %v8015_v34 = vadd.f32 %v2223_v13, %v2055_v45 }
0x277f   :  { %v2196_v11 = vpop.f32.mrf.mxu1 }
0x2780   :  { %v8017_v62 = vadd.f32 %v2196_v11, %v2054_v47 }
0x2783   :  { %v2160_v38 = vpop.f32.mrf.mxu0  ;;  %v2225_v40 = vpop.f32.mrf.mxu3 }
0x2784   :  { %v8019_v41 = vadd.f32 %v2160_v38, %v2053_v0  ;;  %v8021_v43 = vadd.f32 %v2225_v40, %v2055_v45 }
0x278b   :  { %v2162_v36 = vpop.f32.mrf.mxu0 }
0x278c   :  { %v8023_v23 = vadd.f32 %v2162_v36, %v2053_v0 }
0x2793   :  { %v2165_v32 = vpop.f32.mrf.mxu0 }
0x2794   :  { %v8025_v44 = vadd.f32 %v2165_v32, %v2053_v0 }
0x279b   :  { %v2167_v46 = vpop.f32.mrf.mxu0 }
0x279c   :  { %v8027_v12 = vadd.f32 %v2167_v46, %v2053_v0 }
0x279d   :  { %7362 = dma.done.wait [#allocation9 + $0x1], 4096 }
0x279e   :  { %7363 = vsyncadd [#allocation9 + $0x1], 4294963200  ;;  %v5499_v42 = vld [vmem:[#allocation8 + $0xe0] sm:$0xf]  ;;  %v6547_v47 = vld [vmem:[#allocation8 + $0xec] sm:$0xf0] }
0x279f   :  { %v6545_v53 = vld [vmem:[#allocation8 + $0xe4] sm:$0xf]  ;;  %v5500_v54 = vor.u32 %v6547_v47, %v5499_v42  ;;  %v5501_v7 = vld [vmem:[#allocation8 + $0xf0] sm:$0xf0]  ;;  %v5483_v9 = vld [vmem:[#allocation8 + $0xc0] sm:$0xf] }
0x27a0   :  { %v6543_v39 = vld [vmem:[#allocation8 + $0xcc] sm:$0xf0]  ;;  %v5504_v45 = vor.u32 %v6545_v53, %v5501_v7  ;;  %v6541_v60 = vld [vmem:[#allocation8 + $0xc4] sm:$0xf]  ;;  %v5485_v63 = vld [vmem:[#allocation8 + $0xd0] sm:$0xf0] }
0x27a1   :  { %v5507_v33 = vld [vmem:[#allocation8 + $0xe8] sm:$0xf]  ;;  %2460 = vmatpush.bf16.msrb.mxu2 %v5500_v54  ;;  %v5484_v2 = vor.u32 %v6543_v39, %v5483_v9  ;;  %v6548_v3 = vld [vmem:[#allocation8 + $0xf4] sm:$0xf0]  ;;  %v5488_v8 = vor.u32 %v6541_v60, %v5485_v63  ;;  %v5467_v10 = vld [vmem:[#allocation8 + $0xa0] sm:$0xf] }
0x27a2   :  { %2473 = vmatpush.bf16.msrb.mxu0 %v5504_v45  ;;  %v5508_v0 = vor.u32 %v6548_v3, %v5507_v33  ;;  %v6539_v16 = vld [vmem:[#allocation8 + $0xac] sm:$0xf0]  ;;  %v5491_v49 = vld [vmem:[#allocation8 + $0xc8] sm:$0xf]  ;;  %v6537_v24 = vld [vmem:[#allocation8 + $0xa4] sm:$0xf] }
0x27a3   :  { %v5469_v27 = vld [vmem:[#allocation8 + $0xb0] sm:$0xf0]  ;;  %v6544_v28 = vld [vmem:[#allocation8 + $0xd4] sm:$0xf0]  ;;  %v5475_v59 = vld [vmem:[#allocation8 + $0xa8] sm:$0xf]  ;;  %v5468_v52 = vor.u32 %v6539_v16, %v5467_v10 }
0x27a4   :  { %2486 = vmatpush.bf16.msra.mxu1 %v5508_v0  ;;  %v5492_v17 = vor.u32 %v6544_v28, %v5491_v49  ;;  %v6540_v13 = vld [vmem:[#allocation8 + $0xb4] sm:$0xf0]  ;;  %v6546_v11 = vld [vmem:[#allocation8 + $0xec] sm:$0xf]  ;;  %v5509_v38 = vld [vmem:[#allocation8 + $0xf8] sm:$0xf0]  ;;  %v5472_v40 = vor.u32 %v6537_v24, %v5469_v27 }
0x27a5   :  { %2461 = vmatpush.bf16.msrb.mxu2 %v5484_v2  ;;  %v5451_v36 = vld [vmem:[#allocation8 + $0x80] sm:$0xf]  ;;  %v6535_v32 = vld [vmem:[#allocation8 + $0x8c] sm:$0xf0]  ;;  %v5512_v46 = vor.u32 %v6546_v11, %v5509_v38  ;;  %v6533_v42 = vld [vmem:[#allocation8 + $0x84] sm:$0xf]  ;;  %v5476_v53 = vor.u32 %v6540_v13, %v5475_v59 }
0x27a6   :  { %2474 = vmatpush.bf16.msrb.mxu0 %v5488_v8  ;;  %v5453_v47 = vld [vmem:[#allocation8 + $0x90] sm:$0xf0]  ;;  %v6542_v54 = vld [vmem:[#allocation8 + $0xcc] sm:$0xf]  ;;  %v5493_v7 = vld [vmem:[#allocation8 + $0xd8] sm:$0xf0]  ;;  %v5452_v9 = vor.u32 %v6535_v32, %v5451_v36 }
0x27a7   :  { %2499 = vmatpush.bf16.msrb.mxu3 %v5512_v46  ;;  %v5459_v39 = vld [vmem:[#allocation8 + $0x88] sm:$0xf]  ;;  %v6536_v45 = vld [vmem:[#allocation8 + $0x94] sm:$0xf0]  ;;  %v5496_v60 = vor.u32 %v6542_v54, %v5493_v7  ;;  %v5456_v63 = vor.u32 %v6533_v42, %v5453_v47  ;;  %v5435_v33 = vld [vmem:[#allocation8 + $0x60] sm:$0xf] }
0x27a8   :  { %2487 = vmatpush.bf16.msra.mxu1 %v5492_v17  ;;  %v6531_v2 = vld [vmem:[#allocation8 + $0x6c] sm:$0xf0]  ;;  %v6538_v3 = vld [vmem:[#allocation8 + $0xac] sm:$0xf]  ;;  %v6529_v8 = vld [vmem:[#allocation8 + $0x64] sm:$0xf]  ;;  %v5460_v16 = vor.u32 %v6536_v45, %v5459_v39 }
0x27a9   :  { %2462 = vmatpush.bf16.msrb.mxu2 %v5468_v52  ;;  %v5437_v0 = vld [vmem:[#allocation8 + $0x70] sm:$0xf0]  ;;  %v5477_v10 = vld [vmem:[#allocation8 + $0xb8] sm:$0xf0]  ;;  %v5443_v49 = vld [vmem:[#allocation8 + $0x68] sm:$0xf]  ;;  %v5436_v27 = vor.u32 %v6531_v2, %v5435_v33 }
0x27aa   :  { %2475 = vmatpush.bf16.msrb.mxu0 %v5472_v40  ;;  %v5480_v24 = vor.u32 %v6538_v3, %v5477_v10  ;;  %v6532_v28 = vld [vmem:[#allocation8 + $0x74] sm:$0xf0]  ;;  %v6534_v17 = vld [vmem:[#allocation8 + $0x8c] sm:$0xf]  ;;  %v5461_v59 = vld [vmem:[#allocation8 + $0x98] sm:$0xf0]  ;;  %v5440_v52 = vor.u32 %v6529_v8, %v5437_v0 }
0x27ab   :  { %2500 = vmatpush.bf16.msrb.mxu3 %v5496_v60  ;;  %v5419_v13 = vld [vmem:[#allocation8 + $0x40] sm:$0xf]  ;;  %v6527_v11 = vld [vmem:[#allocation8 + $0x4c] sm:$0xf0]  ;;  %v6525_v38 = vld [vmem:[#allocation8 + $0x44] sm:$0xf]  ;;  %v5444_v36 = vor.u32 %v6532_v28, %v5443_v49  ;;  %v5464_v46 = vor.u32 %v6534_v17, %v5461_v59 }
0x27ac   :  { %2488 = vmatpush.bf16.msra.mxu1 %v5476_v53  ;;  %v5421_v40 = vld [vmem:[#allocation8 + $0x50] sm:$0xf0]  ;;  %v5427_v32 = vld [vmem:[#allocation8 + $0x48] sm:$0xf]  ;;  %v5420_v42 = vor.u32 %v6527_v11, %v5419_v13  ;;  %v6528_v47 = vld [vmem:[#allocation8 + $0x54] sm:$0xf0] }
0x27ad   :  { %2463 = vmatpush.bf16.msrb.mxu2 %v5452_v9  ;;  %v6530_v53 = vld [vmem:[#allocation8 + $0x6c] sm:$0xf]  ;;  %v5445_v54 = vld [vmem:[#allocation8 + $0x78] sm:$0xf0]  ;;  %v5424_v7 = vor.u32 %v6525_v38, %v5421_v40  ;;  %v5403_v9 = vld [vmem:[#allocation8 + $0x20] sm:$0xf] }
0x27ae   :  { %2476 = vmatpush.bf16.msrb.mxu0 %v5456_v63  ;;  %v6523_v39 = vld [vmem:[#allocation8 + $0x2c] sm:$0xf0]  ;;  %v6521_v45 = vld [vmem:[#allocation8 + $0x24] sm:$0xf]  ;;  %v5405_v60 = vld [vmem:[#allocation8 + $0x30] sm:$0xf0]  ;;  %v5428_v63 = vor.u32 %v6528_v47, %v5427_v32  ;;  %v5448_v2 = vor.u32 %v6530_v53, %v5445_v54 }
0x27af   :  { %2501 = vmatpush.bf16.msrb.mxu3 %v5480_v24  ;;  %v5411_v33 = vld [vmem:[#allocation8 + $0x28] sm:$0xf]  ;;  %v5404_v3 = vor.u32 %v6523_v39, %v5403_v9  ;;  %v6524_v8 = vld [vmem:[#allocation8 + $0x34] sm:$0xf0]  ;;  %v6526_v0 = vld [vmem:[#allocation8 + $0x4c] sm:$0xf] }
0x27b0   :  { %2489 = vmatpush.bf16.msra.mxu1 %v5460_v16  ;;  %v5429_v10 = vld [vmem:[#allocation8 + $0x58] sm:$0xf0]  ;;  %v5408_v16 = vor.u32 %v6521_v45, %v5405_v60  ;;  %v5387_v49 = vld [vmem:[#allocation8] sm:$0xf]  ;;  %v6519_v24 = vld [vmem:[#allocation8 + $0xc] sm:$0xf0]  ;;  %v5412_v17 = vor.u32 %v6524_v8, %v5411_v33 }
0x27b1   :  { %2464 = vmatpush.bf16.msrb.mxu2 %v5436_v27  ;;  %v6517_v27 = vld [vmem:[#allocation8 + $0x4] sm:$0xf]  ;;  %v5389_v28 = vld [vmem:[#allocation8 + $0x10] sm:$0xf0]  ;;  %v5432_v59 = vor.u32 %v6526_v0, %v5429_v10  ;;  %v5395_v13 = vld [vmem:[#allocation8 + $0x8] sm:$0xf] }
0x27b2   :  { %2477 = vmatpush.bf16.msrb.mxu0 %v5440_v52  ;;  %v5388_v52 = vor.u32 %v6519_v24, %v5387_v49  ;;  %v6520_v11 = vld [vmem:[#allocation8 + $0x14] sm:$0xf0]  ;;  %v5392_v38 = vor.u32 %v6517_v27, %v5389_v28  ;;  %v6522_v40 = vld [vmem:[#allocation8 + $0x2c] sm:$0xf]  ;;  %v5397_v47 = vld [vmem:[#allocation8 + $0x18] sm:$0xf0] }
0x27b3   :  { %2502 = vmatpush.bf16.msrb.mxu3 %v5464_v46  ;;  %v5396_v32 = vor.u32 %v6520_v11, %v5395_v13  ;;  %v5630_v54 = vld [vmem:[#allocation8 + $0xe0] sm:$0xf]  ;;  %v6577_v9 = vld [vmem:[#allocation8 + $0xe4] sm:$0xf]  ;;  %v5632_v45 = vld [vmem:[#allocation8 + $0xf0] sm:$0xf0] }
0x27b4   :  { %2490 = vmatpush.bf16.msra.mxu1 %v5444_v36  ;;  %v5413_v36 = vld [vmem:[#allocation8 + $0x38] sm:$0xf0]  ;;  %v5638_v60 = vld [vmem:[#allocation8 + $0xe8] sm:$0xf]  ;;  %v5635_v33 = vor.u32 %v6577_v9, %v5632_v45  ;;  %v5614_v10 = vld [vmem:[#allocation8 + $0xc0] sm:$0xf] }
0x27b5   :  { %2465 = vmatpush.bf16.msrb.mxu2 %v5420_v42  ;;  %v5416_v46 = vor.u32 %v6522_v40, %v5413_v36  ;;  %v6518_v42 = vld [vmem:[#allocation8 + $0xc] sm:$0xf]  ;;  %v5640_v8 = vld [vmem:[#allocation8 + $0xf8] sm:$0xf0]  ;;  %v6573_v49 = vld [vmem:[#allocation8 + $0xc4] sm:$0xf] }
0x27b6   :  { %2478 = vmatpush.bf16.msrb.mxu0 %v5424_v7  ;;  %v5400_v53 = vor.u32 %v6518_v42, %v5397_v47  ;;  %v6579_v7 = vld [vmem:[#allocation8 + $0xec] sm:$0xf0]  ;;  %v5616_v24 = vld [vmem:[#allocation8 + $0xd0] sm:$0xf0]  ;;  %v5622_v27 = vld [vmem:[#allocation8 + $0xc8] sm:$0xf] }
0x27b7   :  { %2503 = vmatpush.bf16.msrb.mxu3 %v5448_v2  ;;  %v5631_v39 = vor.u32 %v6579_v7, %v5630_v54  ;;  %v6576_v28 = vld [vmem:[#allocation8 + $0xd4] sm:$0xf0]  ;;  %v5624_v13 = vld [vmem:[#allocation8 + $0xd8] sm:$0xf0]  ;;  %v6571_v40 = vld [vmem:[#allocation8 + $0xac] sm:$0xf0] }
0x27b8   :  { %2491 = vmatpush.bf16.msra.mxu1 %v5428_v63  ;;  %v6580_v63 = vld [vmem:[#allocation8 + $0xf4] sm:$0xf0]  ;;  %v6569_v36 = vld [vmem:[#allocation8 + $0xa4] sm:$0xf]  ;;  %v5606_v42 = vld [vmem:[#allocation8 + $0xa8] sm:$0xf] }
0x27b9   :  { %2466 = vmatpush.bf16.msrb.mxu2 %v5404_v3  ;;  %v5639_v2 = vor.u32 %v6580_v63, %v5638_v60  ;;  %v6578_v3 = vld [vmem:[#allocation8 + $0xec] sm:$0xf]  ;;  %v6572_v47 = vld [vmem:[#allocation8 + $0xb4] sm:$0xf0]  ;;  %v5608_v9 = vld [vmem:[#allocation8 + $0xb8] sm:$0xf0] }
0x27ba   :  { %2479 = vmatpush.bf16.msrb.mxu0 %v5408_v16  ;;  %v5643_v0 = vor.u32 %v6578_v3, %v5640_v8  ;;  %v6575_v16 = vld [vmem:[#allocation8 + $0xcc] sm:$0xf0]  ;;  %v5607_v54 = vor.u32 %v6572_v47, %v5606_v42  ;;  %v6570_v7 = vld [vmem:[#allocation8 + $0xac] sm:$0xf]  ;;  %v5582_v45 = vld [vmem:[#allocation8 + $0x80] sm:$0xf] }
0x27bb   :  { %2504 = vmatpush.bf16.msrb.mxu3 %v5432_v59  ;;  %v5623_v59 = vor.u32 %v6576_v28, %v5622_v27  ;;  %v6567_v60 = vld [vmem:[#allocation8 + $0x8c] sm:$0xf0]  ;;  %v6565_v63 = vld [vmem:[#allocation8 + $0x84] sm:$0xf]  ;;  %v5590_v3 = vld [vmem:[#allocation8 + $0x88] sm:$0xf] }
0x27bc   :  { %2492 = vmatpush.bf16.msra.mxu1 %v5412_v17  ;;  %v5619_v17 = vor.u32 %v6573_v49, %v5616_v24  ;;  %v6568_v8 = vld [vmem:[#allocation8 + $0x94] sm:$0xf0]  ;;  %v6566_v49 = vld [vmem:[#allocation8 + $0x8c] sm:$0xf]  ;;  %v5576_v47 = vld [vmem:[#allocation8 + $0x78] sm:$0xf0] }
0x27bd   :  { %2467 = vmatpush.bf16.msrb.mxu2 %v5388_v52  ;;  %v6574_v52 = vld [vmem:[#allocation8 + $0xcc] sm:$0xf]  ;;  %s8425_s0 = sld [smem:[#allocation39_spill]]  ;;  %s7380_s19 = smov 128  }
0x27be   :  { %2480 = vmatpush.bf16.msrb.mxu0 %v5392_v38  ;;  %v5627_v11 = vor.u32 %v6574_v52, %v5624_v13  ;;  %v5598_v38 = vld [vmem:[#allocation8 + $0xa0] sm:$0xf]  ;;  %v6561_v52 = vld [vmem:[#allocation8 + $0x64] sm:$0xf]  ;;  %v6562_v42 = vld [vmem:[#allocation8 + $0x6c] sm:$0xf] }
0x27bf   :  { %2505 = vmatpush.bf16.msrb.mxu3 %v5416_v46  ;;  %v5600_v46 = vld [vmem:[#allocation8 + $0xb0] sm:$0xf0]  ;;  %s7381_s23 = smov 8  }
0x27c0   :  { %2468 = vmatmul.bf16.vlgmr.msrb.gmra.mxu2 %v7375_v6  ;;  %2493 = vmatpush.bf16.msra.mxu1 %v5396_v32  ;;  %v5599_v32 = vor.u32 %v6571_v40, %v5598_v38  ;;  %v5568_v40 = vld [vmem:[#allocation8 + $0x70] sm:$0xf0] }
0x27c1   :  { %2481 = vmatmul.bf16.vlgmr.msrb.gmra.mxu0 %v7375_v6  ;;  %2777 = vmatpush.bf16.msra.mxu2 %v5631_v39  ;;  %v5611_v39 = vor.u32 %v6570_v7, %v5608_v9  ;;  %v5579_v7 = vor.u32 %v6562_v42, %v5576_v47 }
0x27c2   :  { %2790 = vmatpush.bf16.msra.mxu0 %v5635_v33  ;;  %v5583_v33 = vor.u32 %v6567_v60, %v5582_v45  ;;  %v6559_v45 = vld [vmem:[#allocation8 + $0x4c] sm:$0xf0] }
0x27c3   :  { %2494 = vmatmul.bf16.vlgmr.msra.gmra.mxu1 %v7375_v6  ;;  %2506 = vmatpush.bf16.msrb.mxu3 %v5400_v53  ;;  %v5603_v53 = vor.u32 %v6569_v36, %v5600_v46  ;;  %v5574_v36 = vld [vmem:[#allocation8 + $0x68] sm:$0xf]  ;;  %v6564_v46 = vld [vmem:[#allocation8 + $0x74] sm:$0xf0]  ;;  %s5106_s3 = sshll.u32 %s8425_s0, 4  ;;  %s5107_s3 = int_to_ptr.hbm [resolvable:$true] %s5106_s3 }
0x27c4   :  { %2803 = vmatpush.bf16.msrb.mxu1 %v5639_v2  ;;  %v5584_v2 = vld [vmem:[#allocation8 + $0x90] sm:$0xf0] }
0x27c6   :  { %2507 = vmatmul.bf16.vlgmr.msrb.gmra.mxu3 %v7375_v6  ;;  %v5615_v6 = vor.u32 %v6575_v16, %v5614_v10  ;;  %2791 = vmatpush.bf16.msra.mxu0 %v5619_v17  ;;  %v5587_v10 = vor.u32 %v6565_v63, %v5584_v2  ;;  %v5591_v16 = vor.u32 %v6568_v8, %v5590_v3  ;;  %v5566_v17 = vld [vmem:[#allocation8 + $0x60] sm:$0xf]  ;;  %v5552_v63 = vld [vmem:[#allocation8 + $0x50] sm:$0xf0]  ;;  %v6560_v2 = vld [vmem:[#allocation8 + $0x54] sm:$0xf0] }
0x27c7   :  { %2816 = vmatpush.bf16.msra.mxu3 %v5643_v0 }
0x27c8   :  { %2778 = vmatpush.bf16.msra.mxu2 %v5615_v6  ;;  %2804 = vmatpush.bf16.msrb.mxu1 %v5623_v59  ;;  %v5592_v6 = vld [vmem:[#allocation8 + $0x98] sm:$0xf0]  ;;  %v6563_v59 = vld [vmem:[#allocation8 + $0x6c] sm:$0xf0] }
0x27c9   :  { %v5595_v27 = vor.u32 %v6566_v49, %v5592_v6  ;;  %v5567_v38 = vor.u32 %v6563_v59, %v5566_v17  ;;  %v5560_v49 = vld [vmem:[#allocation8 + $0x58] sm:$0xf0]  ;;  %v5536_v59 = vld [vmem:[#allocation8 + $0x30] sm:$0xf0] }
0x27ca   :  { %2792 = vmatpush.bf16.msra.mxu0 %v5603_v53 }
0x27cb   :  { %2817 = vmatpush.bf16.msra.mxu3 %v5627_v11 }
0x27cc   :  { %2779 = vmatpush.bf16.msra.mxu2 %v5599_v32  ;;  %2805 = vmatpush.bf16.msrb.mxu1 %v5607_v54  ;;  %v5571_v32 = vor.u32 %v6561_v52, %v5568_v40  ;;  %v5575_v54 = vor.u32 %v6564_v46, %v5574_v36  ;;  %v5542_v52 = vld [vmem:[#allocation8 + $0x28] sm:$0xf]  ;;  %v6554_v36 = vld [vmem:[#allocation8 + $0x2c] sm:$0xf]  ;;  %v5518_v46 = vld [vmem:[#allocation8] sm:$0xf] }
0x27ce   :  { %2793 = vmatpush.bf16.msra.mxu0 %v5587_v10 }
0x27cf   :  { %2818 = vmatpush.bf16.msra.mxu3 %v5611_v39  ;;  %v5550_v39 = vld [vmem:[#allocation8 + $0x40] sm:$0xf] }
0x27d0   :  { %2780 = vmatpush.bf16.msra.mxu2 %v5583_v33  ;;  %2806 = vmatpush.bf16.msrb.mxu1 %v5591_v16  ;;  %v5551_v60 = vor.u32 %v6559_v45, %v5550_v39  ;;  %v5558_v33 = vld [vmem:[#allocation8 + $0x48] sm:$0xf]  ;;  %v6558_v16 = vld [vmem:[#allocation8 + $0x4c] sm:$0xf]  ;;  %v5520_v45 = vld [vmem:[#allocation8 + $0x10] sm:$0xf0] }
0x27d1   :  { %v5559_v10 = vor.u32 %v6560_v2, %v5558_v33  ;;  %v5563_v6 = vor.u32 %v6558_v16, %v5560_v49  ;;  %v6550_v33 = vld [vmem:[#allocation8 + $0xc] sm:$0xf]  ;;  %v5528_v2 = vld [vmem:[#allocation8 + $0x18] sm:$0xf0] }
0x27d2   :  { %2794 = vmatpush.bf16.msra.mxu0 %v5571_v32  ;;  %v5544_v32 = vld [vmem:[#allocation8 + $0x38] sm:$0xf0] }
0x27d3   :  { %2819 = vmatpush.bf16.msra.mxu3 %v5595_v27  ;;  %v6553_v27 = vld [vmem:[#allocation8 + $0x24] sm:$0xf]  ;;  %v5547_v47 = vor.u32 %v6554_v36, %v5544_v32 }
0x27d4   :  { %2781 = vmatpush.bf16.msra.mxu2 %v5567_v38  ;;  %2807 = vmatpush.bf16.msrb.mxu1 %v5575_v54  ;;  %v5539_v38 = vor.u32 %v6553_v27, %v5536_v59 }
0x27d7   :  { %2820 = vmatpush.bf16.msra.mxu3 %v5579_v7 }
0x27d8   :  { %2782 = vmatpush.bf16.msra.mxu2 %v5551_v60  ;;  %2808 = vmatpush.bf16.msrb.mxu1 %v5559_v10  ;;  %v6552_v60 = vld [vmem:[#allocation8 + $0x14] sm:$0xf0]  ;;  %v5531_v10 = vor.u32 %v6550_v33, %v5528_v2 }
0x27db   :  { %2821 = vmatpush.bf16.msra.mxu3 %v5563_v6 }
0x27df   :  { %2822 = vmatpush.bf16.msra.mxu3 %v5547_v47 }
0x27e3   :  { %2823 = vmatpush.bf16.msra.mxu3 %v5531_v10 }
0x283e   :  { %v2482_v0 = vpop.f32.mrf.mxu0 }
0x283f   :  { %v2513_v24 = vadd.f32 %v2482_v0, %v7989_v14 }
0x2840   :  { %v2495_v28 = vpop.f32.mrf.mxu1 }
0x2841   :  { %v5514_v13 = vmul.f32 -1.442695, %v2513_v24  ;;  %v2514_v11 = vadd.f32 %v2495_v28, %v7967_v29  ;;  %v6557_v29 = vld [vmem:[#allocation8 + $0x44] sm:$0xf]  ;;  %v6555_v24 = vld [vmem:[#allocation8 + $0x2c] sm:$0xf0] }
0x2842   :  { %v5555_v0 = vor.u32 %v6557_v29, %v5552_v63  ;;  %v5526_v29 = vld [vmem:[#allocation8 + $0x8] sm:$0xf] }
0x2843   :  { %6968 = vpow2.f32 %v5514_v13  ;;  %v5515_v14 = vmul.f32 -1.442695, %v2514_v11  ;;  %v2469_v53 = vpop.f32.mrf.mxu2  ;;  %v6556_v13 = vld [vmem:[#allocation8 + $0x34] sm:$0xf0] }
0x2844   :  { %v2512_v9 = vadd.f32 %v2469_v53, %v7965_v26  ;;  %v5534_v26 = vld [vmem:[#allocation8 + $0x20] sm:$0xf]  ;;  %2795 = vmatpush.bf16.msra.mxu0 %v5555_v0  ;;  %v5543_v40 = vor.u32 %v6556_v13, %v5542_v52  ;;  %v6549_v53 = vld [vmem:[#allocation8 + $0x4] sm:$0xf] }
0x2845   :  { %6970 = vpow2.f32 %v5515_v14  ;;  %v5535_v17 = vor.u32 %v6555_v24, %v5534_v26  ;;  %v6551_v14 = vld [vmem:[#allocation8 + $0xc] sm:$0xf0] }
0x2846   :  { %v5513_v3 = vmul.f32 -1.442695, %v2512_v9  ;;  %v2484_v8 = vpop.f32.mrf.mxu0  ;;  %v5519_v39 = vor.u32 %v6551_v14, %v5518_v46  ;;  %2809 = vmatpush.bf16.msrb.mxu1 %v5543_v40 }
0x2847   :  { %2783 = vmatpush.bf16.msra.mxu2 %v5535_v17  ;;  %v5527_v8 = vor.u32 %v6552_v60, %v5526_v29 }
0x2848   :  { %6972 = vpow2.f32 %v5513_v3  ;;  %v2497_v28 = vpop.f32.mrf.mxu1  ;;  %2796 = vmatpush.bf16.msra.mxu0 %v5539_v38  ;;  %v5523_v3 = vor.u32 %v6549_v53, %v5520_v45 }
0x2849   :  { %v6969_v11 = vpop.eup %6968  ;;  %v2508_v9 = vpop.f32.mrf.mxu3 }
0x284a   :  { %v2526_v42 = vadd.f32 1.0, %v6969_v11  ;;  %2810 = vmatpush.bf16.msrb.mxu1 %v5527_v8  ;;  %v2515_v27 = vadd.f32 %v2508_v9, %v7971_v50 }
0x284b   :  { %v6971_v54 = vpop.eup %6970  ;;  %v2471_v7 = vpop.f32.mrf.mxu2  ;;  %2784 = vmatpush.bf16.msra.mxu2 %v5519_v39 }
0x284c   :  { %6974 = vrcp.f32 %v2526_v42  ;;  %v8036_v63 = vadd.f32 1.0, %v6971_v54  ;;  %2797 = vmatpush.bf16.msra.mxu0 %v5523_v3  ;;  %vm2548_vm4 = vweird.f32 %v2526_v42  ;;  %v2554_v13 = vand.u32 2147483648, %v2526_v42 }
0x284d   :  { %v2552_v36 = vand.u32 2147483647, %v2526_v42 }
0x284e   :  { %v6973_v0 = vpop.eup %6972  ;;  %6976 = vrcp.f32 %v8036_v63  ;;  %v2555_v50 = vor.u32 1.1754944e-38, %v2554_v13  ;;  %vm2563_vm0 = vweird.f32 %v8036_v63  ;;  %v2569_v3 = vand.u32 2147483648, %v8036_v63  ;;  %v6612_v13 = vld [vmem:[#allocation8 + $0xf4] sm:$0xf0] }
0x284f   :  { %v2525_v16 = vadd.f32 1.0, %v6973_v0  ;;  %vm2553_vm13 = vcmp.eq.f32.partialorder %v2552_v36, 8.507059e+37  ;;  %v2567_v0 = vand.u32 2147483647, %v8036_v63  ;;  %v5771_v36 = vld [vmem:[#allocation8 + $0xf8] sm:$0xf0] }
0x2850   :  { %v2570_v10 = vor.u32 1.1754944e-38, %v2569_v3  ;;  %v6601_v3 = vld [vmem:[#allocation8 + $0xa4] sm:$0xf] }
0x2851   :  { %6978 = vrcp.f32 %v2525_v16  ;;  %v2510_v26 = vpop.f32.mrf.mxu3  ;;  %v2539_v32 = vand.u32 2147483648, %v2525_v16  ;;  %v2537_v47 = vand.u32 2147483647, %v2525_v16  ;;  %vm2533_vm12 = vweird.f32 %v2525_v16 }
0x2852   :  { %v6975_v49 = vpop.eup %6974  ;;  %6980 = vtanh.f32 %v2515_v27  ;;  %vm2568_vm3 = vcmp.eq.f32.partialorder %v2567_v0, 8.507059e+37  ;;  %v6611_v27 = vld [vmem:[#allocation8 + $0xec] sm:$0xf0]  ;;  %v5731_v0 = vld [vmem:[#allocation8 + $0xb0] sm:$0xf0] }
0x2853   :  { %v2544_v6 = vmul.f32 %v6975_v49, %v2526_v42  ;;  %vm2549_vm9 = vweird.f32 %v6975_v49  ;;  %v2540_v9 = vor.u32 1.1754944e-38, %v2539_v32  ;;  %vm2538_vm15 = vcmp.eq.f32.partialorder %v2537_v47, 8.507059e+37  ;;  %v6607_v47 = vld [vmem:[#allocation8 + $0xcc] sm:$0xf0] }
0x2854   :  { %v6977_v28 = vpop.eup %6976  ;;  %vm2550_vm10 = vmor %vm2548_vm4, %vm2549_vm9 }
0x2855   :  { %v2545_v24 = vsub.f32 1.0, %v2544_v6  ;;  %v2559_v11 = vmul.f32 %v6977_v28, %v8036_v63  ;;  %vm2564_vm1 = vweird.f32 %v6977_v28  ;;  %v5761_v63 = vld [vmem:[#allocation8 + $0xe0] sm:$0xf] }
0x2856   :  { %vm2565_vm2 = vmor %vm2563_vm0, %vm2564_vm1 }
0x2857   :  { %v6979_v17 = vpop.eup %6978  ;;  %v2546_v59 = vmul.f32 %v6975_v49, %v2545_v24  ;;  %v2560_v53 = vsub.f32 1.0, %v2559_v11 }
0x2858   :  { %v2529_v52 = vmul.f32 %v6979_v17, %v2525_v16  ;;  %vm2534_vm11 = vweird.f32 %v6979_v17  ;;  %v6981_v7 = vpop.eup %6980 }
0x2859   :  { %v2547_v38 = vadd.f32 %v6975_v49, %v2546_v59  ;;  %vm2535_vm14 = vmor %vm2533_vm12, %vm2534_vm11  ;;  %v2561_v60 = vmul.f32 %v6977_v28, %v2560_v53  ;;  %v5762_v59 = vor.u32 %v6611_v27, %v5761_v63  ;;  %v5747_v53 = vld [vmem:[#allocation8 + $0xd0] sm:$0xf0]  ;;  %v5739_v63 = vld [vmem:[#allocation8 + $0xb8] sm:$0xf0] }
0x285a   :  { %v2530_v40 = vsub.f32 1.0, %v2529_v52  ;;  %v5763_v52 = vld [vmem:[#allocation8 + $0xf0] sm:$0xf0] }
0x285b   :  { %v2551_v14 = vsel %vm2550_vm10, %v6975_v49, %v2547_v38  ;;  %v2562_v8 = vadd.f32 %v6977_v28, %v2561_v60  ;;  %3094 = vmatpush.bf16.msrb.mxu2 %v5762_v59  ;;  %v6599_v59 = vld [vmem:[#allocation8 + $0x8c] sm:$0xf0] }
0x285c   :  { %v2531_v46 = vmul.f32 %v6979_v17, %v2530_v40  ;;  %v2556_v39 = vsel %vm2553_vm13, %v2555_v50, %v2551_v14  ;;  %v6610_v40 = vld [vmem:[#allocation8 + $0xec] sm:$0xf]  ;;  %v6605_v14 = vld [vmem:[#allocation8 + $0xc4] sm:$0xf] }
0x285d   :  { %v2574_v42 = vmul.f32 0.0, %v2556_v39  ;;  %v2566_v16 = vsel %vm2565_vm2, %v6977_v28, %v2562_v8  ;;  %v5769_v28 = vld [vmem:[#allocation8 + $0xe8] sm:$0xf]  ;;  %v5774_v32 = vor.u32 %v6610_v40, %v5771_v36  ;;  %v6600_v40 = vld [vmem:[#allocation8 + $0x94] sm:$0xf0] }
0x285e   :  { %v2532_v54 = vadd.f32 %v6979_v17, %v2531_v46  ;;  %v2571_v6 = vsel %vm2568_vm3, %v2570_v10, %v2566_v16  ;;  %v5770_v38 = vor.u32 %v6612_v13, %v5769_v28  ;;  %v5745_v46 = vld [vmem:[#allocation8 + $0xc0] sm:$0xf]  ;;  %v5737_v10 = vld [vmem:[#allocation8 + $0xa8] sm:$0xf]  ;;  %v6604_v16 = vld [vmem:[#allocation8 + $0xb4] sm:$0xf0] }
0x285f   :  { %3133 = vmatpush.bf16.msrb.mxu3 %v5774_v32  ;;  %v5746_v50 = vor.u32 %v6607_v47, %v5745_v46 }
0x2860   :  { %v2536_v45 = vsel %vm2535_vm14, %v6979_v17, %v2532_v54  ;;  %v6609_v17 = vld [vmem:[#allocation8 + $0xe4] sm:$0xf]  ;;  %3120 = vmatpush.bf16.msra.mxu1 %v5770_v38  ;;  %v5753_v54 = vld [vmem:[#allocation8 + $0xc8] sm:$0xf] }
0x2861   :  { %v2541_v29 = vsel %vm2538_vm15, %v2540_v9, %v2536_v45  ;;  %v5766_v11 = vor.u32 %v6609_v17, %v5763_v52  ;;  %v5750_v9 = vor.u32 %v6605_v14, %v5747_v53  ;;  %v6606_v45 = vld [vmem:[#allocation8 + $0xcc] sm:$0xf]  ;;  %3095 = vmatpush.bf16.msrb.mxu2 %v5746_v50  ;;  %v5713_v17 = vld [vmem:[#allocation8 + $0x80] sm:$0xf]  ;;  %v6597_v52 = vld [vmem:[#allocation8 + $0x84] sm:$0xf] }
0x2862   :  { %v2575_v33 = vmul.f32 %v6981_v7, %v2541_v29  ;;  %v6608_v7 = vld [vmem:[#allocation8 + $0xd4] sm:$0xf0]  ;;  %v5755_v29 = vld [vmem:[#allocation8 + $0xd8] sm:$0xf0]  ;;  %v5714_v13 = vor.u32 %v6599_v59, %v5713_v17  ;;  %v5721_v38 = vld [vmem:[#allocation8 + $0x88] sm:$0xf] }
0x2863   :  { %3107 = vmatpush.bf16.msrb.mxu0 %v5766_v11  ;;  %v5754_v39 = vor.u32 %v6608_v7, %v5753_v54  ;;  %v5758_v60 = vor.u32 %v6606_v45, %v5755_v29  ;;  %v5715_v11 = vld [vmem:[#allocation8 + $0x90] sm:$0xf0]  ;;  %v5722_v47 = vor.u32 %v6600_v40, %v5721_v38  ;;  %v6598_v14 = vld [vmem:[#allocation8 + $0x8c] sm:$0xf]  ;;  %v5723_v50 = vld [vmem:[#allocation8 + $0x98] sm:$0xf0] }
0x2864   :  { %v8042_v2 = vadd.f32 %v2575_v33, %v2574_v42  ;;  %v5729_v42 = vld [vmem:[#allocation8 + $0xa0] sm:$0xf]  ;;  %v6603_v33 = vld [vmem:[#allocation8 + $0xac] sm:$0xf0]  ;;  %v5718_v46 = vor.u32 %v6597_v52, %v5715_v11  ;;  %v5726_v54 = vor.u32 %v6598_v14, %v5723_v50  ;;  %v5683_v52 = vld [vmem:[#allocation8 + $0x50] sm:$0xf0] }
0x2865   :  { %3121 = vmatpush.bf16.msra.mxu1 %v5754_v39  ;;  %3134 = vmatpush.bf16.msrb.mxu3 %v5758_v60  ;;  %v5730_v8 = vor.u32 %v6603_v33, %v5729_v42  ;;  %v6595_v39 = vld [vmem:[#allocation8 + $0x6c] sm:$0xf0]  ;;  %v6593_v60 = vld [vmem:[#allocation8 + $0x64] sm:$0xf]  ;;  %v5699_v42 = vld [vmem:[#allocation8 + $0x70] sm:$0xf0] }
0x2866   :  { %6982 = vtanh.f32 %v8042_v2  ;;  %v5705_v33 = vld [vmem:[#allocation8 + $0x68] sm:$0xf]  ;;  %v6587_v14 = vld [vmem:[#allocation8 + $0x2c] sm:$0xf0]  ;;  %v6585_v50 = vld [vmem:[#allocation8 + $0x24] sm:$0xf] }
0x2867   :  { %3108 = vmatpush.bf16.msrb.mxu0 %v5750_v9  ;;  %3096 = vmatpush.bf16.msrb.mxu2 %v5730_v8  ;;  %v5697_v9 = vld [vmem:[#allocation8 + $0x60] sm:$0xf]  ;;  %v6594_v8 = vld [vmem:[#allocation8 + $0x6c] sm:$0xf] }
0x2868   :  { %v5698_v29 = vor.u32 %v6595_v39, %v5697_v9  ;;  %v5673_v9 = vld [vmem:[#allocation8 + $0x28] sm:$0xf]  ;;  %v6588_v39 = vld [vmem:[#allocation8 + $0x34] sm:$0xf0] }
0x286b   :  { %3097 = vmatpush.bf16.msrb.mxu2 %v5714_v13  ;;  %v6592_v13 = vld [vmem:[#allocation8 + $0x54] sm:$0xf0] }
0x286c   :  { %v6983_v49 = vpop.eup %6982 }
0x286d   :  { %v8047_v26 = vmul.f32 %v6983_v49, %v2571_v6  ;;  %v5734_v49 = vor.u32 %v6601_v3, %v5731_v0  ;;  %v5738_v6 = vor.u32 %v6604_v16, %v5737_v10  ;;  %v6596_v3 = vld [vmem:[#allocation8 + $0x74] sm:$0xf0]  ;;  %v5707_v10 = vld [vmem:[#allocation8 + $0x78] sm:$0xf0] }
0x286f   :  { %4809 = vadd.xlane.f32.xlu0 %v8047_v26  ;;  %v2584_v24 = vpack.c.bf16 %v8047_v26, %v8047_v26  ;;  %3109 = vmatpush.bf16.msrb.mxu0 %v5734_v49 }
0x2870   :  { %3122 = vmatpush.bf16.msra.mxu1 %v5738_v6  ;;  %3098 = vmatpush.bf16.msrb.mxu2 %v5698_v29  ;;  %v5710_v6 = vor.u32 %v6594_v8, %v5707_v10  ;;  %v5649_v8 = vld [vmem:[#allocation8] sm:$0xf] }
0x2871   :  { %2785 = vmatmul.bf16.vlgmr.msra.gmra.mxu2 %v2584_v24  ;;  %2798 = vmatmul.bf16.vlgmr.msra.gmra.mxu0 %v2584_v24 }
0x2872   :  { %2811 = vmatmul.bf16.vlgmr.msrb.gmra.mxu1 %v2584_v24  ;;  %2824 = vmatmul.bf16.vlgmr.msra.gmra.mxu3 %v2584_v24  ;;  %v6602_v24 = vld [vmem:[#allocation8 + $0xac] sm:$0xf] }
0x2873   :  { %v5742_v27 = vor.u32 %v6602_v24, %v5739_v63  ;;  %3110 = vmatpush.bf16.msrb.mxu0 %v5718_v46  ;;  %v5681_v24 = vld [vmem:[#allocation8 + $0x40] sm:$0xf]  ;;  %v6591_v63 = vld [vmem:[#allocation8 + $0x4c] sm:$0xf0] }
0x2874   :  { %3123 = vmatpush.bf16.msra.mxu1 %v5722_v47  ;;  %v5682_v59 = vor.u32 %v6591_v63, %v5681_v24  ;;  %v5665_v47 = vld [vmem:[#allocation8 + $0x20] sm:$0xf]  ;;  %v5651_v63 = vld [vmem:[#allocation8 + $0x10] sm:$0xf0] }
0x2875   :  { %3135 = vmatpush.bf16.msrb.mxu3 %v5742_v27  ;;  %v6589_v27 = vld [vmem:[#allocation8 + $0x44] sm:$0xf] }
0x2876   :  { %v5686_v40 = vor.u32 %v6589_v27, %v5683_v52  ;;  %3099 = vmatpush.bf16.msrb.mxu2 %v5682_v59  ;;  %v5657_v27 = vld [vmem:[#allocation8 + $0x8] sm:$0xf] }
0x2879   :  { %3136 = vmatpush.bf16.msrb.mxu3 %v5726_v54  ;;  %v5666_v54 = vor.u32 %v6587_v14, %v5665_v47 }
0x287b   :  { %3100 = vmatpush.bf16.msrb.mxu2 %v5666_v54 }
0x287d   :  { %3137 = vmatpush.bf16.msrb.mxu3 %v5710_v6 }
0x28ee   :  { %v2799_v28 = vpop.f32.mrf.mxu0 }
0x28ef   :  { %v2830_v36 = vadd.f32 %v2799_v28, %v7997_v19  ;;  %v2812_v32 = vpop.f32.mrf.mxu1  ;;  %v5702_v19 = vor.u32 %v6593_v60, %v5699_v42  ;;  %v5689_v28 = vld [vmem:[#allocation8 + $0x48] sm:$0xf]  ;;  %v5674_v42 = vor.u32 %v6588_v39, %v5673_v9 }
0x28f0   :  { %v2831_v53 = vadd.f32 %v2812_v32, %v7973_v51  ;;  %v5706_v51 = vor.u32 %v6596_v3, %v5705_v33  ;;  %v6590_v32 = vld [vmem:[#allocation8 + $0x4c] sm:$0xf]  ;;  %v5675_v33 = vld [vmem:[#allocation8 + $0x38] sm:$0xf0] }
0x28f1   :  { %v5645_v7 = vmul.f32 -1.442695, %v2830_v36  ;;  %3111 = vmatpush.bf16.msrb.mxu0 %v5702_v19  ;;  %v5690_v36 = vor.u32 %v6592_v13, %v5689_v28  ;;  %v6586_v19 = vld [vmem:[#allocation8 + $0x2c] sm:$0xf]  ;;  %v5659_v13 = vld [vmem:[#allocation8 + $0x18] sm:$0xf0] }
0x28f2   :  { %v5646_v45 = vmul.f32 -1.442695, %v2831_v53  ;;  %3124 = vmatpush.bf16.msra.mxu1 %v5706_v51  ;;  %v5678_v3 = vor.u32 %v6586_v19, %v5675_v33  ;;  %v6582_v28 = vld [vmem:[#allocation8 + $0xc] sm:$0xf] }
0x28f3   :  { %6984 = vpow2.f32 %v5645_v7  ;;  %v5667_v7 = vld [vmem:[#allocation8 + $0x30] sm:$0xf0] }
0x28f4   :  { %6986 = vpow2.f32 %v5646_v45  ;;  %v2786_v0 = vpop.f32.mrf.mxu2  ;;  %v5670_v60 = vor.u32 %v6585_v50, %v5667_v7 }
0x28f5   :  { %v2829_v16 = vadd.f32 %v2786_v0, %v7969_v48  ;;  %v8055_v49 = vpop.f32.mrf.mxu3  ;;  %v5691_v48 = vld [vmem:[#allocation8 + $0x58] sm:$0xf0]  ;;  %3112 = vmatpush.bf16.msrb.mxu0 %v5686_v40  ;;  %v6583_v0 = vld [vmem:[#allocation8 + $0xc] sm:$0xf0] }
0x28f6   :  { %v2801_v17 = vpop.f32.mrf.mxu0  ;;  %v5694_v46 = vor.u32 %v6590_v32, %v5691_v48  ;;  %3125 = vmatpush.bf16.msra.mxu1 %v5690_v36  ;;  %v5650_v24 = vor.u32 %v6583_v0, %v5649_v8  ;;  %v2832_v50 = vadd.f32 %v8055_v49, %v7977_v57 }
0x28f7   :  { %v5644_v11 = vmul.f32 -1.442695, %v2829_v16  ;;  %v2814_v38 = vpop.f32.mrf.mxu1  ;;  %v6581_v16 = vld [vmem:[#allocation8 + $0x4] sm:$0xf]  ;;  %v6584_v17 = vld [vmem:[#allocation8 + $0x14] sm:$0xf0] }
0x28f8   :  { %3138 = vmatpush.bf16.msrb.mxu3 %v5694_v46  ;;  %v5654_v59 = vor.u32 %v6581_v16, %v5651_v63  ;;  %v5658_v52 = vor.u32 %v6584_v17, %v5657_v27  ;;  %v5662_v38 = vor.u32 %v6582_v28, %v5659_v13  ;;  %3101 = vmatpush.bf16.msrb.mxu2 %v5650_v24  ;;  %v4810_v13 = vpop.xlane.xlu0 %4809 }
0x28f9   :  { %v6985_v53 = vpop.eup %6984  ;;  %6988 = vpow2.f32 %v5644_v11  ;;  %3113 = vmatpush.bf16.msrb.mxu0 %v5670_v60 }
0x28fa   :  { %v6987_v45 = vpop.eup %6986  ;;  %v2843_v29 = vadd.f32 1.0, %v6985_v53  ;;  %3126 = vmatpush.bf16.msra.mxu1 %v5674_v42 }
0x28fb   :  { %v8057_v51 = vadd.f32 1.0, %v6987_v45 }
0x28fc   :  { %6990 = vrcp.f32 %v2843_v29  ;;  %v2788_v10 = vpop.f32.mrf.mxu2  ;;  %3139 = vmatpush.bf16.msrb.mxu3 %v5678_v3  ;;  %v2871_v7 = vand.u32 2147483648, %v2843_v29  ;;  %vm2865_vm6 = vweird.f32 %v2843_v29  ;;  %v2869_v45 = vand.u32 2147483647, %v2843_v29 }
0x28fd   :  { %v2827_v6 = vpop.f32.mrf.mxu3  ;;  %6992 = vrcp.f32 %v8057_v51  ;;  %3114 = vmatpush.bf16.msrb.mxu0 %v5654_v59  ;;  %v2886_v59 = vand.u32 2147483648, %v8057_v51  ;;  %vm2880_vm13 = vweird.f32 %v8057_v51 }
0x28fe   :  { %3127 = vmatpush.bf16.msra.mxu1 %v5658_v52  ;;  %v2872_v3 = vor.u32 1.1754944e-38, %v2871_v7  ;;  %vm2870_vm9 = vcmp.eq.f32.partialorder %v2869_v45, 8.507059e+37  ;;  %v2884_v52 = vand.u32 2147483647, %v8057_v51  ;;  %v5902_v45 = vld [vmem:[#allocation8 + $0xf8] sm:$0xf0] }
0x28ff   :  { %v6989_v11 = vpop.eup %6988 }
0x2900   :  { %v2842_v40 = vadd.f32 1.0, %v6989_v11  ;;  %3140 = vmatpush.bf16.msrb.mxu3 %v5662_v38  ;;  %v2887_v11 = vor.u32 1.1754944e-38, %v2886_v59  ;;  %vm2885_vm15 = vcmp.eq.f32.partialorder %v2884_v52, 8.507059e+37  ;;  %v6633_v59 = vld [vmem:[#allocation8 + $0xa4] sm:$0xf] }
0x2901   :  { %v5862_v52 = vld [vmem:[#allocation8 + $0xb0] sm:$0xf0] }
0x2902   :  { %v6991_v36 = vpop.eup %6990  ;;  %6994 = vrcp.f32 %v2842_v40  ;;  %v2856_v60 = vand.u32 2147483648, %v2842_v40  ;;  %v2854_v19 = vand.u32 2147483647, %v2842_v40  ;;  %vm2850_vm4 = vweird.f32 %v2842_v40 }
0x2903   :  { %v2861_v32 = vmul.f32 %v6991_v36, %v2843_v29  ;;  %v6993_v46 = vpop.eup %6992  ;;  %vm2866_vm5 = vweird.f32 %v6991_v36  ;;  %6996 = vtanh.f32 %v2832_v50  ;;  %v6641_v50 = vld [vmem:[#allocation8 + $0xe4] sm:$0xf] }
0x2904   :  { %v2876_v9 = vmul.f32 %v6993_v46, %v8057_v51  ;;  %vm2867_vm7 = vmor %vm2865_vm6, %vm2866_vm5  ;;  %v2857_v57 = vor.u32 1.1754944e-38, %v2856_v60  ;;  %vm2855_vm11 = vcmp.eq.f32.partialorder %v2854_v19, 8.507059e+37  ;;  %vm2881_vm12 = vweird.f32 %v6993_v46  ;;  %v6639_v19 = vld [vmem:[#allocation8 + $0xcc] sm:$0xf0] }
0x2905   :  { %v2862_v48 = vsub.f32 1.0, %v2861_v32  ;;  %vm2882_vm14 = vmor %vm2880_vm13, %vm2881_vm12 }
0x2906   :  { %v2877_v8 = vsub.f32 1.0, %v2876_v9  ;;  %v6644_v9 = vld [vmem:[#allocation8 + $0xf4] sm:$0xf0] }
0x2907   :  { %v2863_v47 = vmul.f32 %v6991_v36, %v2862_v48 }
0x2908   :  { %v6995_v14 = vpop.eup %6994  ;;  %v2878_v29 = vmul.f32 %v6993_v46, %v2877_v8  ;;  %v5878_v8 = vld [vmem:[#allocation8 + $0xd0] sm:$0xf0] }
0x2909   :  { %v2846_v53 = vmul.f32 %v6995_v14, %v2842_v40  ;;  %v2864_v54 = vadd.f32 %v6991_v36, %v2863_v47  ;;  %vm2851_vm8 = vweird.f32 %v6995_v14  ;;  %v6997_v16 = vpop.eup %6996  ;;  %v4825_v40 = vmul.f32 0.0078125, %v4810_v13  ;;  %v6643_v47 = vld [vmem:[#allocation8 + $0xec] sm:$0xf0] }
0x290a   :  { %vm2852_vm10 = vmor %vm2850_vm4, %vm2851_vm8  ;;  %v2879_v17 = vadd.f32 %v6993_v46, %v2878_v29  ;;  %v5865_v13 = vor.u32 %v6633_v59, %v5862_v52  ;;  %v6626_v59 = vld [vmem:[#allocation8 + $0x6c] sm:$0xf]  ;;  %v5838_v52 = vld [vmem:[#allocation8 + $0x78] sm:$0xf0] }
0x290b   :  { %v2847_v39 = vsub.f32 1.0, %v2846_v53  ;;  %v2868_v33 = vsel %vm2867_vm7, %v6991_v36, %v2864_v54  ;;  %v8076_v48 = vsub.f32 %v8047_v26, %v4825_v40  ;;  %v5894_v53 = vld [vmem:[#allocation8 + $0xf0] sm:$0xf0]  ;;  %v5900_v54 = vld [vmem:[#allocation8 + $0xe8] sm:$0xf] }
0x290c   :  { %v2873_v49 = vsel %vm2870_vm9, %v2872_v3, %v2868_v33  ;;  %v2883_v28 = vsel %vm2882_vm14, %v6993_v46, %v2879_v17  ;;  %v5892_v46 = vld [vmem:[#allocation8 + $0xe0] sm:$0xf]  ;;  %v5897_v7 = vor.u32 %v6641_v50, %v5894_v53  ;;  %v5901_v26 = vor.u32 %v6644_v9, %v5900_v54  ;;  %v6637_v33 = vld [vmem:[#allocation8 + $0xc4] sm:$0xf]  ;;  %v6631_v50 = vld [vmem:[#allocation8 + $0x8c] sm:$0xf0] }
0x290d   :  { %v2848_v42 = vmul.f32 %v6995_v14, %v2847_v39  ;;  %v2891_v24 = vmul.f32 %v2873_v49, %v8042_v2  ;;  %v2888_v2 = vsel %vm2885_vm15, %v2887_v11, %v2883_v28  ;;  %v4841_v51 = vmul.f32 %v8076_v48, %v8076_v48  ;;  %v6642_v39 = vld [vmem:[#allocation8 + $0xec] sm:$0xf]  ;;  %v5868_v28 = vld [vmem:[#allocation8 + $0xa8] sm:$0xf]  ;;  %v6636_v11 = vld [vmem:[#allocation8 + $0xb4] sm:$0xf0] }
0x290e   :  { %v5905_v60 = vor.u32 %v6642_v39, %v5902_v45  ;;  %3424 = vmatpush.bf16.msra.mxu0 %v5897_v7  ;;  %3437 = vmatpush.bf16.msrb.mxu1 %v5901_v26  ;;  %v5881_v49 = vor.u32 %v6637_v33, %v5878_v8  ;;  %v5869_v40 = vor.u32 %v6636_v11, %v5868_v28  ;;  %v6629_v53 = vld [vmem:[#allocation8 + $0x84] sm:$0xf]  ;;  %v5846_v9 = vld [vmem:[#allocation8 + $0x90] sm:$0xf0]  ;;  %v5852_v39 = vld [vmem:[#allocation8 + $0x88] sm:$0xf] }
0x290f   :  { %v2849_v0 = vadd.f32 %v6995_v14, %v2848_v42  ;;  %v5876_v42 = vld [vmem:[#allocation8 + $0xc0] sm:$0xf]  ;;  %v6632_v45 = vld [vmem:[#allocation8 + $0x94] sm:$0xf0]  ;;  %v5854_v33 = vld [vmem:[#allocation8 + $0x98] sm:$0xf0]  ;;  %v5841_v11 = vor.u32 %v6626_v59, %v5838_v52 }
0x2910   :  { %3450 = vmatpush.bf16.msra.mxu3 %v5905_v60  ;;  %v5877_v3 = vor.u32 %v6639_v19, %v5876_v42  ;;  %v5849_v60 = vor.u32 %v6629_v53, %v5846_v9  ;;  %v5853_v42 = vor.u32 %v6632_v45, %v5852_v39  ;;  %v6630_v19 = vld [vmem:[#allocation8 + $0x8c] sm:$0xf]  ;;  %v5828_v8 = vld [vmem:[#allocation8 + $0x60] sm:$0xf]  ;;  %v6619_v45 = vld [vmem:[#allocation8 + $0x2c] sm:$0xf0] }
0x2911   :  { %v2853_v10 = vsel %vm2852_vm10, %v6995_v14, %v2849_v0  ;;  %v5893_v14 = vor.u32 %v6643_v47, %v5892_v46  ;;  %v5884_v0 = vld [vmem:[#allocation8 + $0xc8] sm:$0xf]  ;;  %v5812_v28 = vld [vmem:[#allocation8 + $0x40] sm:$0xf]  ;;  %v6622_v53 = vld [vmem:[#allocation8 + $0x4c] sm:$0xf] }
0x2912   :  { %v2858_v6 = vsel %vm2855_vm11, %v2857_v57, %v2853_v10  ;;  %v6640_v57 = vld [vmem:[#allocation8 + $0xd4] sm:$0xf0]  ;;  %3425 = vmatpush.bf16.msra.mxu0 %v5881_v49  ;;  %v5782_v59 = vld [vmem:[#allocation8 + $0x10] sm:$0xf0] }
0x2913   :  { %v2892_v63 = vmul.f32 %v6997_v16, %v2858_v6  ;;  %3411 = vmatpush.bf16.msra.mxu2 %v5893_v14  ;;  %v5885_v10 = vor.u32 %v6640_v57, %v5884_v0  ;;  %v6638_v16 = vld [vmem:[#allocation8 + $0xcc] sm:$0xf]  ;;  %v5886_v6 = vld [vmem:[#allocation8 + $0xd8] sm:$0xf0]  ;;  %v5844_v14 = vld [vmem:[#allocation8 + $0x80] sm:$0xf] }
0x2914   :  { %v5889_v29 = vor.u32 %v6638_v16, %v5886_v6  ;;  %v5845_v7 = vor.u32 %v6631_v50, %v5844_v14  ;;  %v6627_v0 = vld [vmem:[#allocation8 + $0x6c] sm:$0xf0]  ;;  %v6625_v57 = vld [vmem:[#allocation8 + $0x64] sm:$0xf]  ;;  %v5836_v16 = vld [vmem:[#allocation8 + $0x68] sm:$0xf] }
0x2915   :  { %v8064_v27 = vadd.f32 %v2892_v63, %v2891_v24  ;;  %v5860_v24 = vld [vmem:[#allocation8 + $0xa0] sm:$0xf]  ;;  %v6635_v63 = vld [vmem:[#allocation8 + $0xac] sm:$0xf0]  ;;  %3438 = vmatpush.bf16.msrb.mxu1 %v5885_v10  ;;  %v5829_v49 = vor.u32 %v6627_v0, %v5828_v8  ;;  %v5830_v10 = vld [vmem:[#allocation8 + $0x70] sm:$0xf0] }
0x2916   :  { %3451 = vmatpush.bf16.msra.mxu3 %v5889_v29  ;;  %v5861_v17 = vor.u32 %v6635_v63, %v5860_v24  ;;  %3426 = vmatpush.bf16.msra.mxu0 %v5865_v13  ;;  %v6628_v6 = vld [vmem:[#allocation8 + $0x74] sm:$0xf0]  ;;  %v5833_v63 = vor.u32 %v6625_v57, %v5830_v10  ;;  %v6618_v0 = vld [vmem:[#allocation8 + $0x2c] sm:$0xf]  ;;  %v5806_v57 = vld [vmem:[#allocation8 + $0x38] sm:$0xf0] }
0x2917   :  { %6998 = vtanh.f32 %v8064_v27  ;;  %3412 = vmatpush.bf16.msra.mxu2 %v5877_v3  ;;  %v5857_v3 = vor.u32 %v6630_v19, %v5854_v33  ;;  %v6624_v14 = vld [vmem:[#allocation8 + $0x54] sm:$0xf0]  ;;  %v5780_v10 = vld [vmem:[#allocation8] sm:$0xf] }
0x2919   :  { %3439 = vmatpush.bf16.msrb.mxu1 %v5869_v40  ;;  %v5814_v40 = vld [vmem:[#allocation8 + $0x50] sm:$0xf0] }
0x291a   :  { %3427 = vmatpush.bf16.msra.mxu0 %v5849_v60  ;;  %v5798_v60 = vld [vmem:[#allocation8 + $0x30] sm:$0xf0] }
0x291b   :  { %3413 = vmatpush.bf16.msra.mxu2 %v5861_v17  ;;  %v5837_v17 = vor.u32 %v6628_v6, %v5836_v16  ;;  %v6615_v16 = vld [vmem:[#allocation8 + $0xc] sm:$0xf0] }
0x291c   :  { %v5781_v52 = vor.u32 %v6615_v16, %v5780_v10 }
0x291d   :  { %v6999_v38 = vpop.eup %6998  ;;  %3440 = vmatpush.bf16.msrb.mxu1 %v5853_v42 }
0x291e   :  { %v8070_v36 = vmul.f32 %v6999_v38, %v2888_v2  ;;  %v6634_v38 = vld [vmem:[#allocation8 + $0xac] sm:$0xf]  ;;  %3428 = vmatpush.bf16.msra.mxu0 %v5833_v63  ;;  %v5809_v63 = vor.u32 %v6618_v0, %v5806_v57 }
0x291f   :  { %3414 = vmatpush.bf16.msra.mxu2 %v5845_v7  ;;  %v5796_v7 = vld [vmem:[#allocation8 + $0x20] sm:$0xf] }
0x2920   :  { %4811 = vadd.xlane.f32.xlu0 %v8070_v36  ;;  %v2901_v32 = vpack.c.bf16 %v8070_v36, %v8070_v36  ;;  %v5797_v33 = vor.u32 %v6619_v45, %v5796_v7 }
0x2921   :  { %3441 = vmatpush.bf16.msrb.mxu1 %v5837_v17  ;;  %v6613_v17 = vld [vmem:[#allocation8 + $0x4] sm:$0xf] }
0x2922   :  { %3102 = vmatmul.bf16.vlgmr.msrb.gmra.mxu2 %v2901_v32  ;;  %3115 = vmatmul.bf16.vlgmr.msrb.gmra.mxu0 %v2901_v32 }
0x2923   :  { %3128 = vmatmul.bf16.vlgmr.msra.gmra.mxu1 %v2901_v32  ;;  %3141 = vmatmul.bf16.vlgmr.msrb.gmra.mxu3 %v2901_v32  ;;  %v5870_v32 = vld [vmem:[#allocation8 + $0xb8] sm:$0xf0] }
0x2924   :  { %v5873_v47 = vor.u32 %v6634_v38, %v5870_v32  ;;  %3415 = vmatpush.bf16.msra.mxu2 %v5829_v49  ;;  %v6623_v38 = vld [vmem:[#allocation8 + $0x4c] sm:$0xf0] }
0x2926   :  { %3452 = vmatpush.bf16.msra.mxu3 %v5873_v47 }
0x2928   :  { %4849 = vadd.xlane.f32.xlu0 %v4841_v51 }
0x292a   :  { %3453 = vmatpush.bf16.msra.mxu3 %v5857_v3  ;;  %v6620_v3 = vld [vmem:[#allocation8 + $0x34] sm:$0xf0] }
0x292e   :  { %3454 = vmatpush.bf16.msra.mxu3 %v5841_v11 }
0x299f   :  { %v3116_v2 = vpop.f32.mrf.mxu0 }
0x29a0   :  { %v3147_v51 = vadd.f32 %v3116_v2, %v8005_v30  ;;  %v3129_v46 = vpop.f32.mrf.mxu1  ;;  %v6621_v2 = vld [vmem:[#allocation8 + $0x44] sm:$0xf] }
0x29a1   :  { %v3148_v54 = vadd.f32 %v3129_v46, %v7979_v58  ;;  %v5813_v46 = vor.u32 %v6623_v38, %v5812_v28  ;;  %v5817_v47 = vor.u32 %v6621_v2, %v5814_v40  ;;  %v5788_v28 = vld [vmem:[#allocation8 + $0x8] sm:$0xf]  ;;  %v5785_v38 = vor.u32 %v6613_v17, %v5782_v59  ;;  %v6614_v2 = vld [vmem:[#allocation8 + $0xc] sm:$0xf]  ;;  %v5790_v40 = vld [vmem:[#allocation8 + $0x18] sm:$0xf0] }
0x29a2   :  { %v5776_v26 = vmul.f32 -1.442695, %v3147_v51 }
0x29a3   :  { %v5777_v30 = vmul.f32 -1.442695, %v3148_v54  ;;  %v5822_v54 = vld [vmem:[#allocation8 + $0x58] sm:$0xf0]  ;;  %3416 = vmatpush.bf16.msra.mxu2 %v5813_v46  ;;  %3429 = vmatpush.bf16.msra.mxu0 %v5817_v47  ;;  %v5793_v46 = vor.u32 %v6614_v2, %v5790_v40 }
0x29a4   :  { %7000 = vpow2.f32 %v5776_v26  ;;  %v5825_v39 = vor.u32 %v6622_v53, %v5822_v54  ;;  %v6617_v26 = vld [vmem:[#allocation8 + $0x24] sm:$0xf] }
0x29a5   :  { %7002 = vpow2.f32 %v5777_v30  ;;  %v3103_v58 = vpop.f32.mrf.mxu2  ;;  %v5804_v30 = vld [vmem:[#allocation8 + $0x28] sm:$0xf]  ;;  %v5801_v8 = vor.u32 %v6617_v26, %v5798_v60 }
0x29a6   :  { %v3146_v29 = vadd.f32 %v3103_v58, %v7975_v56  ;;  %v8083_v24 = vpop.f32.mrf.mxu3  ;;  %v5820_v56 = vld [vmem:[#allocation8 + $0x48] sm:$0xf]  ;;  %v5805_v49 = vor.u32 %v6620_v3, %v5804_v30  ;;  %3455 = vmatpush.bf16.msra.mxu3 %v5825_v39 }
0x29a7   :  { %v3118_v13 = vpop.f32.mrf.mxu0  ;;  %v5821_v50 = vor.u32 %v6624_v14, %v5820_v56  ;;  %3417 = vmatpush.bf16.msra.mxu2 %v5797_v33  ;;  %3430 = vmatpush.bf16.msra.mxu0 %v5801_v8  ;;  %v3149_v7 = vadd.f32 %v8083_v24, %v7983_v22 }
0x29a8   :  { %v5775_v32 = vmul.f32 -1.442695, %v3146_v29  ;;  %v3131_v51 = vpop.f32.mrf.mxu1  ;;  %v6616_v13 = vld [vmem:[#allocation8 + $0x14] sm:$0xf0] }
0x29a9   :  { %3442 = vmatpush.bf16.msrb.mxu1 %v5821_v50  ;;  %v5789_v51 = vor.u32 %v6616_v13, %v5788_v28 }
0x29aa   :  { %v7001_v9 = vpop.eup %7000  ;;  %7004 = vpow2.f32 %v5775_v32  ;;  %3456 = vmatpush.bf16.msra.mxu3 %v5809_v63 }
0x29ab   :  { %v7003_v42 = vpop.eup %7002  ;;  %v8085_v19 = vadd.f32 1.0, %v7001_v9  ;;  %3418 = vmatpush.bf16.msra.mxu2 %v5781_v52  ;;  %3431 = vmatpush.bf16.msra.mxu0 %v5785_v38 }
0x29ac   :  { %v8088_v6 = vadd.f32 1.0, %v7003_v42 }
0x29ad   :  { %7006 = vrcp.f32 %v8085_v19  ;;  %v3105_v58 = vpop.f32.mrf.mxu2  ;;  %3443 = vmatpush.bf16.msrb.mxu1 %v5805_v49  ;;  %v3188_v45 = vand.u32 2147483648, %v8085_v19  ;;  %vm3182_vm1 = vweird.f32 %v8085_v19  ;;  %v3186_v42 = vand.u32 2147483647, %v8085_v19 }
0x29ae   :  { %v3144_v29 = vpop.f32.mrf.mxu3  ;;  %7008 = vrcp.f32 %v8088_v6  ;;  %3457 = vmatpush.bf16.msra.mxu3 %v5793_v46  ;;  %v3203_v52 = vand.u32 2147483648, %v8088_v6  ;;  %vm3197_vm9 = vweird.f32 %v8088_v6  ;;  %v3201_v28 = vand.u32 2147483647, %v8088_v6 }
0x29af   :  { %v3189_v22 = vor.u32 1.1754944e-38, %v3188_v45  ;;  %vm3187_vm6 = vcmp.eq.f32.partialorder %v3186_v42, 8.507059e+37  ;;  %v6671_v45 = vld [vmem:[#allocation8 + $0xcc] sm:$0xf0]  ;;  %v6009_v42 = vld [vmem:[#allocation8 + $0xd0] sm:$0xf0] }
0x29b0   :  { %v7005_v11 = vpop.eup %7004  ;;  %vm3202_vm11 = vcmp.eq.f32.partialorder %v3201_v28, 8.507059e+37 }
0x29b1   :  { %v3159_v32 = vadd.f32 1.0, %v7005_v11  ;;  %3444 = vmatpush.bf16.msrb.mxu1 %v5789_v51  ;;  %v3204_v11 = vor.u32 1.1754944e-38, %v3203_v52  ;;  %v6675_v51 = vld [vmem:[#allocation8 + $0xec] sm:$0xf0] }
0x29b3   :  { %v7007_v47 = vpop.eup %7006  ;;  %7010 = vrcp.f32 %v3159_v32  ;;  %v3173_v33 = vand.u32 2147483648, %v3159_v32  ;;  %v3171_v3 = vand.u32 2147483647, %v3159_v32  ;;  %vm3167_vm5 = vweird.f32 %v3159_v32 }
0x29b4   :  { %v3178_v56 = vmul.f32 %v7007_v47, %v8085_v19  ;;  %v7009_v50 = vpop.eup %7008  ;;  %vm3183_vm0 = vweird.f32 %v7007_v47  ;;  %7012 = vtanh.f32 %v3149_v7  ;;  %v6033_v7 = vld [vmem:[#allocation8 + $0xf8] sm:$0xf0] }
0x29b5   :  { %v3193_v26 = vmul.f32 %v7009_v50, %v8088_v6  ;;  %vm3184_vm2 = vmor %vm3182_vm1, %vm3183_vm0  ;;  %v3174_v57 = vor.u32 1.1754944e-38, %v3173_v33  ;;  %vm3172_vm8 = vcmp.eq.f32.partialorder %v3171_v3, 8.507059e+37  ;;  %vm3198_vm4 = vweird.f32 %v7009_v50  ;;  %v6673_v6 = vld [vmem:[#allocation8 + $0xe4] sm:$0xf]  ;;  %v6015_v33 = vld [vmem:[#allocation8 + $0xc8] sm:$0xf] }
0x29b6   :  { %v3179_v14 = vsub.f32 1.0, %v3178_v56  ;;  %vm3199_vm10 = vmor %vm3197_vm9, %vm3198_vm4  ;;  %v6031_v56 = vld [vmem:[#allocation8 + $0xe8] sm:$0xf] }
0x29b7   :  { %v3194_v24 = vsub.f32 1.0, %v3193_v26  ;;  %v6669_v26 = vld [vmem:[#allocation8 + $0xc4] sm:$0xf] }
0x29b8   :  { %v3180_v53 = vmul.f32 %v7007_v47, %v3179_v14  ;;  %v6676_v14 = vld [vmem:[#allocation8 + $0xf4] sm:$0xf0]  ;;  %v6012_v3 = vor.u32 %v6669_v26, %v6009_v42  ;;  %v6659_v42 = vld [vmem:[#allocation8 + $0x6c] sm:$0xf0] }
0x29b9   :  { %v7011_v54 = vpop.eup %7010  ;;  %v3195_v19 = vmul.f32 %v7009_v50, %v3194_v24  ;;  %v6017_v24 = vld [vmem:[#allocation8 + $0xd8] sm:$0xf0] }
0x29ba   :  { %v3163_v9 = vmul.f32 %v7011_v54, %v3159_v32  ;;  %v3181_v39 = vadd.f32 %v7007_v47, %v3180_v53  ;;  %vm3168_vm3 = vweird.f32 %v7011_v54  ;;  %v7013_v10 = vpop.eup %7012  ;;  %v6023_v32 = vld [vmem:[#allocation8 + $0xe0] sm:$0xf]  ;;  %v6032_v53 = vor.u32 %v6676_v14, %v6031_v56  ;;  %v6661_v56 = vld [vmem:[#allocation8 + $0x84] sm:$0xf]  ;;  %v5977_v14 = vld [vmem:[#allocation8 + $0x90] sm:$0xf0] }
0x29bb   :  { %vm3169_vm7 = vmor %vm3167_vm5, %vm3168_vm3  ;;  %v3196_v59 = vadd.f32 %v7009_v50, %v3195_v19  ;;  %v6024_v46 = vor.u32 %v6675_v51, %v6023_v32  ;;  %v5993_v19 = vld [vmem:[#allocation8 + $0xb0] sm:$0xf0]  ;;  %v5975_v51 = vld [vmem:[#allocation8 + $0x80] sm:$0xf] }
0x29bc   :  { %v3164_v60 = vsub.f32 1.0, %v3163_v9  ;;  %v3185_v8 = vsel %vm3184_vm2, %v7007_v47, %v3181_v39  ;;  %v6025_v47 = vld [vmem:[#allocation8 + $0xf0] sm:$0xf0]  ;;  %3754 = vmatpush.bf16.msra.mxu1 %v6032_v53  ;;  %v6007_v39 = vld [vmem:[#allocation8 + $0xc0] sm:$0xf] }
0x29bd   :  { %v3190_v58 = vsel %vm3187_vm6, %v3189_v22, %v3185_v8  ;;  %v3200_v13 = vsel %vm3199_vm10, %v7009_v50, %v3196_v59  ;;  %v6028_v50 = vor.u32 %v6673_v6, %v6025_v47  ;;  %3728 = vmatpush.bf16.msrb.mxu2 %v6024_v46  ;;  %v6670_v22 = vld [vmem:[#allocation8 + $0xcc] sm:$0xf]  ;;  %v6663_v6 = vld [vmem:[#allocation8 + $0x8c] sm:$0xf0]  ;;  %v6664_v53 = vld [vmem:[#allocation8 + $0x94] sm:$0xf0] }
0x29be   :  { %v3165_v30 = vmul.f32 %v7011_v54, %v3164_v60  ;;  %v3208_v29 = vmul.f32 %v3190_v58, %v8064_v27  ;;  %v3205_v2 = vsel %vm3202_vm11, %v3204_v11, %v3200_v13  ;;  %v6008_v60 = vor.u32 %v6671_v45, %v6007_v39  ;;  %v6667_v58 = vld [vmem:[#allocation8 + $0xac] sm:$0xf0]  ;;  %v6666_v11 = vld [vmem:[#allocation8 + $0xac] sm:$0xf] }
0x29bf   :  { %3741 = vmatpush.bf16.msrb.mxu0 %v6028_v50  ;;  %v5976_v47 = vor.u32 %v6663_v6, %v5975_v51  ;;  %v5983_v50 = vld [vmem:[#allocation8 + $0x88] sm:$0xf]  ;;  %v6654_v51 = vld [vmem:[#allocation8 + $0x4c] sm:$0xf]  ;;  %v5953_v6 = vld [vmem:[#allocation8 + $0x58] sm:$0xf0] }
0x29c0   :  { %v3166_v0 = vadd.f32 %v7011_v54, %v3165_v30  ;;  %v6672_v30 = vld [vmem:[#allocation8 + $0xd4] sm:$0xf0] }
0x29c1   :  { %v6016_v8 = vor.u32 %v6672_v30, %v6015_v33  ;;  %3729 = vmatpush.bf16.msrb.mxu2 %v6008_v60  ;;  %v5959_v60 = vld [vmem:[#allocation8 + $0x60] sm:$0xf]  ;;  %v6657_v33 = vld [vmem:[#allocation8 + $0x64] sm:$0xf] }
0x29c2   :  { %v3170_v49 = vsel %vm3169_vm7, %v7011_v54, %v3166_v0  ;;  %v6674_v54 = vld [vmem:[#allocation8 + $0xec] sm:$0xf]  ;;  %v6020_v0 = vor.u32 %v6670_v22, %v6017_v24  ;;  %v5967_v22 = vld [vmem:[#allocation8 + $0x68] sm:$0xf]  ;;  %v6660_v24 = vld [vmem:[#allocation8 + $0x74] sm:$0xf0] }
0x29c3   :  { %v3175_v16 = vsel %vm3172_vm8, %v3174_v57, %v3170_v49  ;;  %v6036_v9 = vor.u32 %v6674_v54, %v6033_v7  ;;  %3742 = vmatpush.bf16.msrb.mxu0 %v6012_v3  ;;  %3755 = vmatpush.bf16.msra.mxu1 %v6016_v8  ;;  %v5991_v57 = vld [vmem:[#allocation8 + $0xa0] sm:$0xf]  ;;  %v6665_v49 = vld [vmem:[#allocation8 + $0xa4] sm:$0xf]  ;;  %v6662_v54 = vld [vmem:[#allocation8 + $0x8c] sm:$0xf]  ;;  %v5960_v3 = vor.u32 %v6659_v42, %v5959_v60 }
0x29c4   :  { %v3209_v63 = vmul.f32 %v7013_v10, %v3175_v16  ;;  %v5992_v16 = vor.u32 %v6667_v58, %v5991_v57  ;;  %v5996_v28 = vor.u32 %v6665_v49, %v5993_v19  ;;  %v5961_v8 = vld [vmem:[#allocation8 + $0x70] sm:$0xf0]  ;;  %v5968_v49 = vor.u32 %v6660_v24, %v5967_v22  ;;  %v5943_v19 = vld [vmem:[#allocation8 + $0x40] sm:$0xf]  ;;  %v6650_v60 = vld [vmem:[#allocation8 + $0x2c] sm:$0xf] }
0x29c5   :  { %3767 = vmatpush.bf16.msrb.mxu3 %v6036_v9  ;;  %v5985_v9 = vld [vmem:[#allocation8 + $0x98] sm:$0xf0]  ;;  %v5964_v58 = vor.u32 %v6657_v33, %v5961_v8  ;;  %v6647_v8 = vld [vmem:[#allocation8 + $0xc] sm:$0xf0]  ;;  %v6645_v22 = vld [vmem:[#allocation8 + $0x4] sm:$0xf] }
0x29c6   :  { %v8099_v17 = vadd.f32 %v3209_v63, %v3208_v29  ;;  %v5999_v29 = vld [vmem:[#allocation8 + $0xa8] sm:$0xf]  ;;  %v6668_v63 = vld [vmem:[#allocation8 + $0xb4] sm:$0xf0]  ;;  %3730 = vmatpush.bf16.msrb.mxu2 %v5992_v16  ;;  %v5988_v26 = vor.u32 %v6662_v54, %v5985_v9  ;;  %v5937_v42 = vld [vmem:[#allocation8 + $0x38] sm:$0xf0] }
0x29c7   :  { %v6000_v13 = vor.u32 %v6668_v63, %v5999_v29  ;;  %3743 = vmatpush.bf16.msrb.mxu0 %v5996_v28  ;;  %v6655_v29 = vld [vmem:[#allocation8 + $0x4c] sm:$0xf0]  ;;  %v6653_v63 = vld [vmem:[#allocation8 + $0x44] sm:$0xf]  ;;  %v5945_v28 = vld [vmem:[#allocation8 + $0x50] sm:$0xf0] }
0x29c8   :  { %7014 = vtanh.f32 %v8099_v17  ;;  %v6652_v9 = vld [vmem:[#allocation8 + $0x34] sm:$0xf0] }
0x29c9   :  { %3768 = vmatpush.bf16.msrb.mxu3 %v6020_v0  ;;  %3756 = vmatpush.bf16.msra.mxu1 %v6000_v13  ;;  %v5951_v13 = vld [vmem:[#allocation8 + $0x48] sm:$0xf] }
0x29ca   :  { %3731 = vmatpush.bf16.msrb.mxu2 %v5976_v47  ;;  %v5927_v47 = vld [vmem:[#allocation8 + $0x20] sm:$0xf] }
0x29ce   :  { %v7015_v38 = vpop.eup %7014  ;;  %3732 = vmatpush.bf16.msrb.mxu2 %v5960_v3  ;;  %v5911_v3 = vld [vmem:[#allocation8] sm:$0xf] }
0x29cf   :  { %v8105_v27 = vmul.f32 %v7015_v38, %v3205_v2  ;;  %v6001_v38 = vld [vmem:[#allocation8 + $0xb8] sm:$0xf0] }
0x29d1   :  { %4813 = vadd.xlane.f32.xlu1 %v8105_v27  ;;  %v3218_v40 = vpack.c.bf16 %v8105_v27, %v8105_v27 }
0x29d3   :  { %3419 = vmatmul.bf16.vlgmr.msra.gmra.mxu2 %v3218_v40  ;;  %3432 = vmatmul.bf16.vlgmr.msra.gmra.mxu0 %v3218_v40 }
0x29d4   :  { %3445 = vmatmul.bf16.vlgmr.msrb.gmra.mxu1 %v3218_v40  ;;  %3458 = vmatmul.bf16.vlgmr.msra.gmra.mxu3 %v3218_v40  ;;  %v6004_v40 = vor.u32 %v6666_v11, %v6001_v38  ;;  %v6656_v11 = vld [vmem:[#allocation8 + $0x54] sm:$0xf0] }
0x29d6   :  { %3769 = vmatpush.bf16.msrb.mxu3 %v6004_v40  ;;  %v5948_v40 = vor.u32 %v6653_v63, %v5945_v28 }
0x29da   :  { %3770 = vmatpush.bf16.msrb.mxu3 %v5988_v26 }
0x2a50   :  { %v3433_v10 = vpop.f32.mrf.mxu0 }
0x2a51   :  { %v3464_v59 = vadd.f32 %v3433_v10, %v8013_v1  ;;  %v3446_v52 = vpop.f32.mrf.mxu1  ;;  %v5980_v1 = vor.u32 %v6661_v56, %v5977_v14  ;;  %v6658_v10 = vld [vmem:[#allocation8 + $0x6c] sm:$0xf]  ;;  %v6651_v56 = vld [vmem:[#allocation8 + $0x2c] sm:$0xf0] }
0x2a52   :  { %v3465_v2 = vadd.f32 %v3446_v52, %v7987_v15  ;;  %v5984_v15 = vor.u32 %v6664_v53, %v5983_v50  ;;  %v5944_v52 = vor.u32 %v6655_v29, %v5943_v19  ;;  %v6649_v50 = vld [vmem:[#allocation8 + $0x24] sm:$0xf]  ;;  %v5928_v54 = vor.u32 %v6651_v56, %v5927_v47 }
0x2a53   :  { %v5907_v32 = vmul.f32 -1.442695, %v3464_v59  ;;  %3744 = vmatpush.bf16.msrb.mxu0 %v5980_v1 }
0x2a54   :  { %v5908_v46 = vmul.f32 -1.442695, %v3465_v2  ;;  %3757 = vmatpush.bf16.msra.mxu1 %v5984_v15  ;;  %3733 = vmatpush.bf16.msrb.mxu2 %v5944_v52  ;;  %v5935_v15 = vld [vmem:[#allocation8 + $0x28] sm:$0xf] }
0x2a55   :  { %7016 = vpow2.f32 %v5907_v32  ;;  %v5952_v32 = vor.u32 %v6656_v11, %v5951_v13  ;;  %v5936_v26 = vor.u32 %v6652_v9, %v5935_v15 }
0x2a56   :  { %7018 = vpow2.f32 %v5908_v46  ;;  %v3420_v7 = vpop.f32.mrf.mxu2  ;;  %v5956_v46 = vor.u32 %v6654_v51, %v5953_v6 }
0x2a57   :  { %v3463_v39 = vadd.f32 %v3420_v7, %v7981_v5  ;;  %v8113_v45 = vpop.f32.mrf.mxu3  ;;  %v5969_v5 = vld [vmem:[#allocation8 + $0x78] sm:$0xf0]  ;;  %3745 = vmatpush.bf16.msrb.mxu0 %v5964_v58  ;;  %v5929_v7 = vld [vmem:[#allocation8 + $0x30] sm:$0xf0]  ;;  %v5919_v58 = vld [vmem:[#allocation8 + $0x8] sm:$0xf] }
0x2a58   :  { %v3435_v30 = vpop.f32.mrf.mxu0  ;;  %v5972_v16 = vor.u32 %v6658_v10, %v5969_v5  ;;  %3758 = vmatpush.bf16.msra.mxu1 %v5968_v49  ;;  %3734 = vmatpush.bf16.msrb.mxu2 %v5928_v54  ;;  %v6648_v10 = vld [vmem:[#allocation8 + $0x14] sm:$0xf0]  ;;  %v6646_v5 = vld [vmem:[#allocation8 + $0xc] sm:$0xf] }
0x2a59   :  { %v5906_v0 = vmul.f32 -1.442695, %v3463_v39  ;;  %v3448_v57 = vpop.f32.mrf.mxu1  ;;  %v5932_v39 = vor.u32 %v6649_v50, %v5929_v7  ;;  %v5940_v30 = vor.u32 %v6650_v60, %v5937_v42  ;;  %v5920_v63 = vor.u32 %v6648_v10, %v5919_v58 }
0x2a5a   :  { %3771 = vmatpush.bf16.msrb.mxu3 %v5972_v16  ;;  %v5913_v57 = vld [vmem:[#allocation8 + $0x10] sm:$0xf0]  ;;  %v5921_v16 = vld [vmem:[#allocation8 + $0x18] sm:$0xf0] }
0x2a5b   :  { %v7017_v59 = vpop.eup %7016  ;;  %7020 = vpow2.f32 %v5906_v0  ;;  %3746 = vmatpush.bf16.msrb.mxu0 %v5948_v40  ;;  %v5912_v0 = vor.u32 %v6647_v8, %v5911_v3  ;;  %v5916_v49 = vor.u32 %v6645_v22, %v5913_v57 }
0x2a5c   :  { %v7019_v38 = vpop.eup %7018  ;;  %v8115_v2 = vadd.f32 1.0, %v7017_v59  ;;  %3759 = vmatpush.bf16.msra.mxu1 %v5952_v32  ;;  %v5924_v59 = vor.u32 %v6646_v5, %v5921_v16 }
0x2a5d   :  { %v8118_v14 = vadd.f32 1.0, %v7019_v38  ;;  %3735 = vmatpush.bf16.msrb.mxu2 %v5912_v0  ;;  %v3466_v38 = vadd.f32 %v8113_v45, %v7991_v18 }
0x2a5e   :  { %7022 = vrcp.f32 %v8115_v2  ;;  %v3422_v1 = vpop.f32.mrf.mxu2  ;;  %3772 = vmatpush.bf16.msrb.mxu3 %v5956_v46  ;;  %v3505_v51 = vand.u32 2147483648, %v8115_v2  ;;  %vm3499_vm13 = vweird.f32 %v8115_v2  ;;  %v3503_v47 = vand.u32 2147483647, %v8115_v2 }
0x2a5f   :  { %v3461_v53 = vpop.f32.mrf.mxu3  ;;  %7024 = vrcp.f32 %v8118_v14  ;;  %3747 = vmatpush.bf16.msrb.mxu0 %v5932_v39  ;;  %v3520_v3 = vand.u32 2147483648, %v8118_v14  ;;  %vm3514_vm6 = vweird.f32 %v8118_v14  ;;  %v3518_v8 = vand.u32 2147483647, %v8118_v14 }
0x2a60   :  { %3760 = vmatpush.bf16.msra.mxu1 %v5936_v26  ;;  %v3506_v18 = vor.u32 1.1754944e-38, %v3505_v51  ;;  %vm3504_vm1 = vcmp.eq.f32.partialorder %v3503_v47, 8.507059e+37  ;;  %v6706_v51 = vld [vmem:[#allocation8 + $0xec] sm:$0xf]  ;;  %v6703_v47 = vld [vmem:[#allocation8 + $0xcc] sm:$0xf0] }
0x2a61   :  { %v7021_v33 = vpop.eup %7020  ;;  %v3521_v0 = vor.u32 1.1754944e-38, %v3520_v3  ;;  %vm3519_vm8 = vcmp.eq.f32.partialorder %v3518_v8, 8.507059e+37  ;;  %v6699_v3 = vld [vmem:[#allocation8 + $0xac] sm:$0xf0] }
0x2a62   :  { %v3476_v24 = vadd.f32 1.0, %v7021_v33  ;;  %3773 = vmatpush.bf16.msrb.mxu3 %v5940_v30 }
0x2a63   :  { %3748 = vmatpush.bf16.msrb.mxu0 %v5916_v49 }
0x2a64   :  { %v7023_v19 = vpop.eup %7022  ;;  %7026 = vrcp.f32 %v3476_v24  ;;  %3761 = vmatpush.bf16.msra.mxu1 %v5920_v63  ;;  %v3490_v56 = vand.u32 2147483648, %v3476_v24  ;;  %v3488_v50 = vand.u32 2147483647, %v3476_v24  ;;  %vm3484_vm0 = vweird.f32 %v3476_v24 }
0x2a65   :  { %v3495_v29 = vmul.f32 %v7023_v19, %v8115_v2  ;;  %v7025_v28 = vpop.eup %7024  ;;  %vm3500_vm12 = vweird.f32 %v7023_v19  ;;  %7028 = vtanh.f32 %v3466_v38  ;;  %v6708_v38 = vld [vmem:[#allocation8 + $0xf4] sm:$0xf0] }
0x2a66   :  { %3774 = vmatpush.bf16.msrb.mxu3 %v5924_v59  ;;  %v3510_v6 = vmul.f32 %v7025_v28, %v8118_v14  ;;  %vm3501_vm14 = vmor %vm3499_vm13, %vm3500_vm12  ;;  %v3491_v7 = vor.u32 1.1754944e-38, %v3490_v56  ;;  %vm3489_vm3 = vcmp.eq.f32.partialorder %v3488_v50, 8.507059e+37  ;;  %vm3515_vm5 = vweird.f32 %v7025_v28  ;;  %v4814_v14 = vpop.xlane.xlu1 %4813  ;;  %v6154_v59 = vld [vmem:[#allocation8 + $0xe0] sm:$0xf]  ;;  %v6701_v50 = vld [vmem:[#allocation8 + $0xc4] sm:$0xf] }
0x2a67   :  { %v3496_v52 = vsub.f32 1.0, %v3495_v29  ;;  %vm3516_vm7 = vmor %vm3514_vm6, %vm3515_vm5  ;;  %v4827_v16 = vmul.f32 0.0078125, %v4814_v14  ;;  %v6132_v14 = vld [vmem:[#allocation8 + $0xb8] sm:$0xf0] }
0x2a68   :  { %v3511_v45 = vsub.f32 1.0, %v3510_v6  ;;  %v6164_v6 = vld [vmem:[#allocation8 + $0xf8] sm:$0xf0] }
0x2a69   :  { %v3497_v13 = vmul.f32 %v7023_v19, %v3496_v52  ;;  %v8146_v29 = vsub.f32 %v8105_v27, %v4827_v16  ;;  %v6705_v52 = vld [vmem:[#allocation8 + $0xe4] sm:$0xf]  ;;  %v6138_v27 = vld [vmem:[#allocation8 + $0xc0] sm:$0xf] }
0x2a6a   :  { %v7027_v11 = vpop.eup %7026  ;;  %v3512_v2 = vmul.f32 %v7025_v28, %v3511_v45 }
0x2a6b   :  { %v3480_v40 = vmul.f32 %v7027_v11, %v3476_v24  ;;  %v3498_v32 = vadd.f32 %v7023_v19, %v3497_v13  ;;  %vm3485_vm15 = vweird.f32 %v7027_v11  ;;  %v7029_v39 = vpop.eup %7028  ;;  %v4812_v24 = vpop.xlane.xlu0 %4811  ;;  %v4843_v63 = vmul.f32 %v8146_v29, %v8146_v29  ;;  %v6156_v13 = vld [vmem:[#allocation8 + $0xf0] sm:$0xf0] }
0x2a6c   :  { %vm3486_vm2 = vmor %vm3484_vm0, %vm3485_vm15  ;;  %v3513_v30 = vadd.f32 %v7025_v28, %v3512_v2  ;;  %v4826_v58 = vmul.f32 0.0078125, %v4812_v24  ;;  %v6697_v24 = vld [vmem:[#allocation8 + $0xa4] sm:$0xf] }
0x2a6d   :  { %v3481_v46 = vsub.f32 1.0, %v3480_v40  ;;  %v3502_v53 = vsel %vm3501_vm14, %v7023_v19, %v3498_v32  ;;  %v6159_v40 = vor.u32 %v6705_v52, %v6156_v13  ;;  %v6693_v13 = vld [vmem:[#allocation8 + $0x84] sm:$0xf] }
0x2a6e   :  { %v3507_v15 = vsel %vm3504_vm1, %v3506_v18, %v3502_v53  ;;  %v3517_v22 = vsel %vm3516_vm7, %v7025_v28, %v3513_v30  ;;  %v8141_v5 = vsub.f32 %v8070_v36, %v4826_v58  ;;  %v6707_v36 = vld [vmem:[#allocation8 + $0xec] sm:$0xf0]  ;;  %v6140_v53 = vld [vmem:[#allocation8 + $0xd0] sm:$0xf0]  ;;  %v6146_v18 = vld [vmem:[#allocation8 + $0xc8] sm:$0xf] }
0x2a6f   :  { %v3482_v1 = vmul.f32 %v7027_v11, %v3481_v46  ;;  %v3525_v60 = vmul.f32 %v3507_v15, %v8099_v17  ;;  %v3522_v17 = vsel %vm3519_vm8, %v3521_v0, %v3517_v22  ;;  %v6155_v28 = vor.u32 %v6707_v36, %v6154_v59  ;;  %4058 = vmatpush.bf16.msra.mxu0 %v6159_v40  ;;  %v6704_v15 = vld [vmem:[#allocation8 + $0xd4] sm:$0xf0]  ;;  %v6122_v30 = vld [vmem:[#allocation8 + $0xa0] sm:$0xf]  ;;  %v6695_v36 = vld [vmem:[#allocation8 + $0x8c] sm:$0xf0] }
0x2a70   :  { %v4842_v19 = vmul.f32 %v8141_v5, %v8141_v5  ;;  %v6167_v46 = vor.u32 %v6706_v51, %v6164_v6  ;;  %v6147_v2 = vor.u32 %v6704_v15, %v6146_v18  ;;  %v6123_v22 = vor.u32 %v6699_v3, %v6122_v30  ;;  %v6106_v59 = vld [vmem:[#allocation8 + $0x80] sm:$0xf]  ;;  %v6696_v6 = vld [vmem:[#allocation8 + $0x94] sm:$0xf0]  ;;  %v6689_v18 = vld [vmem:[#allocation8 + $0x64] sm:$0xf] }
0x2a71   :  { %v3483_v54 = vadd.f32 %v7027_v11, %v3482_v1  ;;  %4045 = vmatpush.bf16.msra.mxu2 %v6155_v28  ;;  %v6139_v1 = vor.u32 %v6703_v47, %v6138_v27  ;;  %v6107_v28 = vor.u32 %v6695_v36, %v6106_v59  ;;  %v6116_v27 = vld [vmem:[#allocation8 + $0x98] sm:$0xf0]  ;;  %v6090_v47 = vld [vmem:[#allocation8 + $0x60] sm:$0xf]  ;;  %v6687_v3 = vld [vmem:[#allocation8 + $0x4c] sm:$0xf0] }
0x2a72   :  { %4084 = vmatpush.bf16.msra.mxu3 %v6167_v46  ;;  %v6694_v46 = vld [vmem:[#allocation8 + $0x8c] sm:$0xf]  ;;  %v6058_v59 = vld [vmem:[#allocation8 + $0x20] sm:$0xf] }
0x2a73   :  { %v3487_v9 = vsel %vm3486_vm2, %v7027_v11, %v3483_v54  ;;  %v6162_v11 = vld [vmem:[#allocation8 + $0xe8] sm:$0xf] }
0x2a74   :  { %v3492_v26 = vsel %vm3489_vm3, %v3491_v7, %v3487_v9  ;;  %v6163_v32 = vor.u32 %v6708_v38, %v6162_v11  ;;  %v6143_v7 = vor.u32 %v6701_v50, %v6140_v53  ;;  %v6702_v9 = vld [vmem:[#allocation8 + $0xcc] sm:$0xf]  ;;  %v6108_v11 = vld [vmem:[#allocation8 + $0x90] sm:$0xf0]  ;;  %v6114_v38 = vld [vmem:[#allocation8 + $0x88] sm:$0xf]  ;;  %v6119_v50 = vor.u32 %v6694_v46, %v6116_v27 }
0x2a75   :  { %v3526_v42 = vmul.f32 %v7029_v39, %v3492_v26  ;;  %v6148_v39 = vld [vmem:[#allocation8 + $0xd8] sm:$0xf0]  ;;  %4046 = vmatpush.bf16.msra.mxu2 %v6139_v1  ;;  %v6111_v51 = vor.u32 %v6693_v13, %v6108_v11  ;;  %v6681_v13 = vld [vmem:[#allocation8 + $0x24] sm:$0xf] }
0x2a76   :  { %4071 = vmatpush.bf16.msrb.mxu1 %v6163_v32  ;;  %4059 = vmatpush.bf16.msra.mxu0 %v6143_v7  ;;  %v6068_v27 = vld [vmem:[#allocation8 + $0x38] sm:$0xf0] }
0x2a77   :  { %v8129_v33 = vadd.f32 %v3526_v42, %v3525_v60  ;;  %v6151_v60 = vor.u32 %v6702_v9, %v6148_v39  ;;  %v6692_v39 = vld [vmem:[#allocation8 + $0x74] sm:$0xf0] }
0x2a79   :  { %7030 = vtanh.f32 %v8129_v33  ;;  %4085 = vmatpush.bf16.msra.mxu3 %v6151_v60  ;;  %4047 = vmatpush.bf16.msra.mxu2 %v6123_v22  ;;  %v6100_v60 = vld [vmem:[#allocation8 + $0x78] sm:$0xf0] }
0x2a7a   :  { %4072 = vmatpush.bf16.msrb.mxu1 %v6147_v2 }
0x2a7d   :  { %4048 = vmatpush.bf16.msra.mxu2 %v6107_v28  ;;  %v6683_v28 = vld [vmem:[#allocation8 + $0x2c] sm:$0xf0] }
0x2a7e   :  { %v6059_v11 = vor.u32 %v6683_v28, %v6058_v59 }
0x2a7f   :  { %v7031_v57 = vpop.eup %7030 }
0x2a80   :  { %v8135_v49 = vmul.f32 %v7031_v57, %v3522_v17  ;;  %v6130_v57 = vld [vmem:[#allocation8 + $0xa8] sm:$0xf]  ;;  %v6700_v17 = vld [vmem:[#allocation8 + $0xb4] sm:$0xf0] }
0x2a82   :  { %4815 = vadd.xlane.f32.xlu1 %v8135_v49  ;;  %v3535_v10 = vpack.c.bf16 %v8135_v49, %v8135_v49 }
0x2a84   :  { %3736 = vmatmul.bf16.vlgmr.msrb.gmra.mxu2 %v3535_v10  ;;  %3749 = vmatmul.bf16.vlgmr.msrb.gmra.mxu0 %v3535_v10 }
0x2a85   :  { %3762 = vmatmul.bf16.vlgmr.msra.gmra.mxu1 %v3535_v10  ;;  %3775 = vmatmul.bf16.vlgmr.msrb.gmra.mxu3 %v3535_v10  ;;  %v6698_v10 = vld [vmem:[#allocation8 + $0xac] sm:$0xf] }
0x2a8a   :  { %4851 = vadd.xlane.f32.xlu1 %v4842_v19 }
0x2a92   :  { %4853 = vadd.xlane.f32.xlu1 %v4843_v63  ;;  %v6135_v63 = vor.u32 %v6698_v10, %v6132_v14 }
0x2a94   :  { %4086 = vmatpush.bf16.msra.mxu3 %v6135_v63  ;;  %v6084_v63 = vld [vmem:[#allocation8 + $0x58] sm:$0xf0] }
0x2a98   :  { %4087 = vmatpush.bf16.msra.mxu3 %v6119_v50  ;;  %v6677_v50 = vld [vmem:[#allocation8 + $0x4] sm:$0xf] }
0x2b01   :  { %v3750_v56 = vpop.f32.mrf.mxu0 }
0x2b02   :  { %v3781_v45 = vadd.f32 %v3750_v56, %v8019_v41  ;;  %v3763_v54 = vpop.f32.mrf.mxu1  ;;  %v6124_v41 = vld [vmem:[#allocation8 + $0xb0] sm:$0xf0]  ;;  %v6691_v56 = vld [vmem:[#allocation8 + $0x6c] sm:$0xf0] }
0x2b03   :  { %v3782_v26 = vadd.f32 %v3763_v54, %v7995_v37  ;;  %v6127_v0 = vor.u32 %v6697_v24, %v6124_v41  ;;  %v6131_v37 = vor.u32 %v6700_v17, %v6130_v57  ;;  %v6091_v53 = vor.u32 %v6691_v56, %v6090_v47  ;;  %v6098_v54 = vld [vmem:[#allocation8 + $0x68] sm:$0xf]  ;;  %v6076_v57 = vld [vmem:[#allocation8 + $0x50] sm:$0xf0]  ;;  %v6042_v47 = vld [vmem:[#allocation8] sm:$0xf] }
0x2b04   :  { %v6038_v42 = vmul.f32 -1.442695, %v3781_v45  ;;  %v6092_v45 = vld [vmem:[#allocation8 + $0x70] sm:$0xf0]  ;;  %v6099_v2 = vor.u32 %v6692_v39, %v6098_v54  ;;  %v6082_v17 = vld [vmem:[#allocation8 + $0x48] sm:$0xf] }
0x2b05   :  { %v6039_v8 = vmul.f32 -1.442695, %v3782_v26  ;;  %4060 = vmatpush.bf16.msra.mxu0 %v6127_v0  ;;  %4073 = vmatpush.bf16.msrb.mxu1 %v6131_v37  ;;  %v6095_v9 = vor.u32 %v6689_v18, %v6092_v45  ;;  %v6690_v26 = vld [vmem:[#allocation8 + $0x6c] sm:$0xf]  ;;  %v6044_v54 = vld [vmem:[#allocation8 + $0x10] sm:$0xf0] }
0x2b06   :  { %7032 = vpow2.f32 %v6038_v42  ;;  %v6074_v42 = vld [vmem:[#allocation8 + $0x40] sm:$0xf]  ;;  %4049 = vmatpush.bf16.msra.mxu2 %v6091_v53  ;;  %v6103_v41 = vor.u32 %v6690_v26, %v6100_v60  ;;  %v6686_v37 = vld [vmem:[#allocation8 + $0x4c] sm:$0xf]  ;;  %v6680_v39 = vld [vmem:[#allocation8 + $0x14] sm:$0xf0] }
0x2b07   :  { %7034 = vpow2.f32 %v6039_v8  ;;  %v3737_v58 = vpop.f32.mrf.mxu2  ;;  %v6685_v8 = vld [vmem:[#allocation8 + $0x44] sm:$0xf]  ;;  %v6075_v0 = vor.u32 %v6687_v3, %v6074_v42  ;;  %v6678_v26 = vld [vmem:[#allocation8 + $0xc] sm:$0xf] }
0x2b08   :  { %v3780_v16 = vadd.f32 %v3737_v58, %v7985_v61  ;;  %v8153_v19 = vpop.f32.mrf.mxu3  ;;  %v6115_v61 = vor.u32 %v6696_v6, %v6114_v38  ;;  %v6688_v58 = vld [vmem:[#allocation8 + $0x54] sm:$0xf0]  ;;  %4088 = vmatpush.bf16.msra.mxu3 %v6103_v41  ;;  %v6079_v14 = vor.u32 %v6685_v8, %v6076_v57  ;;  %v6060_v38 = vld [vmem:[#allocation8 + $0x30] sm:$0xf0]  ;;  %v6682_v6 = vld [vmem:[#allocation8 + $0x2c] sm:$0xf] }
0x2b09   :  { %v3752_v52 = vpop.f32.mrf.mxu0  ;;  %4061 = vmatpush.bf16.msra.mxu0 %v6111_v51  ;;  %v6071_v18 = vor.u32 %v6682_v6, %v6068_v27 }
0x2b0a   :  { %v6037_v40 = vmul.f32 -1.442695, %v3780_v16  ;;  %v3765_v32 = vpop.f32.mrf.mxu1  ;;  %4074 = vmatpush.bf16.msrb.mxu1 %v6115_v61  ;;  %v6083_v16 = vor.u32 %v6688_v58, %v6082_v17  ;;  %4050 = vmatpush.bf16.msra.mxu2 %v6075_v0  ;;  %v6087_v52 = vor.u32 %v6686_v37, %v6084_v63  ;;  %v6063_v61 = vor.u32 %v6681_v13, %v6060_v38 }
0x2b0b   :  { %v6684_v32 = vld [vmem:[#allocation8 + $0x34] sm:$0xf0] }
0x2b0c   :  { %v7033_v1 = vpop.eup %7032  ;;  %7036 = vpow2.f32 %v6037_v40  ;;  %v6066_v40 = vld [vmem:[#allocation8 + $0x28] sm:$0xf]  ;;  %4089 = vmatpush.bf16.msra.mxu3 %v6087_v52 }
0x2b0d   :  { %v7035_v7 = vpop.eup %7034  ;;  %v8155_v15 = vadd.f32 1.0, %v7033_v1  ;;  %4062 = vmatpush.bf16.msra.mxu0 %v6095_v9  ;;  %v6067_v56 = vor.u32 %v6684_v32, %v6066_v40  ;;  %v6679_v1 = vld [vmem:[#allocation8 + $0xc] sm:$0xf0]  ;;  %v6047_v9 = vor.u32 %v6677_v50, %v6044_v54  ;;  %v6285_v50 = vld [vmem:[#allocation8 + $0xe0] sm:$0xf] }
0x2b0e   :  { %v8158_v22 = vadd.f32 1.0, %v7035_v7  ;;  %4075 = vmatpush.bf16.msrb.mxu1 %v6099_v2  ;;  %4051 = vmatpush.bf16.msra.mxu2 %v6059_v11  ;;  %v6043_v45 = vor.u32 %v6679_v1, %v6042_v47  ;;  %v6050_v7 = vld [vmem:[#allocation8 + $0x8] sm:$0xf]  ;;  %v6052_v2 = vld [vmem:[#allocation8 + $0x18] sm:$0xf0] }
0x2b0f   :  { %7038 = vrcp.f32 %v8155_v15  ;;  %v3739_v30 = vpop.f32.mrf.mxu2  ;;  %v6055_v3 = vor.u32 %v6678_v26, %v6052_v2  ;;  %v3822_v57 = vand.u32 2147483648, %v8155_v15  ;;  %vm3816_vm9 = vweird.f32 %v8155_v15  ;;  %v6293_v54 = vld [vmem:[#allocation8 + $0xe8] sm:$0xf]  ;;  %v6738_v2 = vld [vmem:[#allocation8 + $0xec] sm:$0xf] }
0x2b10   :  { %v3778_v24 = vpop.f32.mrf.mxu3  ;;  %7040 = vrcp.f32 %v8158_v22  ;;  %4090 = vmatpush.bf16.msra.mxu3 %v6071_v18  ;;  %v6051_v30 = vor.u32 %v6680_v39, %v6050_v7  ;;  %v3820_v37 = vand.u32 2147483647, %v8155_v15  ;;  %vm3831_vm1 = vweird.f32 %v8158_v22  ;;  %v6740_v7 = vld [vmem:[#allocation8 + $0xf4] sm:$0xf0] }
0x2b11   :  { %4063 = vmatpush.bf16.msra.mxu0 %v6079_v14  ;;  %v3783_v24 = vadd.f32 %v8153_v19, %v7999_v20  ;;  %v6294_v26 = vor.u32 %v6740_v7, %v6293_v54  ;;  %v6728_v54 = vld [vmem:[#allocation8 + $0x94] sm:$0xf0] }
0x2b12   :  { %v7037_v10 = vpop.eup %7036  ;;  %4076 = vmatpush.bf16.msrb.mxu1 %v6083_v16  ;;  %4052 = vmatpush.bf16.msra.mxu2 %v6043_v45  ;;  %v3823_v16 = vor.u32 1.1754944e-38, %v3822_v57  ;;  %vm3821_vm13 = vcmp.eq.f32.partialorder %v3820_v37, 8.507059e+37  ;;  %v6287_v45 = vld [vmem:[#allocation8 + $0xf0] sm:$0xf0]  ;;  %v6277_v37 = vld [vmem:[#allocation8 + $0xc8] sm:$0xf] }
0x2b13   :  { %v8160_v36 = vadd.f32 1.0, %v7037_v10 }
0x2b14   :  { %4091 = vmatpush.bf16.msra.mxu3 %v6055_v3 }
0x2b15   :  { %v7039_v51 = vpop.eup %7038  ;;  %7042 = vrcp.f32 %v8160_v36  ;;  %4064 = vmatpush.bf16.msra.mxu0 %v6063_v61  ;;  %v3807_v20 = vand.u32 2147483648, %v8160_v36  ;;  %v3805_v10 = vand.u32 2147483647, %v8160_v36  ;;  %vm3801_vm12 = vweird.f32 %v8160_v36 }
0x2b16   :  { %v3812_v46 = vmul.f32 %v7039_v51, %v8155_v15  ;;  %4077 = vmatpush.bf16.msrb.mxu1 %v6067_v56  ;;  %v7041_v60 = vpop.eup %7040  ;;  %vm3817_vm4 = vweird.f32 %v7039_v51  ;;  %7044 = vtanh.f32 %v3783_v24  ;;  %v6269_v24 = vld [vmem:[#allocation8 + $0xc0] sm:$0xf] }
0x2b17   :  { %v3827_v17 = vmul.f32 %v7041_v60, %v8158_v22  ;;  %vm3818_vm10 = vmor %vm3816_vm9, %vm3817_vm4  ;;  %v3808_v52 = vor.u32 1.1754944e-38, %v3807_v20  ;;  %vm3806_vm15 = vcmp.eq.f32.partialorder %v3805_v10, 8.507059e+37  ;;  %vm3832_vm0 = vweird.f32 %v7041_v60  ;;  %v6736_v10 = vld [vmem:[#allocation8 + $0xd4] sm:$0xf0] }
0x2b18   :  { %v3813_v53 = vsub.f32 1.0, %v3812_v46  ;;  %v3837_v46 = vand.u32 2147483648, %v8158_v22  ;;  %vm3833_vm2 = vmor %vm3831_vm1, %vm3832_vm0 }
0x2b19   :  { %4065 = vmatpush.bf16.msra.mxu0 %v6047_v9  ;;  %v3828_v63 = vsub.f32 1.0, %v3827_v17 }
0x2b1a   :  { %v3814_v42 = vmul.f32 %v7039_v51, %v3813_v53  ;;  %4078 = vmatpush.bf16.msrb.mxu1 %v6051_v30  ;;  %v3838_v27 = vor.u32 1.1754944e-38, %v3837_v46  ;;  %v6739_v53 = vld [vmem:[#allocation8 + $0xec] sm:$0xf0] }
0x2b1b   :  { %v7043_v8 = vpop.eup %7042  ;;  %v3829_v38 = vmul.f32 %v7041_v60, %v3828_v63  ;;  %v6286_v18 = vor.u32 %v6739_v53, %v6285_v50  ;;  %v6727_v53 = vld [vmem:[#allocation8 + $0x8c] sm:$0xf0] }
0x2b1c   :  { %v3797_v41 = vmul.f32 %v7043_v8, %v8160_v36  ;;  %v3815_v0 = vadd.f32 %v7039_v51, %v3814_v42  ;;  %vm3802_vm11 = vweird.f32 %v7043_v8  ;;  %v7045_v13 = vpop.eup %7044  ;;  %v3835_v36 = vand.u32 2147483647, %v8158_v22  ;;  %v6737_v22 = vld [vmem:[#allocation8 + $0xe4] sm:$0xf] }
0x2b1d   :  { %vm3803_vm14 = vmor %vm3801_vm12, %vm3802_vm11  ;;  %v6290_v39 = vor.u32 %v6737_v22, %v6287_v45  ;;  %4362 = vmatpush.bf16.msrb.mxu2 %v6286_v18  ;;  %v6239_v18 = vld [vmem:[#allocation8 + $0x90] sm:$0xf0]  ;;  %v6245_v45 = vld [vmem:[#allocation8 + $0x88] sm:$0xf] }
0x2b1e   :  { %v3798_v58 = vsub.f32 1.0, %v3797_v41  ;;  %v3819_v14 = vsel %vm3818_vm10, %v7039_v51, %v3815_v0  ;;  %v3830_v51 = vadd.f32 %v7041_v60, %v3829_v38  ;;  %vm3836_vm3 = vcmp.eq.f32.partialorder %v3835_v36, 8.507059e+37  ;;  %4388 = vmatpush.bf16.msra.mxu1 %v6294_v26  ;;  %v6735_v41 = vld [vmem:[#allocation8 + $0xcc] sm:$0xf0]  ;;  %v6733_v0 = vld [vmem:[#allocation8 + $0xc4] sm:$0xf] }
0x2b1f   :  { %v3824_v28 = vsel %vm3821_vm13, %v3823_v16, %v3819_v14  ;;  %4375 = vmatpush.bf16.msrb.mxu0 %v6290_v39  ;;  %v6270_v17 = vor.u32 %v6735_v41, %v6269_v24  ;;  %v6734_v14 = vld [vmem:[#allocation8 + $0xcc] sm:$0xf]  ;;  %v6279_v16 = vld [vmem:[#allocation8 + $0xd8] sm:$0xf0]  ;;  %v6255_v38 = vld [vmem:[#allocation8 + $0xb0] sm:$0xf0]  ;;  %v6246_v39 = vor.u32 %v6728_v54, %v6245_v45 }
0x2b20   :  { %v3799_v19 = vmul.f32 %v7043_v8, %v3798_v58  ;;  %v3842_v40 = vmul.f32 %v3824_v28, %v8129_v33  ;;  %v3834_v61 = vsel %vm3833_vm2, %v7041_v60, %v3830_v51  ;;  %v6295_v60 = vld [vmem:[#allocation8 + $0xf8] sm:$0xf0]  ;;  %v6271_v58 = vld [vmem:[#allocation8 + $0xd0] sm:$0xf0]  ;;  %v6282_v63 = vor.u32 %v6734_v14, %v6279_v16  ;;  %v6729_v28 = vld [vmem:[#allocation8 + $0xa4] sm:$0xf] }
0x2b21   :  { %v3839_v56 = vsel %vm3836_vm3, %v3838_v27, %v3834_v61  ;;  %v6298_v3 = vor.u32 %v6738_v2, %v6295_v60  ;;  %4363 = vmatpush.bf16.msrb.mxu2 %v6270_v17  ;;  %v6258_v46 = vor.u32 %v6729_v28, %v6255_v38  ;;  %v6730_v61 = vld [vmem:[#allocation8 + $0xac] sm:$0xf]  ;;  %v6263_v27 = vld [vmem:[#allocation8 + $0xb8] sm:$0xf0]  ;;  %v6221_v60 = vld [vmem:[#allocation8 + $0x60] sm:$0xf] }
0x2b22   :  { %v3800_v59 = vadd.f32 %v7043_v8, %v3799_v19  ;;  %v6274_v19 = vor.u32 %v6733_v0, %v6271_v58  ;;  %v6266_v50 = vor.u32 %v6730_v61, %v6263_v27  ;;  %v6726_v26 = vld [vmem:[#allocation8 + $0x8c] sm:$0xf]  ;;  %v6247_v2 = vld [vmem:[#allocation8 + $0x98] sm:$0xf0]  ;;  %v6721_v24 = vld [vmem:[#allocation8 + $0x64] sm:$0xf] }
0x2b23   :  { %4401 = vmatpush.bf16.msrb.mxu3 %v6298_v3  ;;  %v6250_v3 = vor.u32 %v6726_v26, %v6247_v2  ;;  %v6223_v0 = vld [vmem:[#allocation8 + $0x70] sm:$0xf0]  ;;  %v6722_v14 = vld [vmem:[#allocation8 + $0x6c] sm:$0xf]  ;;  %v6205_v16 = vld [vmem:[#allocation8 + $0x40] sm:$0xf] }
0x2b24   :  { %v3804_v15 = vsel %vm3803_vm14, %v7043_v8, %v3800_v59  ;;  %4376 = vmatpush.bf16.msrb.mxu0 %v6274_v19  ;;  %v6253_v59 = vld [vmem:[#allocation8 + $0xa0] sm:$0xf]  ;;  %v6226_v19 = vor.u32 %v6721_v24, %v6223_v0  ;;  %v6720_v38 = vld [vmem:[#allocation8 + $0x54] sm:$0xf0]  ;;  %v6715_v27 = vld [vmem:[#allocation8 + $0x2c] sm:$0xf0] }
0x2b25   :  { %v3809_v11 = vsel %vm3806_vm15, %v3808_v52, %v3804_v15  ;;  %v6731_v52 = vld [vmem:[#allocation8 + $0xac] sm:$0xf0]  ;;  %v6189_v61 = vld [vmem:[#allocation8 + $0x20] sm:$0xf]  ;;  %v6714_v45 = vld [vmem:[#allocation8 + $0x2c] sm:$0xf] }
0x2b26   :  { %v3843_v32 = vmul.f32 %v7045_v13, %v3809_v11  ;;  %v6254_v11 = vor.u32 %v6731_v52, %v6253_v59  ;;  %v6717_v59 = vld [vmem:[#allocation8 + $0x44] sm:$0xf]  ;;  %v6711_v2 = vld [vmem:[#allocation8 + $0xc] sm:$0xf0]  ;;  %v6712_v24 = vld [vmem:[#allocation8 + $0x14] sm:$0xf0] }
0x2b27   :  { %4402 = vmatpush.bf16.msrb.mxu3 %v6282_v63  ;;  %v6719_v63 = vld [vmem:[#allocation8 + $0x4c] sm:$0xf0] }
0x2b28   :  { %v8176_v6 = vadd.f32 %v3843_v32, %v3842_v40  ;;  %v6261_v40 = vld [vmem:[#allocation8 + $0xa8] sm:$0xf]  ;;  %v6732_v32 = vld [vmem:[#allocation8 + $0xb4] sm:$0xf0]  ;;  %4364 = vmatpush.bf16.msrb.mxu2 %v6254_v11  ;;  %4377 = vmatpush.bf16.msrb.mxu0 %v6258_v46  ;;  %v6206_v28 = vor.u32 %v6719_v63, %v6205_v16  ;;  %v6215_v46 = vld [vmem:[#allocation8 + $0x58] sm:$0xf0] }
0x2b29   :  { %v6262_v36 = vor.u32 %v6732_v32, %v6261_v40  ;;  %v6213_v11 = vld [vmem:[#allocation8 + $0x48] sm:$0xf] }
0x2b2a   :  { %7046 = vtanh.f32 %v8176_v6 }
0x2b2b   :  { %4403 = vmatpush.bf16.msrb.mxu3 %v6266_v50  ;;  %v6191_v50 = vld [vmem:[#allocation8 + $0x30] sm:$0xf0] }
0x2b2f   :  { %4404 = vmatpush.bf16.msrb.mxu3 %v6250_v3  ;;  %v6175_v3 = vld [vmem:[#allocation8 + $0x10] sm:$0xf0] }
0x2b30   :  { %v7047_v47 = vpop.eup %7046 }
0x2b31   :  { %v8182_v33 = vmul.f32 %v7047_v47, %v3839_v56  ;;  %v6237_v47 = vld [vmem:[#allocation8 + $0x80] sm:$0xf] }
0x2b32   :  { %v6238_v22 = vor.u32 %v6727_v53, %v6237_v47  ;;  %v6713_v47 = vld [vmem:[#allocation8 + $0x24] sm:$0xf] }
0x2b33   :  { %4817 = vadd.xlane.f32.xlu2 %v8182_v33  ;;  %v3852_v1 = vpack.c.bf16 %v8182_v33, %v8182_v33  ;;  %v6194_v54 = vor.u32 %v6713_v47, %v6191_v50 }
0x2b34   :  { %4365 = vmatpush.bf16.msrb.mxu2 %v6238_v22  ;;  %v6197_v22 = vld [vmem:[#allocation8 + $0x28] sm:$0xf] }
0x2b35   :  { %4053 = vmatmul.bf16.vlgmr.msra.gmra.mxu2 %v3852_v1  ;;  %4066 = vmatmul.bf16.vlgmr.msra.gmra.mxu0 %v3852_v1 }
0x2b36   :  { %4079 = vmatmul.bf16.vlgmr.msrb.gmra.mxu1 %v3852_v1  ;;  %4092 = vmatmul.bf16.vlgmr.msra.gmra.mxu3 %v3852_v1 }
0x2bb2   :  { %v4067_v9 = vpop.f32.mrf.mxu0 }
0x2bb3   :  { %v4098_v42 = vadd.f32 %v4067_v9, %v8023_v23  ;;  %v4080_v30 = vpop.f32.mrf.mxu1  ;;  %v6278_v23 = vor.u32 %v6736_v10, %v6277_v37  ;;  %v6724_v37 = vld [vmem:[#allocation8 + $0x74] sm:$0xf0] }
0x2bb4   :  { %v4099_v8 = vadd.f32 %v4080_v30, %v8003_v25 }
0x2bb5   :  { %v6169_v57 = vmul.f32 -1.442695, %v4098_v42  ;;  %4389 = vmatpush.bf16.msra.mxu1 %v6278_v23  ;;  %v6231_v23 = vld [vmem:[#allocation8 + $0x78] sm:$0xf0] }
0x2bb6   :  { %v6170_v20 = vmul.f32 -1.442695, %v4099_v8  ;;  %v6723_v8 = vld [vmem:[#allocation8 + $0x6c] sm:$0xf0] }
0x2bb7   :  { %7048 = vpow2.f32 %v6169_v57  ;;  %v6222_v41 = vor.u32 %v6723_v8, %v6221_v60  ;;  %v6229_v57 = vld [vmem:[#allocation8 + $0x68] sm:$0xf]  ;;  %v6709_v60 = vld [vmem:[#allocation8 + $0x4] sm:$0xf] }
0x2bb8   :  { %7050 = vpow2.f32 %v6170_v20  ;;  %v4054_v25 = vpop.f32.mrf.mxu2  ;;  %v6230_v10 = vor.u32 %v6724_v37, %v6229_v57  ;;  %v6181_v8 = vld [vmem:[#allocation8 + $0x8] sm:$0xf]  ;;  %v6183_v37 = vld [vmem:[#allocation8 + $0x18] sm:$0xf0] }
0x2bb9   :  { %v4097_v15 = vadd.f32 %v4054_v25, %v7993_v4  ;;  %v8190_v13 = vpop.f32.mrf.mxu3  ;;  %v6725_v4 = vld [vmem:[#allocation8 + $0x84] sm:$0xf]  ;;  %4390 = vmatpush.bf16.msra.mxu1 %v6262_v36  ;;  %v6234_v25 = vor.u32 %v6722_v14, %v6231_v23  ;;  %4366 = vmatpush.bf16.msrb.mxu2 %v6222_v41  ;;  %v6214_v36 = vor.u32 %v6720_v38, %v6213_v11 }
0x2bba   :  { %v4069_v51 = vpop.f32.mrf.mxu0  ;;  %v6242_v9 = vor.u32 %v6725_v4, %v6239_v18  ;;  %v6190_v4 = vor.u32 %v6715_v27, %v6189_v61  ;;  %v6716_v18 = vld [vmem:[#allocation8 + $0x34] sm:$0xf0]  ;;  %v6182_v16 = vor.u32 %v6712_v24, %v6181_v8  ;;  %v6767_v8 = vld [vmem:[#allocation8 + $0xcc] sm:$0xf0] }
0x2bbb   :  { %v6168_v56 = vmul.f32 -1.442695, %v4097_v15  ;;  %v4082_v1 = vpop.f32.mrf.mxu1  ;;  %v6207_v15 = vld [vmem:[#allocation8 + $0x50] sm:$0xf0]  ;;  %v6718_v51 = vld [vmem:[#allocation8 + $0x4c] sm:$0xf]  ;;  %4405 = vmatpush.bf16.msrb.mxu3 %v6234_v25  ;;  %v6198_v26 = vor.u32 %v6716_v18, %v6197_v22 }
0x2bbc   :  { %4378 = vmatpush.bf16.msrb.mxu0 %v6242_v9  ;;  %v6210_v32 = vor.u32 %v6717_v59, %v6207_v15  ;;  %v6218_v1 = vor.u32 %v6718_v51, %v6215_v46  ;;  %v6173_v9 = vld [vmem:[#allocation8] sm:$0xf] }
0x2bbd   :  { %v7049_v7 = vpop.eup %7048  ;;  %7052 = vpow2.f32 %v6168_v56  ;;  %4391 = vmatpush.bf16.msra.mxu1 %v6246_v39  ;;  %4367 = vmatpush.bf16.msrb.mxu2 %v6206_v28  ;;  %v6174_v57 = vor.u32 %v6711_v2, %v6173_v9  ;;  %v6771_v2 = vld [vmem:[#allocation8 + $0xec] sm:$0xf0] }
0x2bbe   :  { %v7051_v42 = vpop.eup %7050  ;;  %v8192_v30 = vadd.f32 1.0, %v7049_v7  ;;  %v6199_v7 = vld [vmem:[#allocation8 + $0x38] sm:$0xf0] }
0x2bbf   :  { %v8195_v17 = vadd.f32 1.0, %v7051_v42  ;;  %4406 = vmatpush.bf16.msrb.mxu3 %v6218_v1  ;;  %v6202_v42 = vor.u32 %v6714_v45, %v6199_v7 }
0x2bc0   :  { %7054 = vrcp.f32 %v8192_v30  ;;  %v4056_v58 = vpop.f32.mrf.mxu2  ;;  %4379 = vmatpush.bf16.msrb.mxu0 %v6226_v19  ;;  %v4100_v19 = vadd.f32 %v8190_v13, %v8007_v35  ;;  %v4139_v25 = vand.u32 2147483648, %v8192_v30  ;;  %vm4133_vm6 = vweird.f32 %v8192_v30 }
0x2bc1   :  { %v4095_v20 = vpop.f32.mrf.mxu3  ;;  %7056 = vrcp.f32 %v8195_v17  ;;  %4392 = vmatpush.bf16.msra.mxu1 %v6230_v10  ;;  %4368 = vmatpush.bf16.msrb.mxu2 %v6190_v4  ;;  %v6710_v58 = vld [vmem:[#allocation8 + $0xc] sm:$0xf]  ;;  %v6178_v10 = vor.u32 %v6709_v60, %v6175_v3  ;;  %v4137_v35 = vand.u32 2147483647, %v8192_v30  ;;  %v4154_v22 = vand.u32 2147483648, %v8195_v17 }
0x2bc2   :  { %v6186_v59 = vor.u32 %v6710_v58, %v6183_v37  ;;  %vm4148_vm13 = vweird.f32 %v8195_v17  ;;  %v6400_v3 = vld [vmem:[#allocation8 + $0xc0] sm:$0xf]  ;;  %v6763_v58 = vld [vmem:[#allocation8 + $0xac] sm:$0xf0] }
0x2bc3   :  { %v7053_v52 = vpop.eup %7052  ;;  %4407 = vmatpush.bf16.msrb.mxu3 %v6202_v42  ;;  %vm4138_vm9 = vcmp.eq.f32.partialorder %v4137_v35, 8.507059e+37  ;;  %v4155_v45 = vor.u32 1.1754944e-38, %v4154_v22  ;;  %v6401_v24 = vor.u32 %v6767_v8, %v6400_v3  ;;  %v8238_v35 = vpop.xlane.xlu1 %4815  ;;  %v6394_v3 = vld [vmem:[#allocation8 + $0xb8] sm:$0xf0] }
0x2bc4   :  { %v8197_v40 = vadd.f32 1.0, %v7053_v52  ;;  %4380 = vmatpush.bf16.msrb.mxu0 %v6210_v32  ;;  %v4140_v32 = vor.u32 1.1754944e-38, %v4139_v25 }
0x2bc5   :  { %4393 = vmatpush.bf16.msra.mxu1 %v6214_v36  ;;  %4369 = vmatpush.bf16.msrb.mxu2 %v6174_v57  ;;  %v6384_v57 = vld [vmem:[#allocation8 + $0xa0] sm:$0xf] }
0x2bc6   :  { %v8200_v56 = vpop.eup %7054  ;;  %7058 = vrcp.f32 %v8197_v40  ;;  %v4124_v28 = vand.u32 2147483648, %v8197_v40  ;;  %v4122_v11 = vand.u32 2147483647, %v8197_v40  ;;  %vm4118_vm4 = vweird.f32 %v8197_v40 }
0x2bc7   :  { %v4129_v53 = vmul.f32 %v8200_v56, %v8192_v30  ;;  %v7057_v41 = vpop.eup %7056  ;;  %vm4134_vm5 = vweird.f32 %v8200_v56  ;;  %7060 = vtanh.f32 %v4100_v19  ;;  %4408 = vmatpush.bf16.msrb.mxu3 %v6186_v59  ;;  %v6385_v37 = vor.u32 %v6763_v58, %v6384_v57  ;;  %v6759_v19 = vld [vmem:[#allocation8 + $0x8c] sm:$0xf0]  ;;  %v6770_v59 = vld [vmem:[#allocation8 + $0xec] sm:$0xf]  ;;  %v6320_v57 = vld [vmem:[#allocation8 + $0x20] sm:$0xf] }
0x2bc8   :  { %4381 = vmatpush.bf16.msrb.mxu0 %v6194_v54  ;;  %v4144_v63 = vmul.f32 %v7057_v41, %v8195_v17  ;;  %vm8215_vm7 = vmor %vm4133_vm6, %vm4134_vm5  ;;  %v4125_v46 = vor.u32 1.1754944e-38, %v4124_v28  ;;  %vm4123_vm11 = vcmp.eq.f32.partialorder %v4122_v11, 8.507059e+37  ;;  %vm4149_vm12 = vweird.f32 %v7057_v41  ;;  %v6747_v58 = vld [vmem:[#allocation8 + $0x2c] sm:$0xf0] }
0x2bc9   :  { %v4130_v39 = vsub.f32 1.0, %v4129_v53  ;;  %4394 = vmatpush.bf16.msra.mxu1 %v6198_v26  ;;  %vm4150_vm14 = vmor %vm4148_vm13, %vm4149_vm12  ;;  %v6416_v26 = vld [vmem:[#allocation8 + $0xe0] sm:$0xf] }
0x2bca   :  { %v4145_v30 = vsub.f32 1.0, %v4144_v63  ;;  %v6417_v60 = vor.u32 %v6771_v2, %v6416_v26  ;;  %v6772_v63 = vld [vmem:[#allocation8 + $0xf4] sm:$0xf0] }
0x2bcb   :  { %v4131_v0 = vmul.f32 %v8200_v56, %v4130_v39  ;;  %v8232_v39 = vpop.xlane.xlu2 %4817 }
0x2bcc   :  { %v7059_v20 = vpop.eup %7058  ;;  %4382 = vmatpush.bf16.msrb.mxu0 %v6178_v10  ;;  %v4146_v1 = vmul.f32 %v7057_v41, %v4145_v30  ;;  %4679 = vmatpush.bf16.msra.mxu2 %v6417_v60  ;;  %v6755_v30 = vld [vmem:[#allocation8 + $0x6c] sm:$0xf0] }
0x2bcd   :  { %v4114_v14 = vmul.f32 %v7059_v20, %v8197_v40  ;;  %v4132_v23 = vadd.f32 %v8200_v56, %v4131_v0  ;;  %vm4119_vm8 = vweird.f32 %v7059_v20  ;;  %4395 = vmatpush.bf16.msra.mxu1 %v6182_v16  ;;  %v7061_v27 = vpop.eup %7060  ;;  %v4152_v40 = vand.u32 2147483647, %v8195_v17  ;;  %v6424_v16 = vld [vmem:[#allocation8 + $0xe8] sm:$0xf] }
0x2bce   :  { %vm4120_vm10 = vmor %vm4118_vm4, %vm4119_vm8  ;;  %v4147_v4 = vadd.f32 %v7057_v41, %v4146_v1  ;;  %v6425_v28 = vor.u32 %v6772_v63, %v6424_v16  ;;  %v6758_v63 = vld [vmem:[#allocation8 + $0x8c] sm:$0xf] }
0x2bcf   :  { %v4115_v52 = vsub.f32 1.0, %v4114_v14  ;;  %v4136_v38 = vsel %vm8215_vm7, %v8200_v56, %v4132_v23  ;;  %vm4153_vm15 = vcmp.eq.f32.partialorder %v4152_v40, 8.507059e+37  ;;  %v6769_v14 = vld [vmem:[#allocation8 + $0xe4] sm:$0xf]  ;;  %v6418_v23 = vld [vmem:[#allocation8 + $0xf0] sm:$0xf0] }
0x2bd0   :  { %v4141_v36 = vsel %vm4138_vm9, %v4140_v32, %v4136_v38  ;;  %v4151_v18 = vsel %vm4150_vm14, %v7057_v41, %v4147_v4  ;;  %4680 = vmatpush.bf16.msra.mxu2 %v6401_v24  ;;  %v6421_v25 = vor.u32 %v6769_v14, %v6418_v23  ;;  %v6352_v32 = vld [vmem:[#allocation8 + $0x60] sm:$0xf]  ;;  %v6370_v14 = vld [vmem:[#allocation8 + $0x90] sm:$0xf0]  ;;  %v4852_v23 = vpop.xlane.xlu1 %4851 }
0x2bd1   :  { %v4116_v15 = vmul.f32 %v7059_v20, %v4115_v52  ;;  %v4159_v50 = vmul.f32 %v4141_v36, %v8176_v6  ;;  %v4156_v7 = vsel %vm4153_vm15, %v4155_v45, %v4151_v18  ;;  %v6426_v52 = vld [vmem:[#allocation8 + $0xf8] sm:$0xf0]  ;;  %4705 = vmatpush.bf16.msrb.mxu1 %v6425_v28  ;;  %v6765_v36 = vld [vmem:[#allocation8 + $0xc4] sm:$0xf]  ;;  %v6336_v18 = vld [vmem:[#allocation8 + $0x40] sm:$0xf] }
0x2bd2   :  { %4692 = vmatpush.bf16.msra.mxu0 %v6421_v25  ;;  %v6751_v45 = vld [vmem:[#allocation8 + $0x4c] sm:$0xf0]  ;;  %v6760_v25 = vld [vmem:[#allocation8 + $0x94] sm:$0xf0] }
0x2bd3   :  { %v4117_v51 = vadd.f32 %v7059_v20, %v4116_v15  ;;  %v6429_v15 = vor.u32 %v6770_v59, %v6426_v52  ;;  %v6378_v59 = vld [vmem:[#allocation8 + $0x98] sm:$0xf0] }
0x2bd4   :  { %4681 = vmatpush.bf16.msra.mxu2 %v6385_v37  ;;  %v6757_v37 = vld [vmem:[#allocation8 + $0x84] sm:$0xf]  ;;  %v6381_v28 = vor.u32 %v6758_v63, %v6378_v59 }
0x2bd5   :  { %v4121_v61 = vsel %vm4120_vm10, %v7059_v20, %v4117_v51  ;;  %v6368_v20 = vld [vmem:[#allocation8 + $0x80] sm:$0xf]  ;;  %4718 = vmatpush.bf16.msra.mxu3 %v6429_v15  ;;  %v6373_v16 = vor.u32 %v6757_v37, %v6370_v14 }
0x2bd6   :  { %v4126_v47 = vsel %vm4123_vm11, %v4125_v46, %v4121_v61  ;;  %v6369_v10 = vor.u32 %v6759_v19, %v6368_v20  ;;  %v6353_v46 = vor.u32 %v6755_v30, %v6352_v32  ;;  %v6402_v61 = vld [vmem:[#allocation8 + $0xd0] sm:$0xf0]  ;;  %v6304_v15 = vld [vmem:[#allocation8] sm:$0xf] }
0x2bd7   :  { %v4160_v53 = vmul.f32 %v7061_v27, %v4126_v47  ;;  %v6408_v27 = vld [vmem:[#allocation8 + $0xc8] sm:$0xf]  ;;  %v6405_v1 = vor.u32 %v6765_v36, %v6402_v61  ;;  %v4850_v61 = vpop.xlane.xlu0 %4849 }
0x2bd8   :  { %4682 = vmatpush.bf16.msra.mxu2 %v6369_v10  ;;  %v6321_v10 = vor.u32 %v6747_v58, %v6320_v57  ;;  %v6360_v36 = vld [vmem:[#allocation8 + $0x68] sm:$0xf]  ;;  %v6745_v57 = vld [vmem:[#allocation8 + $0x24] sm:$0xf]  ;;  %v6322_v58 = vld [vmem:[#allocation8 + $0x30] sm:$0xf0] }
0x2bd9   :  { %v8226_v56 = vadd.f32 %v4160_v53, %v4159_v50  ;;  %v6768_v50 = vld [vmem:[#allocation8 + $0xd4] sm:$0xf0]  ;;  %v6766_v53 = vld [vmem:[#allocation8 + $0xcc] sm:$0xf]  ;;  %4693 = vmatpush.bf16.msra.mxu0 %v6405_v1  ;;  %v6778_v63 = vld [vmem:[#allocation21 + $0x28] sm:$0xff] }
0x2bda   :  { %v6409_v22 = vor.u32 %v6768_v50, %v6408_v27  ;;  %v4866_v27 = vmul.f32 0.0078125, %v4852_v23  ;;  %v6756_v1 = vld [vmem:[#allocation8 + $0x74] sm:$0xf0]  ;;  %v6754_v50 = vld [vmem:[#allocation8 + $0x6c] sm:$0xf] }
0x2bdb   :  { %7062 = vtanh.f32 %v8226_v56  ;;  %v6330_v23 = vld [vmem:[#allocation8 + $0x38] sm:$0xf0] }
0x2bdc   :  { %4683 = vmatpush.bf16.msra.mxu2 %v6353_v46  ;;  %4706 = vmatpush.bf16.msrb.mxu1 %v6409_v22  ;;  %v6354_v46 = vld [vmem:[#allocation8 + $0x70] sm:$0xf0] }
0x2be1   :  { %v7063_v54 = vpop.eup %7062 }
0x2be2   :  { %v4163_v6 = vmul.f32 %v7063_v54, %v4156_v7  ;;  %v6337_v54 = vor.u32 %v6751_v45, %v6336_v18  ;;  %v6761_v7 = vld [vmem:[#allocation8 + $0xa4] sm:$0xf]  ;;  %v6361_v18 = vor.u32 %v6756_v1, %v6360_v36 }
0x2be4   :  { %4819 = vadd.xlane.f32.xlu2 %v4163_v6  ;;  %v4169_v9 = vpack.c.bf16 %v4163_v6, %v4163_v6  ;;  %4684 = vmatpush.bf16.msra.mxu2 %v6337_v54  ;;  %v6338_v54 = vld [vmem:[#allocation8 + $0x50] sm:$0xf0] }
0x2be6   :  { %4370 = vmatmul.bf16.vlgmr.msrb.gmra.mxu2 %v4169_v9  ;;  %4383 = vmatmul.bf16.vlgmr.msrb.gmra.mxu0 %v4169_v9 }
0x2be7   :  { %4396 = vmatmul.bf16.vlgmr.msra.gmra.mxu1 %v4169_v9  ;;  %4409 = vmatmul.bf16.vlgmr.msrb.gmra.mxu3 %v4169_v9  ;;  %v6392_v9 = vld [vmem:[#allocation8 + $0xa8] sm:$0xf] }
0x2be8   :  { %4685 = vmatpush.bf16.msra.mxu2 %v6321_v10 }
0x2c57   :  { %v4820_v42 = vpop.xlane.xlu2 %4819 }
0x2c58   :  { %v4830_v17 = vmul.f32 0.0078125, %v4820_v42  ;;  %v6764_v42 = vld [vmem:[#allocation8 + $0xb4] sm:$0xf0] }
0x2c59   :  { %v6393_v24 = vor.u32 %v6764_v42, %v6392_v9  ;;  %v6752_v9 = vld [vmem:[#allocation8 + $0x54] sm:$0xf0]  ;;  %v8250_v42 = vadd.f32 1e-05, %v4866_v27 }
0x2c5a   :  { %v8234_v41 = vsub.f32 %v4163_v6, %v4830_v17  ;;  %v6386_v6 = vld [vmem:[#allocation8 + $0xb0] sm:$0xf0]  ;;  %v6762_v17 = vld [vmem:[#allocation8 + $0xac] sm:$0xf]  ;;  %v6777_v27 = vld [vmem:[#allocation21 + $0x20] sm:$0xff] }
0x2c5b   :  { %v6389_v60 = vor.u32 %v6761_v7, %v6386_v6  ;;  %4707 = vmatpush.bf16.msrb.mxu1 %v6393_v24  ;;  %v6344_v7 = vld [vmem:[#allocation8 + $0x48] sm:$0xf]  ;;  %v4865_v6 = vmul.f32 0.0078125, %v4850_v61  ;;  %vm4897_vm14 = vweird.f32 %v8250_v42 }
0x2c5c   :  { %v4846_v0 = vmul.f32 %v8234_v41, %v8234_v41 }
0x2c5d   :  { %4694 = vmatpush.bf16.msra.mxu0 %v6389_v60  ;;  %v8257_v14 = vadd.f32 1e-05, %v4865_v6 }
0x2c5e   :  { %4859 = vadd.xlane.f32.xlu1 %v4846_v0  ;;  %v6397_v0 = vor.u32 %v6762_v17, %v6394_v3  ;;  %v6346_v3 = vld [vmem:[#allocation8 + $0x58] sm:$0xf0] }
0x2c61   :  { %4695 = vmatpush.bf16.msra.mxu0 %v6373_v16 }
0x2c63   :  { %v4384_v13 = vpop.f32.mrf.mxu0 }
0x2c64   :  { %v4415_v11 = vadd.f32 %v4384_v13, %v8025_v44  ;;  %v4397_v38 = vpop.f32.mrf.mxu1  ;;  %v6410_v44 = vld [vmem:[#allocation8 + $0xd8] sm:$0xf0] }
0x2c65   :  { %v4416_v51 = vadd.f32 %v4397_v38, %v8011_v31  ;;  %v6413_v40 = vor.u32 %v6766_v53, %v6410_v44  ;;  %v6753_v38 = vld [vmem:[#allocation8 + $0x64] sm:$0xf]  ;;  %v6780_v53 = vld [vmem:[#allocation21 + $0x38] sm:$0xff]  ;;  %v6362_v44 = vld [vmem:[#allocation8 + $0x78] sm:$0xf0] }
0x2c66   :  { %v6300_v47 = vmul.f32 -1.442695, %v4415_v11  ;;  %v6743_v11 = vld [vmem:[#allocation8 + $0xc] sm:$0xf0]  ;;  %v6365_v45 = vor.u32 %v6754_v50, %v6362_v44 }
0x2c67   :  { %v6301_v4 = vmul.f32 -1.442695, %v4416_v51  ;;  %4719 = vmatpush.bf16.msra.mxu3 %v6413_v40  ;;  %v6305_v51 = vor.u32 %v6743_v11, %v6304_v15  ;;  %v6312_v11 = vld [vmem:[#allocation8 + $0x8] sm:$0xf] }
0x2c68   :  { %7064 = vpow2.f32 %v6300_v47  ;;  %v6357_v47 = vor.u32 %v6753_v38, %v6354_v46  ;;  %v6744_v38 = vld [vmem:[#allocation8 + $0x14] sm:$0xf0] }
0x2c69   :  { %7066 = vpow2.f32 %v6301_v4  ;;  %v4371_v31 = vpop.f32.mrf.mxu2  ;;  %4686 = vmatpush.bf16.msra.mxu2 %v6305_v51  ;;  %v6314_v51 = vld [vmem:[#allocation8 + $0x18] sm:$0xf0]  ;;  %v6313_v50 = vor.u32 %v6744_v38, %v6312_v11 }
0x2c6a   :  { %v4414_v26 = vadd.f32 %v4371_v31, %v8001_v21  ;;  %v8243_v2 = vpop.f32.mrf.mxu3  ;;  %v6376_v21 = vld [vmem:[#allocation8 + $0x88] sm:$0xf]  ;;  %v6749_v31 = vld [vmem:[#allocation8 + $0x44] sm:$0xf]  ;;  %4696 = vmatpush.bf16.msra.mxu0 %v6357_v47  ;;  %v6773_v11 = vld [vmem:[#allocation21] sm:$0xff] }
0x2c6b   :  { %v4386_v8 = vpop.f32.mrf.mxu0  ;;  %4720 = vmatpush.bf16.msra.mxu3 %v6397_v0  ;;  %v6377_v13 = vor.u32 %v6760_v25, %v6376_v21  ;;  %v6341_v17 = vor.u32 %v6749_v31, %v6338_v54  ;;  %v6345_v0 = vor.u32 %v6752_v9, %v6344_v7  ;;  %v6746_v21 = vld [vmem:[#allocation8 + $0x2c] sm:$0xf]  ;;  %v6325_v25 = vor.u32 %v6745_v57, %v6322_v58  ;;  %v6776_v31 = vld [vmem:[#allocation21 + $0x18] sm:$0xff] }
0x2c6c   :  { %v6299_v20 = vmul.f32 -1.442695, %v4414_v26  ;;  %v4399_v19 = vpop.f32.mrf.mxu1  ;;  %v6750_v26 = vld [vmem:[#allocation8 + $0x4c] sm:$0xf]  ;;  %v6333_v15 = vor.u32 %v6746_v21, %v6330_v23  ;;  %v4417_v1 = vadd.f32 %v8243_v2, %v8015_v34 }
0x2c6d   :  { %4708 = vmatpush.bf16.msrb.mxu1 %v6377_v13  ;;  %5063 = vmatpush.bf16.msrb.mxu2 %v6780_v53  ;;  %v6779_v8 = vld [vmem:[#allocation21 + $0x30] sm:$0xff]  ;;  %v6349_v37 = vor.u32 %v6750_v26, %v6346_v3  ;;  %v6748_v19 = vld [vmem:[#allocation8 + $0x34] sm:$0xf0]  ;;  %v6306_v13 = vld [vmem:[#allocation8 + $0x10] sm:$0xf0] }
0x2c6e   :  { %v7065_v52 = vpop.eup %7064  ;;  %7068 = vpow2.f32 %v6299_v20  ;;  %v6328_v20 = vld [vmem:[#allocation8 + $0x28] sm:$0xf]  ;;  %4697 = vmatpush.bf16.msra.mxu0 %v6341_v17 }
0x2c6f   :  { %v7067_v32 = vpop.eup %7066  ;;  %v8245_v30 = vadd.f32 1.0, %v7065_v52  ;;  %4721 = vmatpush.bf16.msra.mxu3 %v6381_v28  ;;  %v6329_v59 = vor.u32 %v6748_v19, %v6328_v20  ;;  %v6741_v52 = vld [vmem:[#allocation8 + $0x4] sm:$0xf]  ;;  %v6775_v57 = vld [vmem:[#allocation21 + $0x10] sm:$0xff] }
0x2c70   :  { %v8248_v4 = vadd.f32 1.0, %v7067_v32  ;;  %v6742_v32 = vld [vmem:[#allocation8 + $0xc] sm:$0xf]  ;;  %v6309_v61 = vor.u32 %v6741_v52, %v6306_v13 }
0x2c71   :  { %7070 = vrcp.f32 %v8245_v30  ;;  %v4373_v22 = vpop.f32.mrf.mxu2  ;;  %4709 = vmatpush.bf16.msrb.mxu1 %v6361_v18  ;;  %5064 = vmatpush.bf16.msrb.mxu2 %v6779_v8  ;;  %v4456_v18 = vand.u32 2147483648, %v8245_v30  ;;  %vm4450_vm1 = vweird.f32 %v8245_v30  ;;  %v4454_v2 = vand.u32 2147483647, %v8245_v30 }
0x2c72   :  { %v4412_v40 = vpop.f32.mrf.mxu3  ;;  %7072 = vrcp.f32 %v8248_v4  ;;  %4698 = vmatpush.bf16.msra.mxu0 %v6325_v25  ;;  %vm4465_vm9 = vweird.f32 %v8248_v4 }
0x2c73   :  { %4722 = vmatpush.bf16.msra.mxu3 %v6365_v45  ;;  %v6317_v40 = vor.u32 %v6742_v32, %v6314_v51  ;;  %v4457_v17 = vor.u32 1.1754944e-38, %v4456_v18  ;;  %vm4455_vm6 = vcmp.eq.f32.partialorder %v4454_v2, 8.507059e+37  ;;  %v4854_v2 = vpop.xlane.xlu1 %4853 }
0x2c74   :  { %v7069_v60 = vpop.eup %7068 }
0x2c75   :  { %v8252_v24 = vadd.f32 1.0, %v7069_v60  ;;  %4710 = vmatpush.bf16.msrb.mxu1 %v6345_v0  ;;  %5065 = vmatpush.bf16.msrb.mxu2 %v6778_v63 }
0x2c76   :  { %4699 = vmatpush.bf16.msra.mxu0 %v6309_v61 }
0x2c77   :  { %v8255_v10 = vpop.eup %7070  ;;  %7074 = vrcp.f32 %v8252_v24  ;;  %4723 = vmatpush.bf16.msra.mxu3 %v6349_v37  ;;  %v4441_v9 = vand.u32 2147483648, %v8252_v24  ;;  %vm4435_vm5 = vweird.f32 %v8252_v24 }
0x2c78   :  { %7076 = vrsqrt.f32 %v8250_v42  ;;  %v4446_v16 = vmul.f32 %v8255_v10, %v8245_v30  ;;  %v8264_v46 = vpop.eup %7072  ;;  %vm4451_vm0 = vweird.f32 %v8255_v10  ;;  %v4439_v30 = vand.u32 2147483647, %v8252_v24 }
0x2c79   :  { %7078 = vrsqrt.f32 %v8257_v14  ;;  %4711 = vmatpush.bf16.msrb.mxu1 %v6329_v59  ;;  %v4461_v45 = vmul.f32 %v8264_v46, %v8248_v4  ;;  %5066 = vmatpush.bf16.msrb.mxu2 %v6777_v27  ;;  %vm8285_vm2 = vmor %vm4450_vm1, %vm4451_vm0  ;;  %v4442_v58 = vor.u32 1.1754944e-38, %v4441_v9  ;;  %vm4466_vm4 = vweird.f32 %v8264_v46 }
0x2c7a   :  { %v4447_v28 = vsub.f32 1.0, %v4446_v16  ;;  %7080 = vtanh.f32 %v4417_v1  ;;  %vm4440_vm8 = vcmp.eq.f32.partialorder %v4439_v30, 8.507059e+37  ;;  %vm4467_vm10 = vmor %vm4465_vm9, %vm4466_vm4  ;;  %v4828_v1 = vmul.f32 0.0078125, %v8238_v35 }
0x2c7b   :  { %4724 = vmatpush.bf16.msra.mxu3 %v6333_v15  ;;  %v4462_v3 = vsub.f32 1.0, %v4461_v45  ;;  %v4471_v15 = vand.u32 2147483648, %v8248_v4  ;;  %vm4887_vm0 = vweird.f32 %v8257_v14  ;;  %v8336_v45 = vld [vmem:[%s8410_s15] ss:$0 sm:$0xff] }
0x2c7c   :  { %v4448_v36 = vmul.f32 %v8255_v10, %v4447_v28 }
0x2c7d   :  { %v7075_v47 = vpop.eup %7074  ;;  %4712 = vmatpush.bf16.msrb.mxu1 %v6313_v50  ;;  %5067 = vmatpush.bf16.msrb.mxu2 %v6776_v31  ;;  %v4463_v23 = vmul.f32 %v8264_v46, %v4462_v3  ;;  %v4867_v31 = vmul.f32 0.0078125, %v4854_v2 }
0x2c7e   :  { %v8269_v53 = vpop.eup %7076  ;;  %v4431_v22 = vmul.f32 %v7075_v47, %v8252_v24  ;;  %v4449_v44 = vadd.f32 %v8255_v10, %v4448_v36  ;;  %vm4436_vm3 = vweird.f32 %v7075_v47  ;;  %v6774_v24 = vld [vmem:[#allocation21 + $0x8] sm:$0xff]  ;;  %v4472_v36 = vor.u32 1.1754944e-38, %v4471_v15 }
0x2c7f   :  { %v8279_v54 = vpop.eup %7078  ;;  %v4892_v7 = vmul.f32 %v8269_v53, %v8250_v42  ;;  %4725 = vmatpush.bf16.msra.mxu3 %v6317_v40  ;;  %vm4437_vm7 = vmor %vm4435_vm5, %vm4436_vm3  ;;  %v4464_v13 = vadd.f32 %v8264_v46, %v4463_v23  ;;  %vm4898_vm12 = vweird.f32 %v8269_v53 }
0x2c80   :  { %v4432_v34 = vsub.f32 1.0, %v4431_v22  ;;  %v4453_v60 = vsel %vm8285_vm2, %v8255_v10, %v4449_v44  ;;  %v4882_v8 = vmul.f32 %v8279_v54, %v8257_v14  ;;  %v7081_v10 = vpop.eup %7080  ;;  %vm4888_vm13 = vweird.f32 %v8279_v54  ;;  %vm4899_vm15 = vmor %vm4897_vm14, %vm4898_vm12  ;;  %v8329_v14 = vld [vmem:[%s8409_s14] ss:$0 sm:$0xff] }
0x2c81   :  { %v4458_v37 = vsel %vm4455_vm6, %v4457_v17, %v4453_v60  ;;  %v4893_v20 = vmul.f32 %v8269_v53, %v4892_v7  ;;  %5068 = vmatpush.bf16.msrb.mxu2 %v6775_v57  ;;  %v4468_v32 = vsel %vm4467_vm10, %v8264_v46, %v4464_v13  ;;  %vm4889_vm1 = vmor %vm4887_vm0, %vm4888_vm13  ;;  %v8319_v44 = vsub.f32 %v8135_v49, %v4828_v1 }
0x2c82   :  { %v4433_v26 = vmul.f32 %v7075_v47, %v4432_v34  ;;  %v4883_v16 = vmul.f32 %v8279_v54, %v4882_v8  ;;  %v4476_v25 = vmul.f32 %v4458_v37, %v8226_v56  ;;  %v4469_v56 = vand.u32 2147483647, %v8248_v4 }
0x2c83   :  { %v4894_v59 = vmul.f32 0.5, %v4893_v20  ;;  %v4844_v18 = vmul.f32 %v8319_v44, %v8319_v44 }
0x2c84   :  { %v4434_v0 = vadd.f32 %v7075_v47, %v4433_v26  ;;  %v4884_v28 = vmul.f32 0.5, %v4883_v16  ;;  %vm4470_vm11 = vcmp.eq.f32.partialorder %v4469_v56, 8.507059e+37 }
0x2c85   :  { %5069 = vmatpush.bf16.msrb.mxu2 %v6774_v24  ;;  %v4895_v38 = vsub.f32 1.5, %v4894_v59 }
0x2c86   :  { %v4438_v19 = vsel %vm4437_vm7, %v7075_v47, %v4434_v0  ;;  %v4885_v51 = vsub.f32 1.5, %v4884_v28  ;;  %v4473_v47 = vsel %vm4470_vm11, %v4472_v36, %v4468_v32 }
0x2c87   :  { %v4443_v21 = vsel %vm4440_vm8, %v4442_v58, %v4438_v19  ;;  %v4896_v27 = vmul.f32 %v8269_v53, %v4895_v38 }
0x2c88   :  { %v4477_v63 = vmul.f32 %v7081_v10, %v4443_v21  ;;  %v4886_v22 = vmul.f32 %v8279_v54, %v4885_v51 }
0x2c89   :  { %5070 = vmatpush.bf16.msrb.mxu2 %v6773_v11  ;;  %v4900_v46 = vsel %vm4899_vm15, %v8269_v53, %v4896_v27 }
0x2c8a   :  { %v8301_v52 = vadd.f32 %v4477_v63, %v4476_v25  ;;  %v4890_v35 = vsel %vm4889_vm1, %v8279_v54, %v4886_v22  ;;  %v4962_v40 = vmul.f32 %v4900_v46, %v8141_v5  ;;  %v4875_v54 = vadd.f32 1e-05, %v4867_v31  ;;  %v8354_v46 = vld [vmem:[%s8412_s17] ss:$0 sm:$0xff]  ;;  %s7379_s17 = smov [#allocation22]  }
0x2c8b   :  { %v4961_v42 = vmul.f32 %v4890_v35, %v8076_v48  ;;  %s5104_s18 = sshll.u32 %s7379_s17, 4  ;;  %s5105_s18 = int_to_ptr.vmem [resolvable:$true] %s5104_s18 }
0x2c8c   :  { %7082 = vtanh.f32 %v8301_v52  ;;  %v4973_v49 = vmul.f32 %v8329_v14, %v4962_v40  ;;  %vm4907_vm3 = vweird.f32 %v4875_v54 }
0x2c8d   :  { %v4972_v53 = vmul.f32 %v8329_v14, %v4961_v42  ;;  %7084 = vrsqrt.f32 %v4875_v54 }
0x2c8e   :  { %v4984_v48 = vadd.f32 %v8336_v45, %v4973_v49 }
0x2c8f   :  { %v4983_v5 = vadd.f32 %v8336_v45, %v4972_v53 }
0x2c91   :  { %v4991_v34 = vpack.c.bf16 %v4984_v48, %v4983_v5 }
0x2c92   :  { %v7083_v61 = vpop.eup %7082 }
0x2c93   :  { %v4480_v50 = vmul.f32 %v7083_v61, %v4473_v47  ;;  %v7085_v6 = vpop.eup %7084 }
0x2c94   :  { %v4902_v30 = vmul.f32 %v7085_v6, %v4875_v54  ;;  %vm4908_vm2 = vweird.f32 %v7085_v6 }
0x2c95   :  { %4821 = vadd.xlane.f32.xlu2 %v4480_v50  ;;  %v4486_v4 = vpack.c.bf16 %v4480_v50, %v4480_v50  ;;  %vm4909_vm5 = vmor %vm4907_vm3, %vm4908_vm2 }
0x2c96   :  { %v4903_v17 = vmul.f32 %v7085_v6, %v4902_v30 }
0x2c97   :  { %4687 = vmatmul.bf16.vlgmr.msra.gmra.mxu2 %v4486_v4  ;;  %4700 = vmatmul.bf16.vlgmr.msra.gmra.mxu0 %v4486_v4 }
0x2c98   :  { %4713 = vmatmul.bf16.vlgmr.msrb.gmra.mxu1 %v4486_v4  ;;  %4726 = vmatmul.bf16.vlgmr.msra.gmra.mxu3 %v4486_v4  ;;  %v4904_v57 = vmul.f32 0.5, %v4903_v17 }
0x2c9a   :  { %v4905_v21 = vsub.f32 1.5, %v4904_v57 }
0x2c9c   :  { %v4906_v59 = vmul.f32 %v7085_v6, %v4905_v21 }
0x2c9d   :  { %4855 = vadd.xlane.f32.xlu2 %v4844_v18 }
0x2c9e   :  { %v4910_v51 = vsel %vm4909_vm5, %v7085_v6, %v4906_v59 }
0x2c9f   :  { %v4963_v47 = vmul.f32 %v4910_v51, %v8146_v29  ;;  %v4829_v51 = vmul.f32 0.0078125, %v8232_v39 }
0x2ca1   :  { %v4974_v40 = vmul.f32 %v8329_v14, %v4963_v47 }
0x2ca3   :  { %v4985_v5 = vadd.f32 %v8336_v45, %v4974_v40 }
0x2ca7   :  { %5071 = vmatmul.bf16.vlgmr.msrb.gmra.mxu2 %v4991_v34 }
0x2d08   :  { %v4822_v7 = vpop.xlane.xlu2 %4821 }
0x2d09   :  { %v4831_v9 = vmul.f32 0.0078125, %v4822_v7 }
0x2d0b   :  { %v8340_v26 = vsub.f32 %v4480_v50, %v4831_v9 }
0x2d0d   :  { %v4847_v60 = vmul.f32 %v8340_v26, %v8340_v26 }
0x2d0f   :  { %4861 = vadd.xlane.f32.xlu2 %v4847_v60 }
0x2d10   :  { %v4856_v3 = vpop.xlane.xlu2 %4855 }
0x2d11   :  { %v4868_v8 = vmul.f32 0.0078125, %v4856_v3 }
0x2d13   :  { %v4876_v0 = vadd.f32 1e-05, %v4868_v8 }
0x2d14   :  { %v4701_v58 = vpop.f32.mrf.mxu0 }
0x2d15   :  { %7086 = vrsqrt.f32 %v4876_v0  ;;  %v4732_v37 = vadd.f32 %v4701_v58, %v8027_v12  ;;  %v4714_v20 = vpop.f32.mrf.mxu1  ;;  %vm4917_vm7 = vweird.f32 %v4876_v0 }
0x2d16   :  { %v4733_v19 = vadd.f32 %v4714_v20, %v8017_v62 }
0x2d17   :  { %v6431_v10 = vmul.f32 -1.442695, %v4732_v37 }
0x2d18   :  { %v6432_v23 = vmul.f32 -1.442695, %v4733_v19 }
0x2d19   :  { %7088 = vpow2.f32 %v6431_v10 }
0x2d1a   :  { %7090 = vpow2.f32 %v6432_v23  ;;  %v4688_v16 = vpop.f32.mrf.mxu2 }
0x2d1b   :  { %v7087_v25 = vpop.eup %7086  ;;  %v4731_v63 = vadd.f32 %v4688_v16, %v8009_v55  ;;  %v4727_v24 = vpop.f32.mrf.mxu3 }
0x2d1c   :  { %v4912_v13 = vmul.f32 %v7087_v25, %v4876_v0  ;;  %v4703_v28 = vpop.f32.mrf.mxu0  ;;  %vm4918_vm6 = vweird.f32 %v7087_v25  ;;  %v4734_v7 = vadd.f32 %v4727_v24, %v8021_v43 }
0x2d1d   :  { %v6430_v15 = vmul.f32 -1.442695, %v4731_v63  ;;  %v4716_v11 = vpop.f32.mrf.mxu1  ;;  %vm4919_vm8 = vmor %vm4917_vm7, %vm4918_vm6 }
0x2d1e   :  { %v4913_v12 = vmul.f32 %v7087_v25, %v4912_v13 }
0x2d1f   :  { %v7089_v56 = vpop.eup %7088  ;;  %7092 = vpow2.f32 %v6430_v15 }
0x2d20   :  { %v7091_v62 = vpop.eup %7090  ;;  %v4914_v38 = vmul.f32 0.5, %v4913_v12  ;;  %v4745_v32 = vadd.f32 1.0, %v7089_v56 }
0x2d21   :  { %v8347_v61 = vadd.f32 1.0, %v7091_v62 }
0x2d22   :  { %v4915_v36 = vsub.f32 1.5, %v4914_v38  ;;  %7094 = vrcp.f32 %v4745_v32  ;;  %v4690_v55 = vpop.f32.mrf.mxu2  ;;  %v4773_v30 = vand.u32 2147483648, %v4745_v32  ;;  %vm4767_vm9 = vweird.f32 %v4745_v32 }
0x2d23   :  { %v4729_v27 = vpop.f32.mrf.mxu3  ;;  %7096 = vrcp.f32 %v8347_v61  ;;  %v4771_v3 = vand.u32 2147483647, %v4745_v32  ;;  %v4788_v11 = vand.u32 2147483648, %v8347_v61  ;;  %vm4782_vm1 = vweird.f32 %v8347_v61 }
0x2d24   :  { %v4916_v1 = vmul.f32 %v7087_v25, %v4915_v36  ;;  %v4774_v20 = vor.u32 1.1754944e-38, %v4773_v30  ;;  %v4786_v12 = vand.u32 2147483647, %v8347_v61  ;;  %v4860_v27 = vpop.xlane.xlu1 %4859 }
0x2d25   :  { %v7093_v50 = vpop.eup %7092  ;;  %vm4772_vm13 = vcmp.eq.f32.partialorder %v4771_v3, 8.507059e+37  ;;  %v4789_v62 = vor.u32 1.1754944e-38, %v4788_v11  ;;  %v4870_v47 = vmul.f32 0.0078125, %v4860_v27 }
0x2d26   :  { %v4744_v22 = vadd.f32 1.0, %v7093_v50  ;;  %v4920_v4 = vsel %vm4919_vm8, %v7087_v25, %v4916_v1  ;;  %vm4787_vm3 = vcmp.eq.f32.partialorder %v4786_v12, 8.507059e+37 }
0x2d27   :  { %v4964_v35 = vmul.f32 %v4920_v4, %v8319_v44  ;;  %v4878_v1 = vadd.f32 1e-05, %v4870_v47 }
0x2d28   :  { %v7095_v42 = vpop.eup %7094  ;;  %7098 = vrcp.f32 %v4744_v22  ;;  %v4756_v8 = vand.u32 2147483647, %v4744_v22  ;;  %v4758_v0 = vand.u32 2147483648, %v4744_v22  ;;  %vm4752_vm12 = vweird.f32 %v4744_v22 }
0x2d29   :  { %v4763_v29 = vmul.f32 %v7095_v42, %v4745_v32  ;;  %v4975_v18 = vmul.f32 %v8329_v14, %v4964_v35  ;;  %v7097_v2 = vpop.eup %7096  ;;  %vm4768_vm4 = vweird.f32 %v7095_v42  ;;  %7100 = vtanh.f32 %v4734_v7 }
0x2d2a   :  { %v5072_v49 = vpop.f32.mrf.mxu2  ;;  %v4778_v60 = vmul.f32 %v7097_v2, %v8347_v61  ;;  %vm4769_vm10 = vmor %vm4767_vm9, %vm4768_vm4  ;;  %v4759_v21 = vor.u32 1.1754944e-38, %v4758_v0  ;;  %vm4757_vm15 = vcmp.eq.f32.partialorder %v4756_v8, 8.507059e+37  ;;  %vm4783_vm0 = vweird.f32 %v7097_v2 }
0x2d2b   :  { %v4764_v53 = vsub.f32 1.0, %v4763_v29  ;;  %v5073_v48 = vadd.f32 %v8354_v46, %v5072_v49  ;;  %v4986_v34 = vadd.f32 %v8336_v45, %v4975_v18  ;;  %vm4784_vm2 = vmor %vm4782_vm1, %vm4783_vm0  ;;  %vm4937_vm6 = vweird.f32 %v4878_v1 }
0x2d2c   :  { %v4779_v19 = vsub.f32 1.0, %v4778_v60 }
0x2d2d   :  { %v4765_v31 = vmul.f32 %v7095_v42, %v4764_v53  ;;  %5092 = vst [vmem:[#allocation22] sm:$0xff] %v5073_v48  ;;  %v4992_v54 = vpack.c.bf16 %v4986_v34, %v4985_v5 }
0x2d2e   :  { %v7099_v44 = vpop.eup %7098  ;;  %v4780_v24 = vmul.f32 %v7097_v2, %v4779_v19 }
0x2d2f   :  { %v4748_v6 = vmul.f32 %v7099_v44, %v4744_v22  ;;  %5076 = vmatmul.bf16.gmra.mxu2 %v4992_v54  ;;  %v4766_v9 = vadd.f32 %v7095_v42, %v4765_v31  ;;  %vm4753_vm11 = vweird.f32 %v7099_v44  ;;  %v7101_v25 = vpop.eup %7100 }
0x2d30   :  { %vm4754_vm14 = vmor %vm4752_vm12, %vm4753_vm11  ;;  %v4781_v15 = vadd.f32 %v7097_v2, %v4780_v24 }
0x2d31   :  { %v4749_v17 = vsub.f32 1.0, %v4748_v6  ;;  %v4770_v43 = vsel %vm4769_vm10, %v7095_v42, %v4766_v9 }
0x2d32   :  { %v5074_v57 = vpop.f32.mrf.mxu2  ;;  %v4775_v23 = vsel %vm4772_vm13, %v4774_v20, %v4770_v43  ;;  %v4785_v56 = vsel %vm4784_vm2, %v7097_v2, %v4781_v15 }
0x2d33   :  { %v4750_v58 = vmul.f32 %v7099_v44, %v4749_v17  ;;  %v5075_v37 = vadd.f32 %v8354_v46, %v5074_v57  ;;  %v4793_v13 = vmul.f32 %v4775_v23, %v8301_v52  ;;  %v4790_v32 = vsel %vm4787_vm3, %v4789_v62, %v4785_v56 }
0x2d34   :  { %v4837_v52 = vsub.f32 %v8182_v33, %v4829_v51 }
0x2d35   :  { %v4751_v10 = vadd.f32 %v7099_v44, %v4750_v58  ;;  %5093 = vst [vmem:[#allocation22 + $0x8] sm:$0xff] %v5075_v37 }
0x2d36   :  { %v4845_v55 = vmul.f32 %v4837_v52, %v4837_v52 }
0x2d37   :  { %v4755_v16 = vsel %vm4754_vm14, %v7099_v44, %v4751_v10 }
0x2d38   :  { %v4760_v63 = vsel %vm4757_vm15, %v4759_v21, %v4755_v16 }
0x2d39   :  { %v4794_v59 = vmul.f32 %v7101_v25, %v4760_v63 }
0x2d3b   :  { %v4795_v28 = vadd.f32 %v4794_v59, %v4793_v13 }
0x2d3d   :  { %7102 = vtanh.f32 %v4795_v28 }
0x2d3e   :  { %7104 = vrsqrt.f32 %v4878_v1 }
0x2d43   :  { %v7103_v38 = vpop.eup %7102 }
0x2d44   :  { %v4797_v36 = vmul.f32 %v7103_v38, %v4790_v32  ;;  %v7105_v4 = vpop.eup %7104 }
0x2d45   :  { %v4932_v29 = vmul.f32 %v7105_v4, %v4878_v1  ;;  %vm4938_vm5 = vweird.f32 %v7105_v4 }
0x2d46   :  { %4823 = vadd.xlane.f32.xlu0 %v4797_v36  ;;  %vm4939_vm7 = vmor %vm4937_vm6, %vm4938_vm5 }
0x2d47   :  { %v4933_v18 = vmul.f32 %v7105_v4, %v4932_v29 }
0x2d49   :  { %v4934_v5 = vmul.f32 0.5, %v4933_v18 }
0x2d4b   :  { %v4935_v34 = vsub.f32 1.5, %v4934_v5 }
0x2d4d   :  { %v4936_v31 = vmul.f32 %v7105_v4, %v4935_v34 }
0x2d4e   :  { %4857 = vadd.xlane.f32.xlu0 %v4845_v55 }
0x2d4f   :  { %v4940_v7 = vsel %vm4939_vm7, %v7105_v4, %v4936_v31 }
0x2d50   :  { %v4966_v30 = vmul.f32 %v4940_v7, %v8234_v41 }
0x2d52   :  { %v4977_v8 = vmul.f32 %v8329_v14, %v4966_v30 }
0x2d54   :  { %v4988_v58 = vadd.f32 %v8336_v45, %v4977_v8 }
0x2d82   :  { %v4862_v43 = vpop.xlane.xlu2 %4861 }
0x2d83   :  { %v4871_v20 = vmul.f32 0.0078125, %v4862_v43 }
0x2d85   :  { %v4879_v19 = vadd.f32 1e-05, %v4871_v20 }
0x2d87   :  { %vm4947_vm11 = vweird.f32 %v4879_v19 }
0x2db2   :  { %v5077_v50 = vpop.f32.mrf.mxu2 }
0x2db3   :  { %v5078_v61 = vadd.f32 %v8354_v46, %v5077_v50 }
0x2db5   :  { %5094 = vst [vmem:[#allocation22 + $0x10] sm:$0xff] %v5078_v61 }
0x2db9   :  { %v4824_v22 = vpop.xlane.xlu0 %4823 }
0x2dba   :  { %v4832_v35 = vmul.f32 0.0078125, %v4824_v22  ;;  %v5079_v40 = vpop.f32.mrf.mxu2 }
0x2dbb   :  { %v5080_v39 = vadd.f32 %v8354_v46, %v5079_v40 }
0x2dbc   :  { %v8373_v42 = vsub.f32 %v4797_v36, %v4832_v35 }
0x2dbd   :  { %5095 = vst [vmem:[#allocation22 + $0x18] sm:$0xff] %v5080_v39 }
0x2dbe   :  { %v4848_v33 = vmul.f32 %v8373_v42, %v8373_v42 }
0x2dc0   :  { %4863 = vadd.xlane.f32.xlu0 %v4848_v33 }
0x2dc1   :  { %v4858_v49 = vpop.xlane.xlu0 %4857 }
0x2dc2   :  { %v4869_v53 = vmul.f32 0.0078125, %v4858_v49 }
0x2dc4   :  { %v4877_v48 = vadd.f32 1e-05, %v4869_v53 }
0x2dc6   :  { %7106 = vrsqrt.f32 %v4877_v48  ;;  %vm4927_vm4 = vweird.f32 %v4877_v48 }
0x2dc7   :  { %7108 = vrsqrt.f32 %v4879_v19 }
0x2dcc   :  { %v7107_v2 = vpop.eup %7106 }
0x2dcd   :  { %v4922_v54 = vmul.f32 %v7107_v2, %v4877_v48  ;;  %vm4928_vm8 = vweird.f32 %v7107_v2  ;;  %v7109_v41 = vpop.eup %7108 }
0x2dce   :  { %vm4929_vm9 = vmor %vm4927_vm4, %vm4928_vm8  ;;  %v4942_v10 = vmul.f32 %v7109_v41, %v4879_v19  ;;  %vm4948_vm10 = vweird.f32 %v7109_v41 }
0x2dcf   :  { %v4923_v44 = vmul.f32 %v7107_v2, %v4922_v54  ;;  %vm4949_vm12 = vmor %vm4947_vm11, %vm4948_vm10 }
0x2dd0   :  { %v4943_v21 = vmul.f32 %v7109_v41, %v4942_v10 }
0x2dd1   :  { %v4924_v6 = vmul.f32 0.5, %v4923_v44 }
0x2dd2   :  { %v4944_v63 = vmul.f32 0.5, %v4943_v21 }
0x2dd3   :  { %v4925_v9 = vsub.f32 1.5, %v4924_v6 }
0x2dd4   :  { %v4945_v24 = vsub.f32 1.5, %v4944_v63 }
0x2dd5   :  { %v4926_v60 = vmul.f32 %v7107_v2, %v4925_v9 }
0x2dd6   :  { %v4946_v13 = vmul.f32 %v7109_v41, %v4945_v24 }
0x2dd7   :  { %v4930_v17 = vsel %vm4929_vm9, %v7107_v2, %v4926_v60 }
0x2dd8   :  { %v4965_v3 = vmul.f32 %v4930_v17, %v4837_v52  ;;  %v4950_v11 = vsel %vm4949_vm12, %v7109_v41, %v4946_v13 }
0x2dd9   :  { %v4967_v62 = vmul.f32 %v4950_v11, %v8340_v26 }
0x2dda   :  { %v4976_v0 = vmul.f32 %v8329_v14, %v4965_v3 }
0x2ddb   :  { %v4978_v36 = vmul.f32 %v8329_v14, %v4967_v62 }
0x2ddc   :  { %v4987_v57 = vadd.f32 %v8336_v45, %v4976_v0 }
0x2ddd   :  { %v4989_v55 = vadd.f32 %v8336_v45, %v4978_v36 }
0x2dde   :  { %v4993_v37 = vpack.c.bf16 %v4988_v58, %v4987_v57 }
0x2de0   :  { %5081 = vmatmul.bf16.gmra.mxu2 %v4993_v37 }
0x2e33   :  { %v4864_v23 = vpop.xlane.xlu0 %4863 }
0x2e34   :  { %v4872_v16 = vmul.f32 0.0078125, %v4864_v23 }
0x2e36   :  { %v4880_v25 = vadd.f32 1e-05, %v4872_v16 }
0x2e38   :  { %7110 = vrsqrt.f32 %v4880_v25  ;;  %vm4957_vm14 = vweird.f32 %v4880_v25 }
0x2e3e   :  { %v7111_v59 = vpop.eup %7110 }
0x2e3f   :  { %v4952_v28 = vmul.f32 %v7111_v59, %v4880_v25  ;;  %vm4958_vm13 = vweird.f32 %v7111_v59 }
0x2e40   :  { %vm4959_vm15 = vmor %vm4957_vm14, %vm4958_vm13 }
0x2e41   :  { %v4953_v15 = vmul.f32 %v7111_v59, %v4952_v28 }
0x2e43   :  { %v4954_v12 = vmul.f32 0.5, %v4953_v15 }
0x2e45   :  { %v4955_v56 = vsub.f32 1.5, %v4954_v12 }
0x2e47   :  { %v4956_v38 = vmul.f32 %v7111_v59, %v4955_v56 }
0x2e49   :  { %v4960_v32 = vsel %vm4959_vm15, %v7111_v59, %v4956_v38 }
0x2e4a   :  { %v4968_v51 = vmul.f32 %v4960_v32, %v8373_v42 }
0x2e4c   :  { %v4979_v52 = vmul.f32 %v8329_v14, %v4968_v51 }
0x2e4e   :  { %v4990_v27 = vadd.f32 %v8336_v45, %v4979_v52 }
0x2e50   :  { %v4994_v47 = vpack.c.bf16 %v4990_v27, %v4989_v55 }
0x2e52   :  { %5086 = vmatmul.bf16.gmra.mxu2 %v4994_v47 }
0x2e63   :  { %v5082_v1 = vpop.f32.mrf.mxu2 }
0x2e64   :  { %v5083_v50 = vadd.f32 %v8354_v46, %v5082_v1 }
0x2e66   :  { %5096 = vst [vmem:[#allocation22 + $0x20] sm:$0xff] %v5083_v50 }
0x2e6b   :  { %v5084_v26 = vpop.f32.mrf.mxu2 }
0x2e6c   :  { %v5085_v61 = vadd.f32 %v8354_v46, %v5084_v26 }
0x2e6e   :  { %5097 = vst [vmem:[#allocation22 + $0x28] sm:$0xff] %v5085_v61 }
0x2ed5   :  { %v5087_v22 = vpop.f32.mrf.mxu2 }
0x2ed6   :  { %v5088_v4 = vadd.f32 %v8354_v46, %v5087_v22 }
0x2ed8   :  { %5098 = vst [vmem:[#allocation22 + $0x30] sm:$0xff] %v5088_v4 }
0x2edd   :  { %v5089_v14 = vpop.f32.mrf.mxu2 }
0x2ede   :  { %v5090_v45 = vadd.f32 %v8354_v46, %v5089_v14 }
0x2ee0   :  { %5099 = vst [vmem:[#allocation22 + $0x38] sm:$0xff] %v5090_v45 }
0x2ee1   :  { %5112 = dma.vmem_to_hbm [thread:$0]  %s5105_s18, 1024, %s5107_s3, [#allocation12], %s7380_s19, %s7380_s19, %s7381_s23  }
0x2ee2   :  { %7364 = dma.done.wait [#allocation12], 1024  }
0x2ee3   :  { %7365 = vsyncadd [#allocation12], 4294966272 }
0x2ee4   :  { %5117 = vsyncpa [#allocation11], 1 }
0x2ee5   :  { %5118 = vsyncpa [#allocation14], 1 }
0x2ee6   :  { %5119 = vsyncpa [#allocation17], 1 }
0x2ee7   :  { %5120 = vsyncpa [#allocation20], 1 }
0x2ee8   :  { %5121 = vsyncpa [#allocation12], 1 }
0x2ee9   :  { %5122 = vsyncmov [#allocation9] }
0x2eec   :  { %s5123_s25 = vpop.sfrf %5122 }
0x2eed   :  { %p6465_p0 = scmp.ne.s32.totalorder %s5123_s25, 0 }
0x2eef   :  { %5127 = shalt.err (%p6465_p0)  }
0x2ef0   :  { %5129 = vsyncmov [#allocation9 + $0x1] }
0x2ef3   :  { %s5130_s4 = vpop.sfrf %5129 }
0x2ef4   :  { %p6466_p1 = scmp.ne.s32.totalorder %s5130_s4, 0 }
0x2ef6   :  { %5134 = shalt.err (%p6466_p1)  }

</bundles_post_ra>
